<compile_context>
chip_gen: v6e
topology: v6e:2x2x1
jax: 0.10.0
libtpu: 0.0.40
codegen_flags: <defaults>
</compile_context>

<pallas_src>
import functools

import jax
import jax.numpy as jnp
from jax.experimental import pallas as pl
from jax.experimental.pallas import tpu as pltpu


def _round_up(x, m):
    return (x + m - 1) // m * m


def _vmem_limit(block_bytes):
    """Scoped-VMEM request: 2x (double buffering) + headroom, capped at 48 MiB."""
    return int(min(48 << 20, 2 * block_bytes + (16 << 20)))


# ----------------------------------------------------------------------------
# Pallas kernels
# ----------------------------------------------------------------------------
def _gemm_bias_relu_kernel(x_ref, w_ref, b_ref, o_ref, acc_ref):
    """o = relu(x @ w + b); accumulated over the K grid axis in a f32 scratch."""
    @pl.when(pl.program_id(2) == 0)
    def _init():
        acc_ref[...] = jnp.zeros_like(acc_ref)

    acc_ref[...] += jnp.dot(x_ref[...], w_ref[...],
                            preferred_element_type=jnp.float32)

    @pl.when(pl.program_id(2) == pl.num_programs(2) - 1)
    def _finalize():
        o_ref[...] = jnp.maximum(acc_ref[...] + b_ref[...], 0.0).astype(o_ref.dtype)


def _fused_fc_kernel(x_ref, w1_ref, b1_ref, w2_ref, b2_ref, o_ref, *, n_valid):
    """o = softmax(relu(x @ w1 + b1) @ w2 + b2); lanes >= n_valid are padding."""
    h = jnp.dot(x_ref[...], w1_ref[...], preferred_element_type=jnp.float32)
    h = jnp.maximum(h + b1_ref[...], 0.0)
    logits = jnp.dot(h.astype(w2_ref.dtype), w2_ref[...],
                     preferred_element_type=jnp.float32)
    logits = logits + b2_ref[...]
    lane = jax.lax.broadcasted_iota(jnp.int32, logits.shape, 1)
    logits = jnp.where(lane < n_valid, logits, jnp.float32(-1e30))
    m = jnp.max(logits, axis=-1, keepdims=True)
    e = jnp.exp(logits - m)
    denom = jnp.sum(e, axis=-1, keepdims=True)
    o_ref[...] = (e * pl.reciprocal(denom, approx=True)).astype(o_ref.dtype)


# ----------------------------------------------------------------------------
# Pallas wrappers
# ----------------------------------------------------------------------------
def gemm_bias_relu(x, w, b, *, tm=512, tk=None, out_dtype=jnp.bfloat16):
    """Tiled Pallas GEMM: relu(x @ w + b).  N must be a multiple of 128."""
    M, K = x.shape
    K2, N = w.shape
    assert K == K2 and N % 128 == 0
    tn = 128
    if tk is None:
        tk = K                    # K fits one VMEM tile for this model (9 / 1152)
    assert K % tk == 0
    tm = min(tm, _round_up(M, 8))
    Mp = _round_up(M, tm)
    if Mp != M:
        x = jnp.pad(x, ((0, Mp - M), (0, 0)))
    b2d = b.reshape(1, N).astype(jnp.float32)

    block_bytes = (tm * tk * 2 + tk * tn * 2 + tn * 4
                   + tm * tn * jnp.dtype(out_dtype).itemsize + tm * tn * 4)

    out = pl.pallas_call(
        _gemm_bias_relu_kernel,
        out_shape=jax.ShapeDtypeStruct((Mp, N), out_dtype),
        grid=(Mp // tm, N // tn, K // tk),
        in_specs=[
            pl.BlockSpec((tm, tk), lambda i, j, k: (i, k)),
            pl.BlockSpec((tk, tn), lambda i, j, k: (k, j)),
            pl.BlockSpec((1, tn), lambda i, j, k: (0, j)),
        ],
        out_specs=pl.BlockSpec((tm, tn), lambda i, j, k: (i, j)),
        scratch_shapes=[pltpu.VMEM((tm, tn), jnp.float32)],
        compiler_params=pltpu.CompilerParams(
            dimension_semantics=("parallel", "parallel", "arbitrary"),
            vmem_limit_bytes=_vmem_limit(block_bytes),
        ),
    )(x.astype(jnp.bfloat16), w.astype(jnp.bfloat16), b2d)
    return out[:M] if Mp != M else out


def fused_fc_softmax(x, w1, b1, w2, b2, *, n_valid, tm=256):
    """softmax(relu(x @ w1 + b1) @ w2 + b2) in one pallas_call (lane-padded N)."""
    M, K1 = x.shape
    K1b, H = w1.shape
    Hb, N = w2.shape
    assert K1 == K1b and H == Hb and H % 128 == 0 and N % 128 == 0
    tm = min(tm, _round_up(M, 8))
    Mp = _round_up(M, tm)
    if Mp != M:
        x = jnp.pad(x, ((0, Mp - M), (0, 0)))
    b1_2d = b1.reshape(1, H).astype(jnp.float32)
    b2_2d = b2.reshape(1, N).astype(jnp.float32)

    block_bytes = (tm * K1 * 2 + K1 * H * 2 + H * 4
                   + H * N * 2 + N * 4 + tm * N * 4)

    out = pl.pallas_call(
        functools.partial(_fused_fc_kernel, n_valid=n_valid),
        out_shape=jax.ShapeDtypeStruct((Mp, N), jnp.float32),
        grid=(Mp // tm,),
        in_specs=[
            pl.BlockSpec((tm, K1), lambda i: (i, 0)),
            pl.BlockSpec((K1, H), lambda i: (0, 0)),
            pl.BlockSpec((1, H), lambda i: (0, 0)),
            pl.BlockSpec((H, N), lambda i: (0, 0)),
            pl.BlockSpec((1, N), lambda i: (0, 0)),
        ],
        out_specs=pl.BlockSpec((tm, N), lambda i: (i, 0)),
        compiler_params=pltpu.CompilerParams(
            dimension_semantics=("parallel",),
            vmem_limit_bytes=_vmem_limit(block_bytes),
        ),
    )(x.astype(jnp.bfloat16), w1.astype(jnp.bfloat16), b1_2d,
      w2.astype(jnp.bfloat16), b2_2d)
    return out[:M] if Mp != M else out


# ----------------------------------------------------------------------------
# im2col glue (plain JAX, layout-only), NHWC
# ----------------------------------------------------------------------------
def _im2col_nhwc(x_nhwc, kh, kw, stride, pad):
    """(N,H,W,C) -> (N*OH*OW, KH*KW*C); feature axis ordered (KH, KW, C)."""
    if pad:
        x_nhwc = jnp.pad(x_nhwc, ((0, 0), (pad, pad), (pad, pad), (0, 0)))
    n, h, w, c = x_nhwc.shape
    oh = (h - kh) // stride + 1
    ow = (w - kw) // stride + 1
    cols = []
    for i in range(kh):
        for j in range(kw):
            cols.append(x_nhwc[:, i:i + stride * oh:stride,
                               j:j + stride * ow:stride, :])
    patches = jnp.stack(cols, axis=3).reshape(n, oh, ow, kh * kw * c)
    return patches.reshape(n * oh * ow, kh * kw * c), oh, ow


# ----------------------------------------------------------------------------
# Parameters: raw (PyTorch layout) + one-time prepared (NHWC, bf16, lane-padded)
# ----------------------------------------------------------------------------
def init_raw_params(key):
    ks = jax.random.split(key, 8)
    return {
        "conv1_w": jax.random.normal(ks[0], (128, 1, 3, 3), jnp.float32) * 0.10,
        "conv1_b": jax.random.normal(ks[1], (128,), jnp.float32) * 0.01,
        "conv2_w": jax.random.normal(ks[2], (64, 128, 3, 3), jnp.float32) * 0.03,
        "conv2_b": jax.random.normal(ks[3], (64,), jnp.float32) * 0.01,
        "fc1_w": jax.random.normal(ks[4], (128, 64 * 13 * 13), jnp.float32) * 0.01,
        "fc1_b": jax.random.normal(ks[5], (128,), jnp.float32) * 0.01,
        "fc2_w": jax.random.normal(ks[6], (10, 128), jnp.float32) * 0.05,
        "fc2_b": jax.random.normal(ks[7], (10,), jnp.float32) * 0.01,
    }


def prepare_params(raw):
    """One-time weight layout prep: im2col (KH,KW,Cin) order, Cout padded to 128."""
    bf16 = jnp.bfloat16
    # conv1: (128,1,3,3) -> (KH,KW,Cin,Cout) -> (9, 128)
    w1 = jnp.transpose(raw["conv1_w"], (2, 3, 1, 0)).reshape(9, 128)
    # conv2: (64,128,3,3) -> (KH,KW,Cin,Cout) -> (1152, 64) -> pad Cout to 128
    w2 = jnp.transpose(raw["conv2_w"], (2, 3, 1, 0)).reshape(9 * 128, 64)
    w2 = jnp.pad(w2, ((0, 0), (0, 64)))
    b2 = jnp.pad(raw["conv2_b"], (0, 64))
    # fc1: columns are NCHW-flatten order (c,h,w); re-order to NHWC-flatten
    # (h,w,c) with c padded 64 -> 128 to match the padded conv2 output.
    w3 = raw["fc1_w"].reshape(128, 64, 13, 13)            # (out, c, h, w)
    w3 = jnp.transpose(w3, (2, 3, 1, 0))                  # (h, w, c, out)
    w3 = jnp.pad(w3, ((0, 0), (0, 0), (0, 64), (0, 0)))   # pad c -> 128 (zeros)
    w3 = w3.reshape(13 * 13 * 128, 128)
    # fc2: (10,128) -> (128,10) -> pad out classes 10 -> 128 lanes
    w4 = jnp.pad(raw["fc2_w"].T, ((0, 0), (0, 118)))
    b4 = jnp.pad(raw["fc2_b"], (0, 118))
    return {
        "w1": w1.astype(bf16), "b1": raw["conv1_b"].astype(jnp.float32),
        "w2": w2.astype(bf16), "b2": b2.astype(jnp.float32),
        "w3": w3.astype(bf16), "b3": raw["fc1_b"].astype(jnp.float32),
        "w4": w4.astype(bf16), "b4": b4.astype(jnp.float32),
    }


# ----------------------------------------------------------------------------
# Model_C forward (inference)
# ----------------------------------------------------------------------------
def model_c_forward(params, x_nchw):
    n = x_nchw.shape[0]
    x = jnp.transpose(x_nchw, (0, 2, 3, 1)).astype(jnp.bfloat16)     # NHWC

    # conv1: 1 -> 128, k3 s1 p1, ReLU              (28x28 -> 28x28)
    p1, oh1, ow1 = _im2col_nhwc(x, 3, 3, stride=1, pad=1)            # (N*784, 9)
    y1 = gemm_bias_relu(p1, params["w1"], params["b1"], tm=512)      # (N*784, 128) bf16
    y1 = y1.reshape(n, oh1, ow1, 128)                                # NHWC, no transpose

    # conv2: 128 -> 64 (zero-padded to 128 lanes), k3 s2 p0, ReLU  (28x28 -> 13x13)
    p2, oh2, ow2 = _im2col_nhwc(y1, 3, 3, stride=2, pad=0)           # (N*169, 1152)
    y2 = gemm_bias_relu(p2, params["w2"], params["b2"], tm=512)      # (N*169, 128) bf16

    # dropout1 / dropout2: eval-mode identity

    # flatten (NHWC order; fc1 weight columns were permuted to match at prep time)
    flat = y2.reshape(n, oh2 * ow2 * 128)                            # (N, 21632)

    # fc1 + ReLU + fc2 + softmax, fused in one Pallas call (10 valid classes)
    probs = fused_fc_softmax(flat, params["w3"], params["b3"],
                             params["w4"], params["b4"], n_valid=10)
    return probs[:, :10]


# ----------------------------------------------------------------------------
# Pure-JAX reference (PyTorch semantics, f32) for a correctness sanity check
# ----------------------------------------------------------------------------
def reference_forward(raw, x_nchw):
    y = jax.lax.conv_general_dilated(
        x_nchw, raw["conv1_w"], window_strides=(1, 1), padding=((1, 1), (1, 1)),
        dimension_numbers=("NCHW", "OIHW", "NCHW"))
    y = jax.nn.relu(y + raw["conv1_b"][None, :, None, None])
    y = jax.lax.conv_general_dilated(
        y, raw["conv2_w"], window_strides=(2, 2), padding=((0, 0), (0, 0)),
        dimension_numbers=("NCHW", "OIHW", "NCHW"))
    y = jax.nn.relu(y + raw["conv2_b"][None, :, None, None])
    flat = y.reshape(y.shape[0], -1)
    h = jax.nn.relu(flat @ raw["fc1_w"].T + raw["fc1_b"])
    logits = h @ raw["fc2_w"].T + raw["fc2_b"]
    return jax.nn.softmax(logits, axis=1)


# ----------------------------------------------------------------------------
if __name__ == "__main__":
    # Input shape fixed by the architecture: fc1 = 64*13*13 implies 1x28x28 input.
    batch = 2
    x = jax.random.normal(jax.random.PRNGKey(0), (batch, 1, 28, 28), jnp.float32)

    raw = init_raw_params(jax.random.PRNGKey(42))
    params = prepare_params(raw)

    fwd = jax.jit(model_c_forward)
    out = jax.block_until_ready(fwd(params, x))

    assert out.shape == (batch, 10), out.shape
    assert bool(jnp.all(jnp.isfinite(out)))
    # softmax rows sum to ~1 (approx reciprocal -> loose tolerance)
    assert bool(jnp.allclose(jnp.sum(out, axis=1), 1.0, atol=1e-2))
    # matches the f32 reference to within bf16-GEMM tolerance
    ref = reference_forward(raw, x)
    err = float(jnp.max(jnp.abs(out - ref)))
    assert err < 2e-2, f"max abs error vs reference: {err}"

    print("KERNEL_OK")
</pallas_src>

<mosaic_0001>
module attributes {stable_mosaic.version = 11 : i64} {
  func.func @_gemm_bias_relu_kernel(%arg0: i32, %arg1: i32, %arg2: i32, %arg3: memref<512x9xbf16, #tpu.memory_space<vmem>>, %arg4: memref<9x128xbf16, #tpu.memory_space<vmem>>, %arg5: memref<1x128xf32, #tpu.memory_space<vmem>>, %arg6: memref<512x128xbf16, #tpu.memory_space<vmem>>, %arg7: memref<512x128xf32, #tpu.memory_space<vmem>>) attributes {dimension_semantics = [#tpu.dimension_semantics<parallel>, #tpu.dimension_semantics<parallel>, #tpu.dimension_semantics<arbitrary>], iteration_bounds = array<i64: 4, 1, 1>, scalar_prefetch = 0 : i64, scratch_operands = 1 : i64, tpu.core_type = #tpu.core_type<tc>, window_params = [{transform_indices = @transform_0, window_bounds = array<i64: 512, 9>}, {transform_indices = @transform_1, window_bounds = array<i64: 9, 128>}, {transform_indices = @transform_2, window_bounds = array<i64: 1, 128>}, {transform_indices = @transform_3, window_bounds = array<i64: 512, 128>}]} {
    %c0_i32 = arith.constant 0 : i32
    %0 = arith.cmpi eq, %arg2, %c0_i32 : i32
    %1 = arith.extui %0 : i1 to i32
    %c0_i32_0 = arith.constant 0 : i32
    %2 = arith.cmpi ne, %1, %c0_i32_0 : i32
    scf.if %2 {
      %cst_10 = arith.constant 0.000000e+00 : f32
      %12 = vector.broadcast %cst_10 : f32 to vector<512x128xf32>
      %c0_11 = arith.constant 0 : index
      %c0_12 = arith.constant 0 : index
      %13 = vector.load %arg7[%c0_11, %c0_12] : memref<512x128xf32, #tpu.memory_space<vmem>>, vector<512x128xf32>
      tpu.vector_store %arg7[%c0_11, %c0_12], %12 {strides = array<i32>} : memref<512x128xf32, #tpu.memory_space<vmem>>, vector<512x128xf32>,
    } else {
    }
    %c0 = arith.constant 0 : index
    %c0_1 = arith.constant 0 : index
    %3 = vector.load %arg7[%c0, %c0_1] : memref<512x128xf32, #tpu.memory_space<vmem>>, vector<512x128xf32>
    %c0_2 = arith.constant 0 : index
    %c0_3 = arith.constant 0 : index
    %4 = vector.load %arg3[%c0_2, %c0_3] : memref<512x9xbf16, #tpu.memory_space<vmem>>, vector<512x9xbf16>
    %c0_4 = arith.constant 0 : index
    %c0_5 = arith.constant 0 : index
    %5 = vector.load %arg4[%c0_4, %c0_5] : memref<9x128xbf16, #tpu.memory_space<vmem>>, vector<9x128xbf16>
    %cst = arith.constant dense<0.000000e+00> : vector<512x128xf32>
    %6 = tpu.matmul %4, %5, %cst {dimension_numbers = #tpu.dot_dimension_numbers<[1], [0], [0], [1], [0, 0, 1, 1], [], []>} : vector<512x9xbf16>, vector<9x128xbf16>, vector<512x128xf32> -> vector<512x128xf32>
    %7 = arith.addf %3, %6 : vector<512x128xf32>
    %c0_6 = arith.constant 0 : index
    %c0_7 = arith.constant 0 : index
    %8 = vector.load %arg7[%c0_6, %c0_7] : memref<512x128xf32, #tpu.memory_space<vmem>>, vector<512x128xf32>
    tpu.vector_store %arg7[%c0_6, %c0_7], %7 {strides = array<i32>} : memref<512x128xf32, #tpu.memory_space<vmem>>, vector<512x128xf32>,
    %c0_i32_8 = arith.constant 0 : i32
    %9 = arith.cmpi eq, %arg2, %c0_i32_8 : i32
    %10 = arith.extui %9 : i1 to i32
    %c0_i32_9 = arith.constant 0 : i32
    %11 = arith.cmpi ne, %10, %c0_i32_9 : i32
    scf.if %11 {
      %c0_10 = arith.constant 0 : index
      %c0_11 = arith.constant 0 : index
      %12 = vector.load %arg7[%c0_10, %c0_11] : memref<512x128xf32, #tpu.memory_space<vmem>>, vector<512x128xf32>
      %c0_12 = arith.constant 0 : index
      %c0_13 = arith.constant 0 : index
      %13 = vector.load %arg5[%c0_12, %c0_13] : memref<1x128xf32, #tpu.memory_space<vmem>>, vector<1x128xf32>
      %14 = vector.broadcast %13 : vector<1x128xf32> to vector<512x128xf32>
      %15 = arith.addf %12, %14 : vector<512x128xf32>
      %cst_14 = arith.constant 0.000000e+00 : f32
      %16 = vector.broadcast %cst_14 : f32 to vector<512x128xf32>
      %17 = arith.maximumf %15, %16 : vector<512x128xf32>
      %18 = arith.truncf %17 : vector<512x128xf32> to vector<512x128xbf16>
      %c0_15 = arith.constant 0 : index
      %c0_16 = arith.constant 0 : index
      %19 = vector.load %arg6[%c0_15, %c0_16] : memref<512x128xbf16, #tpu.memory_space<vmem>>, vector<512x128xbf16>
      tpu.vector_store %arg6[%c0_15, %c0_16], %18 {strides = array<i32>} : memref<512x128xbf16, #tpu.memory_space<vmem>>, vector<512x128xbf16>,
    } else {
    }
    return
  }
  func.func @transform_0(%arg0: i32, %arg1: i32, %arg2: i32) -> (i32, i32) {
    %c0_i32 = arith.constant 0 : i32
    return %arg0, %arg2 : i32, i32
  }
  func.func @transform_1(%arg0: i32, %arg1: i32, %arg2: i32) -> (i32, i32) {
    %c0_i32 = arith.constant 0 : i32
    return %arg2, %arg1 : i32, i32
  }
  func.func @transform_2(%arg0: i32, %arg1: i32, %arg2: i32) -> (i32, i32) {
    %c0_i32 = arith.constant 0 : i32
    %c0_i32_0 = arith.constant 0 : i32
    return %c0_i32, %arg1 : i32, i32
  }
  func.func @transform_3(%arg0: i32, %arg1: i32, %arg2: i32) -> (i32, i32) {
    %c0_i32 = arith.constant 0 : i32
    return %arg0, %arg1 : i32, i32
  }
}

module attributes {stable_mosaic.version = 11 : i64} {
  func.func @_gemm_bias_relu_kernel(%arg0: i32, %arg1: i32, %arg2: i32, %arg3: memref<344x1152xbf16, #tpu.memory_space<vmem>>, %arg4: memref<1152x128xbf16, #tpu.memory_space<vmem>>, %arg5: memref<1x128xf32, #tpu.memory_space<vmem>>, %arg6: memref<344x128xbf16, #tpu.memory_space<vmem>>, %arg7: memref<344x128xf32, #tpu.memory_space<vmem>>) attributes {dimension_semantics = [#tpu.dimension_semantics<parallel>, #tpu.dimension_semantics<parallel>, #tpu.dimension_semantics<arbitrary>], iteration_bounds = array<i64: 1, 1, 1>, scalar_prefetch = 0 : i64, scratch_operands = 1 : i64, tpu.core_type = #tpu.core_type<tc>, window_params = [{transform_indices = @transform_0, window_bounds = array<i64: 344, 1152>}, {transform_indices = @transform_1, window_bounds = array<i64: 1152, 128>}, {transform_indices = @transform_2, window_bounds = array<i64: 1, 128>}, {transform_indices = @transform_3, window_bounds = array<i64: 344, 128>}]} {
    %c0_i32 = arith.constant 0 : i32
    %0 = arith.cmpi eq, %arg2, %c0_i32 : i32
    %1 = arith.extui %0 : i1 to i32
    %c0_i32_0 = arith.constant 0 : i32
    %2 = arith.cmpi ne, %1, %c0_i32_0 : i32
    scf.if %2 {
      %cst_10 = arith.constant 0.000000e+00 : f32
      %12 = vector.broadcast %cst_10 : f32 to vector<344x128xf32>
      %c0_11 = arith.constant 0 : index
      %c0_12 = arith.constant 0 : index
      %13 = vector.load %arg7[%c0_11, %c0_12] : memref<344x128xf32, #tpu.memory_space<vmem>>, vector<344x128xf32>
      tpu.vector_store %arg7[%c0_11, %c0_12], %12 {strides = array<i32>} : memref<344x128xf32, #tpu.memory_space<vmem>>, vector<344x128xf32>,
    } else {
    }
    %c0 = arith.constant 0 : index
    %c0_1 = arith.constant 0 : index
    %3 = vector.load %arg7[%c0, %c0_1] : memref<344x128xf32, #tpu.memory_space<vmem>>, vector<344x128xf32>
    %c0_2 = arith.constant 0 : index
    %c0_3 = arith.constant 0 : index
    %4 = vector.load %arg3[%c0_2, %c0_3] : memref<344x1152xbf16, #tpu.memory_space<vmem>>, vector<344x1152xbf16>
    %c0_4 = arith.constant 0 : index
    %c0_5 = arith.constant 0 : index
    %5 = vector.load %arg4[%c0_4, %c0_5] : memref<1152x128xbf16, #tpu.memory_space<vmem>>, vector<1152x128xbf16>
    %cst = arith.constant dense<0.000000e+00> : vector<344x128xf32>
    %6 = tpu.matmul %4, %5, %cst {dimension_numbers = #tpu.dot_dimension_numbers<[1], [0], [0], [1], [0, 0, 1, 1], [], []>} : vector<344x1152xbf16>, vector<1152x128xbf16>, vector<344x128xf32> -> vector<344x128xf32>
    %7 = arith.addf %3, %6 : vector<344x128xf32>
    %c0_6 = arith.constant 0 : index
    %c0_7 = arith.constant 0 : index
    %8 = vector.load %arg7[%c0_6, %c0_7] : memref<344x128xf32, #tpu.memory_space<vmem>>, vector<344x128xf32>
    tpu.vector_store %arg7[%c0_6, %c0_7], %7 {strides = array<i32>} : memref<344x128xf32, #tpu.memory_space<vmem>>, vector<344x128xf32>,
    %c0_i32_8 = arith.constant 0 : i32
    %9 = arith.cmpi eq, %arg2, %c0_i32_8 : i32
    %10 = arith.extui %9 : i1 to i32
    %c0_i32_9 = arith.constant 0 : i32
    %11 = arith.cmpi ne, %10, %c0_i32_9 : i32
    scf.if %11 {
      %c0_10 = arith.constant 0 : index
      %c0_11 = arith.constant 0 : index
      %12 = vector.load %arg7[%c0_10, %c0_11] : memref<344x128xf32, #tpu.memory_space<vmem>>, vector<344x128xf32>
      %c0_12 = arith.constant 0 : index
      %c0_13 = arith.constant 0 : index
      %13 = vector.load %arg5[%c0_12, %c0_13] : memref<1x128xf32, #tpu.memory_space<vmem>>, vector<1x128xf32>
      %14 = vector.broadcast %13 : vector<1x128xf32> to vector<344x128xf32>
      %15 = arith.addf %12, %14 : vector<344x128xf32>
      %cst_14 = arith.constant 0.000000e+00 : f32
      %16 = vector.broadcast %cst_14 : f32 to vector<344x128xf32>
      %17 = arith.maximumf %15, %16 : vector<344x128xf32>
      %18 = arith.truncf %17 : vector<344x128xf32> to vector<344x128xbf16>
      %c0_15 = arith.constant 0 : index
      %c0_16 = arith.constant 0 : index
      %19 = vector.load %arg6[%c0_15, %c0_16] : memref<344x128xbf16, #tpu.memory_space<vmem>>, vector<344x128xbf16>
      tpu.vector_store %arg6[%c0_15, %c0_16], %18 {strides = array<i32>} : memref<344x128xbf16, #tpu.memory_space<vmem>>, vector<344x128xbf16>,
    } else {
    }
    return
  }
  func.func @transform_0(%arg0: i32, %arg1: i32, %arg2: i32) -> (i32, i32) {
    %c0_i32 = arith.constant 0 : i32
    return %arg0, %arg2 : i32, i32
  }
  func.func @transform_1(%arg0: i32, %arg1: i32, %arg2: i32) -> (i32, i32) {
    %c0_i32 = arith.constant 0 : i32
    return %arg2, %arg1 : i32, i32
  }
  func.func @transform_2(%arg0: i32, %arg1: i32, %arg2: i32) -> (i32, i32) {
    %c0_i32 = arith.constant 0 : i32
    %c0_i32_0 = arith.constant 0 : i32
    return %c0_i32, %arg1 : i32, i32
  }
  func.func @transform_3(%arg0: i32, %arg1: i32, %arg2: i32) -> (i32, i32) {
    %c0_i32 = arith.constant 0 : i32
    return %arg0, %arg1 : i32, i32
  }
}

module attributes {stable_mosaic.version = 11 : i64} {
  func.func @_fused_fc_kernel(%arg0: i32, %arg1: memref<8x21632xbf16, #tpu.memory_space<vmem>>, %arg2: memref<21632x128xbf16, #tpu.memory_space<vmem>>, %arg3: memref<1x128xf32, #tpu.memory_space<vmem>>, %arg4: memref<128x128xbf16, #tpu.memory_space<vmem>>, %arg5: memref<1x128xf32, #tpu.memory_space<vmem>>, %arg6: memref<8x128xf32, #tpu.memory_space<vmem>>) attributes {dimension_semantics = [#tpu.dimension_semantics<parallel>], iteration_bounds = array<i64: 1>, scalar_prefetch = 0 : i64, scratch_operands = 0 : i64, tpu.core_type = #tpu.core_type<tc>, window_params = [{transform_indices = @transform_0, window_bounds = array<i64: 8, 21632>}, {pipeline_mode = #tpu.pipeline_mode<synchronous>, transform_indices = @transform_1, window_bounds = array<i64: 21632, 128>}, {pipeline_mode = #tpu.pipeline_mode<synchronous>, transform_indices = @transform_2, window_bounds = array<i64: 1, 128>}, {pipeline_mode = #tpu.pipeline_mode<synchronous>, transform_indices = @transform_3, window_bounds = array<i64: 128, 128>}, {pipeline_mode = #tpu.pipeline_mode<synchronous>, transform_indices = @transform_4, window_bounds = array<i64: 1, 128>}, {transform_indices = @transform_5, window_bounds = array<i64: 8, 128>}]} {
    %c0 = arith.constant 0 : index
    %c0_0 = arith.constant 0 : index
    %0 = vector.load %arg1[%c0, %c0_0] : memref<8x21632xbf16, #tpu.memory_space<vmem>>, vector<8x21632xbf16>
    %c0_1 = arith.constant 0 : index
    %c0_2 = arith.constant 0 : index
    %1 = vector.load %arg2[%c0_1, %c0_2] : memref<21632x128xbf16, #tpu.memory_space<vmem>>, vector<21632x128xbf16>
    %cst = arith.constant dense<0.000000e+00> : vector<8x128xf32>
    %2 = tpu.matmul %0, %1, %cst {dimension_numbers = #tpu.dot_dimension_numbers<[1], [0], [0], [1], [0, 0, 1, 1], [], []>} : vector<8x21632xbf16>, vector<21632x128xbf16>, vector<8x128xf32> -> vector<8x128xf32>
    %c0_3 = arith.constant 0 : index
    %c0_4 = arith.constant 0 : index
    %3 = vector.load %arg3[%c0_3, %c0_4] : memref<1x128xf32, #tpu.memory_space<vmem>>, vector<1x128xf32>
    %4 = vector.broadcast %3 : vector<1x128xf32> to vector<8x128xf32>
    %5 = arith.addf %2, %4 : vector<8x128xf32>
    %cst_5 = arith.constant 0.000000e+00 : f32
    %6 = vector.broadcast %cst_5 : f32 to vector<8x128xf32>
    %7 = arith.maximumf %5, %6 : vector<8x128xf32>
    %8 = arith.truncf %7 : vector<8x128xf32> to vector<8x128xbf16>
    %c0_6 = arith.constant 0 : index
    %c0_7 = arith.constant 0 : index
    %9 = vector.load %arg4[%c0_6, %c0_7] : memref<128x128xbf16, #tpu.memory_space<vmem>>, vector<128x128xbf16>
    %cst_8 = arith.constant dense<0.000000e+00> : vector<8x128xf32>
    %10 = tpu.matmul %8, %9, %cst_8 {dimension_numbers = #tpu.dot_dimension_numbers<[1], [0], [0], [1], [0, 0, 1, 1], [], []>} : vector<8x128xbf16>, vector<128x128xbf16>, vector<8x128xf32> -> vector<8x128xf32>
    %c0_9 = arith.constant 0 : index
    %c0_10 = arith.constant 0 : index
    %11 = vector.load %arg5[%c0_9, %c0_10] : memref<1x128xf32, #tpu.memory_space<vmem>>, vector<1x128xf32>
    %12 = vector.broadcast %11 : vector<1x128xf32> to vector<8x128xf32>
    %13 = arith.addf %10, %12 : vector<8x128xf32>
    %14 = tpu.iota {dimensions = array<i32: 1>} : vector<8x128xi32>
    %c10_i32 = arith.constant 10 : i32
    %15 = vector.broadcast %c10_i32 : i32 to vector<8x128xi32>
    %16 = arith.cmpi slt, %14, %15 : vector<8x128xi32>
    %cst_11 = arith.constant -1.000000e+30 : f32
    %17 = vector.broadcast %cst_11 : f32 to vector<8x128xf32>
    %18 = arith.select %16, %13, %17 : vector<8x128xi1>, vector<8x128xf32>
    %cst_12 = arith.constant dense<0xFF800000> : vector<8xf32>
    %19 = vector.multi_reduction <maximumf>, %18, %cst_12 [1] : vector<8x128xf32> to vector<8xf32>
    %20 = vector.shape_cast %19 : vector<8xf32> to vector<8x1xf32>
    %21 = vector.broadcast %20 : vector<8x1xf32> to vector<8x128xf32>
    %22 = arith.subf %18, %21 : vector<8x128xf32>
    %23 = math.exp %22 : vector<8x128xf32>
    %cst_13 = arith.constant dense<0.000000e+00> : vector<8xf32>
    %24 = vector.multi_reduction <add>, %23, %cst_13 [1] : vector<8x128xf32> to vector<8xf32>
    %25 = vector.shape_cast %24 : vector<8xf32> to vector<8x1xf32>
    %26 = tpu.reciprocal %25 {approx = true} : vector<8x1xf32> -> vector<8x1xf32>
    %27 = vector.broadcast %26 : vector<8x1xf32> to vector<8x128xf32>
    %28 = arith.mulf %23, %27 : vector<8x128xf32>
    %c0_14 = arith.constant 0 : index
    %c0_15 = arith.constant 0 : index
    %29 = vector.load %arg6[%c0_14, %c0_15] : memref<8x128xf32, #tpu.memory_space<vmem>>, vector<8x128xf32>
    tpu.vector_store %arg6[%c0_14, %c0_15], %28 {strides = array<i32>} : memref<8x128xf32, #tpu.memory_space<vmem>>, vector<8x128xf32>,
    return
  }
  func.func @transform_0(%arg0: i32) -> (i32, i32) {
    %c0_i32 = arith.constant 0 : i32
    %c0_i32_0 = arith.constant 0 : i32
    return %arg0, %c0_i32 : i32, i32
  }
  func.func @transform_1(%arg0: i32) -> (i32, i32) {
    %c0_i32 = arith.constant 0 : i32
    %c0_i32_0 = arith.constant 0 : i32
    %c0_i32_1 = arith.constant 0 : i32
    return %c0_i32, %c0_i32_0 : i32, i32
  }
  func.func @transform_2(%arg0: i32) -> (i32, i32) {
    %c0_i32 = arith.constant 0 : i32
    %c0_i32_0 = arith.constant 0 : i32
    %c0_i32_1 = arith.constant 0 : i32
    return %c0_i32, %c0_i32_0 : i32, i32
  }
  func.func @transform_3(%arg0: i32) -> (i32, i32) {
    %c0_i32 = arith.constant 0 : i32
    %c0_i32_0 = arith.constant 0 : i32
    %c0_i32_1 = arith.constant 0 : i32
    return %c0_i32, %c0_i32_0 : i32, i32
  }
  func.func @transform_4(%arg0: i32) -> (i32, i32) {
    %c0_i32 = arith.constant 0 : i32
    %c0_i32_0 = arith.constant 0 : i32
    %c0_i32_1 = arith.constant 0 : i32
    return %c0_i32, %c0_i32_0 : i32, i32
  }
  func.func @transform_5(%arg0: i32) -> (i32, i32) {
    %c0_i32 = arith.constant 0 : i32
    %c0_i32_0 = arith.constant 0 : i32
    return %arg0, %c0_i32 : i32, i32
  }
}

</mosaic_0001>

<bundles_post_ra>
// kernel: model_c_forward.3
= control target key start
LH: loop header
LB: loop body
LE: loop exit
PB: predicated region body
PF: predicated region fallthrough
CT: control target
= control target key end

     0   :  { %s2379_s12 = smov 0   ;;  %s2381_s13 = smov 0   ;;  %s2591_s0 = inlined_call_operand.vmem [shape: bf16[2048,9], index: 0, kind: input, shape index: {}]   ;;  %s2592_s1 = inlined_call_operand.vmem [shape: bf16[9,128], index: 1, kind: input, shape index: {}]   ;;  %s2593_s2 = inlined_call_operand.vmem [shape: f32[1,128], index: 2, kind: input, shape index: {}]   ;;  %s2594_s3 = inlined_call_operand.vmem [shape: bf16[2048,128], index: 3, kind: output, shape index: {}]  }
   0x1   :  { %s2383_s14 = smov 0  }
   0x2 LB: > { %s32_s15 = sadd.s32 1, %s2352_s13  ;;  %p1783_p0 = scmp.ge.s32.totalorder %s2356_s14, 1  ;;  %s2356_s14 = sphi %s2383_s14, %s13_s14   ;;  %s2352_s13 = sphi %s2381_s13, %s2596_s13   ;;  %s2348_s12 = sphi %s2379_s12, %s2595_s12  }
   0x3   : > { %p34_p1 = scmp.ge.s32.totalorder %s32_s15, 4  ;;  %p188_p2 = scmp.lt.s32.totalorder %s2356_s14, 5 }
   0x5   : > { %s2598_s15 = smov (%p34_p1, %s32_s15), 0  ;;  %p189_p3 = pnand %p1783_p0, %p188_p2 }
   0x6   : > { %s1784_s18 = sshll.u32 (!%p189_p3), %s2348_s12, 6 }
   0x7   : > { %192 = sbr.rel (%p189_p3) target bundleno = 283 (0x11b), region = 32  ;;  %p230_p4 = scmp.lt.s32.totalorder (!%p189_p3), %s1784_s18, 255 }
   0xc   : > { %v2301_v0 = vld [vmem:[%s2592_s1] sm:$0x1f]   ;;  %vm720_vm0 = vcmask 1043456   ;;  %vm721_vm1 = vcmask 1044480   ;;  %v2358_v1 = vmov 65535   ;;  %s2600_s18 = smov (!%p230_p4, %s1784_s18), 255 }
   0xd   : > { %v722_v2 = vsel %vm720_vm0, 4294967295, %v2358_v1  ;;  %s1785_s19 = sshll.u32 %s2600_s18, 2  ;;  %vm623_vm2 = vcmask 72704   ;;  %v2477_v38 = vld [vmem:[%s2593_s2] ss:$0 sm:$0xff] }
   0xe   : > { %v723_v3 = vsel %vm721_vm1, %v722_v2, 0  ;;  %s2408_s22 = scalar_lea.vmem %s2591_s0, %s1785_s19  ;;  %s2491_s27 = scalar_lea.vmem %s2594_s3, %s1785_s19 }
   0xf   : > { %v725_v4 = vand.u32 %v2301_v0, %v723_v3  ;;  %v2302_v5 = vld [vmem:[%s2408_s22] sm:$0xff]   ;;  %v2304_v7 = vld [vmem:[%s2408_s22 + $0x8] sm:$0xff]   ;;  %v2306_v9 = vld [vmem:[%s2408_s22 + $0x10] sm:$0xff]  }
  0x10   : > { %v2303_v6 = vld [vmem:[%s2408_s22 + $0x80] sm:$0xff]   ;;  %2210 = vmatprep.mubr.msk.bf16.mxu0 %vm623_vm2, %v2302_v5  ;;  %v2305_v8 = vld [vmem:[%s2408_s22 + $0x88] sm:$0xff]   ;;  %v2307_v10 = vld [vmem:[%s2408_s22 + $0x90] sm:$0xff]  }
  0x11   : > { %2208 = vmatprep.subr.bf16.mxu0 %v725_v4  ;;  %2274 = vmatprep.subr.bf16.mxu1 %v725_v4  ;;  %v2308_v11 = vld [vmem:[%s2408_s22 + $0x18] sm:$0xff]   ;;  %v2310_v13 = vld [vmem:[%s2408_s22 + $0x20] sm:$0xff]   ;;  %v2312_v15 = vld [vmem:[%s2408_s22 + $0x28] sm:$0xff]  }
  0x12   : > { %2209 = vmatpush3.bf16.msra.mxu0 %v725_v4  ;;  %2275 = vmatpush3.bf16.msra.mxu1 %v725_v4  ;;  %v2309_v12 = vld [vmem:[%s2408_s22 + $0x98] sm:$0xff]   ;;  %v2311_v14 = vld [vmem:[%s2408_s22 + $0xa0] sm:$0xff]   ;;  %v2313_v16 = vld [vmem:[%s2408_s22 + $0xa8] sm:$0xff]  }
  0x13   : > { %2242 = vmatprep.mubr.msk.bf16.mxu1 %vm623_vm2, %v2303_v6  ;;  %v2314_v17 = vld [vmem:[%s2408_s22 + $0x30] sm:$0xff]   ;;  %v2316_v19 = vld [vmem:[%s2408_s22 + $0x38] sm:$0xff]   ;;  %v2318_v21 = vld [vmem:[%s2408_s22 + $0x40] sm:$0xff]  }
  0x14   : > { %v2315_v18 = vld [vmem:[%s2408_s22 + $0xb0] sm:$0xff]   ;;  %v2317_v20 = vld [vmem:[%s2408_s22 + $0xb8] sm:$0xff]   ;;  %v2319_v22 = vld [vmem:[%s2408_s22 + $0xc0] sm:$0xff]  }
  0x15   : > { %2211 = vmatmul.mubr.msk.bf16.vlgmr.msra.gmra.mxu0 %vm623_vm2, %v2304_v7  ;;  %2243 = vmatmul.mubr.msk.bf16.vlgmr.msra.gmra.mxu1 %vm623_vm2, %v2305_v8  ;;  %v2320_v23 = vld [vmem:[%s2408_s22 + $0x48] sm:$0xff]   ;;  %v2322_v25 = vld [vmem:[%s2408_s22 + $0x50] sm:$0xff]   ;;  %v2324_v27 = vld [vmem:[%s2408_s22 + $0x58] sm:$0xff]  }
  0x16   : > { %2214 = vmatprep.mubr.msk.bf16.mxu0 %vm623_vm2, %v2306_v9  ;;  %2246 = vmatprep.mubr.msk.bf16.mxu1 %vm623_vm2, %v2307_v10  ;;  %v2321_v24 = vld [vmem:[%s2408_s22 + $0xc8] sm:$0xff]   ;;  %v2323_v26 = vld [vmem:[%s2408_s22 + $0xd0] sm:$0xff]   ;;  %v2325_v28 = vld [vmem:[%s2408_s22 + $0xd8] sm:$0xff]  }
  0x17   : > { %v2326_v29 = vld [vmem:[%s2408_s22 + $0x60] sm:$0xff]   ;;  %v2328_v31 = vld [vmem:[%s2408_s22 + $0x68] sm:$0xff]   ;;  %v2330_v33 = vld [vmem:[%s2408_s22 + $0x70] sm:$0xff]  }
  0x18   : > { %v2327_v30 = vld [vmem:[%s2408_s22 + $0xe0] sm:$0xff]   ;;  %v2329_v32 = vld [vmem:[%s2408_s22 + $0xe8] sm:$0xff]   ;;  %v2331_v34 = vld [vmem:[%s2408_s22 + $0xf0] sm:$0xff]  }
  0x19   : > { %v2332_v35 = vld [vmem:[%s2408_s22 + $0x78] sm:$0xff]  }
  0x1a   : > { %v2333_v36 = vld [vmem:[%s2408_s22 + $0xf8] sm:$0xff]  }
  0x1d   : > { %2215 = vmatmul.mubr.msk.bf16.gmra.mxu0 %vm623_vm2, %v2308_v11  ;;  %2247 = vmatmul.mubr.msk.bf16.gmra.mxu1 %vm623_vm2, %v2309_v12 }
  0x1e   : > { %2218 = vmatprep.mubr.msk.bf16.mxu0 %vm623_vm2, %v2310_v13  ;;  %2250 = vmatprep.mubr.msk.bf16.mxu1 %vm623_vm2, %v2311_v14 }
  0x25   : > { %2219 = vmatmul.mubr.msk.bf16.gmra.mxu0 %vm623_vm2, %v2312_v15  ;;  %2251 = vmatmul.mubr.msk.bf16.gmra.mxu1 %vm623_vm2, %v2313_v16 }
  0x26   : > { %2222 = vmatprep.mubr.msk.bf16.mxu0 %vm623_vm2, %v2314_v17  ;;  %2254 = vmatprep.mubr.msk.bf16.mxu1 %vm623_vm2, %v2315_v18 }
  0x2d   : > { %2223 = vmatmul.mubr.msk.bf16.gmra.mxu0 %vm623_vm2, %v2316_v19  ;;  %2255 = vmatmul.mubr.msk.bf16.gmra.mxu1 %vm623_vm2, %v2317_v20 }
  0x2e   : > { %2226 = vmatprep.mubr.msk.bf16.mxu0 %vm623_vm2, %v2318_v21  ;;  %2258 = vmatprep.mubr.msk.bf16.mxu1 %vm623_vm2, %v2319_v22 }
  0x35   : > { %2227 = vmatmul.mubr.msk.bf16.gmra.mxu0 %vm623_vm2, %v2320_v23  ;;  %2259 = vmatmul.mubr.msk.bf16.gmra.mxu1 %vm623_vm2, %v2321_v24 }
  0x36   : > { %2230 = vmatprep.mubr.msk.bf16.mxu0 %vm623_vm2, %v2322_v25  ;;  %2262 = vmatprep.mubr.msk.bf16.mxu1 %vm623_vm2, %v2323_v26 }
  0x3d   : > { %2231 = vmatmul.mubr.msk.bf16.gmra.mxu0 %vm623_vm2, %v2324_v27  ;;  %2263 = vmatmul.mubr.msk.bf16.gmra.mxu1 %vm623_vm2, %v2325_v28 }
  0x3e   : > { %2234 = vmatprep.mubr.msk.bf16.mxu0 %vm623_vm2, %v2326_v29  ;;  %2266 = vmatprep.mubr.msk.bf16.mxu1 %vm623_vm2, %v2327_v30 }
  0x45   : > { %2235 = vmatmul.mubr.msk.bf16.gmra.mxu0 %vm623_vm2, %v2328_v31  ;;  %2267 = vmatmul.mubr.msk.bf16.gmra.mxu1 %vm623_vm2, %v2329_v32 }
  0x46   : > { %2238 = vmatprep.mubr.msk.bf16.mxu0 %vm623_vm2, %v2330_v33  ;;  %2270 = vmatprep.mubr.msk.bf16.mxu1 %vm623_vm2, %v2331_v34 }
  0x4d   : > { %2239 = vmatmul.mubr.msk.bf16.gmra.mxu0 %vm623_vm2, %v2332_v35  ;;  %2271 = vmatmul.mubr.msk.bf16.gmra.mxu1 %vm623_vm2, %v2333_v36 }
  0xd5   : > { %v2212_v37 = vpop.f32.mrf.mxu0  ;;  %v2244_v39 = vpop.f32.mrf.mxu1 }
  0xd6   : > { %v1220_v41 = vadd.f32 %v2212_v37, %v2477_v38  ;;  %v1252_v43 = vadd.f32 %v2244_v39, %v2477_v38 }
  0xd7   : > { %v761_v40 = vpop.f32.mrf.mxu0  ;;  %v889_v42 = vpop.f32.mrf.mxu1 }
  0xd8   : > { %v1218_v45 = vadd.f32 %v2477_v38, %v761_v40  ;;  %v1250_v48 = vadd.f32 %v2477_v38, %v889_v42  ;;  %v1284_v51 = vmax.f32 %v1220_v41, 0.0  ;;  %v1316_v55 = vmax.f32 %v1252_v43, 0.0 }
  0xd9   : > { %v2213_v44 = vpop.f32.mrf.mxu0  ;;  %v2245_v47 = vpop.f32.mrf.mxu1 }
  0xda   : > { %v1221_v46 = vadd.f32 %v2213_v44, %v2477_v38  ;;  %v1253_v49 = vadd.f32 %v2245_v47, %v2477_v38  ;;  %v1282_v59 = vmax.f32 %v1218_v45, 0.0  ;;  %v1314_v63 = vmax.f32 %v1250_v48, 0.0 }
  0xdb   : > { %v764_v50 = vpop.f32.mrf.mxu0  ;;  %v892_v54 = vpop.f32.mrf.mxu1 }
  0xdc   : > { %v1285_v52 = vmax.f32 %v1221_v46, 0.0  ;;  %v1219_v53 = vadd.f32 %v2477_v38, %v764_v50  ;;  %v1317_v56 = vmax.f32 %v1253_v49, 0.0  ;;  %v1251_v57 = vadd.f32 %v2477_v38, %v892_v54 }
  0xdd   : > { %v2216_v58 = vpop.f32.mrf.mxu0  ;;  %v2248_v62 = vpop.f32.mrf.mxu1 }
  0xde   : > { %v1992_v60 = vpack.c.bf16 %v1285_v52, %v1284_v51  ;;  %v1283_v61 = vmax.f32 %v1219_v53, 0.0  ;;  %v2072_v0 = vpack.c.bf16 %v1317_v56, %v1316_v55  ;;  %v1315_v1 = vmax.f32 %v1251_v57, 0.0 }
  0xdf   : > { %v777_v2 = vpop.f32.mrf.mxu0  ;;  %v1224_v4 = vadd.f32 %v2216_v58, %v2477_v38  ;;  %v905_v5 = vpop.f32.mrf.mxu1  ;;  %v1256_v7 = vadd.f32 %v2248_v62, %v2477_v38 }
  0xe0   : > { %2144 = vst [vmem:[%s2491_s27 + $0x8] sm:$0xff] %v1992_v60   ;;  %v1987_v3 = vpack.c.bf16 %v1283_v61, %v1282_v59  ;;  %2160 = vst [vmem:[%s2491_s27 + $0x88] sm:$0xff] %v2072_v0   ;;  %v2067_v6 = vpack.c.bf16 %v1315_v1, %v1314_v63  ;;  %v1222_v9 = vadd.f32 %v2477_v38, %v777_v2 }
  0xe1   : > { %v2217_v8 = vpop.f32.mrf.mxu0  ;;  %v2249_v11 = vpop.f32.mrf.mxu1  ;;  %v1254_v12 = vadd.f32 %v2477_v38, %v905_v5  ;;  %v1288_v15 = vmax.f32 %v1224_v4, 0.0  ;;  %v1320_v19 = vmax.f32 %v1256_v7, 0.0 }
  0xe2   : > { %1988 = vst [vmem:[%s2491_s27] sm:$0xff] %v1987_v3   ;;  %v1225_v10 = vadd.f32 %v2217_v8, %v2477_v38  ;;  %2159 = vst [vmem:[%s2491_s27 + $0x80] sm:$0xff] %v2067_v6   ;;  %v1257_v13 = vadd.f32 %v2249_v11, %v2477_v38  ;;  %v1286_v23 = vmax.f32 %v1222_v9, 0.0 }
  0xe3   : > { %v780_v14 = vpop.f32.mrf.mxu0  ;;  %v908_v18 = vpop.f32.mrf.mxu1  ;;  %v1318_v27 = vmax.f32 %v1254_v12, 0.0 }
  0xe4   : > { %v1289_v16 = vmax.f32 %v1225_v10, 0.0  ;;  %v1223_v17 = vadd.f32 %v2477_v38, %v780_v14  ;;  %v1321_v20 = vmax.f32 %v1257_v13, 0.0  ;;  %v1255_v21 = vadd.f32 %v2477_v38, %v908_v18 }
  0xe5   : > { %v2220_v22 = vpop.f32.mrf.mxu0  ;;  %v2252_v26 = vpop.f32.mrf.mxu1 }
  0xe6   : > { %v2002_v24 = vpack.c.bf16 %v1289_v16, %v1288_v15  ;;  %v1287_v25 = vmax.f32 %v1223_v17, 0.0  ;;  %v2082_v28 = vpack.c.bf16 %v1321_v20, %v1320_v19  ;;  %v1319_v29 = vmax.f32 %v1255_v21, 0.0 }
  0xe7   : > { %v793_v30 = vpop.f32.mrf.mxu0  ;;  %v1228_v32 = vadd.f32 %v2220_v22, %v2477_v38  ;;  %v921_v33 = vpop.f32.mrf.mxu1  ;;  %v1260_v35 = vadd.f32 %v2252_v26, %v2477_v38 }
  0xe8   : > { %2146 = vst [vmem:[%s2491_s27 + $0x18] sm:$0xff] %v2002_v24   ;;  %v1997_v31 = vpack.c.bf16 %v1287_v25, %v1286_v23  ;;  %2162 = vst [vmem:[%s2491_s27 + $0x98] sm:$0xff] %v2082_v28   ;;  %v2077_v34 = vpack.c.bf16 %v1319_v29, %v1318_v27  ;;  %v1226_v37 = vadd.f32 %v2477_v38, %v793_v30 }
  0xe9   : > { %v2221_v36 = vpop.f32.mrf.mxu0  ;;  %v2253_v40 = vpop.f32.mrf.mxu1  ;;  %v1258_v41 = vadd.f32 %v2477_v38, %v921_v33  ;;  %v1292_v44 = vmax.f32 %v1228_v32, 0.0  ;;  %v1324_v48 = vmax.f32 %v1260_v35, 0.0 }
  0xea   : > { %2145 = vst [vmem:[%s2491_s27 + $0x10] sm:$0xff] %v1997_v31   ;;  %v1229_v39 = vadd.f32 %v2221_v36, %v2477_v38  ;;  %2161 = vst [vmem:[%s2491_s27 + $0x90] sm:$0xff] %v2077_v34   ;;  %v1261_v42 = vadd.f32 %v2253_v40, %v2477_v38  ;;  %v1290_v52 = vmax.f32 %v1226_v37, 0.0 }
  0xeb   : > { %v796_v43 = vpop.f32.mrf.mxu0  ;;  %v924_v47 = vpop.f32.mrf.mxu1  ;;  %v1322_v56 = vmax.f32 %v1258_v41, 0.0 }
  0xec   : > { %v1293_v45 = vmax.f32 %v1229_v39, 0.0  ;;  %v1227_v46 = vadd.f32 %v2477_v38, %v796_v43  ;;  %v1325_v49 = vmax.f32 %v1261_v42, 0.0  ;;  %v1259_v50 = vadd.f32 %v2477_v38, %v924_v47 }
  0xed   : > { %v2224_v51 = vpop.f32.mrf.mxu0  ;;  %v2256_v55 = vpop.f32.mrf.mxu1 }
  0xee   : > { %v2012_v53 = vpack.c.bf16 %v1293_v45, %v1292_v44  ;;  %v1291_v54 = vmax.f32 %v1227_v46, 0.0  ;;  %v2092_v57 = vpack.c.bf16 %v1325_v49, %v1324_v48  ;;  %v1323_v58 = vmax.f32 %v1259_v50, 0.0 }
  0xef   : > { %v809_v59 = vpop.f32.mrf.mxu0  ;;  %v1232_v61 = vadd.f32 %v2224_v51, %v2477_v38  ;;  %v937_v62 = vpop.f32.mrf.mxu1  ;;  %v1264_v0 = vadd.f32 %v2256_v55, %v2477_v38 }
  0xf0   : > { %2148 = vst [vmem:[%s2491_s27 + $0x28] sm:$0xff] %v2012_v53   ;;  %v2007_v60 = vpack.c.bf16 %v1291_v54, %v1290_v52  ;;  %2164 = vst [vmem:[%s2491_s27 + $0xa8] sm:$0xff] %v2092_v57   ;;  %v2087_v63 = vpack.c.bf16 %v1323_v58, %v1322_v56  ;;  %v1230_v2 = vadd.f32 %v2477_v38, %v809_v59 }
  0xf1   : > { %v2225_v1 = vpop.f32.mrf.mxu0  ;;  %v2257_v4 = vpop.f32.mrf.mxu1  ;;  %v1262_v5 = vadd.f32 %v2477_v38, %v937_v62  ;;  %v1296_v8 = vmax.f32 %v1232_v61, 0.0  ;;  %v1328_v12 = vmax.f32 %v1264_v0, 0.0 }
  0xf2   : > { %2147 = vst [vmem:[%s2491_s27 + $0x20] sm:$0xff] %v2007_v60   ;;  %v1233_v3 = vadd.f32 %v2225_v1, %v2477_v38  ;;  %2163 = vst [vmem:[%s2491_s27 + $0xa0] sm:$0xff] %v2087_v63   ;;  %v1265_v6 = vadd.f32 %v2257_v4, %v2477_v38  ;;  %v1294_v16 = vmax.f32 %v1230_v2, 0.0 }
  0xf3   : > { %v812_v7 = vpop.f32.mrf.mxu0  ;;  %v940_v11 = vpop.f32.mrf.mxu1  ;;  %v1326_v20 = vmax.f32 %v1262_v5, 0.0 }
  0xf4   : > { %v1297_v9 = vmax.f32 %v1233_v3, 0.0  ;;  %v1231_v10 = vadd.f32 %v2477_v38, %v812_v7  ;;  %v1329_v13 = vmax.f32 %v1265_v6, 0.0  ;;  %v1263_v14 = vadd.f32 %v2477_v38, %v940_v11 }
  0xf5   : > { %v2228_v15 = vpop.f32.mrf.mxu0  ;;  %v2260_v19 = vpop.f32.mrf.mxu1 }
  0xf6   : > { %v2022_v17 = vpack.c.bf16 %v1297_v9, %v1296_v8  ;;  %v1295_v18 = vmax.f32 %v1231_v10, 0.0  ;;  %v2102_v21 = vpack.c.bf16 %v1329_v13, %v1328_v12  ;;  %v1327_v22 = vmax.f32 %v1263_v14, 0.0 }
  0xf7   : > { %v825_v23 = vpop.f32.mrf.mxu0  ;;  %v1236_v25 = vadd.f32 %v2228_v15, %v2477_v38  ;;  %v953_v26 = vpop.f32.mrf.mxu1  ;;  %v1268_v28 = vadd.f32 %v2260_v19, %v2477_v38 }
  0xf8   : > { %2150 = vst [vmem:[%s2491_s27 + $0x38] sm:$0xff] %v2022_v17   ;;  %v2017_v24 = vpack.c.bf16 %v1295_v18, %v1294_v16  ;;  %2166 = vst [vmem:[%s2491_s27 + $0xb8] sm:$0xff] %v2102_v21   ;;  %v2097_v27 = vpack.c.bf16 %v1327_v22, %v1326_v20  ;;  %v1234_v30 = vadd.f32 %v2477_v38, %v825_v23 }
  0xf9   : > { %v2229_v29 = vpop.f32.mrf.mxu0  ;;  %v2261_v32 = vpop.f32.mrf.mxu1  ;;  %v1266_v33 = vadd.f32 %v2477_v38, %v953_v26  ;;  %v1300_v36 = vmax.f32 %v1236_v25, 0.0  ;;  %v1332_v41 = vmax.f32 %v1268_v28, 0.0 }
  0xfa   : > { %2149 = vst [vmem:[%s2491_s27 + $0x30] sm:$0xff] %v2017_v24   ;;  %v1237_v31 = vadd.f32 %v2229_v29, %v2477_v38  ;;  %2165 = vst [vmem:[%s2491_s27 + $0xb0] sm:$0xff] %v2097_v27   ;;  %v1269_v34 = vadd.f32 %v2261_v32, %v2477_v38  ;;  %v1298_v45 = vmax.f32 %v1234_v30, 0.0 }
  0xfb   : > { %v828_v35 = vpop.f32.mrf.mxu0  ;;  %v956_v40 = vpop.f32.mrf.mxu1  ;;  %v1330_v49 = vmax.f32 %v1266_v33, 0.0 }
  0xfc   : > { %v1301_v37 = vmax.f32 %v1237_v31, 0.0  ;;  %v1235_v39 = vadd.f32 %v2477_v38, %v828_v35  ;;  %v1333_v42 = vmax.f32 %v1269_v34, 0.0  ;;  %v1267_v43 = vadd.f32 %v2477_v38, %v956_v40 }
  0xfd   : > { %v2232_v44 = vpop.f32.mrf.mxu0  ;;  %v2264_v48 = vpop.f32.mrf.mxu1 }
  0xfe   : > { %v2032_v46 = vpack.c.bf16 %v1301_v37, %v1300_v36  ;;  %v1299_v47 = vmax.f32 %v1235_v39, 0.0  ;;  %v2112_v50 = vpack.c.bf16 %v1333_v42, %v1332_v41  ;;  %v1331_v51 = vmax.f32 %v1267_v43, 0.0 }
  0xff   : > { %v841_v52 = vpop.f32.mrf.mxu0  ;;  %v1240_v54 = vadd.f32 %v2232_v44, %v2477_v38  ;;  %v969_v55 = vpop.f32.mrf.mxu1  ;;  %v1272_v57 = vadd.f32 %v2264_v48, %v2477_v38 }
 0x100   : > { %2152 = vst [vmem:[%s2491_s27 + $0x48] sm:$0xff] %v2032_v46   ;;  %v2027_v53 = vpack.c.bf16 %v1299_v47, %v1298_v45  ;;  %2168 = vst [vmem:[%s2491_s27 + $0xc8] sm:$0xff] %v2112_v50   ;;  %v2107_v56 = vpack.c.bf16 %v1331_v51, %v1330_v49  ;;  %v1238_v59 = vadd.f32 %v2477_v38, %v841_v52 }
 0x101   : > { %v2233_v58 = vpop.f32.mrf.mxu0  ;;  %v2265_v61 = vpop.f32.mrf.mxu1  ;;  %v1270_v62 = vadd.f32 %v2477_v38, %v969_v55  ;;  %v1304_v1 = vmax.f32 %v1240_v54, 0.0  ;;  %v1336_v5 = vmax.f32 %v1272_v57, 0.0 }
 0x102   : > { %2151 = vst [vmem:[%s2491_s27 + $0x40] sm:$0xff] %v2027_v53   ;;  %v1241_v60 = vadd.f32 %v2233_v58, %v2477_v38  ;;  %2167 = vst [vmem:[%s2491_s27 + $0xc0] sm:$0xff] %v2107_v56   ;;  %v1273_v63 = vadd.f32 %v2265_v61, %v2477_v38  ;;  %v1302_v9 = vmax.f32 %v1238_v59, 0.0 }
 0x103   : > { %v844_v0 = vpop.f32.mrf.mxu0  ;;  %v972_v4 = vpop.f32.mrf.mxu1  ;;  %v1334_v13 = vmax.f32 %v1270_v62, 0.0 }
 0x104   : > { %v1305_v2 = vmax.f32 %v1241_v60, 0.0  ;;  %v1239_v3 = vadd.f32 %v2477_v38, %v844_v0  ;;  %v1337_v6 = vmax.f32 %v1273_v63, 0.0  ;;  %v1271_v7 = vadd.f32 %v2477_v38, %v972_v4 }
 0x105   : > { %v2236_v8 = vpop.f32.mrf.mxu0  ;;  %v2268_v12 = vpop.f32.mrf.mxu1 }
 0x106   : > { %v2042_v10 = vpack.c.bf16 %v1305_v2, %v1304_v1  ;;  %v1303_v11 = vmax.f32 %v1239_v3, 0.0  ;;  %v2122_v14 = vpack.c.bf16 %v1337_v6, %v1336_v5  ;;  %v1335_v15 = vmax.f32 %v1271_v7, 0.0 }
 0x107   : > { %v857_v16 = vpop.f32.mrf.mxu0  ;;  %v1244_v18 = vadd.f32 %v2236_v8, %v2477_v38  ;;  %v985_v19 = vpop.f32.mrf.mxu1  ;;  %v1276_v21 = vadd.f32 %v2268_v12, %v2477_v38 }
 0x108   : > { %2154 = vst [vmem:[%s2491_s27 + $0x58] sm:$0xff] %v2042_v10   ;;  %v2037_v17 = vpack.c.bf16 %v1303_v11, %v1302_v9  ;;  %2170 = vst [vmem:[%s2491_s27 + $0xd8] sm:$0xff] %v2122_v14   ;;  %v2117_v20 = vpack.c.bf16 %v1335_v15, %v1334_v13  ;;  %v1242_v23 = vadd.f32 %v2477_v38, %v857_v16 }
 0x109   : > { %v2237_v22 = vpop.f32.mrf.mxu0  ;;  %v2269_v25 = vpop.f32.mrf.mxu1  ;;  %v1274_v26 = vadd.f32 %v2477_v38, %v985_v19  ;;  %v1308_v29 = vmax.f32 %v1244_v18, 0.0  ;;  %v1340_v33 = vmax.f32 %v1276_v21, 0.0 }
 0x10a   : > { %2153 = vst [vmem:[%s2491_s27 + $0x50] sm:$0xff] %v2037_v17   ;;  %v1245_v24 = vadd.f32 %v2237_v22, %v2477_v38  ;;  %2169 = vst [vmem:[%s2491_s27 + $0xd0] sm:$0xff] %v2117_v20   ;;  %v1277_v27 = vadd.f32 %v2269_v25, %v2477_v38  ;;  %v1306_v37 = vmax.f32 %v1242_v23, 0.0 }
 0x10b   : > { %v860_v28 = vpop.f32.mrf.mxu0  ;;  %v988_v32 = vpop.f32.mrf.mxu1  ;;  %v1338_v42 = vmax.f32 %v1274_v26, 0.0 }
 0x10c   : > { %v1309_v30 = vmax.f32 %v1245_v24, 0.0  ;;  %v1243_v31 = vadd.f32 %v2477_v38, %v860_v28  ;;  %v1341_v34 = vmax.f32 %v1277_v27, 0.0  ;;  %v1275_v35 = vadd.f32 %v2477_v38, %v988_v32 }
 0x10d   : > { %v2240_v36 = vpop.f32.mrf.mxu0  ;;  %v2272_v41 = vpop.f32.mrf.mxu1 }
 0x10e   : > { %v2052_v39 = vpack.c.bf16 %v1309_v30, %v1308_v29  ;;  %v1307_v40 = vmax.f32 %v1243_v31, 0.0  ;;  %v2132_v43 = vpack.c.bf16 %v1341_v34, %v1340_v33  ;;  %v1339_v44 = vmax.f32 %v1275_v35, 0.0 }
 0x10f   : > { %v873_v45 = vpop.f32.mrf.mxu0  ;;  %v1248_v47 = vadd.f32 %v2240_v36, %v2477_v38  ;;  %v1001_v48 = vpop.f32.mrf.mxu1  ;;  %v1280_v50 = vadd.f32 %v2272_v41, %v2477_v38 }
 0x110   : > { %2156 = vst [vmem:[%s2491_s27 + $0x68] sm:$0xff] %v2052_v39   ;;  %v2047_v46 = vpack.c.bf16 %v1307_v40, %v1306_v37  ;;  %2172 = vst [vmem:[%s2491_s27 + $0xe8] sm:$0xff] %v2132_v43   ;;  %v2127_v49 = vpack.c.bf16 %v1339_v44, %v1338_v42  ;;  %v1246_v52 = vadd.f32 %v2477_v38, %v873_v45 }
 0x111   : > { %v2241_v51 = vpop.f32.mrf.mxu0  ;;  %v2273_v54 = vpop.f32.mrf.mxu1  ;;  %v1278_v55 = vadd.f32 %v2477_v38, %v1001_v48  ;;  %v1312_v58 = vmax.f32 %v1248_v47, 0.0  ;;  %v1344_v62 = vmax.f32 %v1280_v50, 0.0 }
 0x112   : > { %2155 = vst [vmem:[%s2491_s27 + $0x60] sm:$0xff] %v2047_v46   ;;  %v1249_v53 = vadd.f32 %v2241_v51, %v2477_v38  ;;  %2171 = vst [vmem:[%s2491_s27 + $0xe0] sm:$0xff] %v2127_v49   ;;  %v1281_v56 = vadd.f32 %v2273_v54, %v2477_v38  ;;  %v1310_v1 = vmax.f32 %v1246_v52, 0.0 }
 0x113   : > { %v876_v57 = vpop.f32.mrf.mxu0  ;;  %v1004_v61 = vpop.f32.mrf.mxu1  ;;  %v1342_v4 = vmax.f32 %v1278_v55, 0.0 }
 0x114   : > { %v1313_v59 = vmax.f32 %v1249_v53, 0.0  ;;  %v1247_v60 = vadd.f32 %v2477_v38, %v876_v57  ;;  %v1345_v63 = vmax.f32 %v1281_v56, 0.0  ;;  %v1279_v0 = vadd.f32 %v2477_v38, %v1004_v61 }
 0x116   : > { %v2062_v2 = vpack.c.bf16 %v1313_v59, %v1312_v58  ;;  %v1311_v3 = vmax.f32 %v1247_v60, 0.0  ;;  %v2142_v5 = vpack.c.bf16 %v1345_v63, %v1344_v62  ;;  %v1343_v6 = vmax.f32 %v1279_v0, 0.0 }
 0x118   : > { %2158 = vst [vmem:[%s2491_s27 + $0x78] sm:$0xff] %v2062_v2   ;;  %v2057_v7 = vpack.c.bf16 %v1311_v3, %v1310_v1  ;;  %2174 = vst [vmem:[%s2491_s27 + $0xf8] sm:$0xff] %v2142_v5   ;;  %v2137_v8 = vpack.c.bf16 %v1343_v6, %v1342_v4 }
 0x11a   : > { %2157 = vst [vmem:[%s2491_s27 + $0x70] sm:$0xff] %v2057_v7   ;;  %2173 = vst [vmem:[%s2491_s27 + $0xf0] sm:$0xff] %v2137_v8  }
 0x11b PF: > { %s13_s14 = sadd.s32 1, %s2356_s14   ;;  %s2595_s12 = smov %s2352_s13 }
 0x11c   : > { %p10_p5 = scmp.ge.s32.totalorder %s13_s14, 6   ;;  %s2596_s13 = smov %s2598_s15 }
 0x11e   :  { %12 = sbr.rel (!%p10_p5) target bundleno = 2 (0x2), region = 76 }

// kernel: model_c_forward.4
= control target key start
LH: loop header
LB: loop body
LE: loop exit
PB: predicated region body
PF: predicated region fallthrough
CT: control target
= control target key end

     0   :  { %v4322_v0 = vmov 0   ;;  %s5607_s1 = inlined_call_operand.vmem [shape: bf16[1152,128], index: 1, kind: input, shape index: {}]   ;;  %s5608_s0 = inlined_call_operand.vmem [shape: bf16[344,1152], index: 0, kind: input, shape index: {}]   ;;  %s5609_s2 = inlined_call_operand.vmem [shape: f32[1,128], index: 2, kind: input, shape index: {}]   ;;  %s5610_s3 = inlined_call_operand.vmem [shape: bf16[344,128], index: 3, kind: output, shape index: {}]  }
   0x1   :  { %1894 = vmatprep.subr.bf16.mxu0 %v4322_v0  ;;  %2102 = vmatprep.subr.bf16.mxu1 %v4322_v0  ;;  %v3968_v1 = vld [vmem:[%s5607_s1 + $0x38] sm:$0xff]   ;;  %v3970_v3 = vld [vmem:[%s5607_s1 + $0x30] sm:$0xff]   ;;  %v3972_v5 = vld [vmem:[%s5607_s1 + $0x28] sm:$0xff]  }
   0x2   :  { %v3969_v2 = vld [vmem:[%s5607_s1 + $0xb8] sm:$0xff]   ;;  %1895 = vmatpush1.bf16.msra.mxu0 %v3968_v1  ;;  %v3971_v4 = vld [vmem:[%s5607_s1 + $0xb0] sm:$0xff]   ;;  %v3973_v6 = vld [vmem:[%s5607_s1 + $0xa8] sm:$0xff]  }
   0x3   :  { %2103 = vmatpush1.bf16.msra.mxu1 %v3969_v2  ;;  %1896 = vmatprep.subr.bf16.mxu0 %v4322_v0  ;;  %v3974_v7 = vld [vmem:[%s5607_s1 + $0x20] sm:$0xff]   ;;  %v3976_v9 = vld [vmem:[%s5607_s1 + $0x18] sm:$0xff]   ;;  %v3978_v11 = vld [vmem:[%s5607_s1 + $0x10] sm:$0xff]  }
   0x4   :  { %2104 = vmatprep.subr.bf16.mxu1 %v4322_v0  ;;  %v3975_v8 = vld [vmem:[%s5607_s1 + $0xa0] sm:$0xff]   ;;  %v3977_v10 = vld [vmem:[%s5607_s1 + $0x98] sm:$0xff]   ;;  %v3979_v12 = vld [vmem:[%s5607_s1 + $0x90] sm:$0xff]  }
   0x5   :  { %v3980_v13 = vld [vmem:[%s5607_s1 + $0x8] sm:$0xff]   ;;  %v3982_v15 = vld [vmem:[%s5607_s1] sm:$0xff]   ;;  %v3984_v17 = vld [vmem:[%s5607_s1 + $0x78] sm:$0xff]  }
   0x6   :  { %1897 = vmatpush1.bf16.msra.mxu0 %v3970_v3  ;;  %v3981_v14 = vld [vmem:[%s5607_s1 + $0x88] sm:$0xff]   ;;  %v3983_v16 = vld [vmem:[%s5607_s1 + $0x80] sm:$0xff]   ;;  %v3985_v18 = vld [vmem:[%s5607_s1 + $0xf8] sm:$0xff]  }
   0x7   :  { %2105 = vmatpush1.bf16.msra.mxu1 %v3971_v4  ;;  %1898 = vmatprep.subr.bf16.mxu0 %v4322_v0  ;;  %v4002_v19 = vld [vmem:[%s5608_s0 + $0x4] ss:$36 sps:$4 sm:$0xff]   ;;  %v3986_v20 = vld [vmem:[%s5607_s1 + $0x70] sm:$0xff]   ;;  %v3992_v27 = vld [vmem:[%s5607_s1 + $0x58] sm:$0xff]  }
   0x8   :  { %2106 = vmatprep.subr.bf16.mxu1 %v4322_v0  ;;  %v4005_v21 = vld [vmem:[%s5608_s0 + $0xc] ss:$36 sps:$4 sm:$0xff]   ;;  %1926 = vmatprep.mubr.bf16.mxu0 %v4002_v19  ;;  %v3990_v25 = vld [vmem:[%s5607_s1 + $0x60] sm:$0xff]   ;;  %v3993_v28 = vld [vmem:[%s5607_s1 + $0xd8] sm:$0xff]  }
   0x9   :  { %v3987_v22 = vld [vmem:[%s5607_s1 + $0xf0] sm:$0xff]   ;;  %2134 = vmatprep.mubr.bf16.mxu1 %v4005_v21  ;;  %v3988_v23 = vld [vmem:[%s5607_s1 + $0x68] sm:$0xff]   ;;  %v3991_v26 = vld [vmem:[%s5607_s1 + $0xe0] sm:$0xff]  }
   0xa   :  { %1899 = vmatpush1.bf16.msra.mxu0 %v3972_v5  ;;  %v3989_v24 = vld [vmem:[%s5607_s1 + $0xe8] sm:$0xff]   ;;  %v3994_v29 = vld [vmem:[%s5607_s1 + $0x50] sm:$0xff]   ;;  %v3998_v33 = vld [vmem:[%s5607_s1 + $0x40] sm:$0xff]  }
   0xb   :  { %2107 = vmatpush1.bf16.msra.mxu1 %v3973_v6  ;;  %1900 = vmatprep.subr.bf16.mxu0 %v4322_v0  ;;  %v3995_v30 = vld [vmem:[%s5607_s1 + $0xd0] sm:$0xff]   ;;  %v3996_v31 = vld [vmem:[%s5607_s1 + $0x48] sm:$0xff]   ;;  %v3999_v34 = vld [vmem:[%s5607_s1 + $0xc0] sm:$0xff]  }
   0xc   :  { %2108 = vmatprep.subr.bf16.mxu1 %v4322_v0  ;;  %v3997_v32 = vld [vmem:[%s5607_s1 + $0xc8] sm:$0xff]   ;;  %v4000_v35 = vld [vmem:[%s5608_s0] ss:$36 sps:$4 sm:$0xff]   ;;  %v4006_v37 = vld [vmem:[%s5607_s1 + $0x138] sm:$0xff]  }
   0xd   :  { %v4003_v36 = vld [vmem:[%s5608_s0 + $0x8] ss:$36 sps:$4 sm:$0xff]   ;;  %v4009_v39 = vld [vmem:[%s5608_s0 + $0x54] ss:$36 sps:$4 sm:$0xff]   ;;  %v4017_v46 = vld [vmem:[%s5608_s0 + $0x9c] ss:$36 sps:$4 sm:$0xff]  }
   0xe   :  { %1901 = vmatpush1.bf16.msra.mxu0 %v3974_v7  ;;  %v4007_v38 = vld [vmem:[%s5608_s0 + $0x4c] ss:$36 sps:$4 sm:$0xff]   ;;  %v4013_v40 = vld [vmem:[%s5607_s1 + $0x1b8] sm:$0xff]   ;;  %v4036_v50 = vld [vmem:[%s5607_s1 + $0x120] sm:$0xff]  }
   0xf   :  { %2109 = vmatpush1.bf16.msra.mxu1 %v3975_v8  ;;  %1902 = vmatprep.subr.bf16.mxu0 %v4322_v0  ;;  %v4014_v41 = vld [vmem:[%s5607_s1 + $0x130] sm:$0xff]   ;;  %v4011_v42 = vld [vmem:[%s5608_s0 + $0x48] ss:$36 sps:$4 sm:$0xff]   ;;  %v4043_v51 = vld [vmem:[%s5607_s1 + $0x1a0] sm:$0xff]  }
  0x10   :  { %2110 = vmatprep.subr.bf16.mxu1 %v4322_v0  ;;  %v4021_v43 = vld [vmem:[%s5607_s1 + $0x1b0] sm:$0xff]   ;;  %v4026_v47 = vld [vmem:[%s5607_s1 + $0x128] sm:$0xff]   ;;  %v4020_v52 = vld [vmem:[%s5608_s0 + $0x98] ss:$36 sps:$4 sm:$0xff]  }
  0x11   :  { %v4012_v44 = vld [vmem:[%s5608_s0 + $0x50] ss:$36 sps:$4 sm:$0xff]   ;;  %v4033_v48 = vld [vmem:[%s5607_s1 + $0x1a8] sm:$0xff]   ;;  %v4022_v53 = vld [vmem:[%s5608_s0 + $0xdc] ss:$36 sps:$4 sm:$0xff]  }
  0x12   :  { %1903 = vmatpush1.bf16.msra.mxu0 %v3976_v9  ;;  %v4015_v45 = vld [vmem:[%s5608_s0 + $0x94] ss:$36 sps:$4 sm:$0xff]   ;;  %v4024_v54 = vld [vmem:[%s5608_s0 + $0xe4] ss:$36 sps:$4 sm:$0xff]   ;;  %v4031_v62 = vld [vmem:[%s5608_s0 + $0x12c] ss:$36 sps:$4 sm:$0xff]  }
  0x13   :  { %2111 = vmatpush1.bf16.msra.mxu1 %v3977_v10  ;;  %1904 = vmatprep.subr.bf16.mxu0 %v4322_v0  ;;  %v4019_v49 = vld [vmem:[%s5608_s0 + $0x90] ss:$36 sps:$4 sm:$0xff]   ;;  %v4044_v55 = vld [vmem:[%s5607_s1 + $0x118] sm:$0xff]   ;;  %v4028_v60 = vld [vmem:[%s5608_s0 + $0xe0] ss:$36 sps:$4 sm:$0xff]  }
  0x14   :  { %2112 = vmatprep.subr.bf16.mxu1 %v4322_v0  ;;  %v4051_v56 = vld [vmem:[%s5607_s1 + $0x198] sm:$0xff]   ;;  %v4058_v58 = vld [vmem:[%s5607_s1 + $0x110] sm:$0xff]   ;;  %v4029_v61 = vld [vmem:[%s5608_s0 + $0x124] ss:$36 sps:$4 sm:$0xff]  }
  0x15   :  { %v4027_v57 = vld [vmem:[%s5608_s0 + $0xd8] ss:$36 sps:$4 sm:$0xff]   ;;  %v4065_v59 = vld [vmem:[%s5607_s1 + $0x190] sm:$0xff]   ;;  %v4066_v63 = vld [vmem:[%s5607_s1 + $0x108] sm:$0xff]  }
  0x16   :  { %1905 = vmatpush1.bf16.msra.mxu0 %v3978_v11  ;;  %v4073_v1 = vld [vmem:[%s5607_s1 + $0x188] sm:$0xff]   ;;  %v4074_v2 = vld [vmem:[%s5607_s1 + $0x100] sm:$0xff]   ;;  %v4039_v7 = vld [vmem:[%s5608_s0 + $0x174] ss:$36 sps:$4 sm:$0xff]  }
  0x17   :  { %2113 = vmatpush1.bf16.msra.mxu1 %v3979_v12  ;;  %1906 = vmatprep.subr.bf16.mxu0 %v4322_v0  ;;  %v4034_v3 = vld [vmem:[%s5608_s0 + $0x120] ss:$36 sps:$4 sm:$0xff]   ;;  %v4035_v4 = vld [vmem:[%s5608_s0 + $0x128] ss:$36 sps:$4 sm:$0xff]   ;;  %v4088_v8 = vld [vmem:[%s5607_s1 + $0x178] sm:$0xff]  }
  0x18   :  { %2114 = vmatprep.subr.bf16.mxu1 %v4322_v0  ;;  %v4081_v5 = vld [vmem:[%s5607_s1 + $0x180] sm:$0xff]   ;;  %v4037_v6 = vld [vmem:[%s5608_s0 + $0x16c] ss:$36 sps:$4 sm:$0xff]   ;;  %v4095_v9 = vld [vmem:[%s5607_s1 + $0x1f8] sm:$0xff]  }
  0x19   :  { %v4041_v10 = vld [vmem:[%s5608_s0 + $0x168] ss:$36 sps:$4 sm:$0xff]   ;;  %v4096_v11 = vld [vmem:[%s5607_s1 + $0x170] sm:$0xff]   ;;  %v4050_v21 = vld [vmem:[%s5608_s0 + $0x1b8] ss:$36 sps:$4 sm:$0xff]  }
  0x1a   :  { %1907 = vmatpush1.bf16.msra.mxu0 %v3980_v13  ;;  %v4042_v12 = vld [vmem:[%s5608_s0 + $0x170] ss:$36 sps:$4 sm:$0xff]  }
  0x1b   :  { %2115 = vmatpush1.bf16.msra.mxu1 %v3981_v14  ;;  %1908 = vmatprep.subr.bf16.mxu0 %v4322_v0  ;;  %v4103_v13 = vld [vmem:[%s5607_s1 + $0x1f0] sm:$0xff]  }
  0x1c   :  { %2116 = vmatprep.subr.bf16.mxu1 %v4322_v0  ;;  %v4045_v14 = vld [vmem:[%s5608_s0 + $0x1b4] ss:$36 sps:$4 sm:$0xff]  }
  0x1d   :  { %v4049_v19 = vld [vmem:[%s5608_s0 + $0x1b0] ss:$36 sps:$4 sm:$0xff]  }
  0x1e   :  { %1909 = vmatpush1.bf16.msra.mxu0 %v3982_v15  ;;  %v4047_v15 = vld [vmem:[%s5608_s0 + $0x1bc] ss:$36 sps:$4 sm:$0xff]  }
  0x1f   :  { %2117 = vmatpush1.bf16.msra.mxu1 %v3983_v16  ;;  %1910 = vmatprep.subr.bf16.mxu0 %v4322_v0  ;;  %v4108_v16 = vld [vmem:[%s5607_s1 + $0x168] sm:$0xff]  }
  0x20   :  { %2118 = vmatprep.subr.bf16.mxu1 %v4322_v0 }
  0x22   :  { %1911 = vmatpush2.bf16.msra.mxu0 %v3984_v17  ;;  %v4115_v17 = vld [vmem:[%s5607_s1 + $0x1e8] sm:$0xff]  }
  0x23   :  { %2119 = vmatpush2.bf16.msra.mxu1 %v3985_v18  ;;  %1912 = vmatprep.subr.bf16.mxu0 %v4322_v0  ;;  %v4118_v18 = vld [vmem:[%s5607_s1 + $0x160] sm:$0xff]  }
  0x24   :  { %2120 = vmatprep.subr.bf16.mxu1 %v4322_v0 }
  0x26   :  { %1913 = vmatpush2.bf16.msra.mxu0 %v3986_v20  ;;  %v4125_v20 = vld [vmem:[%s5607_s1 + $0x1e0] sm:$0xff]  }
  0x27   :  { %2121 = vmatpush2.bf16.msra.mxu1 %v3987_v22  ;;  %1914 = vmatprep.subr.bf16.mxu0 %v4322_v0  ;;  %v4052_v22 = vld [vmem:[%s5608_s0 + $0x1fc] ss:$36 sps:$4 sm:$0xff]  }
  0x28   :  { %2122 = vmatprep.subr.bf16.mxu1 %v4322_v0 }
  0x2a   :  { %1915 = vmatpush2.bf16.msra.mxu0 %v3988_v23  ;;  %v4054_v23 = vld [vmem:[%s5608_s0 + $0x204] ss:$36 sps:$4 sm:$0xff]  }
  0x2b   :  { %2123 = vmatpush2.bf16.msra.mxu1 %v3989_v24  ;;  %1916 = vmatprep.subr.bf16.mxu0 %v4322_v0  ;;  %v4126_v24 = vld [vmem:[%s5607_s1 + $0x158] sm:$0xff]  }
  0x2c   :  { %2124 = vmatprep.subr.bf16.mxu1 %v4322_v0 }
  0x2e   :  { %1917 = vmatpush2.bf16.msra.mxu0 %v3990_v25  ;;  %v4133_v25 = vld [vmem:[%s5607_s1 + $0x1d8] sm:$0xff]  }
  0x2f   :  { %2125 = vmatpush2.bf16.msra.mxu1 %v3991_v26  ;;  %1918 = vmatprep.subr.bf16.mxu0 %v4322_v0  ;;  %v4140_v26 = vld [vmem:[%s5607_s1 + $0x150] sm:$0xff]  }
  0x30   :  { %2126 = vmatprep.subr.bf16.mxu1 %v4322_v0 }
  0x32   :  { %1919 = vmatpush2.bf16.msra.mxu0 %v3992_v27  ;;  %v4056_v27 = vld [vmem:[%s5608_s0 + $0x1f8] ss:$36 sps:$4 sm:$0xff]  }
  0x33   :  { %2127 = vmatpush2.bf16.msra.mxu1 %v3993_v28  ;;  %1920 = vmatprep.subr.bf16.mxu0 %v4322_v0  ;;  %v4147_v28 = vld [vmem:[%s5607_s1 + $0x1d0] sm:$0xff]  }
  0x34   :  { %2128 = vmatprep.subr.bf16.mxu1 %v4322_v0 }
  0x36   :  { %1921 = vmatpush2.bf16.msra.mxu0 %v3994_v29  ;;  %v4057_v29 = vld [vmem:[%s5608_s0 + $0x200] ss:$36 sps:$4 sm:$0xff]  }
  0x37   :  { %2129 = vmatpush2.bf16.msra.mxu1 %v3995_v30  ;;  %1922 = vmatprep.subr.bf16.mxu0 %v4322_v0  ;;  %v4059_v30 = vld [vmem:[%s5608_s0 + $0x244] ss:$36 sps:$4 sm:$0xff]  }
  0x38   :  { %2130 = vmatprep.subr.bf16.mxu1 %v4322_v0 }
  0x3a   :  { %1923 = vmatpush2.bf16.msra.mxu0 %v3996_v31  ;;  %v4061_v31 = vld [vmem:[%s5608_s0 + $0x24c] ss:$36 sps:$4 sm:$0xff]  }
  0x3b   :  { %2131 = vmatpush2.bf16.msra.mxu1 %v3997_v32  ;;  %1924 = vmatprep.subr.bf16.mxu0 %v4322_v0  ;;  %v4148_v32 = vld [vmem:[%s5607_s1 + $0x148] sm:$0xff]  }
  0x3c   :  { %2132 = vmatprep.subr.bf16.mxu1 %v4322_v0 }
  0x3e   :  { %1925 = vmatpush2.bf16.msra.mxu0 %v3998_v33  ;;  %v4155_v33 = vld [vmem:[%s5607_s1 + $0x1c8] sm:$0xff]  }
  0x3f   :  { %2133 = vmatpush2.bf16.msra.mxu1 %v3999_v34  ;;  %2310 = vmatprep.subr.bf16.mxu0 %v4322_v0  ;;  %v4156_v34 = vld [vmem:[%s5607_s1 + $0x140] sm:$0xff]  }
  0x40   :  { %2518 = vmatprep.subr.bf16.mxu1 %v4322_v0 }
  0x41   :  { %1927 = vmatmul.mubr.bf16.vlgmr.msra.gmra.mxu0 %v4000_v35  ;;  %v4161_v35 = vld [vmem:[%s5607_s1 + $0x1c0] sm:$0xff]  }
  0x42   :  { %2135 = vmatmul.mubr.bf16.vlgmr.msra.gmra.mxu1 %v4003_v36  ;;  %2311 = vmatpush1.bf16.msra.mxu0 %v4006_v37  ;;  %v4703_v36 = vld [vmem:[%s5607_s1 + $0x238] sm:$0xff]   ;;  %v4063_v37 = vld [vmem:[%s5608_s0 + $0x240] ss:$36 sps:$4 sm:$0xff]  }
  0x43   :  { %1934 = vmatprep.mubr.bf16.mxu0 %v4007_v38  ;;  %2142 = vmatprep.mubr.bf16.mxu1 %v4009_v39  ;;  %v4064_v38 = vld [vmem:[%s5608_s0 + $0x248] ss:$36 sps:$4 sm:$0xff]  }
  0x44   :  { %2519 = vmatpush1.bf16.msra.mxu1 %v4013_v40  ;;  %2312 = vmatprep.subr.bf16.mxu0 %v4322_v0  ;;  %v4067_v39 = vld [vmem:[%s5608_s0 + $0x28c] ss:$36 sps:$4 sm:$0xff]   ;;  %v4069_v40 = vld [vmem:[%s5608_s0 + $0x294] ss:$36 sps:$4 sm:$0xff]  }
  0x45   :  { %2520 = vmatprep.subr.bf16.mxu1 %v4322_v0 }
  0x46   :  { %2313 = vmatpush1.bf16.msra.mxu0 %v4014_v41  ;;  %v4072_v41 = vld [vmem:[%s5608_s0 + $0x290] ss:$36 sps:$4 sm:$0xff]  }
  0x47   :  { %2314 = vmatprep.subr.bf16.mxu0 %v4322_v0 }
  0x48   :  { %2521 = vmatpush1.bf16.msra.mxu1 %v4021_v43  ;;  %v4077_v43 = vld [vmem:[%s5608_s0 + $0x2dc] ss:$36 sps:$4 sm:$0xff]  }
  0x49   :  { %1935 = vmatmul.mubr.bf16.gmra.mxu0 %v4011_v42  ;;  %2522 = vmatprep.subr.bf16.mxu1 %v4322_v0  ;;  %v4075_v42 = vld [vmem:[%s5608_s0 + $0x2d4] ss:$36 sps:$4 sm:$0xff]  }
  0x4a   :  { %2143 = vmatmul.mubr.bf16.gmra.mxu1 %v4012_v44  ;;  %1942 = vmatprep.mubr.bf16.mxu0 %v4015_v45  ;;  %v4079_v44 = vld [vmem:[%s5608_s0 + $0x2d0] ss:$36 sps:$4 sm:$0xff]   ;;  %v4080_v45 = vld [vmem:[%s5608_s0 + $0x2d8] ss:$36 sps:$4 sm:$0xff]  }
  0x4b   :  { %2150 = vmatprep.mubr.bf16.mxu1 %v4017_v46  ;;  %2315 = vmatpush1.bf16.msra.mxu0 %v4026_v47  ;;  %v4082_v46 = vld [vmem:[%s5608_s0 + $0x31c] ss:$36 sps:$4 sm:$0xff]   ;;  %v4084_v47 = vld [vmem:[%s5608_s0 + $0x324] ss:$36 sps:$4 sm:$0xff]  }
  0x4c   :  { %2523 = vmatpush1.bf16.msra.mxu1 %v4033_v48  ;;  %2316 = vmatprep.subr.bf16.mxu0 %v4322_v0  ;;  %v4086_v48 = vld [vmem:[%s5608_s0 + $0x318] ss:$36 sps:$4 sm:$0xff]  }
  0x4d   :  { %2524 = vmatprep.subr.bf16.mxu1 %v4322_v0 }
  0x4f   :  { %2317 = vmatpush1.bf16.msra.mxu0 %v4036_v50  ;;  %v4089_v50 = vld [vmem:[%s5608_s0 + $0x364] ss:$36 sps:$4 sm:$0xff]  }
  0x50   :  { %2525 = vmatpush1.bf16.msra.mxu1 %v4043_v51  ;;  %2318 = vmatprep.subr.bf16.mxu0 %v4322_v0  ;;  %v4091_v51 = vld [vmem:[%s5608_s0 + $0x36c] ss:$36 sps:$4 sm:$0xff]  }
  0x51   :  { %1943 = vmatmul.mubr.bf16.gmra.mxu0 %v4019_v49  ;;  %2526 = vmatprep.subr.bf16.mxu1 %v4322_v0  ;;  %v4087_v49 = vld [vmem:[%s5608_s0 + $0x320] ss:$36 sps:$4 sm:$0xff]  }
  0x52   :  { %2151 = vmatmul.mubr.bf16.gmra.mxu1 %v4020_v52  ;;  %1950 = vmatprep.mubr.bf16.mxu0 %v4022_v53  ;;  %v4093_v52 = vld [vmem:[%s5608_s0 + $0x360] ss:$36 sps:$4 sm:$0xff]   ;;  %v4094_v53 = vld [vmem:[%s5608_s0 + $0x368] ss:$36 sps:$4 sm:$0xff]  }
  0x53   :  { %2158 = vmatprep.mubr.bf16.mxu1 %v4024_v54  ;;  %2319 = vmatpush1.bf16.msra.mxu0 %v4044_v55  ;;  %v4097_v54 = vld [vmem:[%s5608_s0 + $0x3ac] ss:$36 sps:$4 sm:$0xff]   ;;  %v4099_v55 = vld [vmem:[%s5608_s0 + $0x3b4] ss:$36 sps:$4 sm:$0xff]  }
  0x54   :  { %2527 = vmatpush1.bf16.msra.mxu1 %v4051_v56  ;;  %2320 = vmatprep.subr.bf16.mxu0 %v4322_v0  ;;  %v4101_v56 = vld [vmem:[%s5608_s0 + $0x3a8] ss:$36 sps:$4 sm:$0xff]  }
  0x55   :  { %2528 = vmatprep.subr.bf16.mxu1 %v4322_v0 }
  0x57   :  { %2321 = vmatpush1.bf16.msra.mxu0 %v4058_v58  ;;  %v4104_v58 = vld [vmem:[%s5608_s0 + $0x3f4] ss:$36 sps:$4 sm:$0xff]  }
  0x58   :  { %2529 = vmatpush1.bf16.msra.mxu1 %v4065_v59  ;;  %2322 = vmatprep.subr.bf16.mxu0 %v4322_v0  ;;  %v4106_v59 = vld [vmem:[%s5608_s0 + $0x3fc] ss:$36 sps:$4 sm:$0xff]  }
  0x59   :  { %1951 = vmatmul.mubr.bf16.gmra.mxu0 %v4027_v57  ;;  %2530 = vmatprep.subr.bf16.mxu1 %v4322_v0  ;;  %v4102_v57 = vld [vmem:[%s5608_s0 + $0x3b0] ss:$36 sps:$4 sm:$0xff]  }
  0x5a   :  { %2159 = vmatmul.mubr.bf16.gmra.mxu1 %v4028_v60  ;;  %1958 = vmatprep.mubr.bf16.mxu0 %v4029_v61  ;;  %v4109_v60 = vld [vmem:[%s5608_s0 + $0x3f0] ss:$36 sps:$4 sm:$0xff]   ;;  %v4110_v61 = vld [vmem:[%s5608_s0 + $0x3f8] ss:$36 sps:$4 sm:$0xff]  }
  0x5b   :  { %2166 = vmatprep.mubr.bf16.mxu1 %v4031_v62  ;;  %2323 = vmatpush1.bf16.msra.mxu0 %v4066_v63  ;;  %v4111_v62 = vld [vmem:[%s5608_s0 + $0x43c] ss:$36 sps:$4 sm:$0xff]   ;;  %v4113_v63 = vld [vmem:[%s5608_s0 + $0x444] ss:$36 sps:$4 sm:$0xff]  }
  0x5c   :  { %2531 = vmatpush1.bf16.msra.mxu1 %v4073_v1  ;;  %2324 = vmatprep.subr.bf16.mxu0 %v4322_v0  ;;  %v4116_v1 = vld [vmem:[%s5608_s0 + $0x438] ss:$36 sps:$4 sm:$0xff]  }
  0x5d   :  { %2532 = vmatprep.subr.bf16.mxu1 %v4322_v0 }
  0x5f   :  { %2325 = vmatpush1.bf16.msra.mxu0 %v4074_v2  ;;  %v4117_v2 = vld [vmem:[%s5608_s0 + $0x440] ss:$36 sps:$4 sm:$0xff]  }
  0x60   :  { %2533 = vmatpush1.bf16.msra.mxu1 %v4081_v5  ;;  %2326 = vmatprep.subr.bf16.mxu0 %v4322_v0  ;;  %v4123_v5 = vld [vmem:[%s5608_s0 + $0x480] ss:$36 sps:$4 sm:$0xff]  }
  0x61   :  { %1959 = vmatmul.mubr.bf16.gmra.mxu0 %v4034_v3  ;;  %2534 = vmatprep.subr.bf16.mxu1 %v4322_v0  ;;  %v4119_v3 = vld [vmem:[%s5608_s0 + $0x484] ss:$36 sps:$4 sm:$0xff]  }
  0x62   :  { %2167 = vmatmul.mubr.bf16.gmra.mxu1 %v4035_v4  ;;  %1966 = vmatprep.mubr.bf16.mxu0 %v4037_v6  ;;  %v4121_v4 = vld [vmem:[%s5608_s0 + $0x48c] ss:$36 sps:$4 sm:$0xff]  }
  0x63   :  { %2174 = vmatprep.mubr.bf16.mxu1 %v4039_v7  ;;  %2327 = vmatpush2.bf16.msra.mxu0 %v4088_v8  ;;  %v4124_v6 = vld [vmem:[%s5608_s0 + $0x488] ss:$36 sps:$4 sm:$0xff]   ;;  %v4129_v8 = vld [vmem:[%s5608_s0 + $0x4d4] ss:$36 sps:$4 sm:$0xff]  }
  0x64   :  { %2535 = vmatpush2.bf16.msra.mxu1 %v4095_v9  ;;  %2328 = vmatprep.subr.bf16.mxu0 %v4322_v0  ;;  %v4127_v7 = vld [vmem:[%s5608_s0 + $0x4cc] ss:$36 sps:$4 sm:$0xff]  }
  0x65   :  { %2536 = vmatprep.subr.bf16.mxu1 %v4322_v0  ;;  %v4131_v9 = vld [vmem:[%s5608_s0 + $0x4c8] ss:$36 sps:$4 sm:$0xff]  }
  0x67   :  { %2329 = vmatpush2.bf16.msra.mxu0 %v4096_v11  ;;  %v4134_v11 = vld [vmem:[%s5608_s0 + $0x514] ss:$36 sps:$4 sm:$0xff]  }
  0x68   :  { %2537 = vmatpush2.bf16.msra.mxu1 %v4103_v13  ;;  %2330 = vmatprep.subr.bf16.mxu0 %v4322_v0  ;;  %v4138_v13 = vld [vmem:[%s5608_s0 + $0x510] ss:$36 sps:$4 sm:$0xff]  }
  0x69   :  { %1967 = vmatmul.mubr.bf16.gmra.mxu0 %v4041_v10  ;;  %2538 = vmatprep.subr.bf16.mxu1 %v4322_v0  ;;  %v4132_v10 = vld [vmem:[%s5608_s0 + $0x4d0] ss:$36 sps:$4 sm:$0xff]  }
  0x6a   :  { %2175 = vmatmul.mubr.bf16.gmra.mxu1 %v4042_v12  ;;  %1974 = vmatprep.mubr.bf16.mxu0 %v4045_v14  ;;  %v4136_v12 = vld [vmem:[%s5608_s0 + $0x51c] ss:$36 sps:$4 sm:$0xff]  }
  0x6b   :  { %2182 = vmatprep.mubr.bf16.mxu1 %v4047_v15  ;;  %2331 = vmatpush2.bf16.msra.mxu0 %v4108_v16  ;;  %v4139_v14 = vld [vmem:[%s5608_s0 + $0x518] ss:$36 sps:$4 sm:$0xff]   ;;  %v4143_v16 = vld [vmem:[%s5608_s0 + $0x564] ss:$36 sps:$4 sm:$0xff]  }
  0x6c   :  { %2539 = vmatpush2.bf16.msra.mxu1 %v4115_v17  ;;  %2332 = vmatprep.subr.bf16.mxu0 %v4322_v0  ;;  %v4141_v15 = vld [vmem:[%s5608_s0 + $0x55c] ss:$36 sps:$4 sm:$0xff]  }
  0x6d   :  { %2540 = vmatprep.subr.bf16.mxu1 %v4322_v0  ;;  %v4145_v17 = vld [vmem:[%s5608_s0 + $0x558] ss:$36 sps:$4 sm:$0xff]  }
  0x6f   :  { %2333 = vmatpush2.bf16.msra.mxu0 %v4118_v18  ;;  %v4146_v18 = vld [vmem:[%s5608_s0 + $0x560] ss:$36 sps:$4 sm:$0xff]  }
  0x70   :  { %2541 = vmatpush2.bf16.msra.mxu1 %v4125_v20  ;;  %2334 = vmatprep.subr.bf16.mxu0 %v4322_v0  ;;  %v4151_v20 = vld [vmem:[%s5608_s0 + $0x5ac] ss:$36 sps:$4 sm:$0xff]  }
  0x71   :  { %1975 = vmatmul.mubr.bf16.gmra.mxu0 %v4049_v19  ;;  %2542 = vmatprep.subr.bf16.mxu1 %v4322_v0  ;;  %v4149_v19 = vld [vmem:[%s5608_s0 + $0x5a4] ss:$36 sps:$4 sm:$0xff]  }
  0x72   :  { %2183 = vmatmul.mubr.bf16.gmra.mxu1 %v4050_v21  ;;  %1982 = vmatprep.mubr.bf16.mxu0 %v4052_v22  ;;  %v315_v21 = vld [vmem:[%s5608_s0 + $0x5e8] sm:$0xff]  ;;  %v316_v22 = vld [vmem:[%s5608_s0 + $0x5f0] sm:$0xff] }
  0x73   :  { %2190 = vmatprep.mubr.bf16.mxu1 %v4054_v23  ;;  %2335 = vmatpush2.bf16.msra.mxu0 %v4126_v24  ;;  %v4153_v23 = vld [vmem:[%s5608_s0 + $0x5a0] ss:$36 sps:$4 sm:$0xff]   ;;  %v4154_v24 = vld [vmem:[%s5608_s0 + $0x5a8] ss:$36 sps:$4 sm:$0xff]  }
  0x74   :  { %2543 = vmatpush2.bf16.msra.mxu1 %v4133_v25  ;;  %2336 = vmatprep.subr.bf16.mxu0 %v4322_v0  ;;  %v3569_v25 = vcombine.high %v315_v21, %v315_v21 }
  0x75   :  { %2544 = vmatprep.subr.bf16.mxu1 %v4322_v0 }
  0x77   :  { %2337 = vmatpush2.bf16.msra.mxu0 %v4140_v26  ;;  %v3571_v26 = vcombine.high %v316_v22, %v316_v22 }
  0x78   :  { %2545 = vmatpush2.bf16.msra.mxu1 %v4147_v28  ;;  %2338 = vmatprep.subr.bf16.mxu0 %v4322_v0  ;;  %v3570_v28 = vcombine.low %v316_v22, %v316_v22  ;;  %v4199_v22 = vld [vmem:[%s5608_s0 + $0x180] ss:$36 sps:$4 sm:$0xff]  }
  0x79   :  { %1983 = vmatmul.mubr.bf16.gmra.mxu0 %v4056_v27  ;;  %2546 = vmatprep.subr.bf16.mxu1 %v4322_v0  ;;  %v3568_v27 = vcombine.low %v315_v21, %v315_v21 }
  0x7a   :  { %2191 = vmatmul.mubr.bf16.gmra.mxu1 %v4057_v29  ;;  %1990 = vmatprep.mubr.bf16.mxu0 %v4059_v30  ;;  %v4164_v29 = vld [vmem:[%s5608_s0 + $0x14] ss:$36 sps:$4 sm:$0xff]   ;;  %v4167_v30 = vld [vmem:[%s5608_s0 + $0x1c] ss:$36 sps:$4 sm:$0xff]  }
  0x7b   :  { %2198 = vmatprep.mubr.bf16.mxu1 %v4061_v31  ;;  %2339 = vmatpush2.bf16.msra.mxu0 %v4148_v32  ;;  %v4162_v31 = vld [vmem:[%s5608_s0 + $0x10] ss:$36 sps:$4 sm:$0xff]   ;;  %v4165_v32 = vld [vmem:[%s5608_s0 + $0x18] ss:$36 sps:$4 sm:$0xff]  }
  0x7c   :  { %2547 = vmatpush2.bf16.msra.mxu1 %v4155_v33  ;;  %2340 = vmatprep.subr.bf16.mxu0 %v4322_v0  ;;  %v4169_v33 = vld [vmem:[%s5608_s0 + $0x5c] ss:$36 sps:$4 sm:$0xff]  }
  0x7d   :  { %2548 = vmatprep.subr.bf16.mxu1 %v4322_v0  ;;  %v4071_v0 = vld [vmem:[%s5608_s0 + $0x288] ss:$36 sps:$4 sm:$0xff]  }
  0x7f   :  { %2341 = vmatpush2.bf16.msra.mxu0 %v4156_v34  ;;  %v4171_v34 = vld [vmem:[%s5608_s0 + $0x64] ss:$36 sps:$4 sm:$0xff]  }
  0x80   :  { %2549 = vmatpush2.bf16.msra.mxu1 %v4161_v35  ;;  %3891 = vmatprep.subr.bf16.mxu0 %v4703_v36  ;;  %v4181_v35 = vld [vmem:[%s5607_s1 + $0x230] sm:$0xff]  }
  0x81   :  { %1991 = vmatmul.mubr.bf16.gmra.mxu0 %v4063_v37  ;;  %3951 = vmatprep.subr.bf16.mxu1 %v4703_v36  ;;  %v4200_v37 = vld [vmem:[%s5607_s1 + $0x228] sm:$0xff]  }
  0x82   :  { %2199 = vmatmul.mubr.bf16.gmra.mxu1 %v4064_v38  ;;  %1998 = vmatprep.mubr.bf16.mxu0 %v4067_v39  ;;  %v4173_v38 = vld [vmem:[%s5608_s0 + $0x58] ss:$36 sps:$4 sm:$0xff]   ;;  %v4174_v39 = vld [vmem:[%s5608_s0 + $0x60] ss:$36 sps:$4 sm:$0xff]  }
  0x83   :  { %2206 = vmatprep.mubr.bf16.mxu1 %v4069_v40  ;;  %v4175_v40 = vld [vmem:[%s5608_s0 + $0xa4] ss:$36 sps:$4 sm:$0xff]  }
  0x89   :  { %1999 = vmatmul.mubr.bf16.gmra.mxu0 %v4071_v0  ;;  %v4177_v0 = vld [vmem:[%s5608_s0 + $0xac] ss:$36 sps:$4 sm:$0xff]  }
  0x8a   :  { %2207 = vmatmul.mubr.bf16.gmra.mxu1 %v4072_v41  ;;  %2006 = vmatprep.mubr.bf16.mxu0 %v4075_v42  ;;  %v4238_v41 = vld [vmem:[%s5607_s1 + $0x218] sm:$0xff]   ;;  %v4179_v42 = vld [vmem:[%s5608_s0 + $0xa0] ss:$36 sps:$4 sm:$0xff]  }
  0x8b   :  { %2214 = vmatprep.mubr.bf16.mxu1 %v4077_v43  ;;  %v4180_v43 = vld [vmem:[%s5608_s0 + $0xa8] ss:$36 sps:$4 sm:$0xff]  }
  0x91   :  { %2007 = vmatmul.mubr.bf16.gmra.mxu0 %v4079_v44  ;;  %v4182_v44 = vld [vmem:[%s5608_s0 + $0xec] ss:$36 sps:$4 sm:$0xff]  }
  0x92   :  { %2215 = vmatmul.mubr.bf16.gmra.mxu1 %v4080_v45  ;;  %2014 = vmatprep.mubr.bf16.mxu0 %v4082_v46  ;;  %v4184_v45 = vld [vmem:[%s5608_s0 + $0xf4] ss:$36 sps:$4 sm:$0xff]  }
  0x93   :  { %2222 = vmatprep.mubr.bf16.mxu1 %v4084_v47  ;;  %v4251_v46 = vld [vmem:[%s5607_s1 + $0x210] sm:$0xff]  }
  0x99   :  { %2015 = vmatmul.mubr.bf16.gmra.mxu0 %v4086_v48 }
  0x9a   :  { %2223 = vmatmul.mubr.bf16.gmra.mxu1 %v4087_v49  ;;  %2022 = vmatprep.mubr.bf16.mxu0 %v4089_v50 }
  0x9b   :  { %2230 = vmatprep.mubr.bf16.mxu1 %v4091_v51 }
  0xa1   :  { %2023 = vmatmul.mubr.bf16.gmra.mxu0 %v4093_v52  ;;  %v4270_v52 = vld [vmem:[%s5607_s1 + $0x208] sm:$0xff]  }
  0xa2   :  { %2231 = vmatmul.mubr.bf16.gmra.mxu1 %v4094_v53  ;;  %2030 = vmatprep.mubr.bf16.mxu0 %v4097_v54  ;;  %v4186_v54 = vld [vmem:[%s5608_s0 + $0xe8] ss:$36 sps:$4 sm:$0xff]  }
  0xa3   :  { %2238 = vmatprep.mubr.bf16.mxu1 %v4099_v55 }
  0xa9   :  { %2031 = vmatmul.mubr.bf16.gmra.mxu0 %v4101_v56  ;;  %v4187_v56 = vld [vmem:[%s5608_s0 + $0xf0] ss:$36 sps:$4 sm:$0xff]  }
  0xaa   :  { %2239 = vmatmul.mubr.bf16.gmra.mxu1 %v4102_v57  ;;  %2038 = vmatprep.mubr.bf16.mxu0 %v4104_v58  ;;  %v4188_v57 = vld [vmem:[%s5608_s0 + $0x134] ss:$36 sps:$4 sm:$0xff]  }
  0xab   :  { %2246 = vmatprep.mubr.bf16.mxu1 %v4106_v59 }
  0xb1   :  { %2039 = vmatmul.mubr.bf16.gmra.mxu0 %v4109_v60  ;;  %v4190_v60 = vld [vmem:[%s5608_s0 + $0x13c] ss:$36 sps:$4 sm:$0xff]  }
  0xb2   :  { %2247 = vmatmul.mubr.bf16.gmra.mxu1 %v4110_v61  ;;  %2046 = vmatprep.mubr.bf16.mxu0 %v4111_v62 }
  0xb3   :  { %2254 = vmatprep.mubr.bf16.mxu1 %v4113_v63 }
  0xb9   :  { %2047 = vmatmul.mubr.bf16.gmra.mxu0 %v4116_v1 }
  0xba   :  { %2255 = vmatmul.mubr.bf16.gmra.mxu1 %v4117_v2  ;;  %2054 = vmatprep.mubr.bf16.mxu0 %v4119_v3 }
  0xbb   :  { %2262 = vmatprep.mubr.bf16.mxu1 %v4121_v4  ;;  %v4289_v4 = vld [vmem:[%s5607_s1 + $0x200] sm:$0xff]  }
  0xc1   :  { %2055 = vmatmul.mubr.bf16.gmra.mxu0 %v4123_v5 }
  0xc2   :  { %2263 = vmatmul.mubr.bf16.gmra.mxu1 %v4124_v6  ;;  %2062 = vmatprep.mubr.bf16.mxu0 %v4127_v7  ;;  %v4192_v6 = vld [vmem:[%s5608_s0 + $0x130] ss:$36 sps:$4 sm:$0xff]  }
  0xc3   :  { %2270 = vmatprep.mubr.bf16.mxu1 %v4129_v8  ;;  %v4193_v8 = vld [vmem:[%s5608_s0 + $0x138] ss:$36 sps:$4 sm:$0xff]  }
  0xc9   :  { %2063 = vmatmul.mubr.bf16.gmra.mxu0 %v4131_v9  ;;  %v4194_v9 = vld [vmem:[%s5608_s0 + $0x17c] ss:$36 sps:$4 sm:$0xff]  }
  0xca   :  { %2271 = vmatmul.mubr.bf16.gmra.mxu1 %v4132_v10  ;;  %2070 = vmatprep.mubr.bf16.mxu0 %v4134_v11 }
  0xcb   :  { %2278 = vmatprep.mubr.bf16.mxu1 %v4136_v12  ;;  %v4196_v12 = vld [vmem:[%s5608_s0 + $0x184] ss:$36 sps:$4 sm:$0xff]  }
  0xd1   :  { %2071 = vmatmul.mubr.bf16.gmra.mxu0 %v4138_v13 }
  0xd2   :  { %2279 = vmatmul.mubr.bf16.gmra.mxu1 %v4139_v14  ;;  %2078 = vmatprep.mubr.bf16.mxu0 %v4141_v15 }
  0xd3   :  { %2286 = vmatprep.mubr.bf16.mxu1 %v4143_v16 }
  0xd9   :  { %2079 = vmatmul.mubr.bf16.gmra.mxu0 %v4145_v17 }
  0xda   :  { %2287 = vmatmul.mubr.bf16.gmra.mxu1 %v4146_v18  ;;  %2086 = vmatprep.mubr.bf16.mxu0 %v4149_v19 }
  0xdb   :  { %2294 = vmatprep.mubr.bf16.mxu1 %v4151_v20  ;;  %v4198_v20 = vld [vmem:[%s5608_s0 + $0x178] ss:$36 sps:$4 sm:$0xff]  }
  0xe1   :  { %2087 = vmatmul.mubr.bf16.gmra.mxu0 %v4153_v23  ;;  %v4203_v23 = vld [vmem:[%s5608_s0 + $0x1c4] ss:$36 sps:$4 sm:$0xff]  }
  0xe2   :  { %2295 = vmatmul.mubr.bf16.gmra.mxu1 %v4154_v24  ;;  %2094 = vmatprep.mubr.bf16.mxu0 %v3569_v25 }
  0xe3   :  { %2302 = vmatprep.mubr.bf16.mxu1 %v3571_v26  ;;  %v4206_v26 = vld [vmem:[%s5608_s0 + $0x1cc] ss:$36 sps:$4 sm:$0xff]  }
  0xe9   :  { %2095 = vmatmul.mubr.bf16.gmra.mxu0 %v3568_v27 }
  0xea   :  { %2303 = vmatmul.mubr.bf16.gmra.mxu1 %v3570_v28  ;;  %2342 = vmatprep.mubr.bf16.mxu0 %v4164_v29 }
  0xeb   :  { %2550 = vmatprep.mubr.bf16.mxu1 %v4167_v30 }
  0xf1   :  { %2343 = vmatmul.mubr.bf16.vlgmr.msra.gmra.mxu0 %v4162_v31 }
  0xf2   :  { %2551 = vmatmul.mubr.bf16.vlgmr.msra.gmra.mxu1 %v4165_v32  ;;  %3892 = vmatpush3.bf16.msra.mxu0 %v4703_v36 }
  0xf3   :  { %2350 = vmatprep.mubr.bf16.mxu0 %v4169_v33  ;;  %2558 = vmatprep.mubr.bf16.mxu1 %v4171_v34  ;;  %v4201_v34 = vld [vmem:[%s5608_s0 + $0x1c0] ss:$36 sps:$4 sm:$0xff]  }
  0xf4   :  { %3959 = vmatpush3.bf16.msra.mxu1 %v4703_v36  ;;  %3893 = vmatprep.subr.bf16.mxu0 %v4181_v35  ;;  %v4219_v36 = vld [vmem:[%s5607_s1 + $0x220] sm:$0xff]  }
  0xf5   :  { %3952 = vmatprep.subr.bf16.mxu1 %v4181_v35 }
  0xf6   :  { %3894 = vmatpush3.bf16.msra.mxu0 %v4181_v35 }
  0xf7   :  { %3895 = vmatprep.subr.bf16.mxu0 %v4200_v37 }
  0xf8   :  { %3960 = vmatpush3.bf16.msra.mxu1 %v4181_v35 }
  0xf9   :  { %2351 = vmatmul.mubr.bf16.gmra.mxu0 %v4173_v38  ;;  %3953 = vmatprep.subr.bf16.mxu1 %v4200_v37  ;;  %v4209_v38 = vld [vmem:[%s5608_s0 + $0x20c] ss:$36 sps:$4 sm:$0xff]  }
  0xfa   :  { %2559 = vmatmul.mubr.bf16.gmra.mxu1 %v4174_v39  ;;  %2358 = vmatprep.mubr.bf16.mxu0 %v4175_v40 }
  0xfb   :  { %2566 = vmatprep.mubr.bf16.mxu1 %v4177_v0  ;;  %3896 = vmatpush3.bf16.msra.mxu0 %v4200_v37  ;;  %v4212_v0 = vld [vmem:[%s5608_s0 + $0x214] ss:$36 sps:$4 sm:$0xff]  }
  0xfc   :  { %3961 = vmatpush3.bf16.msra.mxu1 %v4200_v37  ;;  %3897 = vmatprep.subr.bf16.mxu0 %v4219_v36  ;;  %v4204_v37 = vld [vmem:[%s5608_s0 + $0x1c8] ss:$36 sps:$4 sm:$0xff]  }
  0xfd   :  { %3954 = vmatprep.subr.bf16.mxu1 %v4219_v36 }
  0xff   :  { %3898 = vmatpush3.bf16.msra.mxu0 %v4219_v36 }
 0x100   :  { %3962 = vmatpush3.bf16.msra.mxu1 %v4219_v36  ;;  %3899 = vmatprep.subr.bf16.mxu0 %v4238_v41 }
 0x101   :  { %v1928_v47 = vpop.f32.mrf.mxu0  ;;  %2359 = vmatmul.mubr.bf16.gmra.mxu0 %v4179_v42  ;;  %3955 = vmatprep.subr.bf16.mxu1 %v4238_v41 }
 0x102   :  { %v2136_v48 = vpop.f32.mrf.mxu1  ;;  %2567 = vmatmul.mubr.bf16.gmra.mxu1 %v4180_v43  ;;  %2366 = vmatprep.mubr.bf16.mxu0 %v4182_v44 }
 0x103   :  { %v4923_v49 = vadd.f32 %v2136_v48, %v1928_v47  ;;  %v1930_v50 = vpop.f32.mrf.mxu0  ;;  %2574 = vmatprep.mubr.bf16.mxu1 %v4184_v45  ;;  %3900 = vmatpush3.bf16.msra.mxu0 %v4238_v41  ;;  %v4207_v47 = vld [vmem:[%s5608_s0 + $0x208] ss:$36 sps:$4 sm:$0xff]  }
 0x104   :  { %v2138_v51 = vpop.f32.mrf.mxu1  ;;  %3963 = vmatpush3.bf16.msra.mxu1 %v4238_v41  ;;  %3901 = vmatprep.subr.bf16.mxu0 %v4251_v46  ;;  %v4210_v50 = vld [vmem:[%s5608_s0 + $0x210] ss:$36 sps:$4 sm:$0xff]  }
 0x105   :  { %v1931_v53 = vpop.f32.mrf.mxu0  ;;  %3956 = vmatprep.subr.bf16.mxu1 %v4251_v46  ;;  %v4215_v51 = vld [vmem:[%s5608_s0 + $0x254] ss:$36 sps:$4 sm:$0xff]  }
 0x106   :  { %v2139_v55 = vpop.f32.mrf.mxu1 }
 0x107   :  { %v4937_v58 = vadd.f32 %v2139_v55, %v1931_v53  ;;  %v1933_v59 = vpop.f32.mrf.mxu0  ;;  %3902 = vmatpush3.bf16.msra.mxu0 %v4251_v46 }
 0x108   :  { %v2141_v61 = vpop.f32.mrf.mxu1  ;;  %3964 = vmatpush3.bf16.msra.mxu1 %v4251_v46  ;;  %3903 = vmatprep.subr.bf16.mxu0 %v4270_v52 }
 0x109   :  { %v1936_v62 = vpop.f32.mrf.mxu0  ;;  %2367 = vmatmul.mubr.bf16.gmra.mxu0 %v4186_v54  ;;  %3957 = vmatprep.subr.bf16.mxu1 %v4270_v52  ;;  %v4218_v54 = vld [vmem:[%s5608_s0 + $0x25c] ss:$36 sps:$4 sm:$0xff]  }
 0x10a   :  { %v2144_v63 = vpop.f32.mrf.mxu1  ;;  %2575 = vmatmul.mubr.bf16.gmra.mxu1 %v4187_v56  ;;  %2374 = vmatprep.mubr.bf16.mxu0 %v4188_v57 }
 0x10b   :  { %v4942_v1 = vadd.f32 %v2144_v63, %v1936_v62  ;;  %v1938_v2 = vpop.f32.mrf.mxu0  ;;  %2582 = vmatprep.mubr.bf16.mxu1 %v4190_v60  ;;  %3904 = vmatpush3.bf16.msra.mxu0 %v4270_v52  ;;  %v4213_v63 = vld [vmem:[%s5608_s0 + $0x250] ss:$36 sps:$4 sm:$0xff]  }
 0x10c   :  { %v2146_v3 = vpop.f32.mrf.mxu1  ;;  %3965 = vmatpush3.bf16.msra.mxu1 %v4270_v52  ;;  %3905 = vmatprep.subr.bf16.mxu0 %v4289_v4 }
 0x10d   :  { %v1939_v5 = vpop.f32.mrf.mxu0  ;;  %3958 = vmatprep.subr.bf16.mxu1 %v4289_v4  ;;  %v4216_v3 = vld [vmem:[%s5608_s0 + $0x258] ss:$36 sps:$4 sm:$0xff]  }
 0x10e   :  { %v2147_v7 = vpop.f32.mrf.mxu1 }
 0x10f   :  { %v4956_v10 = vadd.f32 %v2147_v7, %v1939_v5  ;;  %v1941_v11 = vpop.f32.mrf.mxu0  ;;  %3906 = vmatpush3.bf16.msra.mxu0 %v4289_v4  ;;  %v4225_v7 = vld [vmem:[%s5608_s0 + $0x2a4] ss:$36 sps:$4 sm:$0xff]  }
 0x110   :  { %v2149_v13 = vpop.f32.mrf.mxu1  ;;  %3966 = vmatpush3.bf16.msra.mxu1 %v4289_v4  ;;  %v4222_v4 = vld [vmem:[%s5608_s0 + $0x29c] ss:$36 sps:$4 sm:$0xff]  }
 0x111   :  { %v1944_v14 = vpop.f32.mrf.mxu0  ;;  %2375 = vmatmul.mubr.bf16.gmra.mxu0 %v4192_v6 }
 0x112   :  { %v2152_v15 = vpop.f32.mrf.mxu1  ;;  %2583 = vmatmul.mubr.bf16.gmra.mxu1 %v4193_v8  ;;  %2382 = vmatprep.mubr.bf16.mxu0 %v4194_v9 }
 0x113   :  { %v4961_v16 = vadd.f32 %v2152_v15, %v1944_v14  ;;  %v1946_v17 = vpop.f32.mrf.mxu0  ;;  %2590 = vmatprep.mubr.bf16.mxu1 %v4196_v12 }
 0x114   :  { %v2154_v18 = vpop.f32.mrf.mxu1  ;;  %v4220_v17 = vld [vmem:[%s5608_s0 + $0x298] ss:$36 sps:$4 sm:$0xff]  }
 0x115   :  { %v1947_v19 = vpop.f32.mrf.mxu0 }
 0x116   :  { %v2155_v21 = vpop.f32.mrf.mxu1 }
 0x117   :  { %v4972_v24 = vadd.f32 %v2155_v21, %v1947_v19  ;;  %v1949_v25 = vpop.f32.mrf.mxu0  ;;  %v4223_v19 = vld [vmem:[%s5608_s0 + $0x2a0] ss:$36 sps:$4 sm:$0xff]  }
 0x118   :  { %v2157_v27 = vpop.f32.mrf.mxu1 }
 0x119   :  { %v1952_v28 = vpop.f32.mrf.mxu0  ;;  %2383 = vmatmul.mubr.bf16.gmra.mxu0 %v4198_v20  ;;  %v4228_v20 = vld [vmem:[%s5608_s0 + $0x2e4] ss:$36 sps:$4 sm:$0xff]  }
 0x11a   :  { %v2160_v29 = vpop.f32.mrf.mxu1  ;;  %2591 = vmatmul.mubr.bf16.gmra.mxu1 %v4199_v22  ;;  %2390 = vmatprep.mubr.bf16.mxu0 %v4203_v23  ;;  %v4231_v23 = vld [vmem:[%s5608_s0 + $0x2ec] ss:$36 sps:$4 sm:$0xff]  }
 0x11b   :  { %v4977_v30 = vadd.f32 %v2160_v29, %v1952_v28  ;;  %v1954_v31 = vpop.f32.mrf.mxu0  ;;  %2598 = vmatprep.mubr.bf16.mxu1 %v4206_v26 }
 0x11c   :  { %v2162_v32 = vpop.f32.mrf.mxu1 }
 0x11d   :  { %v1955_v33 = vpop.f32.mrf.mxu0 }
 0x11e   :  { %v2163_v35 = vpop.f32.mrf.mxu1 }
 0x11f   :  { %v4988_v39 = vadd.f32 %v2163_v35, %v1955_v33  ;;  %v1957_v40 = vpop.f32.mrf.mxu0  ;;  %v4226_v33 = vld [vmem:[%s5608_s0 + $0x2e0] ss:$36 sps:$4 sm:$0xff]   ;;  %v4229_v35 = vld [vmem:[%s5608_s0 + $0x2e8] ss:$36 sps:$4 sm:$0xff]  }
 0x120   :  { %v2165_v36 = vpop.f32.mrf.mxu1 }
 0x121   :  { %v1960_v41 = vpop.f32.mrf.mxu0  ;;  %2391 = vmatmul.mubr.bf16.gmra.mxu0 %v4201_v34 }
 0x122   :  { %v2168_v42 = vpop.f32.mrf.mxu1  ;;  %2599 = vmatmul.mubr.bf16.gmra.mxu1 %v4204_v37  ;;  %2398 = vmatprep.mubr.bf16.mxu0 %v4209_v38  ;;  %v4234_v37 = vld [vmem:[%s5608_s0 + $0x32c] ss:$36 sps:$4 sm:$0xff]  }
 0x123   :  { %v4993_v43 = vadd.f32 %v2168_v42, %v1960_v41  ;;  %v1962_v44 = vpop.f32.mrf.mxu0  ;;  %2606 = vmatprep.mubr.bf16.mxu1 %v4212_v0  ;;  %v4237_v0 = vld [vmem:[%s5608_s0 + $0x334] ss:$36 sps:$4 sm:$0xff]  }
 0x124   :  { %v2170_v45 = vpop.f32.mrf.mxu1 }
 0x125   :  { %v1963_v46 = vpop.f32.mrf.mxu0 }
 0x126   :  { %v2171_v48 = vpop.f32.mrf.mxu1 }
 0x127   :  { %v5004_v52 = vadd.f32 %v2171_v48, %v1963_v46  ;;  %v1965_v53 = vpop.f32.mrf.mxu0  ;;  %v4232_v48 = vld [vmem:[%s5608_s0 + $0x328] ss:$36 sps:$4 sm:$0xff]  }
 0x128   :  { %v2173_v55 = vpop.f32.mrf.mxu1  ;;  %v4241_v53 = vld [vmem:[%s5608_s0 + $0x374] ss:$36 sps:$4 sm:$0xff]  }
 0x129   :  { %v1968_v56 = vpop.f32.mrf.mxu0  ;;  %2399 = vmatmul.mubr.bf16.gmra.mxu0 %v4207_v47 }
 0x12a   :  { %v2176_v57 = vpop.f32.mrf.mxu1  ;;  %2607 = vmatmul.mubr.bf16.gmra.mxu1 %v4210_v50  ;;  %2406 = vmatprep.mubr.bf16.mxu0 %v4215_v51  ;;  %v4235_v51 = vld [vmem:[%s5608_s0 + $0x330] ss:$36 sps:$4 sm:$0xff]  }
 0x12b   :  { %v5009_v59 = vadd.f32 %v2176_v57, %v1968_v56  ;;  %v1970_v60 = vpop.f32.mrf.mxu0  ;;  %2614 = vmatprep.mubr.bf16.mxu1 %v4218_v54  ;;  %v4244_v56 = vld [vmem:[%s5608_s0 + $0x37c] ss:$36 sps:$4 sm:$0xff]  }
 0x12c   :  { %v2178_v61 = vpop.f32.mrf.mxu1 }
 0x12d   :  { %v1971_v62 = vpop.f32.mrf.mxu0 }
 0x12e   :  { %v2179_v2 = vpop.f32.mrf.mxu1 }
 0x12f   :  { %v5020_v5 = vadd.f32 %v2179_v2, %v1971_v62  ;;  %v1973_v6 = vpop.f32.mrf.mxu0 }
 0x130   :  { %v2181_v8 = vpop.f32.mrf.mxu1 }
 0x131   :  { %v1976_v9 = vpop.f32.mrf.mxu0  ;;  %2407 = vmatmul.mubr.bf16.gmra.mxu0 %v4213_v63  ;;  %v4247_v8 = vld [vmem:[%s5608_s0 + $0x3bc] ss:$36 sps:$4 sm:$0xff]  }
 0x132   :  { %v2184_v11 = vpop.f32.mrf.mxu1  ;;  %2615 = vmatmul.mubr.bf16.gmra.mxu1 %v4216_v3  ;;  %2414 = vmatprep.mubr.bf16.mxu0 %v4222_v4  ;;  %v4239_v4 = vld [vmem:[%s5608_s0 + $0x370] ss:$36 sps:$4 sm:$0xff]  }
 0x133   :  { %v5025_v12 = vadd.f32 %v2184_v11, %v1976_v9  ;;  %v1978_v13 = vpop.f32.mrf.mxu0  ;;  %2622 = vmatprep.mubr.bf16.mxu1 %v4225_v7  ;;  %v4242_v7 = vld [vmem:[%s5608_s0 + $0x378] ss:$36 sps:$4 sm:$0xff]  }
 0x134   :  { %v2186_v14 = vpop.f32.mrf.mxu1  ;;  %v4250_v13 = vld [vmem:[%s5608_s0 + $0x3c4] ss:$36 sps:$4 sm:$0xff]  }
 0x135   :  { %v1979_v15 = vpop.f32.mrf.mxu0 }
 0x136   :  { %v2187_v18 = vpop.f32.mrf.mxu1 }
 0x137   :  { %v5036_v21 = vadd.f32 %v2187_v18, %v1979_v15  ;;  %v1981_v22 = vpop.f32.mrf.mxu0 }
 0x138   :  { %v2189_v25 = vpop.f32.mrf.mxu1 }
 0x139   :  { %v1984_v26 = vpop.f32.mrf.mxu0  ;;  %2415 = vmatmul.mubr.bf16.gmra.mxu0 %v4220_v17 }
 0x13a   :  { %v2192_v27 = vpop.f32.mrf.mxu1  ;;  %2623 = vmatmul.mubr.bf16.gmra.mxu1 %v4223_v19  ;;  %2422 = vmatprep.mubr.bf16.mxu0 %v4228_v20 }
 0x13b   :  { %v5041_v28 = vadd.f32 %v2192_v27, %v1984_v26  ;;  %v1986_v29 = vpop.f32.mrf.mxu0  ;;  %2630 = vmatprep.mubr.bf16.mxu1 %v4231_v23  ;;  %v4245_v23 = vld [vmem:[%s5608_s0 + $0x3b8] ss:$36 sps:$4 sm:$0xff]   ;;  %v4248_v26 = vld [vmem:[%s5608_s0 + $0x3c0] ss:$36 sps:$4 sm:$0xff]  }
 0x13c   :  { %v2194_v31 = vpop.f32.mrf.mxu1  ;;  %v4254_v27 = vld [vmem:[%s5608_s0 + $0x404] ss:$36 sps:$4 sm:$0xff]  }
 0x13d   :  { %v1987_v32 = vpop.f32.mrf.mxu0 }
 0x13e   :  { %v2195_v34 = vpop.f32.mrf.mxu1 }
 0x13f   :  { %v5052_v38 = vadd.f32 %v2195_v34, %v1987_v32  ;;  %v1989_v40 = vpop.f32.mrf.mxu0  ;;  %v4257_v32 = vld [vmem:[%s5608_s0 + $0x40c] ss:$36 sps:$4 sm:$0xff]  }
 0x140   :  { %v2197_v36 = vpop.f32.mrf.mxu1 }
 0x141   :  { %v1992_v41 = vpop.f32.mrf.mxu0  ;;  %2423 = vmatmul.mubr.bf16.gmra.mxu0 %v4226_v33 }
 0x142   :  { %v2200_v42 = vpop.f32.mrf.mxu1  ;;  %2631 = vmatmul.mubr.bf16.gmra.mxu1 %v4229_v35  ;;  %2430 = vmatprep.mubr.bf16.mxu0 %v4234_v37 }
 0x143   :  { %v5057_v44 = vadd.f32 %v2200_v42, %v1992_v41  ;;  %v1994_v45 = vpop.f32.mrf.mxu0  ;;  %2638 = vmatprep.mubr.bf16.mxu1 %v4237_v0  ;;  %v4252_v41 = vld [vmem:[%s5608_s0 + $0x400] ss:$36 sps:$4 sm:$0xff]  }
 0x144   :  { %v2202_v46 = vpop.f32.mrf.mxu1  ;;  %v4255_v45 = vld [vmem:[%s5608_s0 + $0x408] ss:$36 sps:$4 sm:$0xff]  }
 0x145   :  { %v1995_v47 = vpop.f32.mrf.mxu0  ;;  %v4260_v46 = vld [vmem:[%s5608_s0 + $0x44c] ss:$36 sps:$4 sm:$0xff]  }
 0x146   :  { %v2203_v50 = vpop.f32.mrf.mxu1 }
 0x147   :  { %v5068_v54 = vadd.f32 %v2203_v50, %v1995_v47  ;;  %v1997_v55 = vpop.f32.mrf.mxu0  ;;  %v4263_v50 = vld [vmem:[%s5608_s0 + $0x454] ss:$36 sps:$4 sm:$0xff]  }
 0x148   :  { %v2205_v57 = vpop.f32.mrf.mxu1 }
 0x149   :  { %v2000_v60 = vpop.f32.mrf.mxu0  ;;  %2431 = vmatmul.mubr.bf16.gmra.mxu0 %v4232_v48 }
 0x14a   :  { %v2208_v61 = vpop.f32.mrf.mxu1  ;;  %2639 = vmatmul.mubr.bf16.gmra.mxu1 %v4235_v51  ;;  %2438 = vmatprep.mubr.bf16.mxu0 %v4241_v53 }
 0x14b   :  { %v5073_v62 = vadd.f32 %v2208_v61, %v2000_v60  ;;  %v2002_v63 = vpop.f32.mrf.mxu0  ;;  %2646 = vmatprep.mubr.bf16.mxu1 %v4244_v56 }
 0x14c   :  { %v2210_v2 = vpop.f32.mrf.mxu1  ;;  %v4258_v63 = vld [vmem:[%s5608_s0 + $0x448] ss:$36 sps:$4 sm:$0xff]  }
 0x14d   :  { %v2003_v3 = vpop.f32.mrf.mxu0 }
 0x14e   :  { %v2211_v6 = vpop.f32.mrf.mxu1 }
 0x14f   :  { %v5084_v9 = vadd.f32 %v2211_v6, %v2003_v3  ;;  %v2005_v11 = vpop.f32.mrf.mxu0  ;;  %v4261_v3 = vld [vmem:[%s5608_s0 + $0x450] ss:$36 sps:$4 sm:$0xff]  }
 0x150   :  { %v2213_v14 = vpop.f32.mrf.mxu1 }
 0x151   :  { %v2008_v15 = vpop.f32.mrf.mxu0  ;;  %2439 = vmatmul.mubr.bf16.gmra.mxu0 %v4239_v4  ;;  %v4266_v4 = vld [vmem:[%s5608_s0 + $0x494] ss:$36 sps:$4 sm:$0xff]  }
 0x152   :  { %v2216_v17 = vpop.f32.mrf.mxu1  ;;  %2647 = vmatmul.mubr.bf16.gmra.mxu1 %v4242_v7  ;;  %2446 = vmatprep.mubr.bf16.mxu0 %v4247_v8  ;;  %v4269_v8 = vld [vmem:[%s5608_s0 + $0x49c] ss:$36 sps:$4 sm:$0xff]  }
 0x153   :  { %v5089_v18 = vadd.f32 %v2216_v17, %v2008_v15  ;;  %v2010_v19 = vpop.f32.mrf.mxu0  ;;  %2654 = vmatprep.mubr.bf16.mxu1 %v4250_v13 }
 0x154   :  { %v2218_v20 = vpop.f32.mrf.mxu1 }
 0x155   :  { %v2011_v22 = vpop.f32.mrf.mxu0 }
 0x156   :  { %v2219_v25 = vpop.f32.mrf.mxu1 }
 0x157   :  { %v5100_v29 = vadd.f32 %v2219_v25, %v2011_v22  ;;  %v2013_v31 = vpop.f32.mrf.mxu0  ;;  %v4264_v22 = vld [vmem:[%s5608_s0 + $0x490] ss:$36 sps:$4 sm:$0xff]   ;;  %v4267_v25 = vld [vmem:[%s5608_s0 + $0x498] ss:$36 sps:$4 sm:$0xff]  }
 0x158   :  { %v2221_v33 = vpop.f32.mrf.mxu1 }
 0x159   :  { %v2016_v34 = vpop.f32.mrf.mxu0  ;;  %2447 = vmatmul.mubr.bf16.gmra.mxu0 %v4245_v23 }
 0x15a   :  { %v2224_v35 = vpop.f32.mrf.mxu1  ;;  %2655 = vmatmul.mubr.bf16.gmra.mxu1 %v4248_v26  ;;  %2454 = vmatprep.mubr.bf16.mxu0 %v4254_v27  ;;  %v4273_v26 = vld [vmem:[%s5608_s0 + $0x4dc] ss:$36 sps:$4 sm:$0xff]  }
 0x15b   :  { %v5105_v37 = vadd.f32 %v2224_v35, %v2016_v34  ;;  %v2018_v40 = vpop.f32.mrf.mxu0  ;;  %2662 = vmatprep.mubr.bf16.mxu1 %v4257_v32  ;;  %v4276_v32 = vld [vmem:[%s5608_s0 + $0x4e4] ss:$36 sps:$4 sm:$0xff]  }
 0x15c   :  { %v2226_v0 = vpop.f32.mrf.mxu1 }
 0x15d   :  { %v2019_v36 = vpop.f32.mrf.mxu0 }
 0x15e   :  { %v2227_v42 = vpop.f32.mrf.mxu1 }
 0x15f   :  { %v5116_v47 = vadd.f32 %v2227_v42, %v2019_v36  ;;  %v2021_v48 = vpop.f32.mrf.mxu0  ;;  %v4271_v42 = vld [vmem:[%s5608_s0 + $0x4d8] ss:$36 sps:$4 sm:$0xff]  }
 0x160   :  { %v2229_v51 = vpop.f32.mrf.mxu1  ;;  %v4279_v48 = vld [vmem:[%s5608_s0 + $0x524] ss:$36 sps:$4 sm:$0xff]  }
 0x161   :  { %v2024_v53 = vpop.f32.mrf.mxu0  ;;  %2455 = vmatmul.mubr.bf16.gmra.mxu0 %v4252_v41 }
 0x162   :  { %v2232_v55 = vpop.f32.mrf.mxu1  ;;  %2663 = vmatmul.mubr.bf16.gmra.mxu1 %v4255_v45  ;;  %2462 = vmatprep.mubr.bf16.mxu0 %v4260_v46  ;;  %v4274_v46 = vld [vmem:[%s5608_s0 + $0x4e0] ss:$36 sps:$4 sm:$0xff]  }
 0x163   :  { %v5121_v56 = vadd.f32 %v2232_v55, %v2024_v53  ;;  %v2026_v57 = vpop.f32.mrf.mxu0  ;;  %2670 = vmatprep.mubr.bf16.mxu1 %v4263_v50  ;;  %v4282_v53 = vld [vmem:[%s5608_s0 + $0x52c] ss:$36 sps:$4 sm:$0xff]  }
 0x164   :  { %v2234_v60 = vpop.f32.mrf.mxu1 }
 0x165   :  { %v2027_v61 = vpop.f32.mrf.mxu0 }
 0x166   :  { %v2235_v2 = vpop.f32.mrf.mxu1 }
 0x167   :  { %v5132_v6 = vadd.f32 %v2235_v2, %v2027_v61  ;;  %v2029_v7 = vpop.f32.mrf.mxu0 }
 0x168   :  { %v2237_v11 = vpop.f32.mrf.mxu1 }
 0x169   :  { %v2032_v13 = vpop.f32.mrf.mxu0  ;;  %2463 = vmatmul.mubr.bf16.gmra.mxu0 %v4258_v63  ;;  %v4285_v11 = vld [vmem:[%s5608_s0 + $0x56c] ss:$36 sps:$4 sm:$0xff]  }
 0x16a   :  { %v2240_v14 = vpop.f32.mrf.mxu1  ;;  %2671 = vmatmul.mubr.bf16.gmra.mxu1 %v4261_v3  ;;  %2470 = vmatprep.mubr.bf16.mxu0 %v4266_v4  ;;  %v4277_v4 = vld [vmem:[%s5608_s0 + $0x520] ss:$36 sps:$4 sm:$0xff]  }
 0x16b   :  { %v5137_v15 = vadd.f32 %v2240_v14, %v2032_v13  ;;  %v2034_v17 = vpop.f32.mrf.mxu0  ;;  %2678 = vmatprep.mubr.bf16.mxu1 %v4269_v8  ;;  %v4280_v8 = vld [vmem:[%s5608_s0 + $0x528] ss:$36 sps:$4 sm:$0xff]  }
 0x16c   :  { %v2242_v19 = vpop.f32.mrf.mxu1  ;;  %v4288_v17 = vld [vmem:[%s5608_s0 + $0x574] ss:$36 sps:$4 sm:$0xff]  }
 0x16d   :  { %v2035_v20 = vpop.f32.mrf.mxu0 }
 0x16e   :  { %v2243_v23 = vpop.f32.mrf.mxu1 }
 0x16f   :  { %v5148_v27 = vadd.f32 %v2243_v23, %v2035_v20  ;;  %v2037_v31 = vpop.f32.mrf.mxu0 }
 0x170   :  { %v2245_v33 = vpop.f32.mrf.mxu1 }
 0x171   :  { %v2040_v34 = vpop.f32.mrf.mxu0  ;;  %2471 = vmatmul.mubr.bf16.gmra.mxu0 %v4264_v22 }
 0x172   :  { %v2248_v35 = vpop.f32.mrf.mxu1  ;;  %2679 = vmatmul.mubr.bf16.gmra.mxu1 %v4267_v25  ;;  %2478 = vmatprep.mubr.bf16.mxu0 %v4273_v26 }
 0x173   :  { %v5153_v40 = vadd.f32 %v2248_v35, %v2040_v34  ;;  %v2042_v0 = vpop.f32.mrf.mxu0  ;;  %2686 = vmatprep.mubr.bf16.mxu1 %v4276_v32  ;;  %v4283_v32 = vld [vmem:[%s5608_s0 + $0x568] ss:$36 sps:$4 sm:$0xff]   ;;  %v4286_v34 = vld [vmem:[%s5608_s0 + $0x570] ss:$36 sps:$4 sm:$0xff]  }
 0x174   :  { %v2250_v36 = vpop.f32.mrf.mxu1  ;;  %v4292_v35 = vld [vmem:[%s5608_s0 + $0x5b4] ss:$36 sps:$4 sm:$0xff]  }
 0x175   :  { %v2043_v41 = vpop.f32.mrf.mxu0 }
 0x176   :  { %v2251_v45 = vpop.f32.mrf.mxu1 }
 0x177   :  { %v5164_v50 = vadd.f32 %v2251_v45, %v2043_v41  ;;  %v2045_v51 = vpop.f32.mrf.mxu0  ;;  %v4295_v41 = vld [vmem:[%s5608_s0 + $0x5bc] ss:$36 sps:$4 sm:$0xff]  }
 0x178   :  { %v2253_v55 = vpop.f32.mrf.mxu1 }
 0x179   :  { %v2048_v57 = vpop.f32.mrf.mxu0  ;;  %2479 = vmatmul.mubr.bf16.gmra.mxu0 %v4271_v42 }
 0x17a   :  { %v2256_v60 = vpop.f32.mrf.mxu1  ;;  %2687 = vmatmul.mubr.bf16.gmra.mxu1 %v4274_v46  ;;  %2486 = vmatprep.mubr.bf16.mxu0 %v4279_v48 }
 0x17b   :  { %v5169_v61 = vadd.f32 %v2256_v60, %v2048_v57  ;;  %v2050_v63 = vpop.f32.mrf.mxu0  ;;  %2694 = vmatprep.mubr.bf16.mxu1 %v4282_v53  ;;  %v317_v53 = vld [vmem:[%s5608_s0 + $0x5f8] sm:$0xff]  ;;  %v318_v57 = vld [vmem:[%s5608_s0 + $0x600] sm:$0xff] }
 0x17c   :  { %v2258_v2 = vpop.f32.mrf.mxu1  ;;  %v4290_v63 = vld [vmem:[%s5608_s0 + $0x5b0] ss:$36 sps:$4 sm:$0xff]  }
 0x17d   :  { %v2051_v3 = vpop.f32.mrf.mxu0 }
 0x17e   :  { %v2259_v7 = vpop.f32.mrf.mxu1 }
 0x17f   :  { %v5180_v13 = vadd.f32 %v2259_v7, %v2051_v3  ;;  %v2053_v14 = vpop.f32.mrf.mxu0  ;;  %v4293_v3 = vld [vmem:[%s5608_s0 + $0x5b8] ss:$36 sps:$4 sm:$0xff]  }
 0x180   :  { %v2261_v19 = vpop.f32.mrf.mxu1 }
 0x181   :  { %v2056_v20 = vpop.f32.mrf.mxu0  ;;  %2487 = vmatmul.mubr.bf16.gmra.mxu0 %v4277_v4  ;;  %v3573_v4 = vcombine.high %v317_v53, %v317_v53 }
 0x182   :  { %v2264_v22 = vpop.f32.mrf.mxu1  ;;  %2695 = vmatmul.mubr.bf16.gmra.mxu1 %v4280_v8  ;;  %2494 = vmatprep.mubr.bf16.mxu0 %v4285_v11  ;;  %v3575_v11 = vcombine.high %v318_v57, %v318_v57 }
 0x183   :  { %v5185_v23 = vadd.f32 %v2264_v22, %v2056_v20  ;;  %v2058_v25 = vpop.f32.mrf.mxu0  ;;  %2702 = vmatprep.mubr.bf16.mxu1 %v4288_v17 }
 0x184   :  { %v2266_v26 = vpop.f32.mrf.mxu1 }
 0x185   :  { %v2059_v31 = vpop.f32.mrf.mxu0 }
 0x186   :  { %v2267_v33 = vpop.f32.mrf.mxu1 }
 0x187   :  { %v5196_v0 = vadd.f32 %v2267_v33, %v2059_v31  ;;  %v2061_v36 = vpop.f32.mrf.mxu0  ;;  %v3572_v31 = vcombine.low %v317_v53, %v317_v53  ;;  %v3574_v33 = vcombine.low %v318_v57, %v318_v57 }
 0x188   :  { %v2269_v42 = vpop.f32.mrf.mxu1 }
 0x189   :  { %v2064_v45 = vpop.f32.mrf.mxu0  ;;  %2495 = vmatmul.mubr.bf16.gmra.mxu0 %v4283_v32 }
 0x18a   :  { %v2272_v46 = vpop.f32.mrf.mxu1  ;;  %2703 = vmatmul.mubr.bf16.gmra.mxu1 %v4286_v34  ;;  %2502 = vmatprep.mubr.bf16.mxu0 %v4292_v35  ;;  %v4300_v34 = vld [vmem:[%s5608_s0 + $0x20] ss:$36 sps:$4 sm:$0xff]  }
 0x18b   :  { %v5201_v48 = vadd.f32 %v2272_v46, %v2064_v45  ;;  %v2066_v51 = vpop.f32.mrf.mxu0  ;;  %2710 = vmatprep.mubr.bf16.mxu1 %v4295_v41  ;;  %v4301_v41 = vld [vmem:[%s5608_s0 + $0x380] ss:$36 sps:$4 sm:$0xff]  }
 0x18c   :  { %v2274_v55 = vpop.f32.mrf.mxu1 }
 0x18d   :  { %v2067_v60 = vpop.f32.mrf.mxu0 }
 0x18e   :  { %v2275_v2 = vpop.f32.mrf.mxu1 }
 0x18f   :  { %v5215_v7 = vadd.f32 %v2275_v2, %v2067_v60  ;;  %v2069_v8 = vpop.f32.mrf.mxu0  ;;  %v4302_v60 = vld [vmem:[%s5608_s0 + $0x68] ss:$36 sps:$4 sm:$0xff]  }
 0x190   :  { %v2277_v14 = vpop.f32.mrf.mxu1  ;;  %v4303_v2 = vld [vmem:[%s5608_s0 + $0x3c8] ss:$36 sps:$4 sm:$0xff]  }
 0x191   :  { %v2072_v17 = vpop.f32.mrf.mxu0  ;;  %2503 = vmatmul.mubr.bf16.gmra.mxu0 %v4290_v63 }
 0x192   :  { %v2280_v19 = vpop.f32.mrf.mxu1  ;;  %2711 = vmatmul.mubr.bf16.gmra.mxu1 %v4293_v3  ;;  %2510 = vmatprep.mubr.bf16.mxu0 %v3573_v4  ;;  %v4304_v3 = vld [vmem:[%s5608_s0 + $0xb0] ss:$36 sps:$4 sm:$0xff]  }
 0x193   :  { %v5217_v20 = vadd.f32 %v2280_v19, %v2072_v17  ;;  %v2074_v22 = vpop.f32.mrf.mxu0  ;;  %2718 = vmatprep.mubr.bf16.mxu1 %v3575_v11  ;;  %v4305_v11 = vld [vmem:[%s5608_s0 + $0x410] ss:$36 sps:$4 sm:$0xff]  }
 0x194   :  { %v2282_v25 = vpop.f32.mrf.mxu1 }
 0x195   :  { %v2075_v26 = vpop.f32.mrf.mxu0 }
 0x196   :  { %v2283_v32 = vpop.f32.mrf.mxu1 }
 0x197   :  { %v5222_v35 = vadd.f32 %v2283_v32, %v2075_v26  ;;  %v2077_v36 = vpop.f32.mrf.mxu0  ;;  %v4306_v32 = vld [vmem:[%s5608_s0 + $0xf8] ss:$36 sps:$4 sm:$0xff]  }
 0x198   :  { %v2285_v42 = vpop.f32.mrf.mxu1  ;;  %v4308_v36 = vld [vmem:[%s5608_s0 + $0x140] ss:$36 sps:$4 sm:$0xff]  }
 0x199   :  { %v2080_v45 = vpop.f32.mrf.mxu0  ;;  %2511 = vmatmul.mubr.bf16.gmra.mxu0 %v3572_v31 }
 0x19a   :  { %v2288_v46 = vpop.f32.mrf.mxu1  ;;  %2719 = vmatmul.mubr.bf16.gmra.mxu1 %v3574_v33  ;;  %3907 = vmatprep.mubr.bf16.mxu0 %v4300_v34  ;;  %v4307_v34 = vld [vmem:[%s5608_s0 + $0x458] ss:$36 sps:$4 sm:$0xff]  }
 0x19b   :  { %v5227_v51 = vadd.f32 %v2288_v46, %v2080_v45  ;;  %v2082_v53 = vpop.f32.mrf.mxu0  ;;  %3931 = vmatprep.mubr.bf16.mxu1 %v4301_v41  ;;  %v4309_v45 = vld [vmem:[%s5608_s0 + $0x4a0] ss:$36 sps:$4 sm:$0xff]  }
 0x19c   :  { %v2290_v55 = vpop.f32.mrf.mxu1 }
 0x19d   :  { %v2083_v57 = vpop.f32.mrf.mxu0 }
 0x19e   :  { %v2291_v63 = vpop.f32.mrf.mxu1 }
 0x19f   :  { %v5238_v4 = vadd.f32 %v2291_v63, %v2083_v57  ;;  %v2085_v8 = vpop.f32.mrf.mxu0 }
 0x1a0   :  { %v2293_v14 = vpop.f32.mrf.mxu1 }
 0x1a1   :  { %v2088_v17 = vpop.f32.mrf.mxu0  ;;  %3908 = vmatmul.mubr.bf16.vlgmr.msra.gmra.mxu0 %v4302_v60  ;;  %v4312_v14 = vld [vmem:[%s5608_s0 + $0x1d0] ss:$36 sps:$4 sm:$0xff]  }
 0x1a2   :  { %v2296_v19 = vpop.f32.mrf.mxu1  ;;  %3932 = vmatmul.mubr.bf16.vlgmr.msra.gmra.mxu1 %v4303_v2  ;;  %3911 = vmatprep.mubr.bf16.mxu0 %v4304_v3  ;;  %v4310_v3 = vld [vmem:[%s5608_s0 + $0x188] ss:$36 sps:$4 sm:$0xff]  }
 0x1a3   :  { %v5243_v22 = vadd.f32 %v2296_v19, %v2088_v17  ;;  %v2090_v25 = vpop.f32.mrf.mxu0  ;;  %3935 = vmatprep.mubr.bf16.mxu1 %v4305_v11  ;;  %v4311_v11 = vld [vmem:[%s5608_s0 + $0x4e8] ss:$36 sps:$4 sm:$0xff]   ;;  %v4313_v19 = vld [vmem:[%s5608_s0 + $0x530] ss:$36 sps:$4 sm:$0xff]  }
 0x1a4   :  { %v2298_v26 = vpop.f32.mrf.mxu1 }
 0x1a5   :  { %v2091_v31 = vpop.f32.mrf.mxu0 }
 0x1a6   :  { %v2299_v33 = vpop.f32.mrf.mxu1 }
 0x1a7   :  { %v5254_v41 = vadd.f32 %v2299_v33, %v2091_v31  ;;  %v2093_v42 = vpop.f32.mrf.mxu0 }
 0x1a8   :  { %v2301_v46 = vpop.f32.mrf.mxu1 }
 0x1a9   :  { %5611 = vst [vmem:[#allocation3_spill] sm:$0xff] %v5254_v41  ;;  %v2096_v53 = vpop.f32.mrf.mxu0  ;;  %3912 = vmatmul.mubr.bf16.gmra.mxu0 %v4306_v32 }
 0x1aa   :  { %v2304_v55 = vpop.f32.mrf.mxu1  ;;  %3936 = vmatmul.mubr.bf16.gmra.mxu1 %v4307_v34  ;;  %3915 = vmatprep.mubr.bf16.mxu0 %v4308_v36 }
 0x1ab   :  { %v5259_v57 = vadd.f32 %v2304_v55, %v2096_v53  ;;  %v2098_v60 = vpop.f32.mrf.mxu0  ;;  %3939 = vmatprep.mubr.bf16.mxu1 %v4309_v45  ;;  %v4314_v45 = vld [vmem:[%s5608_s0 + $0x218] ss:$36 sps:$4 sm:$0xff]   ;;  %v4316_v55 = vld [vmem:[%s5608_s0 + $0x260] ss:$36 sps:$4 sm:$0xff]  }
 0x1ac   :  { %v2306_v63 = vpop.f32.mrf.mxu1 }
 0x1ad   :  { %v2099_v2 = vpop.f32.mrf.mxu0  ;;  %v4317_v63 = vld [vmem:[%s5608_s0 + $0x5c0] ss:$36 sps:$4 sm:$0xff]  }
 0x1ae   :  { %v2307_v8 = vpop.f32.mrf.mxu1 }
 0x1af   :  { %v2100_v17 = vpop.f32.mrf.mxu0 }
 0x1b0   :  { %v2308_v25 = vpop.f32.mrf.mxu1 }
 0x1b1   :  { %v2344_v26 = vpop.f32.mrf.mxu0  ;;  %3916 = vmatmul.mubr.bf16.gmra.mxu0 %v4310_v3 }
 0x1b2   :  { %v2345_v31 = vadd.f32 %v2344_v26, %v4923_v49  ;;  %v2552_v32 = vpop.f32.mrf.mxu1  ;;  %3940 = vmatmul.mubr.bf16.gmra.mxu1 %v4311_v11  ;;  %3919 = vmatprep.mubr.bf16.mxu0 %v4312_v14  ;;  %v4315_v49 = vld [vmem:[%s5608_s0 + $0x578] ss:$36 sps:$4 sm:$0xff]   ;;  %v4318_v26 = vld [vmem:[%s5608_s0 + $0x2a8] ss:$36 sps:$4 sm:$0xff]  }
 0x1b3   :  { %v2346_v33 = vpop.f32.mrf.mxu0  ;;  %3943 = vmatprep.mubr.bf16.mxu1 %v4313_v19 }
 0x1b4   :  { %v5274_v34 = vadd.f32 %v2552_v32, %v2345_v31  ;;  %v2554_v36 = vpop.f32.mrf.mxu1  ;;  %v4320_v33 = vld [vmem:[%s5608_s0 + $0x2f0] ss:$36 sps:$4 sm:$0xff]  }
 0x1b5   :  { %v2347_v42 = vpop.f32.mrf.mxu0 }
 0x1b6   :  { %v2348_v46 = vadd.f32 %v2347_v42, %v4937_v58  ;;  %v2555_v53 = vpop.f32.mrf.mxu1 }
 0x1b7   :  { %v2349_v60 = vpop.f32.mrf.mxu0 }
 0x1b8   :  { %v5289_v2 = vadd.f32 %v2555_v53, %v2348_v46  ;;  %v2557_v3 = vpop.f32.mrf.mxu1 }
 0x1b9   :  { %v2352_v8 = vpop.f32.mrf.mxu0  ;;  %3920 = vmatmul.mubr.bf16.gmra.mxu0 %v4314_v45  ;;  %v4321_v3 = vld [vmem:[%s5608_s0 + $0x338] ss:$36 sps:$4 sm:$0xff]  }
 0x1ba   :  { %v2353_v58 = vadd.f32 %v2352_v8, %v4942_v1  ;;  %v2560_v11 = vpop.f32.mrf.mxu1  ;;  %3944 = vmatmul.mubr.bf16.gmra.mxu1 %v4315_v49  ;;  %3923 = vmatprep.mubr.bf16.mxu0 %v4316_v55  ;;  %v4319_v1 = vld [vmem:[%s5608_s0 + $0x608] ss:$0 sps:$4 sm:$0xff]  }
 0x1bb   :  { %v2354_v14 = vpop.f32.mrf.mxu0  ;;  %3947 = vmatprep.mubr.bf16.mxu1 %v4317_v63 }
 0x1bc   :  { %v5292_v17 = vadd.f32 %v2560_v11, %v2353_v58  ;;  %v2562_v19 = vpop.f32.mrf.mxu1 }
 0x1bd   :  { %v2355_v25 = vpop.f32.mrf.mxu0 }
 0x1be   :  { %v2356_v31 = vadd.f32 %v2355_v25, %v4956_v10  ;;  %v2563_v32 = vpop.f32.mrf.mxu1 }
 0x1bf   :  { %v2357_v36 = vpop.f32.mrf.mxu0 }
 0x1c0   :  { %v5304_v42 = vadd.f32 %v2563_v32, %v2356_v31  ;;  %v2565_v45 = vpop.f32.mrf.mxu1 }
 0x1c1   :  { %v2360_v46 = vpop.f32.mrf.mxu0  ;;  %3924 = vmatmul.mubr.bf16.gmra.mxu0 %v4318_v26 }
 0x1c2   :  { %v2361_v53 = vadd.f32 %v2360_v46, %v4961_v16  ;;  %v2568_v49 = vpop.f32.mrf.mxu1  ;;  %3948 = vmatmul.mubr.bf16.gmra.mxu1 %v4319_v1  ;;  %3927 = vmatprep.mubr.bf16.mxu0 %v4320_v33 }
 0x1c3   :  { %v2362_v10 = vpop.f32.mrf.mxu0 }
 0x1c4   :  { %v5307_v55 = vadd.f32 %v2568_v49, %v2361_v53  ;;  %v2570_v60 = vpop.f32.mrf.mxu1 }
 0x1c5   :  { %v2363_v63 = vpop.f32.mrf.mxu0 }
 0x1c6   :  { %v2364_v8 = vadd.f32 %v2363_v63, %v4972_v24  ;;  %v2571_v58 = vpop.f32.mrf.mxu1 }
 0x1c7   :  { %v2365_v11 = vpop.f32.mrf.mxu0 }
 0x1c8   :  { %v5313_v14 = vadd.f32 %v2571_v58, %v2364_v8  ;;  %v2573_v19 = vpop.f32.mrf.mxu1 }
 0x1c9   :  { %v2368_v16 = vpop.f32.mrf.mxu0  ;;  %3928 = vmatmul.mubr.bf16.gmra.mxu0 %v4321_v3 }
 0x1ca   :  { %v2369_v25 = vadd.f32 %v2368_v16, %v4977_v30  ;;  %v2576_v26 = vpop.f32.mrf.mxu1 }
 0x1cb   :  { %v2370_v31 = vpop.f32.mrf.mxu0 }
 0x1cc   :  { %v5316_v32 = vadd.f32 %v2576_v26, %v2369_v25  ;;  %v2578_v1 = vpop.f32.mrf.mxu1 }
 0x1cd   :  { %v2371_v33 = vpop.f32.mrf.mxu0 }
 0x1ce   :  { %v2372_v36 = vadd.f32 %v2371_v33, %v4988_v39  ;;  %v2579_v45 = vpop.f32.mrf.mxu1 }
 0x1cf   :  { %v2373_v46 = vpop.f32.mrf.mxu0 }
 0x1d0   :  { %v5319_v24 = vadd.f32 %v2579_v45, %v2372_v36  ;;  %v2581_v53 = vpop.f32.mrf.mxu1 }
 0x1d1   :  { %v2376_v49 = vpop.f32.mrf.mxu0 }
 0x1d2   :  { %v2377_v10 = vadd.f32 %v2376_v49, %v4993_v43  ;;  %v2584_v60 = vpop.f32.mrf.mxu1 }
 0x1d3   :  { %v2378_v63 = vpop.f32.mrf.mxu0 }
 0x1d4   :  { %v5322_v3 = vadd.f32 %v2584_v60, %v2377_v10  ;;  %v2586_v30 = vpop.f32.mrf.mxu1 }
 0x1d5   :  { %v2379_v8 = vpop.f32.mrf.mxu0 }
 0x1d6   :  { %v2380_v58 = vadd.f32 %v2379_v8, %v5004_v52  ;;  %v2587_v11 = vpop.f32.mrf.mxu1 }
 0x1d7   :  { %v2381_v19 = vpop.f32.mrf.mxu0 }
 0x1d8   :  { %v5325_v16 = vadd.f32 %v2587_v11, %v2380_v58  ;;  %v2589_v39 = vpop.f32.mrf.mxu1 }
 0x1d9   :  { %v2384_v25 = vpop.f32.mrf.mxu0 }
 0x1da   :  { %v2385_v26 = vadd.f32 %v2384_v25, %v5009_v59  ;;  %v2592_v31 = vpop.f32.mrf.mxu1 }
 0x1db   :  { %v2386_v1 = vpop.f32.mrf.mxu0 }
 0x1dc   :  { %v5328_v33 = vadd.f32 %v2592_v31, %v2385_v26  ;;  %v2594_v43 = vpop.f32.mrf.mxu1 }
 0x1dd   :  { %v2387_v36 = vpop.f32.mrf.mxu0 }
 0x1de   :  { %v2388_v45 = vadd.f32 %v2387_v36, %v5020_v5  ;;  %v2595_v46 = vpop.f32.mrf.mxu1 }
 0x1df   :  { %v2389_v53 = vpop.f32.mrf.mxu0 }
 0x1e0   :  { %v5331_v49 = vadd.f32 %v2595_v46, %v2388_v45  ;;  %v2597_v52 = vpop.f32.mrf.mxu1 }
 0x1e1   :  { %v2392_v10 = vpop.f32.mrf.mxu0 }
 0x1e2   :  { %v2393_v60 = vadd.f32 %v2392_v10, %v5025_v12  ;;  %v2600_v63 = vpop.f32.mrf.mxu1 }
 0x1e3   :  { %v2394_v30 = vpop.f32.mrf.mxu0 }
 0x1e4   :  { %v5334_v8 = vadd.f32 %v2600_v63, %v2393_v60  ;;  %v2602_v59 = vpop.f32.mrf.mxu1 }
 0x1e5   :  { %v2395_v58 = vpop.f32.mrf.mxu0 }
 0x1e6   :  { %v2396_v11 = vadd.f32 %v2395_v58, %v5036_v21  ;;  %v2603_v19 = vpop.f32.mrf.mxu1 }
 0x1e7   :  { %v2397_v39 = vpop.f32.mrf.mxu0 }
 0x1e8   :  { %v5337_v25 = vadd.f32 %v2603_v19, %v2396_v11  ;;  %v2605_v5 = vpop.f32.mrf.mxu1 }
 0x1e9   :  { %v2400_v26 = vpop.f32.mrf.mxu0 }
 0x1ea   :  { %5612 = vst [vmem:[#allocation4_spill] sm:$0xff] %v5337_v25  ;;  %v2401_v31 = vadd.f32 %v2400_v26, %v5041_v28  ;;  %v2608_v1 = vpop.f32.mrf.mxu1 }
 0x1eb   :  { %v2402_v43 = vpop.f32.mrf.mxu0 }
 0x1ec   :  { %v5340_v36 = vadd.f32 %v2608_v1, %v2401_v31  ;;  %v2610_v12 = vpop.f32.mrf.mxu1 }
 0x1ed   :  { %v2403_v45 = vpop.f32.mrf.mxu0 }
 0x1ee   :  { %v2404_v46 = vadd.f32 %v2403_v45, %v5052_v38  ;;  %v2611_v53 = vpop.f32.mrf.mxu1 }
 0x1ef   :  { %v2405_v52 = vpop.f32.mrf.mxu0 }
 0x1f0   :  { %v5343_v10 = vadd.f32 %v2611_v53, %v2404_v46  ;;  %v2613_v21 = vpop.f32.mrf.mxu1 }
 0x1f1   :  { %v2408_v60 = vpop.f32.mrf.mxu0 }
 0x1f2   :  { %v2409_v63 = vadd.f32 %v2408_v60, %v5057_v44  ;;  %v2616_v30 = vpop.f32.mrf.mxu1 }
 0x1f3   :  { %v2410_v59 = vpop.f32.mrf.mxu0 }
 0x1f4   :  { %v5346_v58 = vadd.f32 %v2616_v30, %v2409_v63  ;;  %v2618_v28 = vpop.f32.mrf.mxu1 }
 0x1f5   :  { %v2411_v11 = vpop.f32.mrf.mxu0 }
 0x1f6   :  { %5613 = vst [vmem:[#allocation5_spill] sm:$0xff] %v5346_v58  ;;  %v2412_v19 = vadd.f32 %v2411_v11, %v5068_v54  ;;  %v2619_v39 = vpop.f32.mrf.mxu1 }
 0x1f7   :  { %v2413_v5 = vpop.f32.mrf.mxu0 }
 0x1f8   :  { %v5349_v26 = vadd.f32 %v2619_v39, %v2412_v19  ;;  %v2621_v38 = vpop.f32.mrf.mxu1 }
 0x1f9   :  { %v2416_v31 = vpop.f32.mrf.mxu0 }
 0x1fa   :  { %5614 = vst [vmem:[#allocation6_spill] sm:$0xff] %v5349_v26  ;;  %v2417_v1 = vadd.f32 %v2416_v31, %v5073_v62  ;;  %v2624_v43 = vpop.f32.mrf.mxu1 }
 0x1fb   :  { %v2418_v12 = vpop.f32.mrf.mxu0 }
 0x1fc   :  { %v5352_v45 = vadd.f32 %v2624_v43, %v2417_v1  ;;  %v2626_v44 = vpop.f32.mrf.mxu1 }
 0x1fd   :  { %v2419_v46 = vpop.f32.mrf.mxu0 }
 0x1fe   :  { %5615 = vst [vmem:[#allocation7_spill] sm:$0xff] %v5352_v45  ;;  %v2420_v53 = vadd.f32 %v2419_v46, %v5084_v9  ;;  %v2627_v52 = vpop.f32.mrf.mxu1 }
 0x1ff   :  { %v2421_v21 = vpop.f32.mrf.mxu0 }
 0x200   :  { %v5355_v60 = vadd.f32 %v2627_v52, %v2420_v53  ;;  %v2629_v54 = vpop.f32.mrf.mxu1 }
 0x201   :  { %v2424_v63 = vpop.f32.mrf.mxu0 }
 0x202   :  { %5616 = vst [vmem:[#allocation8_spill] sm:$0xff] %v5355_v60  ;;  %v2425_v30 = vadd.f32 %v2424_v63, %v5089_v18  ;;  %v2632_v59 = vpop.f32.mrf.mxu1 }
 0x203   :  { %v2426_v28 = vpop.f32.mrf.mxu0 }
 0x204   :  { %v5358_v11 = vadd.f32 %v2632_v59, %v2425_v30  ;;  %v2634_v62 = vpop.f32.mrf.mxu1 }
 0x205   :  { %v2427_v19 = vpop.f32.mrf.mxu0 }
 0x206   :  { %5617 = vst [vmem:[#allocation9_spill] sm:$0xff] %v5358_v11  ;;  %v2428_v39 = vadd.f32 %v2427_v19, %v5100_v29  ;;  %v2635_v5 = vpop.f32.mrf.mxu1 }
 0x207   :  { %v2429_v38 = vpop.f32.mrf.mxu0 }
 0x208   :  { %v5361_v31 = vadd.f32 %v2635_v5, %v2428_v39  ;;  %v2637_v9 = vpop.f32.mrf.mxu1 }
 0x209   :  { %v2432_v1 = vpop.f32.mrf.mxu0 }
 0x20a   :  { %5618 = vst [vmem:[#allocation10_spill] sm:$0xff] %v5361_v31  ;;  %v2433_v43 = vadd.f32 %v2432_v1, %v5105_v37  ;;  %v2640_v12 = vpop.f32.mrf.mxu1 }
 0x20b   :  { %v2434_v44 = vpop.f32.mrf.mxu0 }
 0x20c   :  { %v5364_v46 = vadd.f32 %v2640_v12, %v2433_v43  ;;  %v2642_v18 = vpop.f32.mrf.mxu1 }
 0x20d   :  { %v2435_v53 = vpop.f32.mrf.mxu0 }
 0x20e   :  { %5619 = vst [vmem:[#allocation11_spill] sm:$0xff] %v5364_v46  ;;  %v2436_v52 = vadd.f32 %v2435_v53, %v5116_v47  ;;  %v2643_v21 = vpop.f32.mrf.mxu1 }
 0x20f   :  { %v2437_v54 = vpop.f32.mrf.mxu0 }
 0x210   :  { %v5367_v63 = vadd.f32 %v2643_v21, %v2436_v52  ;;  %v2645_v29 = vpop.f32.mrf.mxu1 }
 0x211   :  { %v2440_v30 = vpop.f32.mrf.mxu0 }
 0x212   :  { %5620 = vst [vmem:[#allocation12_spill] sm:$0xff] %v5367_v63  ;;  %v2441_v59 = vadd.f32 %v2440_v30, %v5121_v56  ;;  %v2648_v28 = vpop.f32.mrf.mxu1 }
 0x213   :  { %v2442_v62 = vpop.f32.mrf.mxu0 }
 0x214   :  { %v5370_v19 = vadd.f32 %v2648_v28, %v2441_v59  ;;  %v2650_v37 = vpop.f32.mrf.mxu1 }
 0x215   :  { %v2443_v39 = vpop.f32.mrf.mxu0 }
 0x216   :  { %v2444_v5 = vadd.f32 %v2443_v39, %v5132_v6  ;;  %v2651_v38 = vpop.f32.mrf.mxu1 }
 0x217   :  { %v2445_v9 = vpop.f32.mrf.mxu0 }
 0x218   :  { %v5373_v1 = vadd.f32 %v2651_v38, %v2444_v5  ;;  %v2653_v47 = vpop.f32.mrf.mxu1 }
 0x219   :  { %v2448_v43 = vpop.f32.mrf.mxu0 }
 0x21a   :  { %v2449_v12 = vadd.f32 %v2448_v43, %v5137_v15  ;;  %v2656_v44 = vpop.f32.mrf.mxu1 }
 0x21b   :  { %v2450_v18 = vpop.f32.mrf.mxu0 }
 0x21c   :  { %v5376_v53 = vadd.f32 %v2656_v44, %v2449_v12  ;;  %v2658_v56 = vpop.f32.mrf.mxu1 }
 0x21d   :  { %v2451_v52 = vpop.f32.mrf.mxu0 }
 0x21e   :  { %v2452_v21 = vadd.f32 %v2451_v52, %v5148_v27  ;;  %v2659_v54 = vpop.f32.mrf.mxu1 }
 0x21f   :  { %v2453_v29 = vpop.f32.mrf.mxu0 }
 0x220   :  { %v5379_v30 = vadd.f32 %v2659_v54, %v2452_v21  ;;  %v2661_v6 = vpop.f32.mrf.mxu1 }
 0x221   :  { %v2456_v59 = vpop.f32.mrf.mxu0 }
 0x222   :  { %v2457_v28 = vadd.f32 %v2456_v59, %v5153_v40  ;;  %v2664_v62 = vpop.f32.mrf.mxu1 }
 0x223   :  { %v2458_v37 = vpop.f32.mrf.mxu0 }
 0x224   :  { %v5382_v39 = vadd.f32 %v2664_v62, %v2457_v28  ;;  %v2666_v15 = vpop.f32.mrf.mxu1 }
 0x225   :  { %v2459_v5 = vpop.f32.mrf.mxu0 }
 0x226   :  { %v2460_v38 = vadd.f32 %v2459_v5, %v5164_v50  ;;  %v2667_v9 = vpop.f32.mrf.mxu1 }
 0x227   :  { %v2461_v47 = vpop.f32.mrf.mxu0 }
 0x228   :  { %v5385_v43 = vadd.f32 %v2667_v9, %v2460_v38  ;;  %v2669_v27 = vpop.f32.mrf.mxu1 }
 0x229   :  { %v2464_v12 = vpop.f32.mrf.mxu0 }
 0x22a   :  { %v2465_v44 = vadd.f32 %v2464_v12, %v5169_v61  ;;  %v2672_v18 = vpop.f32.mrf.mxu1 }
 0x22b   :  { %v2466_v56 = vpop.f32.mrf.mxu0 }
 0x22c   :  { %v5388_v52 = vadd.f32 %v2672_v18, %v2465_v44  ;;  %v2674_v40 = vpop.f32.mrf.mxu1 }
 0x22d   :  { %v2467_v21 = vpop.f32.mrf.mxu0 }
 0x22e   :  { %v5390_v54 = vpop.f32.mrf.mxu1 }
 0x22f   :  { %v2469_v29 = vpop.f32.mrf.mxu0 }
 0x230   :  { %v2677_v6 = vpop.f32.mrf.mxu1 }
 0x231   :  { %v2472_v59 = vpop.f32.mrf.mxu0 }
 0x232   :  { %v2473_v50 = vadd.f32 %v2472_v59, %v5185_v23  ;;  %v2680_v28 = vpop.f32.mrf.mxu1 }
 0x233   :  { %v2474_v62 = vpop.f32.mrf.mxu0 }
 0x234   :  { %v5393_v37 = vadd.f32 %v2680_v28, %v2473_v50  ;;  %v2682_v15 = vpop.f32.mrf.mxu1 }
 0x235   :  { %v2475_v5 = vpop.f32.mrf.mxu0 }
 0x236   :  { %v2476_v61 = vadd.f32 %v2475_v5, %v5196_v0  ;;  %v2683_v38 = vpop.f32.mrf.mxu1 }
 0x237   :  { %v2477_v9 = vpop.f32.mrf.mxu0 }
 0x238   :  { %v5396_v47 = vadd.f32 %v2683_v38, %v2476_v61  ;;  %v2685_v27 = vpop.f32.mrf.mxu1 }
 0x239   :  { %v2480_v12 = vpop.f32.mrf.mxu0 }
 0x23a   :  { %v2688_v44 = vpop.f32.mrf.mxu1 }
 0x23b   :  { %v2482_v18 = vpop.f32.mrf.mxu0 }
 0x23c   :  { %v2690_v56 = vpop.f32.mrf.mxu1 }
 0x23d   :  { %v2483_v40 = vpop.f32.mrf.mxu0 }
 0x23e   :  { %v2691_v29 = vpop.f32.mrf.mxu1 }
 0x23f   :  { %v2485_v23 = vpop.f32.mrf.mxu0 }
 0x240   :  { %v2693_v6 = vpop.f32.mrf.mxu1 }
 0x241   :  { %v2488_v59 = vpop.f32.mrf.mxu0 }
 0x242   :  { %v5398_v50 = vpop.f32.mrf.mxu1 }
 0x243   :  { %v2490_v28 = vpop.f32.mrf.mxu0 }
 0x244   :  { %v2698_v62 = vpop.f32.mrf.mxu1 }
 0x245   :  { %v5400_v15 = vpop.f32.mrf.mxu0 }
 0x246   :  { %v5402_v0 = vpop.f32.mrf.mxu1 }
 0x247   :  { %v2493_v5 = vpop.f32.mrf.mxu0 }
 0x248   :  { %v2701_v61 = vpop.f32.mrf.mxu1 }
 0x249   :  { %v5404_v38 = vpop.f32.mrf.mxu0 }
 0x24a   :  { %v5406_v9 = vpop.f32.mrf.mxu1 }
 0x24b   :  { %v2498_v27 = vpop.f32.mrf.mxu0 }
 0x24c   :  { %v2706_v18 = vpop.f32.mrf.mxu1 }
 0x24d   :  { %v5408_v56 = vpop.f32.mrf.mxu0 }
 0x24e   :  { %v5410_v23 = vpop.f32.mrf.mxu1 }
 0x24f   :  { %v2501_v6 = vpop.f32.mrf.mxu0 }
 0x250   :  { %v2709_v31 = vpop.f32.mrf.mxu1 }
 0x251   :  { %v5412_v28 = vpop.f32.mrf.mxu0 }
 0x252   :  { %v5414_v62 = vpop.f32.mrf.mxu1 }
 0x253   :  { %v2506_v63 = vpop.f32.mrf.mxu0 }
 0x254   :  { %v2714_v11 = vpop.f32.mrf.mxu1 }
 0x255   :  { %v5416_v5 = vpop.f32.mrf.mxu0  ;;  %v5428_v11 = vld [vmem:[%s5609_s2] ss:$0 sm:$0xff] }
 0x256   :  { %5621 = vst [vmem:[#allocation13_spill] sm:$0xff] %v5416_v5  ;;  %v5418_v61 = vpop.f32.mrf.mxu1 }
 0x257   :  { %5622 = vst [vmem:[#allocation14_spill] sm:$0xff] %v5418_v61  ;;  %v2509_v46 = vpop.f32.mrf.mxu0  ;;  %v2481_v61 = vadd.f32 %v2480_v12, %v5201_v48 }
 0x258   :  { %v2717_v26 = vpop.f32.mrf.mxu1 }
 0x259   :  { %v5420_v27 = vpop.f32.mrf.mxu0  ;;  %v2468_v26 = vadd.f32 %v2467_v21, %v5180_v13  ;;  %v5440_v21 = vadd.f32 %v2688_v44, %v2481_v61 }
 0x25a   :  { %v5422_v18 = vpop.f32.mrf.mxu1 }
 0x25b   :  { %5623 = vst [vmem:[#allocation15_spill] sm:$0xff] %v5422_v18  ;;  %v2514_v60 = vpop.f32.mrf.mxu0  ;;  %v2676_v48 = vadd.f32 %v5390_v54, %v2468_v26 }
 0x25c   :  { %v2722_v58 = vpop.f32.mrf.mxu1 }
 0x25d   :  { %v2515_v6 = vpop.f32.mrf.mxu0 }
 0x25e   :  { %v2723_v31 = vpop.f32.mrf.mxu1  ;;  %v2484_v6 = vadd.f32 %v2483_v40, %v5215_v7 }
 0x25f   :  { %v2516_v45 = vpop.f32.mrf.mxu0 }
 0x260   :  { %v2724_v25 = vpop.f32.mrf.mxu1  ;;  %v5444_v12 = vadd.f32 %v2691_v29, %v2484_v6 }
 0x261   :  { %v3909_v41 = vpop.f32.mrf.mxu0 }
 0x262   :  { %v2769_v63 = vadd.f32 %v3909_v41, %v5292_v17  ;;  %v3933_v46 = vpop.f32.mrf.mxu1 }
 0x263   :  { %v2865_v60 = vadd.f32 %v3933_v46, %v5376_v53  ;;  %v2760_v58 = vpop.f32.mrf.mxu0 }
 0x264   :  { %v2761_v25 = vadd.f32 %v2760_v58, %v5274_v34  ;;  %v2856_v45 = vpop.f32.mrf.mxu1  ;;  %v3075_v41 = vadd.f32 %v5428_v11, %v2769_v63 }
 0x265   :  { %v2857_v17 = vadd.f32 %v2856_v45, %v5370_v19  ;;  %v3910_v31 = vpop.f32.mrf.mxu0  ;;  %v3099_v18 = vadd.f32 %v5428_v11, %v2865_v60 }
 0x266   :  { %v2772_v5 = vadd.f32 %v3910_v31, %v5304_v42  ;;  %v3934_v13 = vpop.f32.mrf.mxu1  ;;  %v3073_v53 = vadd.f32 %v5428_v11, %v2761_v25  ;;  %v2489_v42 = vadd.f32 %v2488_v59, %v5217_v20  ;;  %v3118_v60 = vmax.f32 %v3075_v41, 0.0 }
 0x267   :  { %v2868_v7 = vadd.f32 %v3934_v13, %v5379_v30  ;;  %v2763_v34 = vpop.f32.mrf.mxu0  ;;  %v3097_v40 = vadd.f32 %v5428_v11, %v2857_v17  ;;  %v3142_v26 = vmax.f32 %v3099_v18, 0.0 }
 0x268   :  { %v3076_v19 = vadd.f32 %v5428_v11, %v2772_v5  ;;  %v2764_v63 = vadd.f32 %v2763_v34, %v5289_v2  ;;  %v2859_v46 = vpop.f32.mrf.mxu1  ;;  %v3116_v25 = vmax.f32 %v3073_v53, 0.0  ;;  %v5460_v53 = vadd.f32 %v5398_v50, %v2489_v42 }
 0x269   :  { %v3100_v54 = vadd.f32 %v5428_v11, %v2868_v7  ;;  %v2860_v44 = vadd.f32 %v2859_v46, %v5373_v1  ;;  %v3913_v61 = vpop.f32.mrf.mxu0  ;;  %v3140_v59 = vmax.f32 %v3097_v40, 0.0 }
 0x26a   :  { %v3119_v30 = vmax.f32 %v3076_v19, 0.0  ;;  %v3074_v29 = vadd.f32 %v5428_v11, %v2764_v63  ;;  %v2785_v58 = vadd.f32 %v3913_v61, %v5316_v32  ;;  %v3937_v6 = vpop.f32.mrf.mxu1  ;;  %v5469_v63 = vadd.f32 %v5400_v15, %v5222_v35 }
 0x26b   :  { %v3143_v5 = vmax.f32 %v3100_v54, 0.0  ;;  %v3098_v2 = vadd.f32 %v5428_v11, %v2860_v44  ;;  %v2881_v45 = vadd.f32 %v3937_v6, %v5388_v52  ;;  %v2776_v20 = vpop.f32.mrf.mxu0  ;;  %v2500_v44 = vadd.f32 %v5408_v56, %v5238_v4 }
 0x26c   :  { %v3744_v41 = vpack.c.bf16 %v3119_v30, %v3118_v60  ;;  %v3117_v17 = vmax.f32 %v3074_v29, 0.0  ;;  %v2777_v1 = vadd.f32 %v2776_v20, %v5307_v55  ;;  %v2872_v31 = vpop.f32.mrf.mxu1  ;;  %v3079_v7 = vadd.f32 %v5428_v11, %v2785_v58 }
 0x26d   :  { %v3804_v18 = vpack.c.bf16 %v3143_v5, %v3142_v26  ;;  %v3141_v13 = vmax.f32 %v3098_v2, 0.0  ;;  %v2873_v32 = vadd.f32 %v2872_v31, %v5382_v39  ;;  %v3914_v34 = vpop.f32.mrf.mxu0  ;;  %v3103_v40 = vadd.f32 %v5428_v11, %v2881_v45 }
 0x26e   :  { %3841 = vst [vmem:[%s5610_s3 + $0x8] sm:$0xff] %v3744_v41   ;;  %v3739_v52 = vpack.c.bf16 %v3117_v17, %v3116_v25  ;;  %v2788_v55 = vadd.f32 %v3914_v34, %v5319_v24  ;;  %v3938_v19 = vpop.f32.mrf.mxu1  ;;  %v3077_v50 = vadd.f32 %v5428_v11, %v2777_v1  ;;  %v2497_v60 = vadd.f32 %v5404_v38, %v5227_v51 }
 0x26f   :  { %3853 = vst [vmem:[%s5610_s3 + $0x68] sm:$0xff] %v3804_v18   ;;  %v3799_v39 = vpack.c.bf16 %v3141_v13, %v3140_v59  ;;  %v2884_v46 = vadd.f32 %v3938_v19, %v2676_v48  ;;  %v2779_v42 = vpop.f32.mrf.mxu0  ;;  %v3101_v24 = vadd.f32 %v5428_v11, %v2873_v32  ;;  %v3122_v48 = vmax.f32 %v3079_v7, 0.0 }
 0x270   :  { %3740 = vst [vmem:[%s5610_s3] sm:$0xff] %v3739_v52   ;;  %v3080_v35 = vadd.f32 %v5428_v11, %v2788_v55  ;;  %v2780_v15 = vadd.f32 %v2779_v42, %v5313_v14  ;;  %v2875_v54 = vpop.f32.mrf.mxu1  ;;  %v3146_v26 = vmax.f32 %v3103_v40, 0.0  ;;  %v3120_v6 = vmax.f32 %v3077_v50, 0.0 }
 0x271   :  { %3852 = vst [vmem:[%s5610_s3 + $0x60] sm:$0xff] %v3799_v39   ;;  %v3104_v51 = vadd.f32 %v5428_v11, %v2884_v46  ;;  %v2876_v38 = vadd.f32 %v2875_v54, %v5385_v43  ;;  %v3917_v61 = vpop.f32.mrf.mxu0  ;;  %v3144_v2 = vmax.f32 %v3101_v24, 0.0  ;;  %v2705_v18 = vadd.f32 %v5406_v9, %v2497_v60 }
 0x272   :  { %v3123_v30 = vmax.f32 %v3080_v35, 0.0  ;;  %v3078_v29 = vadd.f32 %v5428_v11, %v2780_v15  ;;  %v2801_v14 = vadd.f32 %v3917_v61, %v5328_v33  ;;  %v3941_v58 = vpop.f32.mrf.mxu1  ;;  %v2708_v32 = vadd.f32 %v5410_v23, %v2500_v44 }
 0x273   :  { %v3147_v25 = vmax.f32 %v3104_v51, 0.0  ;;  %v3102_v4 = vadd.f32 %v5428_v11, %v2876_v38  ;;  %v2897_v56 = vadd.f32 %v3941_v58, %v5440_v21  ;;  %v2792_v5 = vpop.f32.mrf.mxu0  ;;  %v2505_v40 = vadd.f32 %v5412_v28, %v5243_v22 }
 0x274   :  { %v3754_v45 = vpack.c.bf16 %v3123_v30, %v3122_v48  ;;  %v3121_v20 = vmax.f32 %v3078_v29, 0.0  ;;  %v2793_v43 = vadd.f32 %v2792_v5, %v5322_v3  ;;  %v2888_v59 = vpop.f32.mrf.mxu1  ;;  %v3083_v1 = vadd.f32 %v5428_v11, %v2801_v14  ;;  %v5624_v5 = vld [vmem:[#allocation3_spill] sm:$0xff] }
 0x275   :  { %v3814_v41 = vpack.c.bf16 %v3147_v25, %v3146_v26  ;;  %v3145_v17 = vmax.f32 %v3102_v4, 0.0  ;;  %v2889_v33 = vadd.f32 %v2888_v59, %v5393_v37  ;;  %v3918_v31 = vpop.f32.mrf.mxu0  ;;  %v3107_v13 = vadd.f32 %v5428_v11, %v2897_v56 }
 0x276   :  { %3843 = vst [vmem:[%s5610_s3 + $0x18] sm:$0xff] %v3754_v45   ;;  %v3749_v21 = vpack.c.bf16 %v3121_v20, %v3120_v6  ;;  %v2804_v7 = vadd.f32 %v3918_v31, %v5331_v49  ;;  %v3942_v3 = vpop.f32.mrf.mxu1  ;;  %v3081_v34 = vadd.f32 %v5428_v11, %v2793_v43  ;;  %v2513_v39 = vadd.f32 %v5420_v27, %v5259_v57  ;;  %v5626_v20 = vld [vmem:[#allocation4_spill] sm:$0xff] }
 0x277   :  { %3855 = vst [vmem:[%s5610_s3 + $0x78] sm:$0xff] %v3814_v41   ;;  %v3809_v37 = vpack.c.bf16 %v3145_v17, %v3144_v2  ;;  %v2900_v9 = vadd.f32 %v3942_v3, %v5444_v12  ;;  %v2795_v52 = vpop.f32.mrf.mxu0  ;;  %v3105_v49 = vadd.f32 %v5428_v11, %v2889_v33  ;;  %v3126_v12 = vmax.f32 %v3083_v1, 0.0  ;;  %v5625_v2 = vld [vmem:[#allocation13_spill] sm:$0xff]  ;;  %v5627_v41 = vld [vmem:[#allocation15_spill] sm:$0xff] }
 0x278   :  { %3842 = vst [vmem:[%s5610_s3 + $0x10] sm:$0xff] %v3749_v21   ;;  %v3084_v23 = vadd.f32 %v5428_v11, %v2804_v7  ;;  %v2796_v55 = vadd.f32 %v2795_v52, %v5325_v16  ;;  %v2891_v19 = vpop.f32.mrf.mxu1  ;;  %v3150_v46 = vmax.f32 %v3107_v13, 0.0  ;;  %v3124_v35 = vmax.f32 %v3081_v34, 0.0  ;;  %v5628_v3 = vld [vmem:[#allocation7_spill] sm:$0xff] }
 0x279   :  { %3854 = vst [vmem:[%s5610_s3 + $0x70] sm:$0xff] %v3809_v37   ;;  %v3108_v22 = vadd.f32 %v5428_v11, %v2900_v9  ;;  %v2892_v28 = vadd.f32 %v2891_v19, %v5396_v47  ;;  %v3921_v50 = vpop.f32.mrf.mxu0  ;;  %v3148_v44 = vmax.f32 %v3105_v49, 0.0  ;;  %v2700_v14 = vadd.f32 %v5402_v0, %v5469_v63 }
 0x27a   :  { %v3127_v42 = vmax.f32 %v3084_v23, 0.0  ;;  %v3082_v60 = vadd.f32 %v5428_v11, %v2796_v55  ;;  %v2817_v16 = vadd.f32 %v3921_v50, %v5340_v36  ;;  %v3945_v24 = vpop.f32.mrf.mxu1  ;;  %v2713_v4 = vadd.f32 %v5414_v62, %v2505_v40 }
 0x27b   :  { %v3151_v15 = vmax.f32 %v3108_v22, 0.0  ;;  %v3106_v57 = vadd.f32 %v5428_v11, %v2892_v28  ;;  %v2913_v27 = vadd.f32 %v3945_v24, %v2705_v18  ;;  %v2808_v54 = vpop.f32.mrf.mxu0  ;;  %v2508_v45 = vadd.f32 %v5625_v2, %v5624_v5 }
 0x27c   :  { %v3764_v48 = vpack.c.bf16 %v3127_v42, %v3126_v12  ;;  %v3125_v51 = vmax.f32 %v3082_v60, 0.0  ;;  %v2809_v38 = vadd.f32 %v2808_v54, %v5334_v8  ;;  %v2904_v47 = vpop.f32.mrf.mxu1  ;;  %v3087_v30 = vadd.f32 %v5428_v11, %v2817_v16 }
 0x27d   :  { %v3824_v61 = vpack.c.bf16 %v3151_v15, %v3150_v46  ;;  %v3149_v26 = vmax.f32 %v3106_v57, 0.0  ;;  %v2905_v29 = vadd.f32 %v2904_v47, %v5460_v53  ;;  %v3922_v36 = vpop.f32.mrf.mxu0  ;;  %v3111_v6 = vadd.f32 %v5428_v11, %v2913_v27  ;;  %v5631_v27 = vld [vmem:[#allocation14_spill] sm:$0xff] }
 0x27e   :  { %3845 = vst [vmem:[%s5610_s3 + $0x28] sm:$0xff] %v3764_v48   ;;  %v3759_v58 = vpack.c.bf16 %v3125_v51, %v3124_v35  ;;  %v2820_v8 = vadd.f32 %v3922_v36, %v5343_v10  ;;  %v3946_v25 = vpop.f32.mrf.mxu1  ;;  %v3085_v56 = vadd.f32 %v5428_v11, %v2809_v38  ;;  %v2721_v17 = vadd.f32 %v5627_v41, %v2513_v39  ;;  %v5629_v39 = vld [vmem:[#allocation5_spill] sm:$0xff]  ;;  %v5630_v35 = vld [vmem:[#allocation8_spill] sm:$0xff] }
 0x27f   :  { %3857 = vst [vmem:[%s5610_s3 + $0x88] sm:$0xff] %v3824_v61   ;;  %v3819_v53 = vpack.c.bf16 %v3149_v26, %v3148_v44  ;;  %v2916_v0 = vadd.f32 %v3946_v25, %v2708_v32  ;;  %v2811_v63 = vpop.f32.mrf.mxu0  ;;  %v3109_v10 = vadd.f32 %v5428_v11, %v2905_v29  ;;  %v3130_v1 = vmax.f32 %v3087_v30, 0.0  ;;  %v5632_v61 = vld [vmem:[#allocation6_spill] sm:$0xff] }
 0x280   :  { %3844 = vst [vmem:[%s5610_s3 + $0x20] sm:$0xff] %v3759_v58   ;;  %v3088_v62 = vadd.f32 %v5428_v11, %v2820_v8  ;;  %v2812_v43 = vadd.f32 %v2811_v63, %v5626_v20  ;;  %v2907_v59 = vpop.f32.mrf.mxu1  ;;  %v3154_v21 = vmax.f32 %v3111_v6, 0.0  ;;  %v3128_v34 = vmax.f32 %v3085_v56, 0.0 }
 0x281   :  { %3856 = vst [vmem:[%s5610_s3 + $0x80] sm:$0xff] %v3819_v53   ;;  %v3112_v33 = vadd.f32 %v5428_v11, %v2916_v0  ;;  %v2908_v31 = vadd.f32 %v2907_v59, %v2700_v14  ;;  %v3925_v18 = vpop.f32.mrf.mxu0  ;;  %v3152_v23 = vmax.f32 %v3109_v10, 0.0  ;;  %v2716_v54 = vadd.f32 %v5631_v27, %v2508_v45  ;;  %v5634_v45 = vld [vmem:[#allocation9_spill] sm:$0xff] }
 0x282   :  { %v3131_v13 = vmax.f32 %v3088_v62, 0.0  ;;  %v3086_v7 = vadd.f32 %v5428_v11, %v2812_v43  ;;  %v2833_v32 = vadd.f32 %v3925_v18, %v5628_v3  ;;  %v3949_v37 = vpop.f32.mrf.mxu1 }
 0x283   :  { %v3155_v9 = vmax.f32 %v3112_v33, 0.0  ;;  %v3110_v52 = vadd.f32 %v5428_v11, %v2908_v31  ;;  %v2929_v40 = vadd.f32 %v3949_v37, %v2721_v17  ;;  %v2824_v49 = vpop.f32.mrf.mxu0  ;;  %v5635_v17 = vld [vmem:[#allocation12_spill] sm:$0xff] }
 0x284   :  { %v3774_v55 = vpack.c.bf16 %v3131_v13, %v3130_v1  ;;  %v3129_v19 = vmax.f32 %v3086_v7, 0.0  ;;  %v2825_v12 = vadd.f32 %v2824_v49, %v5629_v39  ;;  %v2920_v22 = vpop.f32.mrf.mxu1  ;;  %v3091_v24 = vadd.f32 %v5428_v11, %v2833_v32  ;;  %v5636_v13 = vld [vmem:[#allocation10_spill] sm:$0xff] }
 0x285   :  { %v3834_v28 = vpack.c.bf16 %v3155_v9, %v3154_v21  ;;  %v3153_v50 = vmax.f32 %v3110_v52, 0.0  ;;  %v3115_v46 = vadd.f32 %v5428_v11, %v2929_v40  ;;  %v2921_v42 = vadd.f32 %v2920_v22, %v2713_v4  ;;  %v3926_v60 = vpop.f32.mrf.mxu0  ;;  %v5633_v4 = vld [vmem:[#allocation11_spill] sm:$0xff] }
 0x286   :  { %3847 = vst [vmem:[%s5610_s3 + $0x38] sm:$0xff] %v3774_v55   ;;  %v3769_v16 = vpack.c.bf16 %v3129_v19, %v3128_v34  ;;  %v2836_v15 = vadd.f32 %v3926_v60, %v5630_v35  ;;  %v3950_v57 = vpop.f32.mrf.mxu1  ;;  %v3089_v38 = vadd.f32 %v5428_v11, %v2825_v12  ;;  %v3134_v6 = vmax.f32 %v3091_v24, 0.0 }
 0x287   :  { %3859 = vst [vmem:[%s5610_s3 + $0x98] sm:$0xff] %v3834_v28   ;;  %v3829_v44 = vpack.c.bf16 %v3153_v50, %v3152_v23  ;;  %v3158_v48 = vmax.f32 %v3115_v46, 0.0  ;;  %v2827_v51 = vpop.f32.mrf.mxu0  ;;  %v3113_v36 = vadd.f32 %v5428_v11, %v2921_v42 }
 0x288   :  { %3846 = vst [vmem:[%s5610_s3 + $0x30] sm:$0xff] %v3769_v16   ;;  %v3092_v47 = vadd.f32 %v5428_v11, %v2836_v15  ;;  %v2828_v26 = vadd.f32 %v2827_v51, %v5632_v61  ;;  %v2923_v30 = vpop.f32.mrf.mxu1  ;;  %v3132_v63 = vmax.f32 %v3089_v38, 0.0 }
 0x289   :  { %3858 = vst [vmem:[%s5610_s3 + $0x90] sm:$0xff] %v3829_v44   ;;  %v3735_v29 = vpack.c.bf16 %v3158_v48, %v3158_v48  ;;  %v2924_v14 = vadd.f32 %v2923_v30, %v2716_v54  ;;  %v3929_v58 = vpop.f32.mrf.mxu0  ;;  %v3156_v62 = vmax.f32 %v3113_v36, 0.0 }
 0x28a   :  { %v3135_v8 = vmax.f32 %v3092_v47, 0.0  ;;  %v3090_v25 = vadd.f32 %v5428_v11, %v2828_v26  ;;  %v2849_v53 = vadd.f32 %v3929_v58, %v5633_v4 }
 0x28b   :  { %3374 = vst [vmem:[%s5610_s3 + $0xa8] sm:$0xf] %v3735_v29  ;;  %v3114_v56 = vadd.f32 %v5428_v11, %v2924_v14  ;;  %v2840_v0 = vpop.f32.mrf.mxu0 }
 0x28c   :  { %v3784_v5 = vpack.c.bf16 %v3135_v8, %v3134_v6  ;;  %v3133_v2 = vmax.f32 %v3090_v25, 0.0  ;;  %v2841_v10 = vadd.f32 %v2840_v0, %v5634_v45  ;;  %v3095_v41 = vadd.f32 %v5428_v11, %v2849_v53 }
 0x28d   :  { %v3157_v20 = vmax.f32 %v3114_v56, 0.0  ;;  %v3930_v43 = vpop.f32.mrf.mxu0 }
 0x28e   :  { %3849 = vst [vmem:[%s5610_s3 + $0x48] sm:$0xff] %v3784_v5   ;;  %v3779_v59 = vpack.c.bf16 %v3133_v2, %v3132_v63  ;;  %v2852_v1 = vadd.f32 %v3930_v43, %v5635_v17  ;;  %v3093_v18 = vadd.f32 %v5428_v11, %v2841_v10  ;;  %v3138_v3 = vmax.f32 %v3095_v41, 0.0 }
 0x28f   :  { %v3839_v33 = vpack.c.bf16 %v3157_v20, %v3156_v62  ;;  %v2843_v31 = vpop.f32.mrf.mxu0 }
 0x290   :  { %3848 = vst [vmem:[%s5610_s3 + $0x40] sm:$0xff] %v3779_v59   ;;  %v3096_v21 = vadd.f32 %v5428_v11, %v2852_v1  ;;  %v2844_v7 = vadd.f32 %v2843_v31, %v5636_v13  ;;  %v3136_v34 = vmax.f32 %v3093_v18, 0.0 }
 0x291   :  { %3860 = vst [vmem:[%s5610_s3 + $0xa0] sm:$0xff] %v3839_v33  }
 0x292   :  { %v3139_v32 = vmax.f32 %v3096_v21, 0.0  ;;  %v3094_v37 = vadd.f32 %v5428_v11, %v2844_v7 }
 0x294   :  { %v3794_v9 = vpack.c.bf16 %v3139_v32, %v3138_v3  ;;  %v3137_v52 = vmax.f32 %v3094_v37, 0.0 }
 0x296   :  { %3851 = vst [vmem:[%s5610_s3 + $0x58] sm:$0xff] %v3794_v9   ;;  %v3789_v40 = vpack.c.bf16 %v3137_v52, %v3136_v34 }
 0x298   :  { %3850 = vst [vmem:[%s5610_s3 + $0x50] sm:$0xff] %v3789_v40  }

// kernel: model_c_forward.5
= control target key start
LH: loop header
LB: loop body
LE: loop exit
PB: predicated region body
PF: predicated region fallthrough
CT: control target
= control target key end

     0   :  { %vm20025_vm0 = vmmov 0   ;;  %s24523_s1 = inlined_call_operand.vmem [shape: bf16[21632,128], index: 1, kind: input, shape index: {}]   ;;  %s24524_s0 = inlined_call_operand.vmem [shape: bf16[8,21632], index: 0, kind: input, shape index: {}]   ;;  %s24525_s2 = inlined_call_operand.vmem [shape: f32[1,128], index: 2, kind: input, shape index: {}]   ;;  %s24526_s3 = inlined_call_operand.vmem [shape: bf16[128,128], index: 3, kind: input, shape index: {}]   ;;  %s24527_s4 = inlined_call_operand.vmem [shape: f32[1,128], index: 4, kind: input, shape index: {}]   ;;  %s24528_s5 = inlined_call_operand.vmem [shape: f32[8,128], index: 5, kind: output, shape index: {}]  }
   0x1   :  { %v18491_v0 = vld [vmem:[%s24523_s1 + $0x78] sm:$0xff]   ;;  %v18495_v4 = vld [vmem:[%s24523_s1 + $0x70] sm:$0xff]   ;;  %v18499_v8 = vld [vmem:[%s24523_s1 + $0x68] sm:$0xff]  }
   0x2   :  { %v18492_v1 = vld [vmem:[%s24523_s1 + $0x38] sm:$0xff]   ;;  %16583 = vmatprep.subr.bf16.mxu0 %v18491_v0  ;;  %v18496_v5 = vld [vmem:[%s24523_s1 + $0x30] sm:$0xff]   ;;  %v18500_v9 = vld [vmem:[%s24523_s1 + $0x28] sm:$0xff]  }
   0x3   :  { %v18493_v2 = vld [vmem:[%s24523_s1 + $0xf8] sm:$0xff]   ;;  %16584 = vmatpush3.bf16.msra.mxu0 %v18492_v1  ;;  %v18497_v6 = vld [vmem:[%s24523_s1 + $0xf0] sm:$0xff]   ;;  %v18501_v10 = vld [vmem:[%s24523_s1 + $0xe8] sm:$0xff]  }
   0x4   :  { %v18494_v3 = vld [vmem:[%s24523_s1 + $0xb8] sm:$0xff]   ;;  %16605 = vmatprep.subr.bf16.mxu1 %v18493_v2  ;;  %16585 = vmatprep.subr.bf16.mxu0 %v18495_v4  ;;  %v18498_v7 = vld [vmem:[%s24523_s1 + $0xb0] sm:$0xff]   ;;  %v18502_v11 = vld [vmem:[%s24523_s1 + $0xa8] sm:$0xff]  }
   0x5   :  { %16606 = vmatpush3.bf16.msra.mxu1 %v18494_v3  ;;  %v18503_v12 = vld [vmem:[%s24523_s1 + $0x60] sm:$0xff]   ;;  %v18507_v16 = vld [vmem:[%s24523_s1 + $0x58] sm:$0xff]   ;;  %v18511_v20 = vld [vmem:[%s24523_s1 + $0x50] sm:$0xff]  }
   0x6   :  { %16607 = vmatprep.subr.bf16.mxu1 %v18497_v6  ;;  %v18504_v13 = vld [vmem:[%s24523_s1 + $0x20] sm:$0xff]   ;;  %v18508_v17 = vld [vmem:[%s24523_s1 + $0x18] sm:$0xff]   ;;  %v18512_v21 = vld [vmem:[%s24523_s1 + $0x10] sm:$0xff]  }
   0x7   :  { %16586 = vmatpush3.bf16.msra.mxu0 %v18496_v5  ;;  %v18505_v14 = vld [vmem:[%s24523_s1 + $0xe0] sm:$0xff]   ;;  %v18509_v18 = vld [vmem:[%s24523_s1 + $0xd8] sm:$0xff]   ;;  %v18513_v22 = vld [vmem:[%s24523_s1 + $0xd0] sm:$0xff]  }
   0x8   :  { %16587 = vmatprep.subr.bf16.mxu0 %v18499_v8  ;;  %v18506_v15 = vld [vmem:[%s24523_s1 + $0xa0] sm:$0xff]   ;;  %v18510_v19 = vld [vmem:[%s24523_s1 + $0x98] sm:$0xff]   ;;  %v18514_v23 = vld [vmem:[%s24523_s1 + $0x90] sm:$0xff]  }
   0x9   :  { %16608 = vmatpush3.bf16.msra.mxu1 %v18498_v7  ;;  %v18515_v24 = vld [vmem:[%s24523_s1 + $0x48] sm:$0xff]   ;;  %v18519_v28 = vld [vmem:[%s24523_s1 + $0x40] sm:$0xff]   ;;  %v18525_v35 = vld [vmem:[%s24523_s1 + $0x178] sm:$0xff]  }
   0xa   :  { %16609 = vmatprep.subr.bf16.mxu1 %v18501_v10  ;;  %v18516_v25 = vld [vmem:[%s24523_s1 + $0x8] sm:$0xff]   ;;  %v18520_v29 = vld [vmem:[%s24523_s1] sm:$0xff]   ;;  %v18528_v39 = vld [vmem:[%s24523_s1 + $0x138] sm:$0xff]  }
   0xb   :  { %16588 = vmatpush3.bf16.msra.mxu0 %v18500_v9  ;;  %v18517_v26 = vld [vmem:[%s24523_s1 + $0xc8] sm:$0xff]   ;;  %v18521_v30 = vld [vmem:[%s24523_s1 + $0xc0] sm:$0xff]   ;;  %v18529_v40 = vld [vmem:[%s24523_s1 + $0x1f8] sm:$0xff]  }
   0xc   :  { %16589 = vmatprep.subr.bf16.mxu0 %v18503_v12  ;;  %v18518_v27 = vld [vmem:[%s24523_s1 + $0x88] sm:$0xff]   ;;  %v21_v31 = vld [vmem:[%s24524_s0] sm:$0xff]  ;;  %v18530_v41 = vld [vmem:[%s24523_s1 + $0x1b8] sm:$0xff]  }
   0xd   :  { %16610 = vmatpush3.bf16.msra.mxu1 %v18502_v11  ;;  %v15053_v32 = vcombine.low %v21_v31, %v21_v31  ;;  %v15054_v33 = vcombine.high %v21_v31, %v21_v31  ;;  %v18524_v34 = vld [vmem:[%s24523_s1 + $0x80] sm:$0xff]   ;;  %v22_v36 = vld [vmem:[%s24524_s0 + $0x8] sm:$0xff]  ;;  %v18531_v42 = vld [vmem:[%s24523_s1 + $0x170] sm:$0xff]  }
   0xe   :  { %16611 = vmatprep.subr.bf16.mxu1 %v18505_v14  ;;  %v15055_v37 = vcombine.low %v22_v36, %v22_v36  ;;  %v15056_v38 = vcombine.high %v22_v36, %v22_v36  ;;  %v18532_v43 = vld [vmem:[%s24523_s1 + $0x130] sm:$0xff]   ;;  %v18535_v46 = vld [vmem:[%s24523_s1 + $0x168] sm:$0xff]   ;;  %v18539_v50 = vld [vmem:[%s24523_s1 + $0x160] sm:$0xff]  }
   0xf   :  { %16590 = vmatpush3.bf16.msra.mxu0 %v18504_v13  ;;  %11553 = vmatprep.mubr.bf16.mxu0 %v15054_v33  ;;  %v18533_v44 = vld [vmem:[%s24523_s1 + $0x1f0] sm:$0xff]   ;;  %v18536_v47 = vld [vmem:[%s24523_s1 + $0x128] sm:$0xff]   ;;  %v18540_v51 = vld [vmem:[%s24523_s1 + $0x120] sm:$0xff]  }
  0x10   :  { %16591 = vmatprep.subr.bf16.mxu0 %v18507_v16  ;;  %11593 = vmatprep.mubr.bf16.mxu1 %v15056_v38  ;;  %v18534_v45 = vld [vmem:[%s24523_s1 + $0x1b0] sm:$0xff]   ;;  %v18537_v48 = vld [vmem:[%s24523_s1 + $0x1e8] sm:$0xff]   ;;  %v18541_v52 = vld [vmem:[%s24523_s1 + $0x1e0] sm:$0xff]  }
  0x11   :  { %16612 = vmatpush3.bf16.msra.mxu1 %v18506_v15  ;;  %v18538_v49 = vld [vmem:[%s24523_s1 + $0x1a8] sm:$0xff]   ;;  %v18542_v53 = vld [vmem:[%s24523_s1 + $0x1a0] sm:$0xff]   ;;  %v18543_v54 = vld [vmem:[%s24523_s1 + $0x158] sm:$0xff]  }
  0x12   :  { %16613 = vmatprep.subr.bf16.mxu1 %v18509_v18  ;;  %v18544_v55 = vld [vmem:[%s24523_s1 + $0x118] sm:$0xff]   ;;  %v18547_v58 = vld [vmem:[%s24523_s1 + $0x150] sm:$0xff]   ;;  %v18551_v62 = vld [vmem:[%s24523_s1 + $0x148] sm:$0xff]  }
  0x13   :  { %16592 = vmatpush3.bf16.msra.mxu0 %v18508_v17  ;;  %v18545_v56 = vld [vmem:[%s24523_s1 + $0x1d8] sm:$0xff]   ;;  %v18548_v59 = vld [vmem:[%s24523_s1 + $0x110] sm:$0xff]   ;;  %v18552_v63 = vld [vmem:[%s24523_s1 + $0x108] sm:$0xff]  }
  0x14   :  { %16593 = vmatprep.subr.bf16.mxu0 %v18511_v20  ;;  %v18546_v57 = vld [vmem:[%s24523_s1 + $0x198] sm:$0xff]   ;;  %v18549_v60 = vld [vmem:[%s24523_s1 + $0x1d0] sm:$0xff]   ;;  %v18553_v0 = vld [vmem:[%s24523_s1 + $0x1c8] sm:$0xff]  }
  0x15   :  { %16614 = vmatpush3.bf16.msra.mxu1 %v18510_v19  ;;  %v18550_v61 = vld [vmem:[%s24523_s1 + $0x190] sm:$0xff]   ;;  %v18554_v1 = vld [vmem:[%s24523_s1 + $0x188] sm:$0xff]   ;;  %v18555_v2 = vld [vmem:[%s24523_s1 + $0x140] sm:$0xff]  }
  0x16   :  { %16615 = vmatprep.subr.bf16.mxu1 %v18513_v22  ;;  %v18556_v3 = vld [vmem:[%s24523_s1 + $0x100] sm:$0xff]   ;;  %v23_v5 = vld [vmem:[%s24524_s0 + $0x10] sm:$0xff]  ;;  %v18561_v9 = vld [vmem:[%s24523_s1 + $0x278] sm:$0xff]  }
  0x17   :  { %16594 = vmatpush3.bf16.msra.mxu0 %v18512_v21  ;;  %v18557_v4 = vld [vmem:[%s24523_s1 + $0x1c0] sm:$0xff]   ;;  %v15057_v6 = vcombine.low %v23_v5, %v23_v5  ;;  %v15058_v7 = vcombine.high %v23_v5, %v23_v5  ;;  %v24_v10 = vld [vmem:[%s24524_s0 + $0x18] sm:$0xff]  ;;  %v18567_v16 = vld [vmem:[%s24523_s1 + $0x270] sm:$0xff]  }
  0x18   :  { %16595 = vmatprep.subr.bf16.mxu0 %v18515_v24  ;;  %v18560_v8 = vld [vmem:[%s24523_s1 + $0x180] sm:$0xff]   ;;  %v15059_v11 = vcombine.low %v24_v10, %v24_v10  ;;  %v15060_v12 = vcombine.high %v24_v10, %v24_v10  ;;  %v18564_v13 = vld [vmem:[%s24523_s1 + $0x238] sm:$0xff]   ;;  %v18568_v17 = vld [vmem:[%s24523_s1 + $0x230] sm:$0xff]  }
  0x19   :  { %16616 = vmatpush3.bf16.msra.mxu1 %v18514_v23  ;;  %v18565_v14 = vld [vmem:[%s24523_s1 + $0x2f8] sm:$0xff]   ;;  %v18569_v18 = vld [vmem:[%s24523_s1 + $0x2f0] sm:$0xff]   ;;  %v18571_v20 = vld [vmem:[%s24523_s1 + $0x268] sm:$0xff]  }
  0x1a   :  { %16617 = vmatprep.subr.bf16.mxu1 %v18517_v26  ;;  %v18566_v15 = vld [vmem:[%s24523_s1 + $0x2b8] sm:$0xff]   ;;  %v18570_v19 = vld [vmem:[%s24523_s1 + $0x2b0] sm:$0xff]   ;;  %v18572_v21 = vld [vmem:[%s24523_s1 + $0x228] sm:$0xff]  }
  0x1b   :  { %16596 = vmatpush3.bf16.msra.mxu0 %v18516_v25  ;;  %v18573_v22 = vld [vmem:[%s24523_s1 + $0x2e8] sm:$0xff]   ;;  %v18575_v24 = vld [vmem:[%s24523_s1 + $0x260] sm:$0xff]   ;;  %v18582_v31 = vld [vmem:[%s24523_s1 + $0x298] sm:$0xff]  }
  0x1c   :  { %16597 = vmatprep.subr.bf16.mxu0 %v18519_v28  ;;  %v18574_v23 = vld [vmem:[%s24523_s1 + $0x2a8] sm:$0xff]   ;;  %v18576_v25 = vld [vmem:[%s24523_s1 + $0x220] sm:$0xff]   ;;  %v18579_v28 = vld [vmem:[%s24523_s1 + $0x258] sm:$0xff]  }
  0x1d   :  { %16618 = vmatpush3.bf16.msra.mxu1 %v18518_v27  ;;  %v18577_v26 = vld [vmem:[%s24523_s1 + $0x2e0] sm:$0xff]   ;;  %v18584_v33 = vld [vmem:[%s24523_s1 + $0x210] sm:$0xff]   ;;  %v18587_v36 = vld [vmem:[%s24523_s1 + $0x248] sm:$0xff]  }
  0x1e   :  { %16619 = vmatprep.subr.bf16.mxu1 %v18521_v30  ;;  %v18578_v27 = vld [vmem:[%s24523_s1 + $0x2a0] sm:$0xff]   ;;  %v18581_v30 = vld [vmem:[%s24523_s1 + $0x2d8] sm:$0xff]   ;;  %v18589_v38 = vld [vmem:[%s24523_s1 + $0x2c8] sm:$0xff]  }
  0x1f   :  { %16598 = vmatpush3.bf16.msra.mxu0 %v18520_v29  ;;  %v18580_v29 = vld [vmem:[%s24523_s1 + $0x218] sm:$0xff]   ;;  %v18623_v10 = vld [vmem:[%s24523_s1 + $0x348] sm:$0xff]  }
  0x20   :  { %16627 = vmatprep.subr.bf16.mxu0 %v18525_v35  ;;  %v18586_v35 = vld [vmem:[%s24523_s1 + $0x290] sm:$0xff]   ;;  %v18618_v5 = vld [vmem:[%s24523_s1 + $0x398] sm:$0xff]  }
  0x21   :  { %16620 = vmatpush3.bf16.msra.mxu1 %v18524_v34  ;;  %v18585_v34 = vld [vmem:[%s24523_s1 + $0x2d0] sm:$0xff]  }
  0x22   :  { %11554 = vmatmul.mubr.bf16.vlgmr.msra.gmra.mxu0 %v15053_v32  ;;  %16649 = vmatprep.subr.bf16.mxu1 %v18529_v40  ;;  %v18583_v32 = vld [vmem:[%s24523_s1 + $0x250] sm:$0xff]   ;;  %v18591_v40 = vld [vmem:[%s24523_s1 + $0x240] sm:$0xff]  }
  0x23   :  { %16628 = vmatpush3.bf16.msra.mxu0 %v18528_v39  ;;  %11633 = vmatprep.mubr.bf16.mxu0 %v15058_v7  ;;  %v18590_v39 = vld [vmem:[%s24523_s1 + $0x288] sm:$0xff]   ;;  %v18620_v7 = vld [vmem:[%s24523_s1 + $0x310] sm:$0xff]  }
  0x24   :  { %11594 = vmatmul.mubr.bf16.vlgmr.msra.gmra.mxu1 %v15055_v37  ;;  %16629 = vmatprep.subr.bf16.mxu0 %v18531_v42  ;;  %v18588_v37 = vld [vmem:[%s24523_s1 + $0x208] sm:$0xff]   ;;  %v18593_v42 = vld [vmem:[%s24523_s1 + $0x2c0] sm:$0xff]  }
  0x25   :  { %16650 = vmatpush3.bf16.msra.mxu1 %v18530_v41  ;;  %11673 = vmatprep.mubr.bf16.mxu1 %v15060_v12  ;;  %v18592_v41 = vld [vmem:[%s24523_s1 + $0x200] sm:$0xff]   ;;  %v18625_v12 = vld [vmem:[%s24523_s1 + $0x3c8] sm:$0xff]  }
  0x26   :  { %16651 = vmatprep.subr.bf16.mxu1 %v18533_v44 }
  0x27   :  { %16630 = vmatpush3.bf16.msra.mxu0 %v18532_v43  ;;  %v25_v43 = vld [vmem:[%s24524_s0 + $0x20] sm:$0xff] }
  0x28   :  { %16631 = vmatprep.subr.bf16.mxu0 %v18535_v46  ;;  %v15061_v44 = vcombine.low %v25_v43, %v25_v43  ;;  %v18596_v46 = vld [vmem:[%s24523_s1 + $0x280] sm:$0xff]  }
  0x29   :  { %16652 = vmatpush3.bf16.msra.mxu1 %v18534_v45  ;;  %v15062_v45 = vcombine.high %v25_v43, %v25_v43  ;;  %v18654_v43 = vld [vmem:[%s24523_s1 + $0x498] sm:$0xff]  }
  0x2a   :  { %16653 = vmatprep.subr.bf16.mxu1 %v18537_v48  ;;  %v26_v48 = vld [vmem:[%s24524_s0 + $0x28] sm:$0xff] }
  0x2b   :  { %16632 = vmatpush3.bf16.msra.mxu0 %v18536_v47  ;;  %v18597_v47 = vld [vmem:[%s24523_s1 + $0x378] sm:$0xff]  }
  0x2c   :  { %16633 = vmatprep.subr.bf16.mxu0 %v18539_v50  ;;  %v15064_v50 = vcombine.high %v26_v48, %v26_v48 }
  0x2d   :  { %16654 = vmatpush3.bf16.msra.mxu1 %v18538_v49  ;;  %v15063_v49 = vcombine.low %v26_v48, %v26_v48  ;;  %v18659_v48 = vld [vmem:[%s24523_s1 + $0x448] sm:$0xff]  }
  0x2e   :  { %16655 = vmatprep.subr.bf16.mxu1 %v18541_v52  ;;  %v18601_v52 = vld [vmem:[%s24523_s1 + $0x3f8] sm:$0xff]  }
  0x2f   :  { %16634 = vmatpush3.bf16.msra.mxu0 %v18540_v51  ;;  %v18600_v51 = vld [vmem:[%s24523_s1 + $0x338] sm:$0xff]  }
  0x30   :  { %16635 = vmatprep.subr.bf16.mxu0 %v18543_v54  ;;  %v18603_v54 = vld [vmem:[%s24523_s1 + $0x370] sm:$0xff]  }
  0x31   :  { %16656 = vmatpush3.bf16.msra.mxu1 %v18542_v53  ;;  %v18602_v53 = vld [vmem:[%s24523_s1 + $0x3b8] sm:$0xff]  }
  0x32   :  { %16657 = vmatprep.subr.bf16.mxu1 %v18545_v56  ;;  %v18605_v56 = vld [vmem:[%s24523_s1 + $0x3f0] sm:$0xff]  }
  0x33   :  { %16636 = vmatpush3.bf16.msra.mxu0 %v18544_v55  ;;  %v18604_v55 = vld [vmem:[%s24523_s1 + $0x330] sm:$0xff]  }
  0x34   :  { %16637 = vmatprep.subr.bf16.mxu0 %v18547_v58  ;;  %v18607_v58 = vld [vmem:[%s24523_s1 + $0x368] sm:$0xff]  }
  0x35   :  { %16658 = vmatpush3.bf16.msra.mxu1 %v18546_v57  ;;  %v18606_v57 = vld [vmem:[%s24523_s1 + $0x3b0] sm:$0xff]  }
  0x36   :  { %16659 = vmatprep.subr.bf16.mxu1 %v18549_v60  ;;  %v18609_v60 = vld [vmem:[%s24523_s1 + $0x3e8] sm:$0xff]  }
  0x37   :  { %16638 = vmatpush3.bf16.msra.mxu0 %v18548_v59  ;;  %v18608_v59 = vld [vmem:[%s24523_s1 + $0x328] sm:$0xff]  }
  0x38   :  { %16639 = vmatprep.subr.bf16.mxu0 %v18551_v62  ;;  %v18611_v62 = vld [vmem:[%s24523_s1 + $0x360] sm:$0xff]  }
  0x39   :  { %16660 = vmatpush3.bf16.msra.mxu1 %v18550_v61  ;;  %v18610_v61 = vld [vmem:[%s24523_s1 + $0x3a8] sm:$0xff]  }
  0x3a   :  { %16661 = vmatprep.subr.bf16.mxu1 %v18553_v0  ;;  %v18613_v0 = vld [vmem:[%s24523_s1 + $0x3e0] sm:$0xff]  }
  0x3b   :  { %16640 = vmatpush3.bf16.msra.mxu0 %v18552_v63  ;;  %v18612_v63 = vld [vmem:[%s24523_s1 + $0x320] sm:$0xff]  }
  0x3c   :  { %16641 = vmatprep.subr.bf16.mxu0 %v18555_v2  ;;  %v18615_v2 = vld [vmem:[%s24523_s1 + $0x358] sm:$0xff]  }
  0x3d   :  { %16662 = vmatpush3.bf16.msra.mxu1 %v18554_v1  ;;  %v18614_v1 = vld [vmem:[%s24523_s1 + $0x3a0] sm:$0xff]  }
  0x3e   :  { %16663 = vmatprep.subr.bf16.mxu1 %v18557_v4  ;;  %v18617_v4 = vld [vmem:[%s24523_s1 + $0x3d8] sm:$0xff]  }
  0x3f   :  { %16642 = vmatpush3.bf16.msra.mxu0 %v18556_v3  ;;  %v18616_v3 = vld [vmem:[%s24523_s1 + $0x318] sm:$0xff]  }
  0x40   :  { %16671 = vmatprep.subr.bf16.mxu0 %v18561_v9  ;;  %v18622_v9 = vld [vmem:[%s24523_s1 + $0x390] sm:$0xff]  }
  0x41   :  { %16664 = vmatpush3.bf16.msra.mxu1 %v18560_v8  ;;  %v18621_v8 = vld [vmem:[%s24523_s1 + $0x3d0] sm:$0xff]  }
  0x42   :  { %11634 = vmatmul.mubr.bf16.vlgmr.msra.gmra.mxu0 %v15057_v6  ;;  %16693 = vmatprep.subr.bf16.mxu1 %v18565_v14  ;;  %v18619_v6 = vld [vmem:[%s24523_s1 + $0x350] sm:$0xff]   ;;  %v18627_v14 = vld [vmem:[%s24523_s1 + $0x340] sm:$0xff]  }
  0x43   :  { %16672 = vmatpush3.bf16.msra.mxu0 %v18564_v13  ;;  %11713 = vmatprep.mubr.bf16.mxu0 %v15062_v45  ;;  %v18626_v13 = vld [vmem:[%s24523_s1 + $0x388] sm:$0xff]   ;;  %v18656_v45 = vld [vmem:[%s24523_s1 + $0x410] sm:$0xff]  }
  0x44   :  { %11674 = vmatmul.mubr.bf16.vlgmr.msra.gmra.mxu1 %v15059_v11  ;;  %16673 = vmatprep.subr.bf16.mxu0 %v18567_v16  ;;  %v18624_v11 = vld [vmem:[%s24523_s1 + $0x308] sm:$0xff]   ;;  %v18629_v16 = vld [vmem:[%s24523_s1 + $0x3c0] sm:$0xff]  }
  0x45   :  { %16694 = vmatpush3.bf16.msra.mxu1 %v18566_v15  ;;  %11753 = vmatprep.mubr.bf16.mxu1 %v15064_v50  ;;  %v18628_v15 = vld [vmem:[%s24523_s1 + $0x300] sm:$0xff]   ;;  %v18661_v50 = vld [vmem:[%s24523_s1 + $0x4c8] sm:$0xff]  }
  0x46   :  { %16695 = vmatprep.subr.bf16.mxu1 %v18569_v18 }
  0x47   :  { %16674 = vmatpush3.bf16.msra.mxu0 %v18568_v17  ;;  %v27_v17 = vld [vmem:[%s24524_s0 + $0x30] sm:$0xff] }
  0x48   :  { %16675 = vmatprep.subr.bf16.mxu0 %v18571_v20  ;;  %v15065_v18 = vcombine.low %v27_v17, %v27_v17  ;;  %v18632_v20 = vld [vmem:[%s24523_s1 + $0x380] sm:$0xff]  }
  0x49   :  { %16696 = vmatpush3.bf16.msra.mxu1 %v18570_v19  ;;  %v15066_v19 = vcombine.high %v27_v17, %v27_v17  ;;  %v18690_v17 = vld [vmem:[%s24523_s1 + $0x598] sm:$0xff]  }
  0x4a   :  { %16697 = vmatprep.subr.bf16.mxu1 %v18573_v22  ;;  %v28_v22 = vld [vmem:[%s24524_s0 + $0x38] sm:$0xff] }
  0x4b   :  { %16676 = vmatpush3.bf16.msra.mxu0 %v18572_v21  ;;  %v18633_v21 = vld [vmem:[%s24523_s1 + $0x478] sm:$0xff]  }
  0x4c   :  { %16677 = vmatprep.subr.bf16.mxu0 %v18575_v24  ;;  %v15068_v24 = vcombine.high %v28_v22, %v28_v22 }
  0x4d   :  { %16698 = vmatpush3.bf16.msra.mxu1 %v18574_v23  ;;  %v15067_v23 = vcombine.low %v28_v22, %v28_v22  ;;  %v18695_v22 = vld [vmem:[%s24523_s1 + $0x548] sm:$0xff]  }
  0x4e   :  { %16699 = vmatprep.subr.bf16.mxu1 %v18577_v26  ;;  %v18637_v26 = vld [vmem:[%s24523_s1 + $0x4f8] sm:$0xff]  }
  0x4f   :  { %16678 = vmatpush3.bf16.msra.mxu0 %v18576_v25  ;;  %v18636_v25 = vld [vmem:[%s24523_s1 + $0x438] sm:$0xff]  }
  0x50   :  { %16679 = vmatprep.subr.bf16.mxu0 %v18579_v28  ;;  %v18639_v28 = vld [vmem:[%s24523_s1 + $0x470] sm:$0xff]  }
  0x51   :  { %16700 = vmatpush3.bf16.msra.mxu1 %v18578_v27  ;;  %v18638_v27 = vld [vmem:[%s24523_s1 + $0x4b8] sm:$0xff]  }
  0x52   :  { %16701 = vmatprep.subr.bf16.mxu1 %v18581_v30  ;;  %v18641_v30 = vld [vmem:[%s24523_s1 + $0x4f0] sm:$0xff]  }
  0x53   :  { %16680 = vmatpush3.bf16.msra.mxu0 %v18580_v29  ;;  %v18640_v29 = vld [vmem:[%s24523_s1 + $0x430] sm:$0xff]  }
  0x54   :  { %16681 = vmatprep.subr.bf16.mxu0 %v18583_v32  ;;  %v18643_v32 = vld [vmem:[%s24523_s1 + $0x468] sm:$0xff]  }
  0x55   :  { %16702 = vmatpush3.bf16.msra.mxu1 %v18582_v31  ;;  %v18642_v31 = vld [vmem:[%s24523_s1 + $0x4b0] sm:$0xff]  }
  0x56   :  { %16703 = vmatprep.subr.bf16.mxu1 %v18585_v34  ;;  %v18645_v34 = vld [vmem:[%s24523_s1 + $0x4e8] sm:$0xff]  }
  0x57   :  { %16682 = vmatpush3.bf16.msra.mxu0 %v18584_v33  ;;  %v18644_v33 = vld [vmem:[%s24523_s1 + $0x428] sm:$0xff]  }
  0x58   :  { %16683 = vmatprep.subr.bf16.mxu0 %v18587_v36  ;;  %v18647_v36 = vld [vmem:[%s24523_s1 + $0x460] sm:$0xff]  }
  0x59   :  { %16704 = vmatpush3.bf16.msra.mxu1 %v18586_v35  ;;  %v18646_v35 = vld [vmem:[%s24523_s1 + $0x4a8] sm:$0xff]  }
  0x5a   :  { %16705 = vmatprep.subr.bf16.mxu1 %v18589_v38  ;;  %v18649_v38 = vld [vmem:[%s24523_s1 + $0x4e0] sm:$0xff]  }
  0x5b   :  { %16684 = vmatpush3.bf16.msra.mxu0 %v18588_v37  ;;  %v18648_v37 = vld [vmem:[%s24523_s1 + $0x420] sm:$0xff]  }
  0x5c   :  { %16685 = vmatprep.subr.bf16.mxu0 %v18591_v40  ;;  %v18651_v40 = vld [vmem:[%s24523_s1 + $0x458] sm:$0xff]  }
  0x5d   :  { %16706 = vmatpush3.bf16.msra.mxu1 %v18590_v39  ;;  %v18650_v39 = vld [vmem:[%s24523_s1 + $0x4a0] sm:$0xff]  }
  0x5e   :  { %16707 = vmatprep.subr.bf16.mxu1 %v18593_v42  ;;  %v18653_v42 = vld [vmem:[%s24523_s1 + $0x4d8] sm:$0xff]  }
  0x5f   :  { %16686 = vmatpush3.bf16.msra.mxu0 %v18592_v41  ;;  %v18652_v41 = vld [vmem:[%s24523_s1 + $0x418] sm:$0xff]  }
  0x60   :  { %16715 = vmatprep.subr.bf16.mxu0 %v18597_v47  ;;  %v18658_v47 = vld [vmem:[%s24523_s1 + $0x490] sm:$0xff]  }
  0x61   :  { %16708 = vmatpush3.bf16.msra.mxu1 %v18596_v46  ;;  %v18657_v46 = vld [vmem:[%s24523_s1 + $0x4d0] sm:$0xff]  }
  0x62   :  { %11714 = vmatmul.mubr.bf16.vlgmr.msra.gmra.mxu0 %v15061_v44  ;;  %16737 = vmatprep.subr.bf16.mxu1 %v18601_v52  ;;  %v18655_v44 = vld [vmem:[%s24523_s1 + $0x450] sm:$0xff]   ;;  %v18663_v52 = vld [vmem:[%s24523_s1 + $0x440] sm:$0xff]  }
  0x63   :  { %16716 = vmatpush3.bf16.msra.mxu0 %v18600_v51  ;;  %11793 = vmatprep.mubr.bf16.mxu0 %v15066_v19  ;;  %v18662_v51 = vld [vmem:[%s24523_s1 + $0x488] sm:$0xff]   ;;  %v18692_v19 = vld [vmem:[%s24523_s1 + $0x510] sm:$0xff]  }
  0x64   :  { %11754 = vmatmul.mubr.bf16.vlgmr.msra.gmra.mxu1 %v15063_v49  ;;  %16717 = vmatprep.subr.bf16.mxu0 %v18603_v54  ;;  %v18660_v49 = vld [vmem:[%s24523_s1 + $0x408] sm:$0xff]   ;;  %v18665_v54 = vld [vmem:[%s24523_s1 + $0x4c0] sm:$0xff]  }
  0x65   :  { %16738 = vmatpush3.bf16.msra.mxu1 %v18602_v53  ;;  %11833 = vmatprep.mubr.bf16.mxu1 %v15068_v24  ;;  %v18664_v53 = vld [vmem:[%s24523_s1 + $0x400] sm:$0xff]   ;;  %v18697_v24 = vld [vmem:[%s24523_s1 + $0x5c8] sm:$0xff]  }
  0x66   :  { %16739 = vmatprep.subr.bf16.mxu1 %v18605_v56 }
  0x67   :  { %16718 = vmatpush3.bf16.msra.mxu0 %v18604_v55  ;;  %v29_v55 = vld [vmem:[%s24524_s0 + $0x40] sm:$0xff] }
  0x68   :  { %16719 = vmatprep.subr.bf16.mxu0 %v18607_v58  ;;  %v15069_v56 = vcombine.low %v29_v55, %v29_v55  ;;  %v18668_v58 = vld [vmem:[%s24523_s1 + $0x480] sm:$0xff]  }
  0x69   :  { %16740 = vmatpush3.bf16.msra.mxu1 %v18606_v57  ;;  %v15070_v57 = vcombine.high %v29_v55, %v29_v55  ;;  %v18726_v55 = vld [vmem:[%s24523_s1 + $0x698] sm:$0xff]  }
  0x6a   :  { %16741 = vmatprep.subr.bf16.mxu1 %v18609_v60  ;;  %v30_v60 = vld [vmem:[%s24524_s0 + $0x48] sm:$0xff] }
  0x6b   :  { %16720 = vmatpush3.bf16.msra.mxu0 %v18608_v59  ;;  %v18669_v59 = vld [vmem:[%s24523_s1 + $0x578] sm:$0xff]  }
  0x6c   :  { %16721 = vmatprep.subr.bf16.mxu0 %v18611_v62  ;;  %v15072_v62 = vcombine.high %v30_v60, %v30_v60 }
  0x6d   :  { %16742 = vmatpush3.bf16.msra.mxu1 %v18610_v61  ;;  %v15071_v61 = vcombine.low %v30_v60, %v30_v60  ;;  %v18731_v60 = vld [vmem:[%s24523_s1 + $0x648] sm:$0xff]  }
  0x6e   :  { %16743 = vmatprep.subr.bf16.mxu1 %v18613_v0  ;;  %v18673_v0 = vld [vmem:[%s24523_s1 + $0x5f8] sm:$0xff]  }
  0x6f   :  { %16722 = vmatpush3.bf16.msra.mxu0 %v18612_v63  ;;  %v18672_v63 = vld [vmem:[%s24523_s1 + $0x538] sm:$0xff]  }
  0x70   :  { %16723 = vmatprep.subr.bf16.mxu0 %v18615_v2  ;;  %v18675_v2 = vld [vmem:[%s24523_s1 + $0x570] sm:$0xff]  }
  0x71   :  { %16744 = vmatpush3.bf16.msra.mxu1 %v18614_v1  ;;  %v18674_v1 = vld [vmem:[%s24523_s1 + $0x5b8] sm:$0xff]  }
  0x72   :  { %16745 = vmatprep.subr.bf16.mxu1 %v18617_v4  ;;  %v18677_v4 = vld [vmem:[%s24523_s1 + $0x5f0] sm:$0xff]  }
  0x73   :  { %16724 = vmatpush3.bf16.msra.mxu0 %v18616_v3  ;;  %v18676_v3 = vld [vmem:[%s24523_s1 + $0x530] sm:$0xff]  }
  0x74   :  { %16725 = vmatprep.subr.bf16.mxu0 %v18619_v6  ;;  %v18679_v6 = vld [vmem:[%s24523_s1 + $0x568] sm:$0xff]  }
  0x75   :  { %16746 = vmatpush3.bf16.msra.mxu1 %v18618_v5  ;;  %v18678_v5 = vld [vmem:[%s24523_s1 + $0x5b0] sm:$0xff]  }
  0x76   :  { %16747 = vmatprep.subr.bf16.mxu1 %v18621_v8  ;;  %v18681_v8 = vld [vmem:[%s24523_s1 + $0x5e8] sm:$0xff]  }
  0x77   :  { %16726 = vmatpush3.bf16.msra.mxu0 %v18620_v7  ;;  %v18680_v7 = vld [vmem:[%s24523_s1 + $0x528] sm:$0xff]  }
  0x78   :  { %16727 = vmatprep.subr.bf16.mxu0 %v18623_v10  ;;  %v18683_v10 = vld [vmem:[%s24523_s1 + $0x560] sm:$0xff]  }
  0x79   :  { %16748 = vmatpush3.bf16.msra.mxu1 %v18622_v9  ;;  %v18682_v9 = vld [vmem:[%s24523_s1 + $0x5a8] sm:$0xff]  }
  0x7a   :  { %16749 = vmatprep.subr.bf16.mxu1 %v18625_v12  ;;  %v18685_v12 = vld [vmem:[%s24523_s1 + $0x5e0] sm:$0xff]  }
  0x7b   :  { %16728 = vmatpush3.bf16.msra.mxu0 %v18624_v11  ;;  %v18684_v11 = vld [vmem:[%s24523_s1 + $0x520] sm:$0xff]  }
  0x7c   :  { %16729 = vmatprep.subr.bf16.mxu0 %v18627_v14  ;;  %v18687_v14 = vld [vmem:[%s24523_s1 + $0x558] sm:$0xff]  }
  0x7d   :  { %16750 = vmatpush3.bf16.msra.mxu1 %v18626_v13  ;;  %v18686_v13 = vld [vmem:[%s24523_s1 + $0x5a0] sm:$0xff]  }
  0x7e   :  { %16751 = vmatprep.subr.bf16.mxu1 %v18629_v16  ;;  %v18689_v16 = vld [vmem:[%s24523_s1 + $0x5d8] sm:$0xff]  }
  0x7f   :  { %16730 = vmatpush3.bf16.msra.mxu0 %v18628_v15  ;;  %v18688_v15 = vld [vmem:[%s24523_s1 + $0x518] sm:$0xff]  }
  0x80   :  { %16759 = vmatprep.subr.bf16.mxu0 %v18633_v21  ;;  %v18694_v21 = vld [vmem:[%s24523_s1 + $0x590] sm:$0xff]  }
  0x81   :  { %16752 = vmatpush3.bf16.msra.mxu1 %v18632_v20  ;;  %v18693_v20 = vld [vmem:[%s24523_s1 + $0x5d0] sm:$0xff]  }
  0x82   :  { %11794 = vmatmul.mubr.bf16.vlgmr.msra.gmra.mxu0 %v15065_v18  ;;  %16781 = vmatprep.subr.bf16.mxu1 %v18637_v26  ;;  %v18691_v18 = vld [vmem:[%s24523_s1 + $0x550] sm:$0xff]   ;;  %v18699_v26 = vld [vmem:[%s24523_s1 + $0x540] sm:$0xff]  }
  0x83   :  { %16760 = vmatpush3.bf16.msra.mxu0 %v18636_v25  ;;  %11873 = vmatprep.mubr.bf16.mxu0 %v15070_v57  ;;  %v18698_v25 = vld [vmem:[%s24523_s1 + $0x588] sm:$0xff]   ;;  %v18728_v57 = vld [vmem:[%s24523_s1 + $0x610] sm:$0xff]  }
  0x84   :  { %11834 = vmatmul.mubr.bf16.vlgmr.msra.gmra.mxu1 %v15067_v23  ;;  %16761 = vmatprep.subr.bf16.mxu0 %v18639_v28  ;;  %v18696_v23 = vld [vmem:[%s24523_s1 + $0x508] sm:$0xff]   ;;  %v18701_v28 = vld [vmem:[%s24523_s1 + $0x5c0] sm:$0xff]  }
  0x85   :  { %16782 = vmatpush3.bf16.msra.mxu1 %v18638_v27  ;;  %11913 = vmatprep.mubr.bf16.mxu1 %v15072_v62  ;;  %v18700_v27 = vld [vmem:[%s24523_s1 + $0x500] sm:$0xff]   ;;  %v18733_v62 = vld [vmem:[%s24523_s1 + $0x6c8] sm:$0xff]  }
  0x86   :  { %16783 = vmatprep.subr.bf16.mxu1 %v18641_v30 }
  0x87   :  { %16762 = vmatpush3.bf16.msra.mxu0 %v18640_v29  ;;  %v31_v29 = vld [vmem:[%s24524_s0 + $0x50] sm:$0xff] }
  0x88   :  { %16763 = vmatprep.subr.bf16.mxu0 %v18643_v32  ;;  %v15073_v30 = vcombine.low %v31_v29, %v31_v29  ;;  %v18704_v32 = vld [vmem:[%s24523_s1 + $0x580] sm:$0xff]  }
  0x89   :  { %16784 = vmatpush3.bf16.msra.mxu1 %v18642_v31  ;;  %v15074_v31 = vcombine.high %v31_v29, %v31_v29 }
  0x8a   :  { %16785 = vmatprep.subr.bf16.mxu1 %v18645_v34  ;;  %v32_v34 = vld [vmem:[%s24524_s0 + $0x58] sm:$0xff] }
  0x8b   :  { %16764 = vmatpush3.bf16.msra.mxu0 %v18644_v33  ;;  %v18705_v33 = vld [vmem:[%s24523_s1 + $0x678] sm:$0xff]  }
  0x8c   :  { %16765 = vmatprep.subr.bf16.mxu0 %v18647_v36  ;;  %v15076_v36 = vcombine.high %v32_v34, %v32_v34 }
  0x8d   :  { %16786 = vmatpush3.bf16.msra.mxu1 %v18646_v35  ;;  %v15075_v35 = vcombine.low %v32_v34, %v32_v34  ;;  %v18754_v34 = vld [vmem:[%s24523_s1 + $0x7a8] sm:$0xff]  }
  0x8e   :  { %16787 = vmatprep.subr.bf16.mxu1 %v18649_v38  ;;  %v18709_v38 = vld [vmem:[%s24523_s1 + $0x6f8] sm:$0xff]  }
  0x8f   :  { %16766 = vmatpush3.bf16.msra.mxu0 %v18648_v37  ;;  %v18708_v37 = vld [vmem:[%s24523_s1 + $0x638] sm:$0xff]  }
  0x90   :  { %16767 = vmatprep.subr.bf16.mxu0 %v18651_v40  ;;  %v18711_v40 = vld [vmem:[%s24523_s1 + $0x670] sm:$0xff]  }
  0x91   :  { %16788 = vmatpush3.bf16.msra.mxu1 %v18650_v39  ;;  %v18710_v39 = vld [vmem:[%s24523_s1 + $0x6b8] sm:$0xff]  }
  0x92   :  { %16789 = vmatprep.subr.bf16.mxu1 %v18653_v42  ;;  %v18713_v42 = vld [vmem:[%s24523_s1 + $0x6f0] sm:$0xff]  }
  0x93   :  { %16768 = vmatpush3.bf16.msra.mxu0 %v18652_v41  ;;  %v18712_v41 = vld [vmem:[%s24523_s1 + $0x630] sm:$0xff]  }
  0x94   :  { %16769 = vmatprep.subr.bf16.mxu0 %v18655_v44  ;;  %v18715_v44 = vld [vmem:[%s24523_s1 + $0x668] sm:$0xff]  }
  0x95   :  { %16790 = vmatpush3.bf16.msra.mxu1 %v18654_v43  ;;  %v18714_v43 = vld [vmem:[%s24523_s1 + $0x6b0] sm:$0xff]  }
  0x96   :  { %16791 = vmatprep.subr.bf16.mxu1 %v18657_v46  ;;  %v18717_v46 = vld [vmem:[%s24523_s1 + $0x6e8] sm:$0xff]  }
  0x97   :  { %16770 = vmatpush3.bf16.msra.mxu0 %v18656_v45  ;;  %v18716_v45 = vld [vmem:[%s24523_s1 + $0x628] sm:$0xff]  }
  0x98   :  { %16771 = vmatprep.subr.bf16.mxu0 %v18659_v48  ;;  %v18719_v48 = vld [vmem:[%s24523_s1 + $0x660] sm:$0xff]  }
  0x99   :  { %16792 = vmatpush3.bf16.msra.mxu1 %v18658_v47  ;;  %v18718_v47 = vld [vmem:[%s24523_s1 + $0x6a8] sm:$0xff]  }
  0x9a   :  { %16793 = vmatprep.subr.bf16.mxu1 %v18661_v50  ;;  %v18721_v50 = vld [vmem:[%s24523_s1 + $0x6e0] sm:$0xff]  }
  0x9b   :  { %16772 = vmatpush3.bf16.msra.mxu0 %v18660_v49  ;;  %v18720_v49 = vld [vmem:[%s24523_s1 + $0x620] sm:$0xff]  }
  0x9c   :  { %16773 = vmatprep.subr.bf16.mxu0 %v18663_v52  ;;  %v18723_v52 = vld [vmem:[%s24523_s1 + $0x658] sm:$0xff]  }
  0x9d   :  { %16794 = vmatpush3.bf16.msra.mxu1 %v18662_v51  ;;  %v18722_v51 = vld [vmem:[%s24523_s1 + $0x6a0] sm:$0xff]  }
  0x9e   :  { %16795 = vmatprep.subr.bf16.mxu1 %v18665_v54  ;;  %v18725_v54 = vld [vmem:[%s24523_s1 + $0x6d8] sm:$0xff]  }
  0x9f   :  { %16774 = vmatpush3.bf16.msra.mxu0 %v18664_v53  ;;  %v18724_v53 = vld [vmem:[%s24523_s1 + $0x618] sm:$0xff]  }
  0xa0   :  { %16803 = vmatprep.subr.bf16.mxu0 %v18669_v59  ;;  %v18730_v59 = vld [vmem:[%s24523_s1 + $0x690] sm:$0xff]  }
  0xa1   :  { %16796 = vmatpush3.bf16.msra.mxu1 %v18668_v58  ;;  %v18729_v58 = vld [vmem:[%s24523_s1 + $0x6d0] sm:$0xff]  }
  0xa2   :  { %11874 = vmatmul.mubr.bf16.vlgmr.msra.gmra.mxu0 %v15069_v56  ;;  %16825 = vmatprep.subr.bf16.mxu1 %v18673_v0  ;;  %v18727_v56 = vld [vmem:[%s24523_s1 + $0x650] sm:$0xff]   ;;  %v18735_v0 = vld [vmem:[%s24523_s1 + $0x640] sm:$0xff]  }
  0xa3   :  { %16804 = vmatpush3.bf16.msra.mxu0 %v18672_v63  ;;  %11953 = vmatprep.mubr.bf16.mxu0 %v15074_v31  ;;  %v18734_v63 = vld [vmem:[%s24523_s1 + $0x688] sm:$0xff]  }
  0xa4   :  { %11914 = vmatmul.mubr.bf16.vlgmr.msra.gmra.mxu1 %v15071_v61  ;;  %16805 = vmatprep.subr.bf16.mxu0 %v18675_v2  ;;  %v18732_v61 = vld [vmem:[%s24523_s1 + $0x608] sm:$0xff]   ;;  %v18737_v2 = vld [vmem:[%s24523_s1 + $0x6c0] sm:$0xff]  }
  0xa5   :  { %16826 = vmatpush3.bf16.msra.mxu1 %v18674_v1  ;;  %11993 = vmatprep.mubr.bf16.mxu1 %v15076_v36  ;;  %v18736_v1 = vld [vmem:[%s24523_s1 + $0x600] sm:$0xff]   ;;  %v18751_v31 = vld [vmem:[%s24523_s1 + $0x768] sm:$0xff]  }
  0xa6   :  { %16827 = vmatprep.subr.bf16.mxu1 %v18677_v4  ;;  %v18756_v36 = vld [vmem:[%s24523_s1 + $0x720] sm:$0xff]  }
  0xa7   :  { %16806 = vmatpush3.bf16.msra.mxu0 %v18676_v3  ;;  %v33_v3 = vld [vmem:[%s24524_s0 + $0x60] sm:$0xff] }
  0xa8   :  { %16807 = vmatprep.subr.bf16.mxu0 %v18679_v6  ;;  %v15078_v6 = vcombine.high %v33_v3, %v33_v3 }
  0xa9   :  { %16828 = vmatpush3.bf16.msra.mxu1 %v18678_v5  ;;  %v15077_v5 = vcombine.low %v33_v3, %v33_v3 }
  0xaa   :  { %16829 = vmatprep.subr.bf16.mxu1 %v18681_v8  ;;  %v18741_v8 = vld [vmem:[%s24523_s1 + $0x778] sm:$0xff]  }
  0xab   :  { %16808 = vmatpush3.bf16.msra.mxu0 %v18680_v7  ;;  %v18740_v7 = vld [vmem:[%s24523_s1 + $0x680] sm:$0xff]  }
  0xac   :  { %16809 = vmatprep.subr.bf16.mxu0 %v18683_v10 }
  0xad   :  { %16830 = vmatpush3.bf16.msra.mxu1 %v18682_v9  ;;  %v34_v9 = vld [vmem:[%s24524_s0 + $0x68] sm:$0xff] }
  0xae   :  { %16831 = vmatprep.subr.bf16.mxu1 %v18685_v12  ;;  %v15079_v12 = vcombine.low %v34_v9, %v34_v9 }
  0xaf   :  { %16810 = vmatpush3.bf16.msra.mxu0 %v18684_v11 }
  0xb0   :  { %16811 = vmatprep.subr.bf16.mxu0 %v18687_v14  ;;  %v18744_v14 = vld [vmem:[%s24523_s1 + $0x738] sm:$0xff]  }
  0xb1   :  { %16832 = vmatpush3.bf16.msra.mxu1 %v18686_v13  ;;  %v15080_v13 = vcombine.high %v34_v9, %v34_v9 }
  0xb2   :  { %16833 = vmatprep.subr.bf16.mxu1 %v18689_v16 }
  0xb3   :  { %16812 = vmatpush3.bf16.msra.mxu0 %v18688_v15  ;;  %v15052_v15 = vld [vmem:[%s24525_s2] ss:$0 sm:$0xff] }
  0xb4   :  { %16813 = vmatprep.subr.bf16.mxu0 %v18691_v18 }
  0xb5   :  { %16834 = vmatpush3.bf16.msra.mxu1 %v18690_v17  ;;  %v18745_v17 = vld [vmem:[%s24523_s1 + $0x7f8] sm:$0xff]  }
  0xb6   :  { %16835 = vmatprep.subr.bf16.mxu1 %v18693_v20 }
  0xb7   :  { %16814 = vmatpush3.bf16.msra.mxu0 %v18692_v19 }
  0xb8   :  { %16815 = vmatprep.subr.bf16.mxu0 %v18695_v22 }
  0xb9   :  { %16836 = vmatpush3.bf16.msra.mxu1 %v18694_v21  ;;  %v18746_v21 = vld [vmem:[%s24523_s1 + $0x7b8] sm:$0xff]  }
  0xba   :  { %16837 = vmatprep.subr.bf16.mxu1 %v18697_v24 }
  0xbb   :  { %16816 = vmatpush3.bf16.msra.mxu0 %v18696_v23  ;;  %v18747_v23 = vld [vmem:[%s24523_s1 + $0x770] sm:$0xff]  }
  0xbc   :  { %16817 = vmatprep.subr.bf16.mxu0 %v18699_v26 }
  0xbd   :  { %16838 = vmatpush3.bf16.msra.mxu1 %v18698_v25 }
  0xbe   :  { %16839 = vmatprep.subr.bf16.mxu1 %v18701_v28  ;;  %v18749_v28 = vld [vmem:[%s24523_s1 + $0x7f0] sm:$0xff]  }
  0xbf   :  { %16818 = vmatpush3.bf16.msra.mxu0 %v18700_v27  ;;  %v18748_v27 = vld [vmem:[%s24523_s1 + $0x730] sm:$0xff]  }
  0xc0   :  { %16847 = vmatprep.subr.bf16.mxu0 %v18705_v33  ;;  %v18753_v33 = vld [vmem:[%s24523_s1 + $0x7e8] sm:$0xff]  }
  0xc1   :  { %16840 = vmatpush3.bf16.msra.mxu1 %v18704_v32  ;;  %v18752_v32 = vld [vmem:[%s24523_s1 + $0x728] sm:$0xff]  }
  0xc2   :  { %11954 = vmatmul.mubr.bf16.vlgmr.msra.gmra.mxu0 %v15073_v30  ;;  %16869 = vmatprep.subr.bf16.mxu1 %v18709_v38  ;;  %v18750_v30 = vld [vmem:[%s24523_s1 + $0x7b0] sm:$0xff]   ;;  %v18758_v38 = vld [vmem:[%s24523_s1 + $0x7a0] sm:$0xff]  }
  0xc3   :  { %16848 = vmatpush3.bf16.msra.mxu0 %v18708_v37  ;;  %12033 = vmatprep.mubr.bf16.mxu0 %v15078_v6  ;;  %v18757_v37 = vld [vmem:[%s24523_s1 + $0x7e0] sm:$0xff]  }
  0xc4   :  { %11994 = vmatmul.mubr.bf16.vlgmr.msra.gmra.mxu1 %v15075_v35  ;;  %16849 = vmatprep.subr.bf16.mxu0 %v18711_v40  ;;  %v18755_v35 = vld [vmem:[%s24523_s1 + $0x760] sm:$0xff]   ;;  %v18760_v40 = vld [vmem:[%s24523_s1 + $0x718] sm:$0xff]  }
  0xc5   :  { %16870 = vmatpush3.bf16.msra.mxu1 %v18710_v39  ;;  %12073 = vmatprep.mubr.bf16.mxu1 %v15080_v13  ;;  %v18759_v39 = vld [vmem:[%s24523_s1 + $0x758] sm:$0xff]   ;;  %v18784_v13 = vld [vmem:[%s24523_s1 + $0x830] sm:$0xff]  }
  0xc6   :  { %16871 = vmatprep.subr.bf16.mxu1 %v18713_v42  ;;  %v18762_v42 = vld [vmem:[%s24523_s1 + $0x798] sm:$0xff]  }
  0xc7   :  { %16850 = vmatpush3.bf16.msra.mxu0 %v18712_v41  ;;  %v18761_v41 = vld [vmem:[%s24523_s1 + $0x7d8] sm:$0xff]  }
  0xc8   :  { %16851 = vmatprep.subr.bf16.mxu0 %v18715_v44  ;;  %v18764_v44 = vld [vmem:[%s24523_s1 + $0x710] sm:$0xff]  }
  0xc9   :  { %16872 = vmatpush3.bf16.msra.mxu1 %v18714_v43  ;;  %v18763_v43 = vld [vmem:[%s24523_s1 + $0x750] sm:$0xff]  }
  0xca   :  { %16873 = vmatprep.subr.bf16.mxu1 %v18717_v46  ;;  %v18766_v46 = vld [vmem:[%s24523_s1 + $0x790] sm:$0xff]  }
  0xcb   :  { %16852 = vmatpush3.bf16.msra.mxu0 %v18716_v45  ;;  %v18765_v45 = vld [vmem:[%s24523_s1 + $0x7d0] sm:$0xff]  }
  0xcc   :  { %16853 = vmatprep.subr.bf16.mxu0 %v18719_v48  ;;  %v18768_v48 = vld [vmem:[%s24523_s1 + $0x708] sm:$0xff]  }
  0xcd   :  { %16874 = vmatpush3.bf16.msra.mxu1 %v18718_v47  ;;  %v18767_v47 = vld [vmem:[%s24523_s1 + $0x748] sm:$0xff]  }
  0xce   :  { %16875 = vmatprep.subr.bf16.mxu1 %v18721_v50  ;;  %v18770_v50 = vld [vmem:[%s24523_s1 + $0x788] sm:$0xff]  }
  0xcf   :  { %16854 = vmatpush3.bf16.msra.mxu0 %v18720_v49  ;;  %v18769_v49 = vld [vmem:[%s24523_s1 + $0x7c8] sm:$0xff]  }
  0xd0   :  { %16855 = vmatprep.subr.bf16.mxu0 %v18723_v52  ;;  %v18772_v52 = vld [vmem:[%s24523_s1 + $0x700] sm:$0xff]  }
  0xd1   :  { %16876 = vmatpush3.bf16.msra.mxu1 %v18722_v51  ;;  %v18771_v51 = vld [vmem:[%s24523_s1 + $0x740] sm:$0xff]  }
  0xd2   :  { %16877 = vmatprep.subr.bf16.mxu1 %v18725_v54 }
  0xd3   :  { %16856 = vmatpush3.bf16.msra.mxu0 %v18724_v53  ;;  %v18773_v53 = vld [vmem:[%s24523_s1 + $0x7c0] sm:$0xff]  }
  0xd4   :  { %16857 = vmatprep.subr.bf16.mxu0 %v18727_v56 }
  0xd5   :  { %16878 = vmatpush3.bf16.msra.mxu1 %v18726_v55  ;;  %v35_v55 = vld [vmem:[%s24524_s0 + $0x70] sm:$0xff] }
  0xd6   :  { %16879 = vmatprep.subr.bf16.mxu1 %v18729_v58  ;;  %v15081_v56 = vcombine.low %v35_v55, %v35_v55  ;;  %v18776_v58 = vld [vmem:[%s24523_s1 + $0x780] sm:$0xff]  }
  0xd7   :  { %16858 = vmatpush3.bf16.msra.mxu0 %v18728_v57  ;;  %v15082_v57 = vcombine.high %v35_v55, %v35_v55 }
  0xd8   :  { %16859 = vmatprep.subr.bf16.mxu0 %v18731_v60  ;;  %v18777_v60 = vld [vmem:[%s24523_s1 + $0x878] sm:$0xff]  }
  0xd9   :  { %16880 = vmatpush3.bf16.msra.mxu1 %v18730_v59 }
  0xda   :  { %16881 = vmatprep.subr.bf16.mxu1 %v18733_v62 }
  0xdb   :  { %16860 = vmatpush3.bf16.msra.mxu0 %v18732_v61  ;;  %v36_v61 = vld [vmem:[%s24524_s0 + $0x78] sm:$0xff] }
  0xdc   :  { %16861 = vmatprep.subr.bf16.mxu0 %v18735_v0  ;;  %v15083_v0 = vcombine.low %v36_v61, %v36_v61 }
  0xdd   :  { %16882 = vmatpush3.bf16.msra.mxu1 %v18734_v63 }
  0xde   :  { %16883 = vmatprep.subr.bf16.mxu1 %v18737_v2  ;;  %v18780_v2 = vld [vmem:[%s24523_s1 + $0x838] sm:$0xff]  }
  0xdf   :  { %16862 = vmatpush3.bf16.msra.mxu0 %v18736_v1  ;;  %v15084_v1 = vcombine.high %v36_v61, %v36_v61 }
  0xe0   :  { %16891 = vmatprep.subr.bf16.mxu0 %v18741_v8 }
  0xe1   :  { %16884 = vmatpush3.bf16.msra.mxu1 %v18740_v7  ;;  %v18782_v7 = vld [vmem:[%s24523_s1 + $0x8b8] sm:$0xff]  }
  0xe2   :  { %v16599_v4 = vpop.f32.mrf.mxu0  ;;  %12034 = vmatmul.mubr.bf16.vlgmr.msra.gmra.mxu0 %v15077_v5  ;;  %16913 = vmatprep.subr.bf16.mxu1 %v18745_v17  ;;  %v18781_v5 = vld [vmem:[%s24523_s1 + $0x8f8] sm:$0xff]   ;;  %v18787_v17 = vld [vmem:[%s24523_s1 + $0x868] sm:$0xff]  }
  0xe3   :  { %16892 = vmatpush3.bf16.msra.mxu0 %v18744_v14  ;;  %12113 = vmatprep.mubr.bf16.mxu0 %v15082_v57  ;;  %v18785_v14 = vld [vmem:[%s24523_s1 + $0x8f0] sm:$0xff]  }
  0xe4   :  { %v16600_v10 = vpop.f32.mrf.mxu0  ;;  %v16621_v11 = vpop.f32.mrf.mxu1  ;;  %12074 = vmatmul.mubr.bf16.vlgmr.msra.gmra.mxu1 %v15079_v12  ;;  %16893 = vmatprep.subr.bf16.mxu0 %v18747_v23  ;;  %v18793_v23 = vld [vmem:[%s24523_s1 + $0x8e0] sm:$0xff]  }
  0xe5   :  { %v16601_v16 = vadd.f32 %v16600_v10, %v16599_v4  ;;  %16914 = vmatpush3.bf16.msra.mxu1 %v18746_v21  ;;  %12153 = vmatprep.mubr.bf16.mxu1 %v15084_v1  ;;  %v18783_v10 = vld [vmem:[%s24523_s1 + $0x870] sm:$0xff]   ;;  %v18791_v21 = vld [vmem:[%s24523_s1 + $0x860] sm:$0xff]  }
  0xe6   :  { %v16602_v18 = vpop.f32.mrf.mxu0  ;;  %v16622_v19 = vpop.f32.mrf.mxu1  ;;  %16915 = vmatprep.subr.bf16.mxu1 %v18749_v28  ;;  %v18798_v28 = vld [vmem:[%s24523_s1 + $0x898] sm:$0xff]   ;;  %v18821_v1 = vld [vmem:[%s24523_s1 + $0x9f0] sm:$0xff]  }
  0xe7   :  { %v11556_v20 = vadd.f32 %v16601_v16, %v15052_v15  ;;  %v16623_v22 = vadd.f32 %v16622_v19, %v16621_v11  ;;  %16894 = vmatpush3.bf16.msra.mxu0 %v18748_v27  ;;  %v18786_v16 = vld [vmem:[%s24523_s1 + $0x8b0] sm:$0xff]   ;;  %v18788_v18 = vld [vmem:[%s24523_s1 + $0x828] sm:$0xff]   ;;  %v18797_v27 = vld [vmem:[%s24523_s1 + $0x8d8] sm:$0xff]  }
  0xe8   :  { %v16603_v24 = vpop.f32.mrf.mxu0  ;;  %v16624_v25 = vpop.f32.mrf.mxu1  ;;  %16895 = vmatprep.subr.bf16.mxu0 %v18751_v31  ;;  %v18789_v19 = vld [vmem:[%s24523_s1 + $0x8e8] sm:$0xff]   ;;  %v18801_v31 = vld [vmem:[%s24523_s1 + $0x8d0] sm:$0xff]  }
  0xe9   :  { %v20788_v26 = vadd.f32 %v16623_v22, %v11556_v20  ;;  %16916 = vmatpush3.bf16.msra.mxu1 %v18750_v30  ;;  %v18790_v20 = vld [vmem:[%s24523_s1 + $0x8a8] sm:$0xff]   ;;  %v18792_v22 = vld [vmem:[%s24523_s1 + $0x820] sm:$0xff]   ;;  %v18795_v25 = vld [vmem:[%s24523_s1 + $0x858] sm:$0xff]  }
  0xea   :  { %v16625_v29 = vpop.f32.mrf.mxu1  ;;  %16917 = vmatprep.subr.bf16.mxu1 %v18753_v33  ;;  %v18794_v24 = vld [vmem:[%s24523_s1 + $0x8a0] sm:$0xff]   ;;  %v18800_v30 = vld [vmem:[%s24523_s1 + $0x810] sm:$0xff]   ;;  %v18803_v33 = vld [vmem:[%s24523_s1 + $0x848] sm:$0xff]  }
  0xeb   :  { %16896 = vmatpush3.bf16.msra.mxu0 %v18752_v32  ;;  %v18799_v29 = vld [vmem:[%s24523_s1 + $0x850] sm:$0xff]  }
  0xec   :  { %16897 = vmatprep.subr.bf16.mxu0 %v18755_v35  ;;  %v18802_v32 = vld [vmem:[%s24523_s1 + $0x890] sm:$0xff]   ;;  %v18805_v35 = vld [vmem:[%s24523_s1 + $0x8c8] sm:$0xff]  }
  0xed   :  { %16918 = vmatpush3.bf16.msra.mxu1 %v18754_v34  ;;  %v18804_v34 = vld [vmem:[%s24523_s1 + $0x808] sm:$0xff]  }
  0xee   :  { %16919 = vmatprep.subr.bf16.mxu1 %v18757_v37  ;;  %v18807_v37 = vld [vmem:[%s24523_s1 + $0x840] sm:$0xff]  }
  0xef   :  { %16898 = vmatpush3.bf16.msra.mxu0 %v18756_v36  ;;  %v18806_v36 = vld [vmem:[%s24523_s1 + $0x888] sm:$0xff]  }
  0xf0   :  { %16899 = vmatprep.subr.bf16.mxu0 %v18759_v39  ;;  %v18809_v39 = vld [vmem:[%s24523_s1 + $0x8c0] sm:$0xff]  }
  0xf1   :  { %16920 = vmatpush3.bf16.msra.mxu1 %v18758_v38  ;;  %v18808_v38 = vld [vmem:[%s24523_s1 + $0x800] sm:$0xff]  }
  0xf2   :  { %16921 = vmatprep.subr.bf16.mxu1 %v18761_v41 }
  0xf3   :  { %16900 = vmatpush3.bf16.msra.mxu0 %v18760_v40  ;;  %v37_v40 = vld [vmem:[%s24524_s0 + $0x80] sm:$0xff] }
  0xf4   :  { %16901 = vmatprep.subr.bf16.mxu0 %v18763_v43  ;;  %v15086_v43 = vcombine.high %v37_v40, %v37_v40 }
  0xf5   :  { %16922 = vmatpush3.bf16.msra.mxu1 %v18762_v42  ;;  %v15085_v42 = vcombine.low %v37_v40, %v37_v40 }
  0xf6   :  { %16923 = vmatprep.subr.bf16.mxu1 %v18765_v45  ;;  %v18813_v45 = vld [vmem:[%s24523_s1 + $0x978] sm:$0xff]  }
  0xf7   :  { %16902 = vmatpush3.bf16.msra.mxu0 %v18764_v44  ;;  %v18812_v44 = vld [vmem:[%s24523_s1 + $0x880] sm:$0xff]  }
  0xf8   :  { %16903 = vmatprep.subr.bf16.mxu0 %v18767_v47 }
  0xf9   :  { %16924 = vmatpush3.bf16.msra.mxu1 %v18766_v46 }
  0xfa   :  { %16925 = vmatprep.subr.bf16.mxu1 %v18769_v49 }
  0xfb   :  { %16904 = vmatpush3.bf16.msra.mxu0 %v18768_v48  ;;  %v38_v48 = vld [vmem:[%s24524_s0 + $0x88] sm:$0xff] }
  0xfc   :  { %16905 = vmatprep.subr.bf16.mxu0 %v18771_v51  ;;  %v15088_v51 = vcombine.high %v38_v48, %v38_v48 }
  0xfd   :  { %16926 = vmatpush3.bf16.msra.mxu1 %v18770_v50  ;;  %v15087_v50 = vcombine.low %v38_v48, %v38_v48 }
  0xfe   :  { %16927 = vmatprep.subr.bf16.mxu1 %v18773_v53 }
  0xff   :  { %16906 = vmatpush3.bf16.msra.mxu0 %v18772_v52  ;;  %v18816_v52 = vld [vmem:[%s24523_s1 + $0x938] sm:$0xff]  }
 0x100   :  { %16935 = vmatprep.subr.bf16.mxu0 %v18777_v60 }
 0x101   :  { %16928 = vmatpush3.bf16.msra.mxu1 %v18776_v58  ;;  %v18818_v58 = vld [vmem:[%s24523_s1 + $0x9b8] sm:$0xff]  }
 0x102   :  { %v16643_v54 = vpop.f32.mrf.mxu0  ;;  %12114 = vmatmul.mubr.bf16.vlgmr.msra.gmra.mxu0 %v15081_v56  ;;  %16957 = vmatprep.subr.bf16.mxu1 %v18781_v5  ;;  %v18817_v56 = vld [vmem:[%s24523_s1 + $0x9f8] sm:$0xff]   ;;  %v18825_v5 = vld [vmem:[%s24523_s1 + $0x9e8] sm:$0xff]  }
 0x103   :  { %16936 = vmatpush3.bf16.msra.mxu0 %v18780_v2  ;;  %12193 = vmatprep.mubr.bf16.mxu0 %v15086_v43  ;;  %v18822_v2 = vld [vmem:[%s24523_s1 + $0x9b0] sm:$0xff]   ;;  %v18854_v43 = vld [vmem:[%s24523_s1 + $0xab8] sm:$0xff]  }
 0x104   :  { %v16644_v59 = vpop.f32.mrf.mxu0  ;;  %v16665_v63 = vpop.f32.mrf.mxu1  ;;  %12154 = vmatmul.mubr.bf16.vlgmr.msra.gmra.mxu1 %v15083_v0  ;;  %16937 = vmatprep.subr.bf16.mxu0 %v18783_v10  ;;  %v18830_v10 = vld [vmem:[%s24523_s1 + $0x9a0] sm:$0xff]  }
 0x105   :  { %v16645_v62 = vadd.f32 %v16644_v59, %v16643_v54  ;;  %16958 = vmatpush3.bf16.msra.mxu1 %v18782_v7  ;;  %12233 = vmatprep.mubr.bf16.mxu1 %v15088_v51  ;;  %v18827_v7 = vld [vmem:[%s24523_s1 + $0x960] sm:$0xff]  }
 0x106   :  { %v16646_v3 = vpop.f32.mrf.mxu0  ;;  %v16666_v6 = vpop.f32.mrf.mxu1  ;;  %16959 = vmatprep.subr.bf16.mxu1 %v18785_v14  ;;  %v18834_v14 = vld [vmem:[%s24523_s1 + $0x998] sm:$0xff]  }
 0x107   :  { %v11636_v4 = vadd.f32 %v16645_v62, %v20788_v26  ;;  %v16667_v8 = vadd.f32 %v16666_v6, %v16665_v63  ;;  %16938 = vmatpush3.bf16.msra.mxu0 %v18784_v13  ;;  %v18796_v26 = vld [vmem:[%s24523_s1 + $0x818] sm:$0xff]   ;;  %v18819_v62 = vld [vmem:[%s24523_s1 + $0x970] sm:$0xff]   ;;  %v18823_v3 = vld [vmem:[%s24523_s1 + $0x968] sm:$0xff]  }
 0x108   :  { %v16647_v9 = vpop.f32.mrf.mxu0  ;;  %v16668_v11 = vpop.f32.mrf.mxu1  ;;  %16939 = vmatprep.subr.bf16.mxu0 %v18787_v17  ;;  %v18820_v63 = vld [vmem:[%s24523_s1 + $0x930] sm:$0xff]   ;;  %v18826_v6 = vld [vmem:[%s24523_s1 + $0x9a8] sm:$0xff]   ;;  %v18833_v13 = vld [vmem:[%s24523_s1 + $0x9d8] sm:$0xff]  }
 0x109   :  { %v20893_v12 = vadd.f32 %v16667_v8, %v11636_v4  ;;  %16960 = vmatpush3.bf16.msra.mxu1 %v18786_v16  ;;  %v18824_v4 = vld [vmem:[%s24523_s1 + $0x928] sm:$0xff]   ;;  %v18828_v8 = vld [vmem:[%s24523_s1 + $0x920] sm:$0xff]   ;;  %v18831_v11 = vld [vmem:[%s24523_s1 + $0x958] sm:$0xff]  }
 0x10a   :  { %v16669_v15 = vpop.f32.mrf.mxu1  ;;  %16961 = vmatprep.subr.bf16.mxu1 %v18789_v19  ;;  %v18829_v9 = vld [vmem:[%s24523_s1 + $0x9e0] sm:$0xff]   ;;  %v18836_v16 = vld [vmem:[%s24523_s1 + $0x910] sm:$0xff]   ;;  %v18839_v19 = vld [vmem:[%s24523_s1 + $0x948] sm:$0xff]  }
 0x10b   :  { %16940 = vmatpush3.bf16.msra.mxu0 %v18788_v18  ;;  %v18835_v15 = vld [vmem:[%s24523_s1 + $0x950] sm:$0xff]  }
 0x10c   :  { %16941 = vmatprep.subr.bf16.mxu0 %v18791_v21  ;;  %v18837_v17 = vld [vmem:[%s24523_s1 + $0x9d0] sm:$0xff]   ;;  %v18841_v21 = vld [vmem:[%s24523_s1 + $0x9c8] sm:$0xff]  }
 0x10d   :  { %16962 = vmatpush3.bf16.msra.mxu1 %v18790_v20  ;;  %v18838_v18 = vld [vmem:[%s24523_s1 + $0x990] sm:$0xff]   ;;  %v18840_v20 = vld [vmem:[%s24523_s1 + $0x908] sm:$0xff]  }
 0x10e   :  { %16963 = vmatprep.subr.bf16.mxu1 %v18793_v23  ;;  %v18843_v23 = vld [vmem:[%s24523_s1 + $0x940] sm:$0xff]  }
 0x10f   :  { %16942 = vmatpush3.bf16.msra.mxu0 %v18792_v22  ;;  %v18842_v22 = vld [vmem:[%s24523_s1 + $0x988] sm:$0xff]  }
 0x110   :  { %16943 = vmatprep.subr.bf16.mxu0 %v18795_v25  ;;  %v18845_v25 = vld [vmem:[%s24523_s1 + $0x9c0] sm:$0xff]  }
 0x111   :  { %16964 = vmatpush3.bf16.msra.mxu1 %v18794_v24  ;;  %v18844_v24 = vld [vmem:[%s24523_s1 + $0x900] sm:$0xff]  }
 0x112   :  { %16965 = vmatprep.subr.bf16.mxu1 %v18797_v27 }
 0x113   :  { %16944 = vmatpush3.bf16.msra.mxu0 %v18796_v26  ;;  %v39_v26 = vld [vmem:[%s24524_s0 + $0x90] sm:$0xff] }
 0x114   :  { %16945 = vmatprep.subr.bf16.mxu0 %v18799_v29  ;;  %v15090_v29 = vcombine.high %v39_v26, %v39_v26 }
 0x115   :  { %16966 = vmatpush3.bf16.msra.mxu1 %v18798_v28  ;;  %v15089_v28 = vcombine.low %v39_v26, %v39_v26 }
 0x116   :  { %16967 = vmatprep.subr.bf16.mxu1 %v18801_v31  ;;  %v18849_v31 = vld [vmem:[%s24523_s1 + $0xa78] sm:$0xff]  }
 0x117   :  { %16946 = vmatpush3.bf16.msra.mxu0 %v18800_v30  ;;  %v18848_v30 = vld [vmem:[%s24523_s1 + $0x980] sm:$0xff]  }
 0x118   :  { %16947 = vmatprep.subr.bf16.mxu0 %v18803_v33 }
 0x119   :  { %16968 = vmatpush3.bf16.msra.mxu1 %v18802_v32  ;;  %v40_v32 = vld [vmem:[%s24524_s0 + $0x98] sm:$0xff] }
 0x11a   :  { %16969 = vmatprep.subr.bf16.mxu1 %v18805_v35  ;;  %v15091_v35 = vcombine.low %v40_v32, %v40_v32 }
 0x11b   :  { %16948 = vmatpush3.bf16.msra.mxu0 %v18804_v34 }
 0x11c   :  { %16949 = vmatprep.subr.bf16.mxu0 %v18807_v37  ;;  %v18852_v37 = vld [vmem:[%s24523_s1 + $0xa38] sm:$0xff]  }
 0x11d   :  { %16970 = vmatpush3.bf16.msra.mxu1 %v18806_v36  ;;  %v15092_v36 = vcombine.high %v40_v32, %v40_v32  ;;  %v18891_v32 = vld [vmem:[%s24523_s1 + $0xb70] sm:$0xff]  }
 0x11e   :  { %16971 = vmatprep.subr.bf16.mxu1 %v18809_v39  ;;  %v18853_v39 = vld [vmem:[%s24523_s1 + $0xaf8] sm:$0xff]  }
 0x11f   :  { %16950 = vmatpush3.bf16.msra.mxu0 %v18808_v38 }
 0x120   :  { %16979 = vmatprep.subr.bf16.mxu0 %v18813_v45  ;;  %v18855_v45 = vld [vmem:[%s24523_s1 + $0xa70] sm:$0xff]  }
 0x121   :  { %16972 = vmatpush3.bf16.msra.mxu1 %v18812_v44 }
 0x122   :  { %v16687_v41 = vpop.f32.mrf.mxu0  ;;  %12194 = vmatmul.mubr.bf16.vlgmr.msra.gmra.mxu0 %v15085_v42  ;;  %17001 = vmatprep.subr.bf16.mxu1 %v18817_v56  ;;  %v18862_v56 = vld [vmem:[%s24523_s1 + $0xaa8] sm:$0xff]  }
 0x123   :  { %16980 = vmatpush3.bf16.msra.mxu0 %v18816_v52  ;;  %12273 = vmatprep.mubr.bf16.mxu0 %v15090_v29  ;;  %v18858_v52 = vld [vmem:[%s24523_s1 + $0xab0] sm:$0xff]   ;;  %v18890_v29 = vld [vmem:[%s24523_s1 + $0xbb8] sm:$0xff]  }
 0x124   :  { %v16688_v46 = vpop.f32.mrf.mxu0  ;;  %v16709_v47 = vpop.f32.mrf.mxu1  ;;  %12234 = vmatmul.mubr.bf16.vlgmr.msra.gmra.mxu1 %v15087_v50  ;;  %16981 = vmatprep.subr.bf16.mxu0 %v18819_v62  ;;  %v18857_v50 = vld [vmem:[%s24523_s1 + $0xaf0] sm:$0xff]   ;;  %v18868_v62 = vld [vmem:[%s24523_s1 + $0xa18] sm:$0xff]  }
 0x125   :  { %v16689_v49 = vadd.f32 %v16688_v46, %v16687_v41  ;;  %17002 = vmatpush3.bf16.msra.mxu1 %v18818_v58  ;;  %12313 = vmatprep.mubr.bf16.mxu1 %v15092_v36  ;;  %v18864_v58 = vld [vmem:[%s24523_s1 + $0xa20] sm:$0xff]   ;;  %v18893_v36 = vld [vmem:[%s24523_s1 + $0xbf0] sm:$0xff]  }
 0x126   :  { %v16690_v53 = vpop.f32.mrf.mxu0  ;;  %v16710_v54 = vpop.f32.mrf.mxu1  ;;  %17003 = vmatprep.subr.bf16.mxu1 %v18821_v1  ;;  %v18871_v1 = vld [vmem:[%s24523_s1 + $0xa50] sm:$0xff]  }
 0x127   :  { %v11716_v55 = vadd.f32 %v16689_v49, %v20893_v12  ;;  %v16711_v57 = vadd.f32 %v16710_v54, %v16709_v47  ;;  %16982 = vmatpush3.bf16.msra.mxu0 %v18820_v63  ;;  %v18832_v12 = vld [vmem:[%s24523_s1 + $0x918] sm:$0xff]   ;;  %v18856_v49 = vld [vmem:[%s24523_s1 + $0xa30] sm:$0xff]   ;;  %v18859_v53 = vld [vmem:[%s24523_s1 + $0xa68] sm:$0xff]  }
 0x128   :  { %v16691_v59 = vpop.f32.mrf.mxu0  ;;  %v16712_v60 = vpop.f32.mrf.mxu1  ;;  %16983 = vmatprep.subr.bf16.mxu0 %v18823_v3  ;;  %v18860_v54 = vld [vmem:[%s24523_s1 + $0xa28] sm:$0xff]   ;;  %v18869_v63 = vld [vmem:[%s24523_s1 + $0xad8] sm:$0xff]   ;;  %v18873_v3 = vld [vmem:[%s24523_s1 + $0xad0] sm:$0xff]  }
 0x129   :  { %v20995_v61 = vadd.f32 %v16711_v57, %v11716_v55  ;;  %17004 = vmatpush3.bf16.msra.mxu1 %v18822_v2  ;;  %v18861_v55 = vld [vmem:[%s24523_s1 + $0xae8] sm:$0xff]   ;;  %v18863_v57 = vld [vmem:[%s24523_s1 + $0xa60] sm:$0xff]   ;;  %v18872_v2 = vld [vmem:[%s24523_s1 + $0xa10] sm:$0xff]  }
 0x12a   :  { %v16713_v0 = vpop.f32.mrf.mxu1  ;;  %17005 = vmatprep.subr.bf16.mxu1 %v18825_v5  ;;  %v18865_v59 = vld [vmem:[%s24523_s1 + $0xae0] sm:$0xff]   ;;  %v18875_v5 = vld [vmem:[%s24523_s1 + $0xa48] sm:$0xff]  }
 0x12b   :  { %16984 = vmatpush3.bf16.msra.mxu0 %v18824_v4  ;;  %v18866_v60 = vld [vmem:[%s24523_s1 + $0xaa0] sm:$0xff]   ;;  %v18870_v0 = vld [vmem:[%s24523_s1 + $0xa98] sm:$0xff]   ;;  %v18874_v4 = vld [vmem:[%s24523_s1 + $0xa90] sm:$0xff]  }
 0x12c   :  { %16985 = vmatprep.subr.bf16.mxu0 %v18827_v7  ;;  %v18877_v7 = vld [vmem:[%s24523_s1 + $0xac8] sm:$0xff]  }
 0x12d   :  { %17006 = vmatpush3.bf16.msra.mxu1 %v18826_v6  ;;  %v18876_v6 = vld [vmem:[%s24523_s1 + $0xa08] sm:$0xff]  }
 0x12e   :  { %17007 = vmatprep.subr.bf16.mxu1 %v18829_v9  ;;  %v18879_v9 = vld [vmem:[%s24523_s1 + $0xa40] sm:$0xff]  }
 0x12f   :  { %16986 = vmatpush3.bf16.msra.mxu0 %v18828_v8  ;;  %v18878_v8 = vld [vmem:[%s24523_s1 + $0xa88] sm:$0xff]  }
 0x130   :  { %16987 = vmatprep.subr.bf16.mxu0 %v18831_v11  ;;  %v18881_v11 = vld [vmem:[%s24523_s1 + $0xac0] sm:$0xff]  }
 0x131   :  { %17008 = vmatpush3.bf16.msra.mxu1 %v18830_v10  ;;  %v18880_v10 = vld [vmem:[%s24523_s1 + $0xa00] sm:$0xff]  }
 0x132   :  { %17009 = vmatprep.subr.bf16.mxu1 %v18833_v13  ;;  %v41_v13 = vld [vmem:[%s24524_s0 + $0xa0] sm:$0xff] }
 0x133   :  { %16988 = vmatpush3.bf16.msra.mxu0 %v18832_v12 }
 0x134   :  { %16989 = vmatprep.subr.bf16.mxu0 %v18835_v15  ;;  %v15094_v15 = vcombine.high %v41_v13, %v41_v13 }
 0x135   :  { %17010 = vmatpush3.bf16.msra.mxu1 %v18834_v14  ;;  %v15093_v14 = vcombine.low %v41_v13, %v41_v13 }
 0x136   :  { %17011 = vmatprep.subr.bf16.mxu1 %v18837_v17 }
 0x137   :  { %16990 = vmatpush3.bf16.msra.mxu0 %v18836_v16  ;;  %v18884_v16 = vld [vmem:[%s24523_s1 + $0xa80] sm:$0xff]  }
 0x138   :  { %16991 = vmatprep.subr.bf16.mxu0 %v18839_v19  ;;  %v42_v19 = vld [vmem:[%s24524_s0 + $0xa8] sm:$0xff] }
 0x139   :  { %17012 = vmatpush3.bf16.msra.mxu1 %v18838_v18  ;;  %v18885_v18 = vld [vmem:[%s24523_s1 + $0xb78] sm:$0xff]  }
 0x13a   :  { %17013 = vmatprep.subr.bf16.mxu1 %v18841_v21 }
 0x13b   :  { %16992 = vmatpush3.bf16.msra.mxu0 %v18840_v20 }
 0x13c   :  { %16993 = vmatprep.subr.bf16.mxu0 %v18843_v23  ;;  %v15096_v23 = vcombine.high %v42_v19, %v42_v19 }
 0x13d   :  { %17014 = vmatpush3.bf16.msra.mxu1 %v18842_v22  ;;  %v15095_v22 = vcombine.low %v42_v19, %v42_v19 }
 0x13e   :  { %17015 = vmatprep.subr.bf16.mxu1 %v18845_v25 }
 0x13f   :  { %16994 = vmatpush3.bf16.msra.mxu0 %v18844_v24  ;;  %v18888_v24 = vld [vmem:[%s24523_s1 + $0xb38] sm:$0xff]  }
 0x140   :  { %17023 = vmatprep.subr.bf16.mxu0 %v18849_v31 }
 0x141   :  { %17016 = vmatpush3.bf16.msra.mxu1 %v18848_v30 }
 0x142   :  { %v16731_v27 = vpop.f32.mrf.mxu0  ;;  %12274 = vmatmul.mubr.bf16.vlgmr.msra.gmra.mxu0 %v15089_v28  ;;  %17045 = vmatprep.subr.bf16.mxu1 %v18853_v39  ;;  %v18895_v39 = vld [vmem:[%s24523_s1 + $0xb68] sm:$0xff]  }
 0x143   :  { %17024 = vmatpush3.bf16.msra.mxu0 %v18852_v37  ;;  %12353 = vmatprep.mubr.bf16.mxu0 %v15094_v15 }
 0x144   :  { %v16732_v33 = vpop.f32.mrf.mxu0  ;;  %v16753_v34 = vpop.f32.mrf.mxu1  ;;  %12314 = vmatmul.mubr.bf16.vlgmr.msra.gmra.mxu1 %v15091_v35  ;;  %17025 = vmatprep.subr.bf16.mxu0 %v18855_v45  ;;  %v18892_v35 = vld [vmem:[%s24523_s1 + $0xb30] sm:$0xff]   ;;  %v18901_v45 = vld [vmem:[%s24523_s1 + $0xbe0] sm:$0xff]  }
 0x145   :  { %v16733_v38 = vadd.f32 %v16732_v33, %v16731_v27  ;;  %17046 = vmatpush3.bf16.msra.mxu1 %v18854_v43  ;;  %v18889_v27 = vld [vmem:[%s24523_s1 + $0xbf8] sm:$0xff]   ;;  %12393 = vmatprep.mubr.bf16.mxu1 %v15096_v23  ;;  %v18899_v43 = vld [vmem:[%s24523_s1 + $0xb60] sm:$0xff]   ;;  %v18929_v23 = vld [vmem:[%s24523_s1 + $0xcf0] sm:$0xff]  }
 0x146   :  { %v16734_v40 = vpop.f32.mrf.mxu0  ;;  %v16754_v41 = vpop.f32.mrf.mxu1  ;;  %17047 = vmatprep.subr.bf16.mxu1 %v18857_v50  ;;  %v18906_v50 = vld [vmem:[%s24523_s1 + $0xb98] sm:$0xff]  }
 0x147   :  { %v11796_v42 = vadd.f32 %v16733_v38, %v20995_v61  ;;  %v16755_v44 = vadd.f32 %v16754_v41, %v16753_v34  ;;  %17026 = vmatpush3.bf16.msra.mxu0 %v18856_v49  ;;  %v18867_v61 = vld [vmem:[%s24523_s1 + $0xa58] sm:$0xff]   ;;  %v18894_v38 = vld [vmem:[%s24523_s1 + $0xbb0] sm:$0xff]   ;;  %v18896_v40 = vld [vmem:[%s24523_s1 + $0xb28] sm:$0xff]  }
 0x148   :  { %v16735_v46 = vpop.f32.mrf.mxu0  ;;  %v16756_v47 = vpop.f32.mrf.mxu1  ;;  %17027 = vmatprep.subr.bf16.mxu0 %v18859_v53  ;;  %v18897_v41 = vld [vmem:[%s24523_s1 + $0xbe8] sm:$0xff]   ;;  %v18905_v49 = vld [vmem:[%s24523_s1 + $0xbd8] sm:$0xff]   ;;  %v18909_v53 = vld [vmem:[%s24523_s1 + $0xbd0] sm:$0xff]  }
 0x149   :  { %v21103_v48 = vadd.f32 %v16755_v44, %v11796_v42  ;;  %17048 = vmatpush3.bf16.msra.mxu1 %v18858_v52  ;;  %v18898_v42 = vld [vmem:[%s24523_s1 + $0xba8] sm:$0xff]   ;;  %v18900_v44 = vld [vmem:[%s24523_s1 + $0xb20] sm:$0xff]   ;;  %v18903_v47 = vld [vmem:[%s24523_s1 + $0xb58] sm:$0xff]  }
 0x14a   :  { %v16757_v51 = vpop.f32.mrf.mxu1  ;;  %17049 = vmatprep.subr.bf16.mxu1 %v18861_v55  ;;  %v18902_v46 = vld [vmem:[%s24523_s1 + $0xba0] sm:$0xff]   ;;  %v18908_v52 = vld [vmem:[%s24523_s1 + $0xb10] sm:$0xff]   ;;  %v18911_v55 = vld [vmem:[%s24523_s1 + $0xb48] sm:$0xff]  }
 0x14b   :  { %17028 = vmatpush3.bf16.msra.mxu0 %v18860_v54  ;;  %v18907_v51 = vld [vmem:[%s24523_s1 + $0xb50] sm:$0xff]  }
 0x14c   :  { %17029 = vmatprep.subr.bf16.mxu0 %v18863_v57  ;;  %v18910_v54 = vld [vmem:[%s24523_s1 + $0xb90] sm:$0xff]   ;;  %v18913_v57 = vld [vmem:[%s24523_s1 + $0xbc8] sm:$0xff]  }
 0x14d   :  { %17050 = vmatpush3.bf16.msra.mxu1 %v18862_v56  ;;  %v18912_v56 = vld [vmem:[%s24523_s1 + $0xb08] sm:$0xff]  }
 0x14e   :  { %17051 = vmatprep.subr.bf16.mxu1 %v18865_v59  ;;  %v18915_v59 = vld [vmem:[%s24523_s1 + $0xb40] sm:$0xff]  }
 0x14f   :  { %17030 = vmatpush3.bf16.msra.mxu0 %v18864_v58  ;;  %v18914_v58 = vld [vmem:[%s24523_s1 + $0xb88] sm:$0xff]  }
 0x150   :  { %17031 = vmatprep.subr.bf16.mxu0 %v18867_v61  ;;  %v18917_v61 = vld [vmem:[%s24523_s1 + $0xbc0] sm:$0xff]  }
 0x151   :  { %17052 = vmatpush3.bf16.msra.mxu1 %v18866_v60  ;;  %v18916_v60 = vld [vmem:[%s24523_s1 + $0xb00] sm:$0xff]  }
 0x152   :  { %17053 = vmatprep.subr.bf16.mxu1 %v18869_v63 }
 0x153   :  { %17032 = vmatpush3.bf16.msra.mxu0 %v18868_v62  ;;  %v43_v62 = vld [vmem:[%s24524_s0 + $0xb0] sm:$0xff] }
 0x154   :  { %17033 = vmatprep.subr.bf16.mxu0 %v18871_v1  ;;  %v15098_v1 = vcombine.high %v43_v62, %v43_v62 }
 0x155   :  { %17054 = vmatpush3.bf16.msra.mxu1 %v18870_v0  ;;  %v15097_v0 = vcombine.low %v43_v62, %v43_v62 }
 0x156   :  { %17055 = vmatprep.subr.bf16.mxu1 %v18873_v3  ;;  %v18921_v3 = vld [vmem:[%s24523_s1 + $0xc78] sm:$0xff]  }
 0x157   :  { %17034 = vmatpush3.bf16.msra.mxu0 %v18872_v2  ;;  %v18920_v2 = vld [vmem:[%s24523_s1 + $0xb80] sm:$0xff]  }
 0x158   :  { %17035 = vmatprep.subr.bf16.mxu0 %v18875_v5 }
 0x159   :  { %17056 = vmatpush3.bf16.msra.mxu1 %v18874_v4 }
 0x15a   :  { %17057 = vmatprep.subr.bf16.mxu1 %v18877_v7 }
 0x15b   :  { %17036 = vmatpush3.bf16.msra.mxu0 %v18876_v6  ;;  %v44_v6 = vld [vmem:[%s24524_s0 + $0xb8] sm:$0xff] }
 0x15c   :  { %17037 = vmatprep.subr.bf16.mxu0 %v18879_v9  ;;  %v15100_v9 = vcombine.high %v44_v6, %v44_v6 }
 0x15d   :  { %17058 = vmatpush3.bf16.msra.mxu1 %v18878_v8  ;;  %v15099_v8 = vcombine.low %v44_v6, %v44_v6 }
 0x15e   :  { %17059 = vmatprep.subr.bf16.mxu1 %v18881_v11 }
 0x15f   :  { %17038 = vmatpush3.bf16.msra.mxu0 %v18880_v10  ;;  %v18924_v10 = vld [vmem:[%s24523_s1 + $0xc38] sm:$0xff]  }
 0x160   :  { %17067 = vmatprep.subr.bf16.mxu0 %v18885_v18 }
 0x161   :  { %17060 = vmatpush3.bf16.msra.mxu1 %v18884_v16  ;;  %v18926_v16 = vld [vmem:[%s24523_s1 + $0xcb8] sm:$0xff]  }
 0x162   :  { %v16775_v12 = vpop.f32.mrf.mxu0  ;;  %12354 = vmatmul.mubr.bf16.vlgmr.msra.gmra.mxu0 %v15093_v14  ;;  %17089 = vmatprep.subr.bf16.mxu1 %v18889_v27  ;;  %v18925_v14 = vld [vmem:[%s24523_s1 + $0xcf8] sm:$0xff]   ;;  %v18933_v27 = vld [vmem:[%s24523_s1 + $0xce8] sm:$0xff]  }
 0x163   :  { %17068 = vmatpush3.bf16.msra.mxu0 %v18888_v24  ;;  %12433 = vmatprep.mubr.bf16.mxu0 %v15098_v1  ;;  %v18930_v24 = vld [vmem:[%s24523_s1 + $0xcb0] sm:$0xff]   ;;  %v18962_v1 = vld [vmem:[%s24523_s1 + $0xdb8] sm:$0xff]  }
 0x164   :  { %v16776_v17 = vpop.f32.mrf.mxu0  ;;  %v16797_v21 = vpop.f32.mrf.mxu1  ;;  %12394 = vmatmul.mubr.bf16.vlgmr.msra.gmra.mxu1 %v15095_v22  ;;  %17069 = vmatprep.subr.bf16.mxu0 %v18891_v32  ;;  %v18938_v32 = vld [vmem:[%s24523_s1 + $0xca0] sm:$0xff]  }
 0x165   :  { %v16777_v20 = vadd.f32 %v16776_v17, %v16775_v12  ;;  %17090 = vmatpush3.bf16.msra.mxu1 %v18890_v29  ;;  %12473 = vmatprep.mubr.bf16.mxu1 %v15100_v9  ;;  %v18935_v29 = vld [vmem:[%s24523_s1 + $0xc60] sm:$0xff]  }
 0x166   :  { %v16778_v25 = vpop.f32.mrf.mxu0  ;;  %v16798_v28 = vpop.f32.mrf.mxu1  ;;  %17091 = vmatprep.subr.bf16.mxu1 %v18893_v36  ;;  %v18942_v36 = vld [vmem:[%s24523_s1 + $0xc98] sm:$0xff]  }
 0x167   :  { %v11876_v26 = vadd.f32 %v16777_v20, %v21103_v48  ;;  %v16799_v30 = vadd.f32 %v16798_v28, %v16797_v21  ;;  %17070 = vmatpush3.bf16.msra.mxu0 %v18892_v35  ;;  %v18904_v48 = vld [vmem:[%s24523_s1 + $0xb18] sm:$0xff]   ;;  %v18927_v20 = vld [vmem:[%s24523_s1 + $0xc70] sm:$0xff]   ;;  %v18931_v25 = vld [vmem:[%s24523_s1 + $0xc68] sm:$0xff]  }
 0x168   :  { %v16779_v31 = vpop.f32.mrf.mxu0  ;;  %v16800_v33 = vpop.f32.mrf.mxu1  ;;  %17071 = vmatprep.subr.bf16.mxu0 %v18895_v39  ;;  %v18928_v21 = vld [vmem:[%s24523_s1 + $0xc30] sm:$0xff]   ;;  %v18934_v28 = vld [vmem:[%s24523_s1 + $0xca8] sm:$0xff]   ;;  %v18941_v35 = vld [vmem:[%s24523_s1 + $0xcd8] sm:$0xff]  }
 0x169   :  { %v21208_v34 = vadd.f32 %v16799_v30, %v11876_v26  ;;  %17092 = vmatpush3.bf16.msra.mxu1 %v18894_v38  ;;  %v18932_v26 = vld [vmem:[%s24523_s1 + $0xc28] sm:$0xff]   ;;  %v18936_v30 = vld [vmem:[%s24523_s1 + $0xc20] sm:$0xff]   ;;  %v18939_v33 = vld [vmem:[%s24523_s1 + $0xc58] sm:$0xff]  }
 0x16a   :  { %v16801_v37 = vpop.f32.mrf.mxu1  ;;  %17093 = vmatprep.subr.bf16.mxu1 %v18897_v41  ;;  %v18937_v31 = vld [vmem:[%s24523_s1 + $0xce0] sm:$0xff]   ;;  %v18944_v38 = vld [vmem:[%s24523_s1 + $0xc10] sm:$0xff]   ;;  %v18947_v41 = vld [vmem:[%s24523_s1 + $0xc48] sm:$0xff]  }
 0x16b   :  { %17072 = vmatpush3.bf16.msra.mxu0 %v18896_v40  ;;  %v18943_v37 = vld [vmem:[%s24523_s1 + $0xc50] sm:$0xff]  }
 0x16c   :  { %17073 = vmatprep.subr.bf16.mxu0 %v18899_v43  ;;  %v18945_v39 = vld [vmem:[%s24523_s1 + $0xcd0] sm:$0xff]   ;;  %v18949_v43 = vld [vmem:[%s24523_s1 + $0xcc8] sm:$0xff]  }
 0x16d   :  { %17094 = vmatpush3.bf16.msra.mxu1 %v18898_v42  ;;  %v18946_v40 = vld [vmem:[%s24523_s1 + $0xc90] sm:$0xff]   ;;  %v18948_v42 = vld [vmem:[%s24523_s1 + $0xc08] sm:$0xff]  }
 0x16e   :  { %17095 = vmatprep.subr.bf16.mxu1 %v18901_v45  ;;  %v18951_v45 = vld [vmem:[%s24523_s1 + $0xc40] sm:$0xff]  }
 0x16f   :  { %17074 = vmatpush3.bf16.msra.mxu0 %v18900_v44  ;;  %v18950_v44 = vld [vmem:[%s24523_s1 + $0xc88] sm:$0xff]  }
 0x170   :  { %17075 = vmatprep.subr.bf16.mxu0 %v18903_v47  ;;  %v18953_v47 = vld [vmem:[%s24523_s1 + $0xcc0] sm:$0xff]  }
 0x171   :  { %17096 = vmatpush3.bf16.msra.mxu1 %v18902_v46  ;;  %v18952_v46 = vld [vmem:[%s24523_s1 + $0xc00] sm:$0xff]  }
 0x172   :  { %17097 = vmatprep.subr.bf16.mxu1 %v18905_v49 }
 0x173   :  { %17076 = vmatpush3.bf16.msra.mxu0 %v18904_v48  ;;  %v45_v48 = vld [vmem:[%s24524_s0 + $0xc0] sm:$0xff] }
 0x174   :  { %17077 = vmatprep.subr.bf16.mxu0 %v18907_v51  ;;  %v15102_v51 = vcombine.high %v45_v48, %v45_v48 }
 0x175   :  { %17098 = vmatpush3.bf16.msra.mxu1 %v18906_v50  ;;  %v15101_v50 = vcombine.low %v45_v48, %v45_v48 }
 0x176   :  { %17099 = vmatprep.subr.bf16.mxu1 %v18909_v53  ;;  %v18957_v53 = vld [vmem:[%s24523_s1 + $0xd78] sm:$0xff]  }
 0x177   :  { %17078 = vmatpush3.bf16.msra.mxu0 %v18908_v52  ;;  %v18956_v52 = vld [vmem:[%s24523_s1 + $0xc80] sm:$0xff]  }
 0x178   :  { %17079 = vmatprep.subr.bf16.mxu0 %v18911_v55 }
 0x179   :  { %17100 = vmatpush3.bf16.msra.mxu1 %v18910_v54  ;;  %v46_v54 = vld [vmem:[%s24524_s0 + $0xc8] sm:$0xff] }
 0x17a   :  { %17101 = vmatprep.subr.bf16.mxu1 %v18913_v57  ;;  %v15103_v57 = vcombine.low %v46_v54, %v46_v54 }
 0x17b   :  { %17080 = vmatpush3.bf16.msra.mxu0 %v18912_v56 }
 0x17c   :  { %17081 = vmatprep.subr.bf16.mxu0 %v18915_v59  ;;  %v18960_v59 = vld [vmem:[%s24523_s1 + $0xd38] sm:$0xff]  }
 0x17d   :  { %17102 = vmatpush3.bf16.msra.mxu1 %v18914_v58  ;;  %v15104_v58 = vcombine.high %v46_v54, %v46_v54 }
 0x17e   :  { %17103 = vmatprep.subr.bf16.mxu1 %v18917_v61  ;;  %v18961_v61 = vld [vmem:[%s24523_s1 + $0xdf8] sm:$0xff]  }
 0x17f   :  { %17082 = vmatpush3.bf16.msra.mxu0 %v18916_v60 }
 0x180   :  { %17111 = vmatprep.subr.bf16.mxu0 %v18921_v3  ;;  %v18963_v3 = vld [vmem:[%s24523_s1 + $0xd70] sm:$0xff]  }
 0x181   :  { %17104 = vmatpush3.bf16.msra.mxu1 %v18920_v2 }
 0x182   :  { %v16819_v63 = vpop.f32.mrf.mxu0  ;;  %12434 = vmatmul.mubr.bf16.vlgmr.msra.gmra.mxu0 %v15097_v0  ;;  %17133 = vmatprep.subr.bf16.mxu1 %v18925_v14  ;;  %v18970_v14 = vld [vmem:[%s24523_s1 + $0xda8] sm:$0xff]  }
 0x183   :  { %17112 = vmatpush3.bf16.msra.mxu0 %v18924_v10  ;;  %12513 = vmatprep.mubr.bf16.mxu0 %v15102_v51  ;;  %v18966_v10 = vld [vmem:[%s24523_s1 + $0xdb0] sm:$0xff]   ;;  %v18998_v51 = vld [vmem:[%s24523_s1 + $0xeb8] sm:$0xff]  }
 0x184   :  { %v16820_v4 = vpop.f32.mrf.mxu0  ;;  %v16841_v5 = vpop.f32.mrf.mxu1  ;;  %12474 = vmatmul.mubr.bf16.vlgmr.msra.gmra.mxu1 %v15099_v8  ;;  %17113 = vmatprep.subr.bf16.mxu0 %v18927_v20  ;;  %v18965_v8 = vld [vmem:[%s24523_s1 + $0xdf0] sm:$0xff]   ;;  %v18976_v20 = vld [vmem:[%s24523_s1 + $0xd18] sm:$0xff]  }
 0x185   :  { %v16821_v7 = vadd.f32 %v16820_v4, %v16819_v63  ;;  %17134 = vmatpush3.bf16.msra.mxu1 %v18926_v16  ;;  %12553 = vmatprep.mubr.bf16.mxu1 %v15104_v58  ;;  %v18972_v16 = vld [vmem:[%s24523_s1 + $0xd20] sm:$0xff]   ;;  %v19001_v58 = vld [vmem:[%s24523_s1 + $0xef0] sm:$0xff]  }
 0x186   :  { %v16822_v11 = vpop.f32.mrf.mxu0  ;;  %v16842_v12 = vpop.f32.mrf.mxu1  ;;  %17135 = vmatprep.subr.bf16.mxu1 %v18929_v23  ;;  %v18979_v23 = vld [vmem:[%s24523_s1 + $0xd50] sm:$0xff]  }
 0x187   :  { %v11956_v13 = vadd.f32 %v16821_v7, %v21208_v34  ;;  %v16843_v15 = vadd.f32 %v16842_v12, %v16841_v5  ;;  %17114 = vmatpush3.bf16.msra.mxu0 %v18928_v21  ;;  %v18940_v34 = vld [vmem:[%s24523_s1 + $0xc18] sm:$0xff]   ;;  %v18964_v7 = vld [vmem:[%s24523_s1 + $0xd30] sm:$0xff]   ;;  %v18967_v11 = vld [vmem:[%s24523_s1 + $0xd68] sm:$0xff]  }
 0x188   :  { %v16823_v17 = vpop.f32.mrf.mxu0  ;;  %v16844_v18 = vpop.f32.mrf.mxu1  ;;  %17115 = vmatprep.subr.bf16.mxu0 %v18931_v25  ;;  %v18968_v12 = vld [vmem:[%s24523_s1 + $0xd28] sm:$0xff]   ;;  %v18977_v21 = vld [vmem:[%s24523_s1 + $0xdd8] sm:$0xff]   ;;  %v18981_v25 = vld [vmem:[%s24523_s1 + $0xdd0] sm:$0xff]  }
 0x189   :  { %v21310_v19 = vadd.f32 %v16843_v15, %v11956_v13  ;;  %17136 = vmatpush3.bf16.msra.mxu1 %v18930_v24  ;;  %v18969_v13 = vld [vmem:[%s24523_s1 + $0xde8] sm:$0xff]   ;;  %v18971_v15 = vld [vmem:[%s24523_s1 + $0xd60] sm:$0xff]   ;;  %v18980_v24 = vld [vmem:[%s24523_s1 + $0xd10] sm:$0xff]  }
 0x18a   :  { %v16845_v22 = vpop.f32.mrf.mxu1  ;;  %17137 = vmatprep.subr.bf16.mxu1 %v18933_v27  ;;  %v18973_v17 = vld [vmem:[%s24523_s1 + $0xde0] sm:$0xff]   ;;  %v18983_v27 = vld [vmem:[%s24523_s1 + $0xd48] sm:$0xff]  }
 0x18b   :  { %17116 = vmatpush3.bf16.msra.mxu0 %v18932_v26  ;;  %v18974_v18 = vld [vmem:[%s24523_s1 + $0xda0] sm:$0xff]   ;;  %v18978_v22 = vld [vmem:[%s24523_s1 + $0xd98] sm:$0xff]   ;;  %v18982_v26 = vld [vmem:[%s24523_s1 + $0xd90] sm:$0xff]  }
 0x18c   :  { %17117 = vmatprep.subr.bf16.mxu0 %v18935_v29  ;;  %v18985_v29 = vld [vmem:[%s24523_s1 + $0xdc8] sm:$0xff]  }
 0x18d   :  { %17138 = vmatpush3.bf16.msra.mxu1 %v18934_v28  ;;  %v18984_v28 = vld [vmem:[%s24523_s1 + $0xd08] sm:$0xff]  }
 0x18e   :  { %17139 = vmatprep.subr.bf16.mxu1 %v18937_v31  ;;  %v18987_v31 = vld [vmem:[%s24523_s1 + $0xd40] sm:$0xff]  }
 0x18f   :  { %17118 = vmatpush3.bf16.msra.mxu0 %v18936_v30  ;;  %v18986_v30 = vld [vmem:[%s24523_s1 + $0xd88] sm:$0xff]  }
 0x190   :  { %17119 = vmatprep.subr.bf16.mxu0 %v18939_v33  ;;  %v18989_v33 = vld [vmem:[%s24523_s1 + $0xdc0] sm:$0xff]  }
 0x191   :  { %17140 = vmatpush3.bf16.msra.mxu1 %v18938_v32  ;;  %v18988_v32 = vld [vmem:[%s24523_s1 + $0xd00] sm:$0xff]  }
 0x192   :  { %17141 = vmatprep.subr.bf16.mxu1 %v18941_v35 }
 0x193   :  { %17120 = vmatpush3.bf16.msra.mxu0 %v18940_v34  ;;  %v47_v34 = vld [vmem:[%s24524_s0 + $0xd0] sm:$0xff] }
 0x194   :  { %17121 = vmatprep.subr.bf16.mxu0 %v18943_v37  ;;  %v15106_v37 = vcombine.high %v47_v34, %v47_v34 }
 0x195   :  { %17142 = vmatpush3.bf16.msra.mxu1 %v18942_v36  ;;  %v15105_v36 = vcombine.low %v47_v34, %v47_v34 }
 0x196   :  { %17143 = vmatprep.subr.bf16.mxu1 %v18945_v39  ;;  %v18993_v39 = vld [vmem:[%s24523_s1 + $0xe78] sm:$0xff]  }
 0x197   :  { %17122 = vmatpush3.bf16.msra.mxu0 %v18944_v38  ;;  %v18992_v38 = vld [vmem:[%s24523_s1 + $0xd80] sm:$0xff]  }
 0x198   :  { %17123 = vmatprep.subr.bf16.mxu0 %v18947_v41 }
 0x199   :  { %17144 = vmatpush3.bf16.msra.mxu1 %v18946_v40  ;;  %v48_v40 = vld [vmem:[%s24524_s0 + $0xd8] sm:$0xff] }
 0x19a   :  { %17145 = vmatprep.subr.bf16.mxu1 %v18949_v43  ;;  %v15107_v43 = vcombine.low %v48_v40, %v48_v40 }
 0x19b   :  { %17124 = vmatpush3.bf16.msra.mxu0 %v18948_v42 }
 0x19c   :  { %17125 = vmatprep.subr.bf16.mxu0 %v18951_v45  ;;  %v18996_v45 = vld [vmem:[%s24523_s1 + $0xe38] sm:$0xff]  }
 0x19d   :  { %17146 = vmatpush3.bf16.msra.mxu1 %v18950_v44  ;;  %v15108_v44 = vcombine.high %v48_v40, %v48_v40  ;;  %v19035_v40 = vld [vmem:[%s24523_s1 + $0xf70] sm:$0xff]  }
 0x19e   :  { %17147 = vmatprep.subr.bf16.mxu1 %v18953_v47  ;;  %v18997_v47 = vld [vmem:[%s24523_s1 + $0xef8] sm:$0xff]  }
 0x19f   :  { %17126 = vmatpush3.bf16.msra.mxu0 %v18952_v46 }
 0x1a0   :  { %17155 = vmatprep.subr.bf16.mxu0 %v18957_v53  ;;  %v18999_v53 = vld [vmem:[%s24523_s1 + $0xe70] sm:$0xff]  }
 0x1a1   :  { %17148 = vmatpush3.bf16.msra.mxu1 %v18956_v52 }
 0x1a2   :  { %v16863_v49 = vpop.f32.mrf.mxu0  ;;  %12514 = vmatmul.mubr.bf16.vlgmr.msra.gmra.mxu0 %v15101_v50  ;;  %17177 = vmatprep.subr.bf16.mxu1 %v18961_v61  ;;  %v19003_v61 = vld [vmem:[%s24523_s1 + $0xe68] sm:$0xff]  }
 0x1a3   :  { %17156 = vmatpush3.bf16.msra.mxu0 %v18960_v59  ;;  %12593 = vmatprep.mubr.bf16.mxu0 %v15106_v37  ;;  %v19034_v37 = vld [vmem:[%s24523_s1 + $0xfb8] sm:$0xff]  }
 0x1a4   :  { %v16864_v55 = vpop.f32.mrf.mxu0  ;;  %v16885_v56 = vpop.f32.mrf.mxu1  ;;  %12554 = vmatmul.mubr.bf16.vlgmr.msra.gmra.mxu1 %v15103_v57  ;;  %17157 = vmatprep.subr.bf16.mxu0 %v18963_v3  ;;  %v19000_v57 = vld [vmem:[%s24523_s1 + $0xe30] sm:$0xff]   ;;  %v19009_v3 = vld [vmem:[%s24523_s1 + $0xee0] sm:$0xff]  }
 0x1a5   :  { %v16865_v60 = vadd.f32 %v16864_v55, %v16863_v49  ;;  %17178 = vmatpush3.bf16.msra.mxu1 %v18962_v1  ;;  %12633 = vmatprep.mubr.bf16.mxu1 %v15108_v44  ;;  %v19007_v1 = vld [vmem:[%s24523_s1 + $0xe60] sm:$0xff]   ;;  %v19037_v44 = vld [vmem:[%s24523_s1 + $0xff0] sm:$0xff]  }
 0x1a6   :  { %v16866_v62 = vpop.f32.mrf.mxu0  ;;  %v16886_v63 = vpop.f32.mrf.mxu1  ;;  %17179 = vmatprep.subr.bf16.mxu1 %v18965_v8  ;;  %v19014_v8 = vld [vmem:[%s24523_s1 + $0xe98] sm:$0xff]  }
 0x1a7   :  { %v12036_v0 = vadd.f32 %v16865_v60, %v21310_v19  ;;  %v16887_v2 = vadd.f32 %v16886_v63, %v16885_v56  ;;  %17158 = vmatpush3.bf16.msra.mxu0 %v18964_v7  ;;  %v18975_v19 = vld [vmem:[%s24523_s1 + $0xd58] sm:$0xff]   ;;  %v19002_v60 = vld [vmem:[%s24523_s1 + $0xeb0] sm:$0xff]   ;;  %v19004_v62 = vld [vmem:[%s24523_s1 + $0xe28] sm:$0xff]  }
 0x1a8   :  { %v16867_v4 = vpop.f32.mrf.mxu0  ;;  %v16888_v5 = vpop.f32.mrf.mxu1  ;;  %17159 = vmatprep.subr.bf16.mxu0 %v18967_v11  ;;  %v19005_v63 = vld [vmem:[%s24523_s1 + $0xee8] sm:$0xff]   ;;  %v19013_v7 = vld [vmem:[%s24523_s1 + $0xed8] sm:$0xff]   ;;  %v19017_v11 = vld [vmem:[%s24523_s1 + $0xed0] sm:$0xff]  }
 0x1a9   :  { %v21418_v6 = vadd.f32 %v16887_v2, %v12036_v0  ;;  %17180 = vmatpush3.bf16.msra.mxu1 %v18966_v10  ;;  %v19006_v0 = vld [vmem:[%s24523_s1 + $0xea8] sm:$0xff]   ;;  %v19008_v2 = vld [vmem:[%s24523_s1 + $0xe20] sm:$0xff]   ;;  %v19011_v5 = vld [vmem:[%s24523_s1 + $0xe58] sm:$0xff]  }
 0x1aa   :  { %v16889_v9 = vpop.f32.mrf.mxu1  ;;  %17181 = vmatprep.subr.bf16.mxu1 %v18969_v13  ;;  %v19010_v4 = vld [vmem:[%s24523_s1 + $0xea0] sm:$0xff]   ;;  %v19016_v10 = vld [vmem:[%s24523_s1 + $0xe10] sm:$0xff]   ;;  %v19019_v13 = vld [vmem:[%s24523_s1 + $0xe48] sm:$0xff]  }
 0x1ab   :  { %17160 = vmatpush3.bf16.msra.mxu0 %v18968_v12  ;;  %v19015_v9 = vld [vmem:[%s24523_s1 + $0xe50] sm:$0xff]  }
 0x1ac   :  { %17161 = vmatprep.subr.bf16.mxu0 %v18971_v15  ;;  %v19018_v12 = vld [vmem:[%s24523_s1 + $0xe90] sm:$0xff]   ;;  %v19021_v15 = vld [vmem:[%s24523_s1 + $0xec8] sm:$0xff]  }
 0x1ad   :  { %17182 = vmatpush3.bf16.msra.mxu1 %v18970_v14  ;;  %v19020_v14 = vld [vmem:[%s24523_s1 + $0xe08] sm:$0xff]  }
 0x1ae   :  { %17183 = vmatprep.subr.bf16.mxu1 %v18973_v17  ;;  %v19023_v17 = vld [vmem:[%s24523_s1 + $0xe40] sm:$0xff]  }
 0x1af   :  { %17162 = vmatpush3.bf16.msra.mxu0 %v18972_v16  ;;  %v19022_v16 = vld [vmem:[%s24523_s1 + $0xe88] sm:$0xff]  }
 0x1b0   :  { %17163 = vmatprep.subr.bf16.mxu0 %v18975_v19  ;;  %v19025_v19 = vld [vmem:[%s24523_s1 + $0xec0] sm:$0xff]  }
 0x1b1   :  { %17184 = vmatpush3.bf16.msra.mxu1 %v18974_v18  ;;  %v19024_v18 = vld [vmem:[%s24523_s1 + $0xe00] sm:$0xff]  }
 0x1b2   :  { %17185 = vmatprep.subr.bf16.mxu1 %v18977_v21 }
 0x1b3   :  { %17164 = vmatpush3.bf16.msra.mxu0 %v18976_v20  ;;  %v49_v20 = vld [vmem:[%s24524_s0 + $0xe0] sm:$0xff] }
 0x1b4   :  { %17165 = vmatprep.subr.bf16.mxu0 %v18979_v23  ;;  %v15110_v23 = vcombine.high %v49_v20, %v49_v20 }
 0x1b5   :  { %17186 = vmatpush3.bf16.msra.mxu1 %v18978_v22  ;;  %v15109_v22 = vcombine.low %v49_v20, %v49_v20 }
 0x1b6   :  { %17187 = vmatprep.subr.bf16.mxu1 %v18981_v25  ;;  %v19029_v25 = vld [vmem:[%s24523_s1 + $0xf78] sm:$0xff]  }
 0x1b7   :  { %17166 = vmatpush3.bf16.msra.mxu0 %v18980_v24  ;;  %v19028_v24 = vld [vmem:[%s24523_s1 + $0xe80] sm:$0xff]  }
 0x1b8   :  { %17167 = vmatprep.subr.bf16.mxu0 %v18983_v27  ;;  %v50_v27 = vld [vmem:[%s24524_s0 + $0xe8] sm:$0xff] }
 0x1b9   :  { %17188 = vmatpush3.bf16.msra.mxu1 %v18982_v26 }
 0x1ba   :  { %17189 = vmatprep.subr.bf16.mxu1 %v18985_v29 }
 0x1bb   :  { %17168 = vmatpush3.bf16.msra.mxu0 %v18984_v28 }
 0x1bc   :  { %17169 = vmatprep.subr.bf16.mxu0 %v18987_v31  ;;  %v15112_v31 = vcombine.high %v50_v27, %v50_v27 }
 0x1bd   :  { %17190 = vmatpush3.bf16.msra.mxu1 %v18986_v30  ;;  %v15111_v30 = vcombine.low %v50_v27, %v50_v27 }
 0x1be   :  { %17191 = vmatprep.subr.bf16.mxu1 %v18989_v33 }
 0x1bf   :  { %17170 = vmatpush3.bf16.msra.mxu0 %v18988_v32  ;;  %v19032_v32 = vld [vmem:[%s24523_s1 + $0xf38] sm:$0xff]  }
 0x1c0   :  { %17199 = vmatprep.subr.bf16.mxu0 %v18993_v39 }
 0x1c1   :  { %17192 = vmatpush3.bf16.msra.mxu1 %v18992_v38 }
 0x1c2   :  { %v16907_v35 = vpop.f32.mrf.mxu0  ;;  %12594 = vmatmul.mubr.bf16.vlgmr.msra.gmra.mxu0 %v15105_v36  ;;  %17221 = vmatprep.subr.bf16.mxu1 %v18997_v47  ;;  %v19039_v47 = vld [vmem:[%s24523_s1 + $0xf68] sm:$0xff]  }
 0x1c3   :  { %17200 = vmatpush3.bf16.msra.mxu0 %v18996_v45  ;;  %12673 = vmatprep.mubr.bf16.mxu0 %v15110_v23  ;;  %v19070_v23 = vld [vmem:[%s24523_s1 + $0x10b8] sm:$0xff]  }
 0x1c4   :  { %v16908_v41 = vpop.f32.mrf.mxu0  ;;  %v16929_v42 = vpop.f32.mrf.mxu1  ;;  %12634 = vmatmul.mubr.bf16.vlgmr.msra.gmra.mxu1 %v15107_v43  ;;  %17201 = vmatprep.subr.bf16.mxu0 %v18999_v53  ;;  %v19036_v43 = vld [vmem:[%s24523_s1 + $0xf30] sm:$0xff]   ;;  %v19045_v53 = vld [vmem:[%s24523_s1 + $0xfe0] sm:$0xff]  }
 0x1c5   :  { %v16909_v46 = vadd.f32 %v16908_v41, %v16907_v35  ;;  %17222 = vmatpush3.bf16.msra.mxu1 %v18998_v51  ;;  %v19033_v35 = vld [vmem:[%s24523_s1 + $0xff8] sm:$0xff]   ;;  %12713 = vmatprep.mubr.bf16.mxu1 %v15112_v31  ;;  %v19043_v51 = vld [vmem:[%s24523_s1 + $0xf60] sm:$0xff]  }
 0x1c6   :  { %v16910_v48 = vpop.f32.mrf.mxu0  ;;  %v16930_v49 = vpop.f32.mrf.mxu1  ;;  %17223 = vmatprep.subr.bf16.mxu1 %v19001_v58  ;;  %v19050_v58 = vld [vmem:[%s24523_s1 + $0xf98] sm:$0xff]  }
 0x1c7   :  { %v12116_v50 = vadd.f32 %v16909_v46, %v21418_v6  ;;  %v16931_v52 = vadd.f32 %v16930_v49, %v16929_v42  ;;  %17202 = vmatpush3.bf16.msra.mxu0 %v19000_v57  ;;  %v19012_v6 = vld [vmem:[%s24523_s1 + $0xe18] sm:$0xff]   ;;  %v19038_v46 = vld [vmem:[%s24523_s1 + $0xfb0] sm:$0xff]   ;;  %v19040_v48 = vld [vmem:[%s24523_s1 + $0xf28] sm:$0xff]  }
 0x1c8   :  { %v16911_v54 = vpop.f32.mrf.mxu0  ;;  %v16932_v55 = vpop.f32.mrf.mxu1  ;;  %17203 = vmatprep.subr.bf16.mxu0 %v19003_v61  ;;  %v19041_v49 = vld [vmem:[%s24523_s1 + $0xfe8] sm:$0xff]   ;;  %v19049_v57 = vld [vmem:[%s24523_s1 + $0xfd8] sm:$0xff]   ;;  %v19053_v61 = vld [vmem:[%s24523_s1 + $0xfd0] sm:$0xff]  }
 0x1c9   :  { %v21523_v56 = vadd.f32 %v16931_v52, %v12116_v50  ;;  %17224 = vmatpush3.bf16.msra.mxu1 %v19002_v60  ;;  %v19042_v50 = vld [vmem:[%s24523_s1 + $0xfa8] sm:$0xff]   ;;  %v19044_v52 = vld [vmem:[%s24523_s1 + $0xf20] sm:$0xff]   ;;  %v19047_v55 = vld [vmem:[%s24523_s1 + $0xf58] sm:$0xff]  }
 0x1ca   :  { %v16933_v59 = vpop.f32.mrf.mxu1  ;;  %17225 = vmatprep.subr.bf16.mxu1 %v19005_v63  ;;  %v19046_v54 = vld [vmem:[%s24523_s1 + $0xfa0] sm:$0xff]   ;;  %v19052_v60 = vld [vmem:[%s24523_s1 + $0xf10] sm:$0xff]   ;;  %v19055_v63 = vld [vmem:[%s24523_s1 + $0xf48] sm:$0xff]  }
 0x1cb   :  { %17204 = vmatpush3.bf16.msra.mxu0 %v19004_v62  ;;  %v19051_v59 = vld [vmem:[%s24523_s1 + $0xf50] sm:$0xff]  }
 0x1cc   :  { %17205 = vmatprep.subr.bf16.mxu0 %v19007_v1  ;;  %v19054_v62 = vld [vmem:[%s24523_s1 + $0xf90] sm:$0xff]   ;;  %v19057_v1 = vld [vmem:[%s24523_s1 + $0xfc8] sm:$0xff]  }
 0x1cd   :  { %17226 = vmatpush3.bf16.msra.mxu1 %v19006_v0  ;;  %v19056_v0 = vld [vmem:[%s24523_s1 + $0xf08] sm:$0xff]  }
 0x1ce   :  { %17227 = vmatprep.subr.bf16.mxu1 %v19009_v3  ;;  %v19059_v3 = vld [vmem:[%s24523_s1 + $0xf40] sm:$0xff]  }
 0x1cf   :  { %17206 = vmatpush3.bf16.msra.mxu0 %v19008_v2  ;;  %v19058_v2 = vld [vmem:[%s24523_s1 + $0xf88] sm:$0xff]  }
 0x1d0   :  { %17207 = vmatprep.subr.bf16.mxu0 %v19011_v5  ;;  %v19061_v5 = vld [vmem:[%s24523_s1 + $0xfc0] sm:$0xff]  }
 0x1d1   :  { %17228 = vmatpush3.bf16.msra.mxu1 %v19010_v4  ;;  %v19060_v4 = vld [vmem:[%s24523_s1 + $0xf00] sm:$0xff]  }
 0x1d2   :  { %17229 = vmatprep.subr.bf16.mxu1 %v19013_v7 }
 0x1d3   :  { %17208 = vmatpush3.bf16.msra.mxu0 %v19012_v6  ;;  %v51_v6 = vld [vmem:[%s24524_s0 + $0xf0] sm:$0xff] }
 0x1d4   :  { %17209 = vmatprep.subr.bf16.mxu0 %v19015_v9  ;;  %v15114_v9 = vcombine.high %v51_v6, %v51_v6 }
 0x1d5   :  { %17230 = vmatpush3.bf16.msra.mxu1 %v19014_v8  ;;  %v15113_v8 = vcombine.low %v51_v6, %v51_v6 }
 0x1d6   :  { %17231 = vmatprep.subr.bf16.mxu1 %v19017_v11  ;;  %v19065_v11 = vld [vmem:[%s24523_s1 + $0x1078] sm:$0xff]  }
 0x1d7   :  { %17210 = vmatpush3.bf16.msra.mxu0 %v19016_v10  ;;  %v19064_v10 = vld [vmem:[%s24523_s1 + $0xf80] sm:$0xff]  }
 0x1d8   :  { %17211 = vmatprep.subr.bf16.mxu0 %v19019_v13 }
 0x1d9   :  { %17232 = vmatpush3.bf16.msra.mxu1 %v19018_v12  ;;  %v52_v12 = vld [vmem:[%s24524_s0 + $0xf8] sm:$0xff] }
 0x1da   :  { %17233 = vmatprep.subr.bf16.mxu1 %v19021_v15  ;;  %v15115_v15 = vcombine.low %v52_v12, %v52_v12 }
 0x1db   :  { %17212 = vmatpush3.bf16.msra.mxu0 %v19020_v14 }
 0x1dc   :  { %17213 = vmatprep.subr.bf16.mxu0 %v19023_v17  ;;  %v19068_v17 = vld [vmem:[%s24523_s1 + $0x1038] sm:$0xff]  }
 0x1dd   :  { %17234 = vmatpush3.bf16.msra.mxu1 %v19022_v16  ;;  %v15116_v16 = vcombine.high %v52_v12, %v52_v12 }
 0x1de   :  { %17235 = vmatprep.subr.bf16.mxu1 %v19025_v19  ;;  %v19069_v19 = vld [vmem:[%s24523_s1 + $0x10f8] sm:$0xff]  }
 0x1df   :  { %17214 = vmatpush3.bf16.msra.mxu0 %v19024_v18 }
 0x1e0   :  { %17243 = vmatprep.subr.bf16.mxu0 %v19029_v25  ;;  %v19071_v25 = vld [vmem:[%s24523_s1 + $0x1070] sm:$0xff]  }
 0x1e1   :  { %17236 = vmatpush3.bf16.msra.mxu1 %v19028_v24 }
 0x1e2   :  { %v16951_v21 = vpop.f32.mrf.mxu0  ;;  %12674 = vmatmul.mubr.bf16.vlgmr.msra.gmra.mxu0 %v15109_v22  ;;  %17265 = vmatprep.subr.bf16.mxu1 %v19033_v35  ;;  %v19077_v35 = vld [vmem:[%s24523_s1 + $0x10e8] sm:$0xff]  }
 0x1e3   :  { %17244 = vmatpush3.bf16.msra.mxu0 %v19032_v32  ;;  %12753 = vmatprep.mubr.bf16.mxu0 %v15114_v9  ;;  %v19074_v32 = vld [vmem:[%s24523_s1 + $0x10b0] sm:$0xff]   ;;  %v19106_v9 = vld [vmem:[%s24523_s1 + $0x11b8] sm:$0xff]  }
 0x1e4   :  { %v16952_v26 = vpop.f32.mrf.mxu0  ;;  %v16973_v29 = vpop.f32.mrf.mxu1  ;;  %12714 = vmatmul.mubr.bf16.vlgmr.msra.gmra.mxu1 %v15111_v30  ;;  %17245 = vmatprep.subr.bf16.mxu0 %v19035_v40  ;;  %v19073_v30 = vld [vmem:[%s24523_s1 + $0x10f0] sm:$0xff]   ;;  %v19082_v40 = vld [vmem:[%s24523_s1 + $0x10a0] sm:$0xff]  }
 0x1e5   :  { %v16953_v28 = vadd.f32 %v16952_v26, %v16951_v21  ;;  %17266 = vmatpush3.bf16.msra.mxu1 %v19034_v37  ;;  %12793 = vmatprep.mubr.bf16.mxu1 %v15116_v16  ;;  %v19079_v37 = vld [vmem:[%s24523_s1 + $0x1060] sm:$0xff]   ;;  %v19109_v16 = vld [vmem:[%s24523_s1 + $0x11f0] sm:$0xff]  }
 0x1e6   :  { %v16954_v33 = vpop.f32.mrf.mxu0  ;;  %v16974_v36 = vpop.f32.mrf.mxu1  ;;  %17267 = vmatprep.subr.bf16.mxu1 %v19037_v44  ;;  %v19086_v44 = vld [vmem:[%s24523_s1 + $0x1098] sm:$0xff]  }
 0x1e7   :  { %v12196_v34 = vadd.f32 %v16953_v28, %v21523_v56  ;;  %v16975_v38 = vadd.f32 %v16974_v36, %v16973_v29  ;;  %17246 = vmatpush3.bf16.msra.mxu0 %v19036_v43  ;;  %v19048_v56 = vld [vmem:[%s24523_s1 + $0xf18] sm:$0xff]   ;;  %v19072_v29 = vld [vmem:[%s24523_s1 + $0x1030] sm:$0xff]   ;;  %v19075_v33 = vld [vmem:[%s24523_s1 + $0x1068] sm:$0xff]  }
 0x1e8   :  { %v16955_v39 = vpop.f32.mrf.mxu0  ;;  %v16976_v41 = vpop.f32.mrf.mxu1  ;;  %17247 = vmatprep.subr.bf16.mxu0 %v19039_v47  ;;  %v19078_v36 = vld [vmem:[%s24523_s1 + $0x10a8] sm:$0xff]   ;;  %v19085_v43 = vld [vmem:[%s24523_s1 + $0x10d8] sm:$0xff]   ;;  %v19089_v47 = vld [vmem:[%s24523_s1 + $0x10d0] sm:$0xff]  }
 0x1e9   :  { %v21628_v42 = vadd.f32 %v16975_v38, %v12196_v34  ;;  %17268 = vmatpush3.bf16.msra.mxu1 %v19038_v46  ;;  %v19076_v34 = vld [vmem:[%s24523_s1 + $0x1028] sm:$0xff]   ;;  %v19080_v38 = vld [vmem:[%s24523_s1 + $0x1020] sm:$0xff]   ;;  %v19083_v41 = vld [vmem:[%s24523_s1 + $0x1058] sm:$0xff]  }
 0x1ea   :  { %v16977_v45 = vpop.f32.mrf.mxu1  ;;  %17269 = vmatprep.subr.bf16.mxu1 %v19041_v49  ;;  %v19081_v39 = vld [vmem:[%s24523_s1 + $0x10e0] sm:$0xff]   ;;  %v19088_v46 = vld [vmem:[%s24523_s1 + $0x1010] sm:$0xff]   ;;  %v19091_v49 = vld [vmem:[%s24523_s1 + $0x1048] sm:$0xff]  }
 0x1eb   :  { %17248 = vmatpush3.bf16.msra.mxu0 %v19040_v48  ;;  %v19087_v45 = vld [vmem:[%s24523_s1 + $0x1050] sm:$0xff]  }
 0x1ec   :  { %17249 = vmatprep.subr.bf16.mxu0 %v19043_v51  ;;  %v19090_v48 = vld [vmem:[%s24523_s1 + $0x1090] sm:$0xff]   ;;  %v19093_v51 = vld [vmem:[%s24523_s1 + $0x10c8] sm:$0xff]  }
 0x1ed   :  { %17270 = vmatpush3.bf16.msra.mxu1 %v19042_v50  ;;  %v19092_v50 = vld [vmem:[%s24523_s1 + $0x1008] sm:$0xff]  }
 0x1ee   :  { %17271 = vmatprep.subr.bf16.mxu1 %v19045_v53  ;;  %v19095_v53 = vld [vmem:[%s24523_s1 + $0x1040] sm:$0xff]  }
 0x1ef   :  { %17250 = vmatpush3.bf16.msra.mxu0 %v19044_v52  ;;  %v19094_v52 = vld [vmem:[%s24523_s1 + $0x1088] sm:$0xff]  }
 0x1f0   :  { %17251 = vmatprep.subr.bf16.mxu0 %v19047_v55  ;;  %v19097_v55 = vld [vmem:[%s24523_s1 + $0x10c0] sm:$0xff]  }
 0x1f1   :  { %17272 = vmatpush3.bf16.msra.mxu1 %v19046_v54  ;;  %v19096_v54 = vld [vmem:[%s24523_s1 + $0x1000] sm:$0xff]  }
 0x1f2   :  { %17273 = vmatprep.subr.bf16.mxu1 %v19049_v57 }
 0x1f3   :  { %17252 = vmatpush3.bf16.msra.mxu0 %v19048_v56  ;;  %v53_v56 = vld [vmem:[%s24524_s0 + $0x100] sm:$0xff] }
 0x1f4   :  { %17253 = vmatprep.subr.bf16.mxu0 %v19051_v59  ;;  %v15118_v59 = vcombine.high %v53_v56, %v53_v56 }
 0x1f5   :  { %17274 = vmatpush3.bf16.msra.mxu1 %v19050_v58  ;;  %v15117_v58 = vcombine.low %v53_v56, %v53_v56 }
 0x1f6   :  { %17275 = vmatprep.subr.bf16.mxu1 %v19053_v61  ;;  %v19101_v61 = vld [vmem:[%s24523_s1 + $0x1178] sm:$0xff]  }
 0x1f7   :  { %17254 = vmatpush3.bf16.msra.mxu0 %v19052_v60  ;;  %v19100_v60 = vld [vmem:[%s24523_s1 + $0x1080] sm:$0xff]  }
 0x1f8   :  { %17255 = vmatprep.subr.bf16.mxu0 %v19055_v63 }
 0x1f9   :  { %17276 = vmatpush3.bf16.msra.mxu1 %v19054_v62  ;;  %v54_v62 = vld [vmem:[%s24524_s0 + $0x108] sm:$0xff] }
 0x1fa   :  { %17277 = vmatprep.subr.bf16.mxu1 %v19057_v1  ;;  %v15119_v1 = vcombine.low %v54_v62, %v54_v62 }
 0x1fb   :  { %17256 = vmatpush3.bf16.msra.mxu0 %v19056_v0 }
 0x1fc   :  { %17257 = vmatprep.subr.bf16.mxu0 %v19059_v3  ;;  %v19104_v3 = vld [vmem:[%s24523_s1 + $0x1138] sm:$0xff]  }
 0x1fd   :  { %17278 = vmatpush3.bf16.msra.mxu1 %v19058_v2  ;;  %v15120_v2 = vcombine.high %v54_v62, %v54_v62  ;;  %v19143_v62 = vld [vmem:[%s24523_s1 + $0x1270] sm:$0xff]  }
 0x1fe   :  { %17279 = vmatprep.subr.bf16.mxu1 %v19061_v5  ;;  %v19105_v5 = vld [vmem:[%s24523_s1 + $0x11f8] sm:$0xff]  }
 0x1ff   :  { %17258 = vmatpush3.bf16.msra.mxu0 %v19060_v4 }
 0x200   :  { %17287 = vmatprep.subr.bf16.mxu0 %v19065_v11  ;;  %v19107_v11 = vld [vmem:[%s24523_s1 + $0x1170] sm:$0xff]  }
 0x201   :  { %17280 = vmatpush3.bf16.msra.mxu1 %v19064_v10 }
 0x202   :  { %v16995_v7 = vpop.f32.mrf.mxu0  ;;  %12754 = vmatmul.mubr.bf16.vlgmr.msra.gmra.mxu0 %v15113_v8  ;;  %17309 = vmatprep.subr.bf16.mxu1 %v19069_v19  ;;  %v19111_v19 = vld [vmem:[%s24523_s1 + $0x1168] sm:$0xff]  }
 0x203   :  { %17288 = vmatpush3.bf16.msra.mxu0 %v19068_v17  ;;  %12833 = vmatprep.mubr.bf16.mxu0 %v15118_v59  ;;  %v19142_v59 = vld [vmem:[%s24523_s1 + $0x12b8] sm:$0xff]  }
 0x204   :  { %v16996_v13 = vpop.f32.mrf.mxu0  ;;  %v17017_v14 = vpop.f32.mrf.mxu1  ;;  %12794 = vmatmul.mubr.bf16.vlgmr.msra.gmra.mxu1 %v15115_v15  ;;  %17289 = vmatprep.subr.bf16.mxu0 %v19071_v25  ;;  %v19108_v15 = vld [vmem:[%s24523_s1 + $0x1130] sm:$0xff]   ;;  %v19117_v25 = vld [vmem:[%s24523_s1 + $0x11e0] sm:$0xff]  }
 0x205   :  { %v16997_v18 = vadd.f32 %v16996_v13, %v16995_v7  ;;  %17310 = vmatpush3.bf16.msra.mxu1 %v19070_v23  ;;  %12873 = vmatprep.mubr.bf16.mxu1 %v15120_v2  ;;  %v19115_v23 = vld [vmem:[%s24523_s1 + $0x1160] sm:$0xff]   ;;  %v19145_v2 = vld [vmem:[%s24523_s1 + $0x12f0] sm:$0xff]  }
 0x206   :  { %v16998_v20 = vpop.f32.mrf.mxu0  ;;  %v17018_v21 = vpop.f32.mrf.mxu1  ;;  %17311 = vmatprep.subr.bf16.mxu1 %v19073_v30  ;;  %v19122_v30 = vld [vmem:[%s24523_s1 + $0x1198] sm:$0xff]  }
 0x207   :  { %v12276_v22 = vadd.f32 %v16997_v18, %v21628_v42  ;;  %v17019_v24 = vadd.f32 %v17018_v21, %v17017_v14  ;;  %17290 = vmatpush3.bf16.msra.mxu0 %v19072_v29  ;;  %v19084_v42 = vld [vmem:[%s24523_s1 + $0x1018] sm:$0xff]   ;;  %v19110_v18 = vld [vmem:[%s24523_s1 + $0x11b0] sm:$0xff]   ;;  %v19112_v20 = vld [vmem:[%s24523_s1 + $0x1128] sm:$0xff]  }
 0x208   :  { %v16999_v26 = vpop.f32.mrf.mxu0  ;;  %v17020_v27 = vpop.f32.mrf.mxu1  ;;  %17291 = vmatprep.subr.bf16.mxu0 %v19075_v33  ;;  %v19113_v21 = vld [vmem:[%s24523_s1 + $0x11e8] sm:$0xff]   ;;  %v19121_v29 = vld [vmem:[%s24523_s1 + $0x11d8] sm:$0xff]   ;;  %v19125_v33 = vld [vmem:[%s24523_s1 + $0x11d0] sm:$0xff]  }
 0x209   :  { %v21733_v28 = vadd.f32 %v17019_v24, %v12276_v22  ;;  %17312 = vmatpush3.bf16.msra.mxu1 %v19074_v32  ;;  %v19114_v22 = vld [vmem:[%s24523_s1 + $0x11a8] sm:$0xff]   ;;  %v19116_v24 = vld [vmem:[%s24523_s1 + $0x1120] sm:$0xff]   ;;  %v19119_v27 = vld [vmem:[%s24523_s1 + $0x1158] sm:$0xff]  }
 0x20a   :  { %v17021_v31 = vpop.f32.mrf.mxu1  ;;  %17313 = vmatprep.subr.bf16.mxu1 %v19077_v35  ;;  %v19118_v26 = vld [vmem:[%s24523_s1 + $0x11a0] sm:$0xff]   ;;  %v19124_v32 = vld [vmem:[%s24523_s1 + $0x1110] sm:$0xff]   ;;  %v19127_v35 = vld [vmem:[%s24523_s1 + $0x1148] sm:$0xff]  }
 0x20b   :  { %17292 = vmatpush3.bf16.msra.mxu0 %v19076_v34  ;;  %v19123_v31 = vld [vmem:[%s24523_s1 + $0x1150] sm:$0xff]  }
 0x20c   :  { %17293 = vmatprep.subr.bf16.mxu0 %v19079_v37  ;;  %v19126_v34 = vld [vmem:[%s24523_s1 + $0x1190] sm:$0xff]   ;;  %v19129_v37 = vld [vmem:[%s24523_s1 + $0x11c8] sm:$0xff]  }
 0x20d   :  { %17314 = vmatpush3.bf16.msra.mxu1 %v19078_v36  ;;  %v19128_v36 = vld [vmem:[%s24523_s1 + $0x1108] sm:$0xff]  }
 0x20e   :  { %17315 = vmatprep.subr.bf16.mxu1 %v19081_v39  ;;  %v19131_v39 = vld [vmem:[%s24523_s1 + $0x1140] sm:$0xff]  }
 0x20f   :  { %17294 = vmatpush3.bf16.msra.mxu0 %v19080_v38  ;;  %v19130_v38 = vld [vmem:[%s24523_s1 + $0x1188] sm:$0xff]  }
 0x210   :  { %17295 = vmatprep.subr.bf16.mxu0 %v19083_v41  ;;  %v19133_v41 = vld [vmem:[%s24523_s1 + $0x11c0] sm:$0xff]  }
 0x211   :  { %17316 = vmatpush3.bf16.msra.mxu1 %v19082_v40  ;;  %v19132_v40 = vld [vmem:[%s24523_s1 + $0x1100] sm:$0xff]  }
 0x212   :  { %17317 = vmatprep.subr.bf16.mxu1 %v19085_v43 }
 0x213   :  { %17296 = vmatpush3.bf16.msra.mxu0 %v19084_v42  ;;  %v55_v42 = vld [vmem:[%s24524_s0 + $0x110] sm:$0xff] }
 0x214   :  { %17297 = vmatprep.subr.bf16.mxu0 %v19087_v45  ;;  %v15122_v45 = vcombine.high %v55_v42, %v55_v42 }
 0x215   :  { %17318 = vmatpush3.bf16.msra.mxu1 %v19086_v44  ;;  %v15121_v44 = vcombine.low %v55_v42, %v55_v42 }
 0x216   :  { %17319 = vmatprep.subr.bf16.mxu1 %v19089_v47  ;;  %v19137_v47 = vld [vmem:[%s24523_s1 + $0x1278] sm:$0xff]  }
 0x217   :  { %17298 = vmatpush3.bf16.msra.mxu0 %v19088_v46  ;;  %v19136_v46 = vld [vmem:[%s24523_s1 + $0x1180] sm:$0xff]  }
 0x218   :  { %17299 = vmatprep.subr.bf16.mxu0 %v19091_v49  ;;  %v56_v49 = vld [vmem:[%s24524_s0 + $0x118] sm:$0xff] }
 0x219   :  { %17320 = vmatpush3.bf16.msra.mxu1 %v19090_v48 }
 0x21a   :  { %17321 = vmatprep.subr.bf16.mxu1 %v19093_v51 }
 0x21b   :  { %17300 = vmatpush3.bf16.msra.mxu0 %v19092_v50 }
 0x21c   :  { %17301 = vmatprep.subr.bf16.mxu0 %v19095_v53  ;;  %v15124_v53 = vcombine.high %v56_v49, %v56_v49 }
 0x21d   :  { %17322 = vmatpush3.bf16.msra.mxu1 %v19094_v52  ;;  %v15123_v52 = vcombine.low %v56_v49, %v56_v49 }
 0x21e   :  { %17323 = vmatprep.subr.bf16.mxu1 %v19097_v55 }
 0x21f   :  { %17302 = vmatpush3.bf16.msra.mxu0 %v19096_v54  ;;  %v19140_v54 = vld [vmem:[%s24523_s1 + $0x1238] sm:$0xff]  }
 0x220   :  { %17331 = vmatprep.subr.bf16.mxu0 %v19101_v61 }
 0x221   :  { %17324 = vmatpush3.bf16.msra.mxu1 %v19100_v60 }
 0x222   :  { %v17039_v57 = vpop.f32.mrf.mxu0  ;;  %12834 = vmatmul.mubr.bf16.vlgmr.msra.gmra.mxu0 %v15117_v58  ;;  %17353 = vmatprep.subr.bf16.mxu1 %v19105_v5  ;;  %v19147_v5 = vld [vmem:[%s24523_s1 + $0x1268] sm:$0xff]  }
 0x223   :  { %17332 = vmatpush3.bf16.msra.mxu0 %v19104_v3  ;;  %12913 = vmatprep.mubr.bf16.mxu0 %v15122_v45  ;;  %v19178_v45 = vld [vmem:[%s24523_s1 + $0x13b8] sm:$0xff]  }
 0x224   :  { %v17040_v63 = vpop.f32.mrf.mxu0  ;;  %v17061_v0 = vpop.f32.mrf.mxu1  ;;  %12874 = vmatmul.mubr.bf16.vlgmr.msra.gmra.mxu1 %v15119_v1  ;;  %17333 = vmatprep.subr.bf16.mxu0 %v19107_v11  ;;  %v19144_v1 = vld [vmem:[%s24523_s1 + $0x1230] sm:$0xff]   ;;  %v19153_v11 = vld [vmem:[%s24523_s1 + $0x12e0] sm:$0xff]  }
 0x225   :  { %v17041_v4 = vadd.f32 %v17040_v63, %v17039_v57  ;;  %17354 = vmatpush3.bf16.msra.mxu1 %v19106_v9  ;;  %v19141_v57 = vld [vmem:[%s24523_s1 + $0x12f8] sm:$0xff]   ;;  %12953 = vmatprep.mubr.bf16.mxu1 %v15124_v53  ;;  %v19151_v9 = vld [vmem:[%s24523_s1 + $0x1260] sm:$0xff]  }
 0x226   :  { %v17042_v6 = vpop.f32.mrf.mxu0  ;;  %v17062_v7 = vpop.f32.mrf.mxu1  ;;  %17355 = vmatprep.subr.bf16.mxu1 %v19109_v16  ;;  %v19158_v16 = vld [vmem:[%s24523_s1 + $0x1298] sm:$0xff]  }
 0x227   :  { %v12356_v8 = vadd.f32 %v17041_v4, %v21733_v28  ;;  %v17063_v10 = vadd.f32 %v17062_v7, %v17061_v0  ;;  %17334 = vmatpush3.bf16.msra.mxu0 %v19108_v15  ;;  %v19120_v28 = vld [vmem:[%s24523_s1 + $0x1118] sm:$0xff]   ;;  %v19146_v4 = vld [vmem:[%s24523_s1 + $0x12b0] sm:$0xff]   ;;  %v19148_v6 = vld [vmem:[%s24523_s1 + $0x1228] sm:$0xff]  }
 0x228   :  { %v17043_v12 = vpop.f32.mrf.mxu0  ;;  %v17064_v13 = vpop.f32.mrf.mxu1  ;;  %17335 = vmatprep.subr.bf16.mxu0 %v19111_v19  ;;  %v19149_v7 = vld [vmem:[%s24523_s1 + $0x12e8] sm:$0xff]   ;;  %v19157_v15 = vld [vmem:[%s24523_s1 + $0x12d8] sm:$0xff]   ;;  %v19161_v19 = vld [vmem:[%s24523_s1 + $0x12d0] sm:$0xff]  }
 0x229   :  { %v21838_v14 = vadd.f32 %v17063_v10, %v12356_v8  ;;  %17356 = vmatpush3.bf16.msra.mxu1 %v19110_v18  ;;  %v19150_v8 = vld [vmem:[%s24523_s1 + $0x12a8] sm:$0xff]   ;;  %v19152_v10 = vld [vmem:[%s24523_s1 + $0x1220] sm:$0xff]   ;;  %v19155_v13 = vld [vmem:[%s24523_s1 + $0x1258] sm:$0xff]  }
 0x22a   :  { %v17065_v17 = vpop.f32.mrf.mxu1  ;;  %17357 = vmatprep.subr.bf16.mxu1 %v19113_v21  ;;  %v19154_v12 = vld [vmem:[%s24523_s1 + $0x12a0] sm:$0xff]   ;;  %v19160_v18 = vld [vmem:[%s24523_s1 + $0x1210] sm:$0xff]   ;;  %v19163_v21 = vld [vmem:[%s24523_s1 + $0x1248] sm:$0xff]  }
 0x22b   :  { %17336 = vmatpush3.bf16.msra.mxu0 %v19112_v20  ;;  %v19159_v17 = vld [vmem:[%s24523_s1 + $0x1250] sm:$0xff]  }
 0x22c   :  { %17337 = vmatprep.subr.bf16.mxu0 %v19115_v23  ;;  %v19162_v20 = vld [vmem:[%s24523_s1 + $0x1290] sm:$0xff]   ;;  %v19165_v23 = vld [vmem:[%s24523_s1 + $0x12c8] sm:$0xff]  }
 0x22d   :  { %17358 = vmatpush3.bf16.msra.mxu1 %v19114_v22  ;;  %v19164_v22 = vld [vmem:[%s24523_s1 + $0x1208] sm:$0xff]  }
 0x22e   :  { %17359 = vmatprep.subr.bf16.mxu1 %v19117_v25  ;;  %v19167_v25 = vld [vmem:[%s24523_s1 + $0x1240] sm:$0xff]  }
 0x22f   :  { %17338 = vmatpush3.bf16.msra.mxu0 %v19116_v24  ;;  %v19166_v24 = vld [vmem:[%s24523_s1 + $0x1288] sm:$0xff]  }
 0x230   :  { %17339 = vmatprep.subr.bf16.mxu0 %v19119_v27  ;;  %v19169_v27 = vld [vmem:[%s24523_s1 + $0x12c0] sm:$0xff]  }
 0x231   :  { %17360 = vmatpush3.bf16.msra.mxu1 %v19118_v26  ;;  %v19168_v26 = vld [vmem:[%s24523_s1 + $0x1200] sm:$0xff]  }
 0x232   :  { %17361 = vmatprep.subr.bf16.mxu1 %v19121_v29 }
 0x233   :  { %17340 = vmatpush3.bf16.msra.mxu0 %v19120_v28  ;;  %v57_v28 = vld [vmem:[%s24524_s0 + $0x120] sm:$0xff] }
 0x234   :  { %17341 = vmatprep.subr.bf16.mxu0 %v19123_v31  ;;  %v15126_v31 = vcombine.high %v57_v28, %v57_v28 }
 0x235   :  { %17362 = vmatpush3.bf16.msra.mxu1 %v19122_v30  ;;  %v15125_v30 = vcombine.low %v57_v28, %v57_v28 }
 0x236   :  { %17363 = vmatprep.subr.bf16.mxu1 %v19125_v33  ;;  %v19173_v33 = vld [vmem:[%s24523_s1 + $0x1378] sm:$0xff]  }
 0x237   :  { %17342 = vmatpush3.bf16.msra.mxu0 %v19124_v32  ;;  %v19172_v32 = vld [vmem:[%s24523_s1 + $0x1280] sm:$0xff]  }
 0x238   :  { %17343 = vmatprep.subr.bf16.mxu0 %v19127_v35 }
 0x239   :  { %17364 = vmatpush3.bf16.msra.mxu1 %v19126_v34  ;;  %v58_v34 = vld [vmem:[%s24524_s0 + $0x128] sm:$0xff] }
 0x23a   :  { %17365 = vmatprep.subr.bf16.mxu1 %v19129_v37  ;;  %v15127_v37 = vcombine.low %v58_v34, %v58_v34 }
 0x23b   :  { %17344 = vmatpush3.bf16.msra.mxu0 %v19128_v36 }
 0x23c   :  { %17345 = vmatprep.subr.bf16.mxu0 %v19131_v39  ;;  %v19176_v39 = vld [vmem:[%s24523_s1 + $0x1338] sm:$0xff]  }
 0x23d   :  { %17366 = vmatpush3.bf16.msra.mxu1 %v19130_v38  ;;  %v15128_v38 = vcombine.high %v58_v34, %v58_v34 }
 0x23e   :  { %17367 = vmatprep.subr.bf16.mxu1 %v19133_v41  ;;  %v19177_v41 = vld [vmem:[%s24523_s1 + $0x13f8] sm:$0xff]  }
 0x23f   :  { %17346 = vmatpush3.bf16.msra.mxu0 %v19132_v40 }
 0x240   :  { %17375 = vmatprep.subr.bf16.mxu0 %v19137_v47  ;;  %v19179_v47 = vld [vmem:[%s24523_s1 + $0x1370] sm:$0xff]  }
 0x241   :  { %17368 = vmatpush3.bf16.msra.mxu1 %v19136_v46 }
 0x242   :  { %v17083_v43 = vpop.f32.mrf.mxu0  ;;  %12914 = vmatmul.mubr.bf16.vlgmr.msra.gmra.mxu0 %v15121_v44  ;;  %17397 = vmatprep.subr.bf16.mxu1 %v19141_v57  ;;  %v19185_v57 = vld [vmem:[%s24523_s1 + $0x13e8] sm:$0xff]  }
 0x243   :  { %17376 = vmatpush3.bf16.msra.mxu0 %v19140_v54  ;;  %12993 = vmatprep.mubr.bf16.mxu0 %v15126_v31  ;;  %v19182_v54 = vld [vmem:[%s24523_s1 + $0x13b0] sm:$0xff]   ;;  %v19214_v31 = vld [vmem:[%s24523_s1 + $0x14b8] sm:$0xff]  }
 0x244   :  { %v17084_v48 = vpop.f32.mrf.mxu0  ;;  %v17105_v51 = vpop.f32.mrf.mxu1  ;;  %12954 = vmatmul.mubr.bf16.vlgmr.msra.gmra.mxu1 %v15123_v52  ;;  %17377 = vmatprep.subr.bf16.mxu0 %v19143_v62  ;;  %v19181_v52 = vld [vmem:[%s24523_s1 + $0x13f0] sm:$0xff]   ;;  %v19190_v62 = vld [vmem:[%s24523_s1 + $0x13a0] sm:$0xff]  }
 0x245   :  { %v17085_v50 = vadd.f32 %v17084_v48, %v17083_v43  ;;  %17398 = vmatpush3.bf16.msra.mxu1 %v19142_v59  ;;  %13033 = vmatprep.mubr.bf16.mxu1 %v15128_v38  ;;  %v19187_v59 = vld [vmem:[%s24523_s1 + $0x1360] sm:$0xff]   ;;  %v19217_v38 = vld [vmem:[%s24523_s1 + $0x14f0] sm:$0xff]  }
 0x246   :  { %v17086_v55 = vpop.f32.mrf.mxu0  ;;  %v17106_v58 = vpop.f32.mrf.mxu1  ;;  %17399 = vmatprep.subr.bf16.mxu1 %v19145_v2  ;;  %v19194_v2 = vld [vmem:[%s24523_s1 + $0x1398] sm:$0xff]  }
 0x247   :  { %v12436_v56 = vadd.f32 %v17085_v50, %v21838_v14  ;;  %v17107_v60 = vadd.f32 %v17106_v58, %v17105_v51  ;;  %17378 = vmatpush3.bf16.msra.mxu0 %v19144_v1  ;;  %v19156_v14 = vld [vmem:[%s24523_s1 + $0x1218] sm:$0xff]   ;;  %v19180_v51 = vld [vmem:[%s24523_s1 + $0x1330] sm:$0xff]   ;;  %v19183_v55 = vld [vmem:[%s24523_s1 + $0x1368] sm:$0xff]  }
 0x248   :  { %v17087_v61 = vpop.f32.mrf.mxu0  ;;  %v17108_v63 = vpop.f32.mrf.mxu1  ;;  %17379 = vmatprep.subr.bf16.mxu0 %v19147_v5  ;;  %v19186_v58 = vld [vmem:[%s24523_s1 + $0x13a8] sm:$0xff]   ;;  %v19193_v1 = vld [vmem:[%s24523_s1 + $0x13d8] sm:$0xff]   ;;  %v19197_v5 = vld [vmem:[%s24523_s1 + $0x13d0] sm:$0xff]  }
 0x249   :  { %v21943_v0 = vadd.f32 %v17107_v60, %v12436_v56  ;;  %17400 = vmatpush3.bf16.msra.mxu1 %v19146_v4  ;;  %v19184_v56 = vld [vmem:[%s24523_s1 + $0x1328] sm:$0xff]   ;;  %v19188_v60 = vld [vmem:[%s24523_s1 + $0x1320] sm:$0xff]   ;;  %v19191_v63 = vld [vmem:[%s24523_s1 + $0x1358] sm:$0xff]  }
 0x24a   :  { %v17109_v3 = vpop.f32.mrf.mxu1  ;;  %17401 = vmatprep.subr.bf16.mxu1 %v19149_v7  ;;  %v19189_v61 = vld [vmem:[%s24523_s1 + $0x13e0] sm:$0xff]   ;;  %v19196_v4 = vld [vmem:[%s24523_s1 + $0x1310] sm:$0xff]   ;;  %v19199_v7 = vld [vmem:[%s24523_s1 + $0x1348] sm:$0xff]  }
 0x24b   :  { %17380 = vmatpush3.bf16.msra.mxu0 %v19148_v6  ;;  %v19195_v3 = vld [vmem:[%s24523_s1 + $0x1350] sm:$0xff]  }
 0x24c   :  { %17381 = vmatprep.subr.bf16.mxu0 %v19151_v9  ;;  %v19198_v6 = vld [vmem:[%s24523_s1 + $0x1390] sm:$0xff]   ;;  %v19201_v9 = vld [vmem:[%s24523_s1 + $0x13c8] sm:$0xff]  }
 0x24d   :  { %17402 = vmatpush3.bf16.msra.mxu1 %v19150_v8  ;;  %v19200_v8 = vld [vmem:[%s24523_s1 + $0x1308] sm:$0xff]  }
 0x24e   :  { %17403 = vmatprep.subr.bf16.mxu1 %v19153_v11  ;;  %v19203_v11 = vld [vmem:[%s24523_s1 + $0x1340] sm:$0xff]  }
 0x24f   :  { %17382 = vmatpush3.bf16.msra.mxu0 %v19152_v10  ;;  %v19202_v10 = vld [vmem:[%s24523_s1 + $0x1388] sm:$0xff]  }
 0x250   :  { %17383 = vmatprep.subr.bf16.mxu0 %v19155_v13  ;;  %v19205_v13 = vld [vmem:[%s24523_s1 + $0x13c0] sm:$0xff]  }
 0x251   :  { %17404 = vmatpush3.bf16.msra.mxu1 %v19154_v12  ;;  %v19204_v12 = vld [vmem:[%s24523_s1 + $0x1300] sm:$0xff]  }
 0x252   :  { %17405 = vmatprep.subr.bf16.mxu1 %v19157_v15 }
 0x253   :  { %17384 = vmatpush3.bf16.msra.mxu0 %v19156_v14  ;;  %v59_v14 = vld [vmem:[%s24524_s0 + $0x130] sm:$0xff] }
 0x254   :  { %17385 = vmatprep.subr.bf16.mxu0 %v19159_v17  ;;  %v15130_v17 = vcombine.high %v59_v14, %v59_v14 }
 0x255   :  { %17406 = vmatpush3.bf16.msra.mxu1 %v19158_v16  ;;  %v15129_v16 = vcombine.low %v59_v14, %v59_v14 }
 0x256   :  { %17407 = vmatprep.subr.bf16.mxu1 %v19161_v19  ;;  %v19209_v19 = vld [vmem:[%s24523_s1 + $0x1478] sm:$0xff]  }
 0x257   :  { %17386 = vmatpush3.bf16.msra.mxu0 %v19160_v18  ;;  %v19208_v18 = vld [vmem:[%s24523_s1 + $0x1380] sm:$0xff]  }
 0x258   :  { %17387 = vmatprep.subr.bf16.mxu0 %v19163_v21 }
 0x259   :  { %17408 = vmatpush3.bf16.msra.mxu1 %v19162_v20  ;;  %v60_v20 = vld [vmem:[%s24524_s0 + $0x138] sm:$0xff] }
 0x25a   :  { %17409 = vmatprep.subr.bf16.mxu1 %v19165_v23  ;;  %v15131_v23 = vcombine.low %v60_v20, %v60_v20 }
 0x25b   :  { %17388 = vmatpush3.bf16.msra.mxu0 %v19164_v22 }
 0x25c   :  { %17389 = vmatprep.subr.bf16.mxu0 %v19167_v25  ;;  %v19212_v25 = vld [vmem:[%s24523_s1 + $0x1438] sm:$0xff]  }
 0x25d   :  { %17410 = vmatpush3.bf16.msra.mxu1 %v19166_v24  ;;  %v15132_v24 = vcombine.high %v60_v20, %v60_v20  ;;  %v19251_v20 = vld [vmem:[%s24523_s1 + $0x1570] sm:$0xff]  }
 0x25e   :  { %17411 = vmatprep.subr.bf16.mxu1 %v19169_v27  ;;  %v19213_v27 = vld [vmem:[%s24523_s1 + $0x14f8] sm:$0xff]  }
 0x25f   :  { %17390 = vmatpush3.bf16.msra.mxu0 %v19168_v26 }
 0x260   :  { %17419 = vmatprep.subr.bf16.mxu0 %v19173_v33  ;;  %v19215_v33 = vld [vmem:[%s24523_s1 + $0x1470] sm:$0xff]  }
 0x261   :  { %17412 = vmatpush3.bf16.msra.mxu1 %v19172_v32 }
 0x262   :  { %v17127_v29 = vpop.f32.mrf.mxu0  ;;  %12994 = vmatmul.mubr.bf16.vlgmr.msra.gmra.mxu0 %v15125_v30  ;;  %17441 = vmatprep.subr.bf16.mxu1 %v19177_v41  ;;  %v19219_v41 = vld [vmem:[%s24523_s1 + $0x1468] sm:$0xff]  }
 0x263   :  { %17420 = vmatpush3.bf16.msra.mxu0 %v19176_v39  ;;  %13073 = vmatprep.mubr.bf16.mxu0 %v15130_v17  ;;  %v19250_v17 = vld [vmem:[%s24523_s1 + $0x15b8] sm:$0xff]  }
 0x264   :  { %v17128_v35 = vpop.f32.mrf.mxu0  ;;  %v17149_v36 = vpop.f32.mrf.mxu1  ;;  %13034 = vmatmul.mubr.bf16.vlgmr.msra.gmra.mxu1 %v15127_v37  ;;  %17421 = vmatprep.subr.bf16.mxu0 %v19179_v47  ;;  %v19216_v37 = vld [vmem:[%s24523_s1 + $0x1430] sm:$0xff]   ;;  %v19225_v47 = vld [vmem:[%s24523_s1 + $0x14e0] sm:$0xff]  }
 0x265   :  { %v17129_v40 = vadd.f32 %v17128_v35, %v17127_v29  ;;  %17442 = vmatpush3.bf16.msra.mxu1 %v19178_v45  ;;  %13113 = vmatprep.mubr.bf16.mxu1 %v15132_v24  ;;  %v19223_v45 = vld [vmem:[%s24523_s1 + $0x1460] sm:$0xff]   ;;  %v19253_v24 = vld [vmem:[%s24523_s1 + $0x15f0] sm:$0xff]  }
 0x266   :  { %v17130_v42 = vpop.f32.mrf.mxu0  ;;  %v17150_v43 = vpop.f32.mrf.mxu1  ;;  %17443 = vmatprep.subr.bf16.mxu1 %v19181_v52  ;;  %v19230_v52 = vld [vmem:[%s24523_s1 + $0x1498] sm:$0xff]  }
 0x267   :  { %v12516_v44 = vadd.f32 %v17129_v40, %v21943_v0  ;;  %v17151_v46 = vadd.f32 %v17150_v43, %v17149_v36  ;;  %17422 = vmatpush3.bf16.msra.mxu0 %v19180_v51  ;;  %v19192_v0 = vld [vmem:[%s24523_s1 + $0x1318] sm:$0xff]   ;;  %v19218_v40 = vld [vmem:[%s24523_s1 + $0x14b0] sm:$0xff]   ;;  %v19220_v42 = vld [vmem:[%s24523_s1 + $0x1428] sm:$0xff]  }
 0x268   :  { %v17131_v48 = vpop.f32.mrf.mxu0  ;;  %v17152_v49 = vpop.f32.mrf.mxu1  ;;  %17423 = vmatprep.subr.bf16.mxu0 %v19183_v55  ;;  %v19221_v43 = vld [vmem:[%s24523_s1 + $0x14e8] sm:$0xff]   ;;  %v19229_v51 = vld [vmem:[%s24523_s1 + $0x14d8] sm:$0xff]   ;;  %v19233_v55 = vld [vmem:[%s24523_s1 + $0x14d0] sm:$0xff]  }
 0x269   :  { %v22048_v50 = vadd.f32 %v17151_v46, %v12516_v44  ;;  %17444 = vmatpush3.bf16.msra.mxu1 %v19182_v54  ;;  %v19222_v44 = vld [vmem:[%s24523_s1 + $0x14a8] sm:$0xff]   ;;  %v19224_v46 = vld [vmem:[%s24523_s1 + $0x1420] sm:$0xff]   ;;  %v19227_v49 = vld [vmem:[%s24523_s1 + $0x1458] sm:$0xff]  }
 0x26a   :  { %v17153_v53 = vpop.f32.mrf.mxu1  ;;  %17445 = vmatprep.subr.bf16.mxu1 %v19185_v57  ;;  %v19226_v48 = vld [vmem:[%s24523_s1 + $0x14a0] sm:$0xff]   ;;  %v19232_v54 = vld [vmem:[%s24523_s1 + $0x1410] sm:$0xff]   ;;  %v19235_v57 = vld [vmem:[%s24523_s1 + $0x1448] sm:$0xff]  }
 0x26b   :  { %17424 = vmatpush3.bf16.msra.mxu0 %v19184_v56  ;;  %v19231_v53 = vld [vmem:[%s24523_s1 + $0x1450] sm:$0xff]  }
 0x26c   :  { %17425 = vmatprep.subr.bf16.mxu0 %v19187_v59  ;;  %v19234_v56 = vld [vmem:[%s24523_s1 + $0x1490] sm:$0xff]   ;;  %v19237_v59 = vld [vmem:[%s24523_s1 + $0x14c8] sm:$0xff]  }
 0x26d   :  { %17446 = vmatpush3.bf16.msra.mxu1 %v19186_v58  ;;  %v19236_v58 = vld [vmem:[%s24523_s1 + $0x1408] sm:$0xff]  }
 0x26e   :  { %17447 = vmatprep.subr.bf16.mxu1 %v19189_v61  ;;  %v19239_v61 = vld [vmem:[%s24523_s1 + $0x1440] sm:$0xff]  }
 0x26f   :  { %17426 = vmatpush3.bf16.msra.mxu0 %v19188_v60  ;;  %v19238_v60 = vld [vmem:[%s24523_s1 + $0x1488] sm:$0xff]  }
 0x270   :  { %17427 = vmatprep.subr.bf16.mxu0 %v19191_v63  ;;  %v19241_v63 = vld [vmem:[%s24523_s1 + $0x14c0] sm:$0xff]  }
 0x271   :  { %17448 = vmatpush3.bf16.msra.mxu1 %v19190_v62  ;;  %v19240_v62 = vld [vmem:[%s24523_s1 + $0x1400] sm:$0xff]  }
 0x272   :  { %17449 = vmatprep.subr.bf16.mxu1 %v19193_v1 }
 0x273   :  { %17428 = vmatpush3.bf16.msra.mxu0 %v19192_v0  ;;  %v61_v0 = vld [vmem:[%s24524_s0 + $0x140] sm:$0xff] }
 0x274   :  { %17429 = vmatprep.subr.bf16.mxu0 %v19195_v3  ;;  %v15134_v3 = vcombine.high %v61_v0, %v61_v0 }
 0x275   :  { %17450 = vmatpush3.bf16.msra.mxu1 %v19194_v2  ;;  %v15133_v2 = vcombine.low %v61_v0, %v61_v0 }
 0x276   :  { %17451 = vmatprep.subr.bf16.mxu1 %v19197_v5  ;;  %v19245_v5 = vld [vmem:[%s24523_s1 + $0x1578] sm:$0xff]  }
 0x277   :  { %17430 = vmatpush3.bf16.msra.mxu0 %v19196_v4  ;;  %v19244_v4 = vld [vmem:[%s24523_s1 + $0x1480] sm:$0xff]  }
 0x278   :  { %17431 = vmatprep.subr.bf16.mxu0 %v19199_v7  ;;  %v62_v7 = vld [vmem:[%s24524_s0 + $0x148] sm:$0xff] }
 0x279   :  { %17452 = vmatpush3.bf16.msra.mxu1 %v19198_v6 }
 0x27a   :  { %17453 = vmatprep.subr.bf16.mxu1 %v19201_v9 }
 0x27b   :  { %17432 = vmatpush3.bf16.msra.mxu0 %v19200_v8 }
 0x27c   :  { %17433 = vmatprep.subr.bf16.mxu0 %v19203_v11  ;;  %v15136_v11 = vcombine.high %v62_v7, %v62_v7 }
 0x27d   :  { %17454 = vmatpush3.bf16.msra.mxu1 %v19202_v10  ;;  %v15135_v10 = vcombine.low %v62_v7, %v62_v7 }
 0x27e   :  { %17455 = vmatprep.subr.bf16.mxu1 %v19205_v13 }
 0x27f   :  { %17434 = vmatpush3.bf16.msra.mxu0 %v19204_v12  ;;  %v19248_v12 = vld [vmem:[%s24523_s1 + $0x1538] sm:$0xff]  }
 0x280   :  { %17463 = vmatprep.subr.bf16.mxu0 %v19209_v19 }
 0x281   :  { %17456 = vmatpush3.bf16.msra.mxu1 %v19208_v18 }
 0x282   :  { %v17171_v15 = vpop.f32.mrf.mxu0  ;;  %13074 = vmatmul.mubr.bf16.vlgmr.msra.gmra.mxu0 %v15129_v16  ;;  %17485 = vmatprep.subr.bf16.mxu1 %v19213_v27  ;;  %v19255_v27 = vld [vmem:[%s24523_s1 + $0x1568] sm:$0xff]  }
 0x283   :  { %17464 = vmatpush3.bf16.msra.mxu0 %v19212_v25  ;;  %13153 = vmatprep.mubr.bf16.mxu0 %v15134_v3  ;;  %v19286_v3 = vld [vmem:[%s24523_s1 + $0x16b8] sm:$0xff]  }
 0x284   :  { %v17172_v21 = vpop.f32.mrf.mxu0  ;;  %v17193_v22 = vpop.f32.mrf.mxu1  ;;  %13114 = vmatmul.mubr.bf16.vlgmr.msra.gmra.mxu1 %v15131_v23  ;;  %17465 = vmatprep.subr.bf16.mxu0 %v19215_v33  ;;  %v19252_v23 = vld [vmem:[%s24523_s1 + $0x1530] sm:$0xff]   ;;  %v19261_v33 = vld [vmem:[%s24523_s1 + $0x15e0] sm:$0xff]  }
 0x285   :  { %v17173_v26 = vadd.f32 %v17172_v21, %v17171_v15  ;;  %17486 = vmatpush3.bf16.msra.mxu1 %v19214_v31  ;;  %v19249_v15 = vld [vmem:[%s24523_s1 + $0x15f8] sm:$0xff]   ;;  %13193 = vmatprep.mubr.bf16.mxu1 %v15136_v11  ;;  %v19259_v31 = vld [vmem:[%s24523_s1 + $0x1560] sm:$0xff]  }
 0x286   :  { %v17174_v28 = vpop.f32.mrf.mxu0  ;;  %v17194_v29 = vpop.f32.mrf.mxu1  ;;  %17487 = vmatprep.subr.bf16.mxu1 %v19217_v38  ;;  %v19266_v38 = vld [vmem:[%s24523_s1 + $0x1598] sm:$0xff]  }
 0x287   :  { %v12596_v30 = vadd.f32 %v17173_v26, %v22048_v50  ;;  %v17195_v32 = vadd.f32 %v17194_v29, %v17193_v22  ;;  %17466 = vmatpush3.bf16.msra.mxu0 %v19216_v37  ;;  %v19228_v50 = vld [vmem:[%s24523_s1 + $0x1418] sm:$0xff]   ;;  %v19254_v26 = vld [vmem:[%s24523_s1 + $0x15b0] sm:$0xff]   ;;  %v19256_v28 = vld [vmem:[%s24523_s1 + $0x1528] sm:$0xff]  }
 0x288   :  { %v17175_v34 = vpop.f32.mrf.mxu0  ;;  %v17196_v35 = vpop.f32.mrf.mxu1  ;;  %17467 = vmatprep.subr.bf16.mxu0 %v19219_v41  ;;  %v19257_v29 = vld [vmem:[%s24523_s1 + $0x15e8] sm:$0xff]   ;;  %v19265_v37 = vld [vmem:[%s24523_s1 + $0x15d8] sm:$0xff]   ;;  %v19269_v41 = vld [vmem:[%s24523_s1 + $0x15d0] sm:$0xff]  }
 0x289   :  { %v22153_v36 = vadd.f32 %v17195_v32, %v12596_v30  ;;  %17488 = vmatpush3.bf16.msra.mxu1 %v19218_v40  ;;  %v19258_v30 = vld [vmem:[%s24523_s1 + $0x15a8] sm:$0xff]   ;;  %v19260_v32 = vld [vmem:[%s24523_s1 + $0x1520] sm:$0xff]   ;;  %v19263_v35 = vld [vmem:[%s24523_s1 + $0x1558] sm:$0xff]  }
 0x28a   :  { %v17197_v39 = vpop.f32.mrf.mxu1  ;;  %17489 = vmatprep.subr.bf16.mxu1 %v19221_v43  ;;  %v19262_v34 = vld [vmem:[%s24523_s1 + $0x15a0] sm:$0xff]   ;;  %v19268_v40 = vld [vmem:[%s24523_s1 + $0x1510] sm:$0xff]   ;;  %v19271_v43 = vld [vmem:[%s24523_s1 + $0x1548] sm:$0xff]  }
 0x28b   :  { %17468 = vmatpush3.bf16.msra.mxu0 %v19220_v42  ;;  %v19267_v39 = vld [vmem:[%s24523_s1 + $0x1550] sm:$0xff]  }
 0x28c   :  { %17469 = vmatprep.subr.bf16.mxu0 %v19223_v45  ;;  %v19270_v42 = vld [vmem:[%s24523_s1 + $0x1590] sm:$0xff]   ;;  %v19273_v45 = vld [vmem:[%s24523_s1 + $0x15c8] sm:$0xff]  }
 0x28d   :  { %17490 = vmatpush3.bf16.msra.mxu1 %v19222_v44  ;;  %v19272_v44 = vld [vmem:[%s24523_s1 + $0x1508] sm:$0xff]  }
 0x28e   :  { %17491 = vmatprep.subr.bf16.mxu1 %v19225_v47  ;;  %v19275_v47 = vld [vmem:[%s24523_s1 + $0x1540] sm:$0xff]  }
 0x28f   :  { %17470 = vmatpush3.bf16.msra.mxu0 %v19224_v46  ;;  %v19274_v46 = vld [vmem:[%s24523_s1 + $0x1588] sm:$0xff]  }
 0x290   :  { %17471 = vmatprep.subr.bf16.mxu0 %v19227_v49  ;;  %v19277_v49 = vld [vmem:[%s24523_s1 + $0x15c0] sm:$0xff]  }
 0x291   :  { %17492 = vmatpush3.bf16.msra.mxu1 %v19226_v48  ;;  %v19276_v48 = vld [vmem:[%s24523_s1 + $0x1500] sm:$0xff]  }
 0x292   :  { %17493 = vmatprep.subr.bf16.mxu1 %v19229_v51 }
 0x293   :  { %17472 = vmatpush3.bf16.msra.mxu0 %v19228_v50  ;;  %v63_v50 = vld [vmem:[%s24524_s0 + $0x150] sm:$0xff] }
 0x294   :  { %17473 = vmatprep.subr.bf16.mxu0 %v19231_v53  ;;  %v15138_v53 = vcombine.high %v63_v50, %v63_v50 }
 0x295   :  { %17494 = vmatpush3.bf16.msra.mxu1 %v19230_v52  ;;  %v15137_v52 = vcombine.low %v63_v50, %v63_v50 }
 0x296   :  { %17495 = vmatprep.subr.bf16.mxu1 %v19233_v55  ;;  %v19281_v55 = vld [vmem:[%s24523_s1 + $0x1678] sm:$0xff]  }
 0x297   :  { %17474 = vmatpush3.bf16.msra.mxu0 %v19232_v54  ;;  %v19280_v54 = vld [vmem:[%s24523_s1 + $0x1580] sm:$0xff]  }
 0x298   :  { %17475 = vmatprep.subr.bf16.mxu0 %v19235_v57 }
 0x299   :  { %17496 = vmatpush3.bf16.msra.mxu1 %v19234_v56  ;;  %v64_v56 = vld [vmem:[%s24524_s0 + $0x158] sm:$0xff] }
 0x29a   :  { %17497 = vmatprep.subr.bf16.mxu1 %v19237_v59  ;;  %v15139_v59 = vcombine.low %v64_v56, %v64_v56 }
 0x29b   :  { %17476 = vmatpush3.bf16.msra.mxu0 %v19236_v58 }
 0x29c   :  { %17477 = vmatprep.subr.bf16.mxu0 %v19239_v61  ;;  %v19284_v61 = vld [vmem:[%s24523_s1 + $0x1638] sm:$0xff]  }
 0x29d   :  { %17498 = vmatpush3.bf16.msra.mxu1 %v19238_v60  ;;  %v15140_v60 = vcombine.high %v64_v56, %v64_v56 }
 0x29e   :  { %17499 = vmatprep.subr.bf16.mxu1 %v19241_v63  ;;  %v19285_v63 = vld [vmem:[%s24523_s1 + $0x16f8] sm:$0xff]  }
 0x29f   :  { %17478 = vmatpush3.bf16.msra.mxu0 %v19240_v62 }
 0x2a0   :  { %17507 = vmatprep.subr.bf16.mxu0 %v19245_v5  ;;  %v19287_v5 = vld [vmem:[%s24523_s1 + $0x1670] sm:$0xff]  }
 0x2a1   :  { %17500 = vmatpush3.bf16.msra.mxu1 %v19244_v4 }
 0x2a2   :  { %v17215_v1 = vpop.f32.mrf.mxu0  ;;  %13154 = vmatmul.mubr.bf16.vlgmr.msra.gmra.mxu0 %v15133_v2  ;;  %17529 = vmatprep.subr.bf16.mxu1 %v19249_v15  ;;  %v19293_v15 = vld [vmem:[%s24523_s1 + $0x16e8] sm:$0xff]  }
 0x2a3   :  { %17508 = vmatpush3.bf16.msra.mxu0 %v19248_v12  ;;  %13233 = vmatprep.mubr.bf16.mxu0 %v15138_v53  ;;  %v19290_v12 = vld [vmem:[%s24523_s1 + $0x16b0] sm:$0xff]   ;;  %v19322_v53 = vld [vmem:[%s24523_s1 + $0x17b8] sm:$0xff]  }
 0x2a4   :  { %v17216_v6 = vpop.f32.mrf.mxu0  ;;  %v17237_v9 = vpop.f32.mrf.mxu1  ;;  %13194 = vmatmul.mubr.bf16.vlgmr.msra.gmra.mxu1 %v15135_v10  ;;  %17509 = vmatprep.subr.bf16.mxu0 %v19251_v20  ;;  %v19289_v10 = vld [vmem:[%s24523_s1 + $0x16f0] sm:$0xff]   ;;  %v19298_v20 = vld [vmem:[%s24523_s1 + $0x16a0] sm:$0xff]  }
 0x2a5   :  { %v17217_v8 = vadd.f32 %v17216_v6, %v17215_v1  ;;  %17530 = vmatpush3.bf16.msra.mxu1 %v19250_v17  ;;  %13273 = vmatprep.mubr.bf16.mxu1 %v15140_v60  ;;  %v19295_v17 = vld [vmem:[%s24523_s1 + $0x1660] sm:$0xff]   ;;  %v19325_v60 = vld [vmem:[%s24523_s1 + $0x17f0] sm:$0xff]  }
 0x2a6   :  { %v17218_v13 = vpop.f32.mrf.mxu0  ;;  %v17238_v16 = vpop.f32.mrf.mxu1  ;;  %17531 = vmatprep.subr.bf16.mxu1 %v19253_v24  ;;  %v19302_v24 = vld [vmem:[%s24523_s1 + $0x1698] sm:$0xff]  }
 0x2a7   :  { %v12676_v14 = vadd.f32 %v17217_v8, %v22153_v36  ;;  %v17239_v18 = vadd.f32 %v17238_v16, %v17237_v9  ;;  %17510 = vmatpush3.bf16.msra.mxu0 %v19252_v23  ;;  %v19264_v36 = vld [vmem:[%s24523_s1 + $0x1518] sm:$0xff]   ;;  %v19288_v9 = vld [vmem:[%s24523_s1 + $0x1630] sm:$0xff]   ;;  %v19291_v13 = vld [vmem:[%s24523_s1 + $0x1668] sm:$0xff]  }
 0x2a8   :  { %v17219_v19 = vpop.f32.mrf.mxu0  ;;  %v17240_v21 = vpop.f32.mrf.mxu1  ;;  %17511 = vmatprep.subr.bf16.mxu0 %v19255_v27  ;;  %v19294_v16 = vld [vmem:[%s24523_s1 + $0x16a8] sm:$0xff]   ;;  %v19301_v23 = vld [vmem:[%s24523_s1 + $0x16d8] sm:$0xff]   ;;  %v19305_v27 = vld [vmem:[%s24523_s1 + $0x16d0] sm:$0xff]  }
 0x2a9   :  { %v22258_v22 = vadd.f32 %v17239_v18, %v12676_v14  ;;  %17532 = vmatpush3.bf16.msra.mxu1 %v19254_v26  ;;  %v19292_v14 = vld [vmem:[%s24523_s1 + $0x1628] sm:$0xff]   ;;  %v19296_v18 = vld [vmem:[%s24523_s1 + $0x1620] sm:$0xff]   ;;  %v19299_v21 = vld [vmem:[%s24523_s1 + $0x1658] sm:$0xff]  }
 0x2aa   :  { %v17241_v25 = vpop.f32.mrf.mxu1  ;;  %17533 = vmatprep.subr.bf16.mxu1 %v19257_v29  ;;  %v19297_v19 = vld [vmem:[%s24523_s1 + $0x16e0] sm:$0xff]   ;;  %v19304_v26 = vld [vmem:[%s24523_s1 + $0x1610] sm:$0xff]   ;;  %v19307_v29 = vld [vmem:[%s24523_s1 + $0x1648] sm:$0xff]  }
 0x2ab   :  { %17512 = vmatpush3.bf16.msra.mxu0 %v19256_v28  ;;  %v19303_v25 = vld [vmem:[%s24523_s1 + $0x1650] sm:$0xff]  }
 0x2ac   :  { %17513 = vmatprep.subr.bf16.mxu0 %v19259_v31  ;;  %v19306_v28 = vld [vmem:[%s24523_s1 + $0x1690] sm:$0xff]   ;;  %v19309_v31 = vld [vmem:[%s24523_s1 + $0x16c8] sm:$0xff]  }
 0x2ad   :  { %17534 = vmatpush3.bf16.msra.mxu1 %v19258_v30  ;;  %v19308_v30 = vld [vmem:[%s24523_s1 + $0x1608] sm:$0xff]  }
 0x2ae   :  { %17535 = vmatprep.subr.bf16.mxu1 %v19261_v33  ;;  %v19311_v33 = vld [vmem:[%s24523_s1 + $0x1640] sm:$0xff]  }
 0x2af   :  { %17514 = vmatpush3.bf16.msra.mxu0 %v19260_v32  ;;  %v19310_v32 = vld [vmem:[%s24523_s1 + $0x1688] sm:$0xff]  }
 0x2b0   :  { %17515 = vmatprep.subr.bf16.mxu0 %v19263_v35  ;;  %v19313_v35 = vld [vmem:[%s24523_s1 + $0x16c0] sm:$0xff]  }
 0x2b1   :  { %17536 = vmatpush3.bf16.msra.mxu1 %v19262_v34  ;;  %v19312_v34 = vld [vmem:[%s24523_s1 + $0x1600] sm:$0xff]  }
 0x2b2   :  { %17537 = vmatprep.subr.bf16.mxu1 %v19265_v37 }
 0x2b3   :  { %17516 = vmatpush3.bf16.msra.mxu0 %v19264_v36  ;;  %v65_v36 = vld [vmem:[%s24524_s0 + $0x160] sm:$0xff] }
 0x2b4   :  { %17517 = vmatprep.subr.bf16.mxu0 %v19267_v39  ;;  %v15142_v39 = vcombine.high %v65_v36, %v65_v36 }
 0x2b5   :  { %17538 = vmatpush3.bf16.msra.mxu1 %v19266_v38  ;;  %v15141_v38 = vcombine.low %v65_v36, %v65_v36 }
 0x2b6   :  { %17539 = vmatprep.subr.bf16.mxu1 %v19269_v41  ;;  %v19317_v41 = vld [vmem:[%s24523_s1 + $0x1778] sm:$0xff]  }
 0x2b7   :  { %17518 = vmatpush3.bf16.msra.mxu0 %v19268_v40  ;;  %v19316_v40 = vld [vmem:[%s24523_s1 + $0x1680] sm:$0xff]  }
 0x2b8   :  { %17519 = vmatprep.subr.bf16.mxu0 %v19271_v43 }
 0x2b9   :  { %17540 = vmatpush3.bf16.msra.mxu1 %v19270_v42  ;;  %v66_v42 = vld [vmem:[%s24524_s0 + $0x168] sm:$0xff] }
 0x2ba   :  { %17541 = vmatprep.subr.bf16.mxu1 %v19273_v45  ;;  %v15143_v45 = vcombine.low %v66_v42, %v66_v42 }
 0x2bb   :  { %17520 = vmatpush3.bf16.msra.mxu0 %v19272_v44 }
 0x2bc   :  { %17521 = vmatprep.subr.bf16.mxu0 %v19275_v47  ;;  %v19320_v47 = vld [vmem:[%s24523_s1 + $0x1738] sm:$0xff]  }
 0x2bd   :  { %17542 = vmatpush3.bf16.msra.mxu1 %v19274_v46  ;;  %v15144_v46 = vcombine.high %v66_v42, %v66_v42  ;;  %v19359_v42 = vld [vmem:[%s24523_s1 + $0x1870] sm:$0xff]  }
 0x2be   :  { %17543 = vmatprep.subr.bf16.mxu1 %v19277_v49  ;;  %v19321_v49 = vld [vmem:[%s24523_s1 + $0x17f8] sm:$0xff]  }
 0x2bf   :  { %17522 = vmatpush3.bf16.msra.mxu0 %v19276_v48 }
 0x2c0   :  { %17551 = vmatprep.subr.bf16.mxu0 %v19281_v55  ;;  %v19323_v55 = vld [vmem:[%s24523_s1 + $0x1770] sm:$0xff]  }
 0x2c1   :  { %17544 = vmatpush3.bf16.msra.mxu1 %v19280_v54 }
 0x2c2   :  { %v17259_v51 = vpop.f32.mrf.mxu0  ;;  %13234 = vmatmul.mubr.bf16.vlgmr.msra.gmra.mxu0 %v15137_v52  ;;  %17573 = vmatprep.subr.bf16.mxu1 %v19285_v63  ;;  %v19327_v63 = vld [vmem:[%s24523_s1 + $0x1768] sm:$0xff]  }
 0x2c3   :  { %17552 = vmatpush3.bf16.msra.mxu0 %v19284_v61  ;;  %13313 = vmatprep.mubr.bf16.mxu0 %v15142_v39  ;;  %v19358_v39 = vld [vmem:[%s24523_s1 + $0x18b8] sm:$0xff]  }
 0x2c4   :  { %v17260_v57 = vpop.f32.mrf.mxu0  ;;  %v17281_v58 = vpop.f32.mrf.mxu1  ;;  %13274 = vmatmul.mubr.bf16.vlgmr.msra.gmra.mxu1 %v15139_v59  ;;  %17553 = vmatprep.subr.bf16.mxu0 %v19287_v5  ;;  %v19324_v59 = vld [vmem:[%s24523_s1 + $0x1730] sm:$0xff]   ;;  %v19333_v5 = vld [vmem:[%s24523_s1 + $0x17e0] sm:$0xff]  }
 0x2c5   :  { %v17261_v62 = vadd.f32 %v17260_v57, %v17259_v51  ;;  %17574 = vmatpush3.bf16.msra.mxu1 %v19286_v3  ;;  %13353 = vmatprep.mubr.bf16.mxu1 %v15144_v46  ;;  %v19331_v3 = vld [vmem:[%s24523_s1 + $0x1760] sm:$0xff]   ;;  %v19361_v46 = vld [vmem:[%s24523_s1 + $0x18f0] sm:$0xff]  }
 0x2c6   :  { %v17262_v0 = vpop.f32.mrf.mxu0  ;;  %v17282_v1 = vpop.f32.mrf.mxu1  ;;  %17575 = vmatprep.subr.bf16.mxu1 %v19289_v10  ;;  %v19338_v10 = vld [vmem:[%s24523_s1 + $0x1798] sm:$0xff]  }
 0x2c7   :  { %v12756_v2 = vadd.f32 %v17261_v62, %v22258_v22  ;;  %v17283_v4 = vadd.f32 %v17282_v1, %v17281_v58  ;;  %17554 = vmatpush3.bf16.msra.mxu0 %v19288_v9  ;;  %v19300_v22 = vld [vmem:[%s24523_s1 + $0x1618] sm:$0xff]   ;;  %v19326_v62 = vld [vmem:[%s24523_s1 + $0x17b0] sm:$0xff]   ;;  %v19328_v0 = vld [vmem:[%s24523_s1 + $0x1728] sm:$0xff]  }
 0x2c8   :  { %v17263_v6 = vpop.f32.mrf.mxu0  ;;  %v17284_v7 = vpop.f32.mrf.mxu1  ;;  %17555 = vmatprep.subr.bf16.mxu0 %v19291_v13  ;;  %v19329_v1 = vld [vmem:[%s24523_s1 + $0x17e8] sm:$0xff]   ;;  %v19337_v9 = vld [vmem:[%s24523_s1 + $0x17d8] sm:$0xff]   ;;  %v19341_v13 = vld [vmem:[%s24523_s1 + $0x17d0] sm:$0xff]  }
 0x2c9   :  { %v22363_v8 = vadd.f32 %v17283_v4, %v12756_v2  ;;  %17576 = vmatpush3.bf16.msra.mxu1 %v19290_v12  ;;  %v19330_v2 = vld [vmem:[%s24523_s1 + $0x17a8] sm:$0xff]   ;;  %v19332_v4 = vld [vmem:[%s24523_s1 + $0x1720] sm:$0xff]   ;;  %v19335_v7 = vld [vmem:[%s24523_s1 + $0x1758] sm:$0xff]  }
 0x2ca   :  { %v17285_v11 = vpop.f32.mrf.mxu1  ;;  %17577 = vmatprep.subr.bf16.mxu1 %v19293_v15  ;;  %v19334_v6 = vld [vmem:[%s24523_s1 + $0x17a0] sm:$0xff]   ;;  %v19340_v12 = vld [vmem:[%s24523_s1 + $0x1710] sm:$0xff]   ;;  %v19343_v15 = vld [vmem:[%s24523_s1 + $0x1748] sm:$0xff]  }
 0x2cb   :  { %17556 = vmatpush3.bf16.msra.mxu0 %v19292_v14  ;;  %v19339_v11 = vld [vmem:[%s24523_s1 + $0x1750] sm:$0xff]  }
 0x2cc   :  { %17557 = vmatprep.subr.bf16.mxu0 %v19295_v17  ;;  %v19342_v14 = vld [vmem:[%s24523_s1 + $0x1790] sm:$0xff]   ;;  %v19345_v17 = vld [vmem:[%s24523_s1 + $0x17c8] sm:$0xff]  }
 0x2cd   :  { %17578 = vmatpush3.bf16.msra.mxu1 %v19294_v16  ;;  %v19344_v16 = vld [vmem:[%s24523_s1 + $0x1708] sm:$0xff]  }
 0x2ce   :  { %17579 = vmatprep.subr.bf16.mxu1 %v19297_v19  ;;  %v19347_v19 = vld [vmem:[%s24523_s1 + $0x1740] sm:$0xff]  }
 0x2cf   :  { %17558 = vmatpush3.bf16.msra.mxu0 %v19296_v18  ;;  %v19346_v18 = vld [vmem:[%s24523_s1 + $0x1788] sm:$0xff]  }
 0x2d0   :  { %17559 = vmatprep.subr.bf16.mxu0 %v19299_v21  ;;  %v19349_v21 = vld [vmem:[%s24523_s1 + $0x17c0] sm:$0xff]  }
 0x2d1   :  { %17580 = vmatpush3.bf16.msra.mxu1 %v19298_v20  ;;  %v19348_v20 = vld [vmem:[%s24523_s1 + $0x1700] sm:$0xff]  }
 0x2d2   :  { %17581 = vmatprep.subr.bf16.mxu1 %v19301_v23 }
 0x2d3   :  { %17560 = vmatpush3.bf16.msra.mxu0 %v19300_v22  ;;  %v67_v22 = vld [vmem:[%s24524_s0 + $0x170] sm:$0xff] }
 0x2d4   :  { %17561 = vmatprep.subr.bf16.mxu0 %v19303_v25  ;;  %v15146_v25 = vcombine.high %v67_v22, %v67_v22 }
 0x2d5   :  { %17582 = vmatpush3.bf16.msra.mxu1 %v19302_v24  ;;  %v15145_v24 = vcombine.low %v67_v22, %v67_v22 }
 0x2d6   :  { %17583 = vmatprep.subr.bf16.mxu1 %v19305_v27  ;;  %v19353_v27 = vld [vmem:[%s24523_s1 + $0x1878] sm:$0xff]  }
 0x2d7   :  { %17562 = vmatpush3.bf16.msra.mxu0 %v19304_v26  ;;  %v19352_v26 = vld [vmem:[%s24523_s1 + $0x1780] sm:$0xff]  }
 0x2d8   :  { %17563 = vmatprep.subr.bf16.mxu0 %v19307_v29  ;;  %v68_v29 = vld [vmem:[%s24524_s0 + $0x178] sm:$0xff] }
 0x2d9   :  { %17584 = vmatpush3.bf16.msra.mxu1 %v19306_v28 }
 0x2da   :  { %17585 = vmatprep.subr.bf16.mxu1 %v19309_v31 }
 0x2db   :  { %17564 = vmatpush3.bf16.msra.mxu0 %v19308_v30 }
 0x2dc   :  { %17565 = vmatprep.subr.bf16.mxu0 %v19311_v33  ;;  %v15148_v33 = vcombine.high %v68_v29, %v68_v29 }
 0x2dd   :  { %17586 = vmatpush3.bf16.msra.mxu1 %v19310_v32  ;;  %v15147_v32 = vcombine.low %v68_v29, %v68_v29 }
 0x2de   :  { %17587 = vmatprep.subr.bf16.mxu1 %v19313_v35 }
 0x2df   :  { %17566 = vmatpush3.bf16.msra.mxu0 %v19312_v34  ;;  %v19356_v34 = vld [vmem:[%s24523_s1 + $0x1838] sm:$0xff]  }
 0x2e0   :  { %17595 = vmatprep.subr.bf16.mxu0 %v19317_v41 }
 0x2e1   :  { %17588 = vmatpush3.bf16.msra.mxu1 %v19316_v40 }
 0x2e2   :  { %v17303_v37 = vpop.f32.mrf.mxu0  ;;  %13314 = vmatmul.mubr.bf16.vlgmr.msra.gmra.mxu0 %v15141_v38  ;;  %17617 = vmatprep.subr.bf16.mxu1 %v19321_v49  ;;  %v19363_v49 = vld [vmem:[%s24523_s1 + $0x1868] sm:$0xff]  }
 0x2e3   :  { %17596 = vmatpush3.bf16.msra.mxu0 %v19320_v47  ;;  %13393 = vmatprep.mubr.bf16.mxu0 %v15146_v25  ;;  %v19394_v25 = vld [vmem:[%s24523_s1 + $0x19b8] sm:$0xff]  }
 0x2e4   :  { %v17304_v43 = vpop.f32.mrf.mxu0  ;;  %v17325_v44 = vpop.f32.mrf.mxu1  ;;  %13354 = vmatmul.mubr.bf16.vlgmr.msra.gmra.mxu1 %v15143_v45  ;;  %17597 = vmatprep.subr.bf16.mxu0 %v19323_v55  ;;  %v19360_v45 = vld [vmem:[%s24523_s1 + $0x1830] sm:$0xff]   ;;  %v19369_v55 = vld [vmem:[%s24523_s1 + $0x18e0] sm:$0xff]  }
 0x2e5   :  { %v17305_v48 = vadd.f32 %v17304_v43, %v17303_v37  ;;  %17618 = vmatpush3.bf16.msra.mxu1 %v19322_v53  ;;  %v19357_v37 = vld [vmem:[%s24523_s1 + $0x18f8] sm:$0xff]   ;;  %13433 = vmatprep.mubr.bf16.mxu1 %v15148_v33  ;;  %v19367_v53 = vld [vmem:[%s24523_s1 + $0x1860] sm:$0xff]  }
 0x2e6   :  { %v17306_v50 = vpop.f32.mrf.mxu0  ;;  %v17326_v51 = vpop.f32.mrf.mxu1  ;;  %17619 = vmatprep.subr.bf16.mxu1 %v19325_v60  ;;  %v19374_v60 = vld [vmem:[%s24523_s1 + $0x1898] sm:$0xff]  }
 0x2e7   :  { %v12836_v52 = vadd.f32 %v17305_v48, %v22363_v8  ;;  %v17327_v54 = vadd.f32 %v17326_v51, %v17325_v44  ;;  %17598 = vmatpush3.bf16.msra.mxu0 %v19324_v59  ;;  %v19336_v8 = vld [vmem:[%s24523_s1 + $0x1718] sm:$0xff]   ;;  %v19362_v48 = vld [vmem:[%s24523_s1 + $0x18b0] sm:$0xff]   ;;  %v19364_v50 = vld [vmem:[%s24523_s1 + $0x1828] sm:$0xff]  }
 0x2e8   :  { %v17307_v56 = vpop.f32.mrf.mxu0  ;;  %v17328_v57 = vpop.f32.mrf.mxu1  ;;  %17599 = vmatprep.subr.bf16.mxu0 %v19327_v63  ;;  %v19365_v51 = vld [vmem:[%s24523_s1 + $0x18e8] sm:$0xff]   ;;  %v19373_v59 = vld [vmem:[%s24523_s1 + $0x18d8] sm:$0xff]   ;;  %v19377_v63 = vld [vmem:[%s24523_s1 + $0x18d0] sm:$0xff]  }
 0x2e9   :  { %v22468_v58 = vadd.f32 %v17327_v54, %v12836_v52  ;;  %17620 = vmatpush3.bf16.msra.mxu1 %v19326_v62  ;;  %v19366_v52 = vld [vmem:[%s24523_s1 + $0x18a8] sm:$0xff]   ;;  %v19368_v54 = vld [vmem:[%s24523_s1 + $0x1820] sm:$0xff]   ;;  %v19371_v57 = vld [vmem:[%s24523_s1 + $0x1858] sm:$0xff]  }
 0x2ea   :  { %v17329_v61 = vpop.f32.mrf.mxu1  ;;  %17621 = vmatprep.subr.bf16.mxu1 %v19329_v1  ;;  %v19370_v56 = vld [vmem:[%s24523_s1 + $0x18a0] sm:$0xff]   ;;  %v19376_v62 = vld [vmem:[%s24523_s1 + $0x1810] sm:$0xff]   ;;  %v19379_v1 = vld [vmem:[%s24523_s1 + $0x1848] sm:$0xff]  }
 0x2eb   :  { %17600 = vmatpush3.bf16.msra.mxu0 %v19328_v0  ;;  %v19375_v61 = vld [vmem:[%s24523_s1 + $0x1850] sm:$0xff]  }
 0x2ec   :  { %17601 = vmatprep.subr.bf16.mxu0 %v19331_v3  ;;  %v19378_v0 = vld [vmem:[%s24523_s1 + $0x1890] sm:$0xff]   ;;  %v19381_v3 = vld [vmem:[%s24523_s1 + $0x18c8] sm:$0xff]  }
 0x2ed   :  { %17622 = vmatpush3.bf16.msra.mxu1 %v19330_v2  ;;  %v19380_v2 = vld [vmem:[%s24523_s1 + $0x1808] sm:$0xff]  }
 0x2ee   :  { %17623 = vmatprep.subr.bf16.mxu1 %v19333_v5  ;;  %v19383_v5 = vld [vmem:[%s24523_s1 + $0x1840] sm:$0xff]  }
 0x2ef   :  { %17602 = vmatpush3.bf16.msra.mxu0 %v19332_v4  ;;  %v19382_v4 = vld [vmem:[%s24523_s1 + $0x1888] sm:$0xff]  }
 0x2f0   :  { %17603 = vmatprep.subr.bf16.mxu0 %v19335_v7  ;;  %v19385_v7 = vld [vmem:[%s24523_s1 + $0x18c0] sm:$0xff]  }
 0x2f1   :  { %17624 = vmatpush3.bf16.msra.mxu1 %v19334_v6  ;;  %v19384_v6 = vld [vmem:[%s24523_s1 + $0x1800] sm:$0xff]  }
 0x2f2   :  { %17625 = vmatprep.subr.bf16.mxu1 %v19337_v9 }
 0x2f3   :  { %17604 = vmatpush3.bf16.msra.mxu0 %v19336_v8  ;;  %v69_v8 = vld [vmem:[%s24524_s0 + $0x180] sm:$0xff] }
 0x2f4   :  { %17605 = vmatprep.subr.bf16.mxu0 %v19339_v11  ;;  %v15150_v11 = vcombine.high %v69_v8, %v69_v8 }
 0x2f5   :  { %17626 = vmatpush3.bf16.msra.mxu1 %v19338_v10  ;;  %v15149_v10 = vcombine.low %v69_v8, %v69_v8 }
 0x2f6   :  { %17627 = vmatprep.subr.bf16.mxu1 %v19341_v13  ;;  %v19389_v13 = vld [vmem:[%s24523_s1 + $0x1978] sm:$0xff]  }
 0x2f7   :  { %17606 = vmatpush3.bf16.msra.mxu0 %v19340_v12  ;;  %v19388_v12 = vld [vmem:[%s24523_s1 + $0x1880] sm:$0xff]  }
 0x2f8   :  { %17607 = vmatprep.subr.bf16.mxu0 %v19343_v15 }
 0x2f9   :  { %17628 = vmatpush3.bf16.msra.mxu1 %v19342_v14  ;;  %v70_v14 = vld [vmem:[%s24524_s0 + $0x188] sm:$0xff] }
 0x2fa   :  { %17629 = vmatprep.subr.bf16.mxu1 %v19345_v17  ;;  %v15151_v17 = vcombine.low %v70_v14, %v70_v14 }
 0x2fb   :  { %17608 = vmatpush3.bf16.msra.mxu0 %v19344_v16 }
 0x2fc   :  { %17609 = vmatprep.subr.bf16.mxu0 %v19347_v19  ;;  %v19392_v19 = vld [vmem:[%s24523_s1 + $0x1938] sm:$0xff]  }
 0x2fd   :  { %17630 = vmatpush3.bf16.msra.mxu1 %v19346_v18  ;;  %v15152_v18 = vcombine.high %v70_v14, %v70_v14 }
 0x2fe   :  { %17631 = vmatprep.subr.bf16.mxu1 %v19349_v21  ;;  %v19393_v21 = vld [vmem:[%s24523_s1 + $0x19f8] sm:$0xff]  }
 0x2ff   :  { %17610 = vmatpush3.bf16.msra.mxu0 %v19348_v20 }
 0x300   :  { %17639 = vmatprep.subr.bf16.mxu0 %v19353_v27  ;;  %v19395_v27 = vld [vmem:[%s24523_s1 + $0x1970] sm:$0xff]  }
 0x301   :  { %17632 = vmatpush3.bf16.msra.mxu1 %v19352_v26 }
 0x302   :  { %v17347_v23 = vpop.f32.mrf.mxu0  ;;  %13394 = vmatmul.mubr.bf16.vlgmr.msra.gmra.mxu0 %v15145_v24  ;;  %17661 = vmatprep.subr.bf16.mxu1 %v19357_v37  ;;  %v19401_v37 = vld [vmem:[%s24523_s1 + $0x19e8] sm:$0xff]  }
 0x303   :  { %17640 = vmatpush3.bf16.msra.mxu0 %v19356_v34  ;;  %13473 = vmatprep.mubr.bf16.mxu0 %v15150_v11  ;;  %v19398_v34 = vld [vmem:[%s24523_s1 + $0x19b0] sm:$0xff]   ;;  %v19430_v11 = vld [vmem:[%s24523_s1 + $0x1ab8] sm:$0xff]  }
 0x304   :  { %v17348_v28 = vpop.f32.mrf.mxu0  ;;  %v17369_v31 = vpop.f32.mrf.mxu1  ;;  %13434 = vmatmul.mubr.bf16.vlgmr.msra.gmra.mxu1 %v15147_v32  ;;  %17641 = vmatprep.subr.bf16.mxu0 %v19359_v42  ;;  %v19397_v32 = vld [vmem:[%s24523_s1 + $0x19f0] sm:$0xff]   ;;  %v19406_v42 = vld [vmem:[%s24523_s1 + $0x19a0] sm:$0xff]  }
 0x305   :  { %v17349_v30 = vadd.f32 %v17348_v28, %v17347_v23  ;;  %17662 = vmatpush3.bf16.msra.mxu1 %v19358_v39  ;;  %13513 = vmatprep.mubr.bf16.mxu1 %v15152_v18  ;;  %v19403_v39 = vld [vmem:[%s24523_s1 + $0x1960] sm:$0xff]   ;;  %v19433_v18 = vld [vmem:[%s24523_s1 + $0x1af0] sm:$0xff]  }
 0x306   :  { %v17350_v35 = vpop.f32.mrf.mxu0  ;;  %v17370_v38 = vpop.f32.mrf.mxu1  ;;  %17663 = vmatprep.subr.bf16.mxu1 %v19361_v46  ;;  %v19410_v46 = vld [vmem:[%s24523_s1 + $0x1998] sm:$0xff]  }
 0x307   :  { %v12916_v36 = vadd.f32 %v17349_v30, %v22468_v58  ;;  %v17371_v40 = vadd.f32 %v17370_v38, %v17369_v31  ;;  %17642 = vmatpush3.bf16.msra.mxu0 %v19360_v45  ;;  %v19372_v58 = vld [vmem:[%s24523_s1 + $0x1818] sm:$0xff]   ;;  %v19396_v31 = vld [vmem:[%s24523_s1 + $0x1930] sm:$0xff]   ;;  %v19399_v35 = vld [vmem:[%s24523_s1 + $0x1968] sm:$0xff]  }
 0x308   :  { %v17351_v41 = vpop.f32.mrf.mxu0  ;;  %v17372_v43 = vpop.f32.mrf.mxu1  ;;  %17643 = vmatprep.subr.bf16.mxu0 %v19363_v49  ;;  %v19402_v38 = vld [vmem:[%s24523_s1 + $0x19a8] sm:$0xff]   ;;  %v19409_v45 = vld [vmem:[%s24523_s1 + $0x19d8] sm:$0xff]   ;;  %v19413_v49 = vld [vmem:[%s24523_s1 + $0x19d0] sm:$0xff]  }
 0x309   :  { %v22573_v44 = vadd.f32 %v17371_v40, %v12916_v36  ;;  %17664 = vmatpush3.bf16.msra.mxu1 %v19362_v48  ;;  %v19400_v36 = vld [vmem:[%s24523_s1 + $0x1928] sm:$0xff]   ;;  %v19404_v40 = vld [vmem:[%s24523_s1 + $0x1920] sm:$0xff]   ;;  %v19407_v43 = vld [vmem:[%s24523_s1 + $0x1958] sm:$0xff]  }
 0x30a   :  { %v17373_v47 = vpop.f32.mrf.mxu1  ;;  %17665 = vmatprep.subr.bf16.mxu1 %v19365_v51  ;;  %v19405_v41 = vld [vmem:[%s24523_s1 + $0x19e0] sm:$0xff]   ;;  %v19412_v48 = vld [vmem:[%s24523_s1 + $0x1910] sm:$0xff]   ;;  %v19415_v51 = vld [vmem:[%s24523_s1 + $0x1948] sm:$0xff]  }
 0x30b   :  { %17644 = vmatpush3.bf16.msra.mxu0 %v19364_v50  ;;  %v19411_v47 = vld [vmem:[%s24523_s1 + $0x1950] sm:$0xff]  }
 0x30c   :  { %17645 = vmatprep.subr.bf16.mxu0 %v19367_v53  ;;  %v19414_v50 = vld [vmem:[%s24523_s1 + $0x1990] sm:$0xff]   ;;  %v19417_v53 = vld [vmem:[%s24523_s1 + $0x19c8] sm:$0xff]  }
 0x30d   :  { %17666 = vmatpush3.bf16.msra.mxu1 %v19366_v52  ;;  %v19416_v52 = vld [vmem:[%s24523_s1 + $0x1908] sm:$0xff]  }
 0x30e   :  { %17667 = vmatprep.subr.bf16.mxu1 %v19369_v55  ;;  %v19419_v55 = vld [vmem:[%s24523_s1 + $0x1940] sm:$0xff]  }
 0x30f   :  { %17646 = vmatpush3.bf16.msra.mxu0 %v19368_v54  ;;  %v19418_v54 = vld [vmem:[%s24523_s1 + $0x1988] sm:$0xff]  }
 0x310   :  { %17647 = vmatprep.subr.bf16.mxu0 %v19371_v57  ;;  %v19421_v57 = vld [vmem:[%s24523_s1 + $0x19c0] sm:$0xff]  }
 0x311   :  { %17668 = vmatpush3.bf16.msra.mxu1 %v19370_v56  ;;  %v19420_v56 = vld [vmem:[%s24523_s1 + $0x1900] sm:$0xff]  }
 0x312   :  { %17669 = vmatprep.subr.bf16.mxu1 %v19373_v59 }
 0x313   :  { %17648 = vmatpush3.bf16.msra.mxu0 %v19372_v58  ;;  %v71_v58 = vld [vmem:[%s24524_s0 + $0x190] sm:$0xff] }
 0x314   :  { %17649 = vmatprep.subr.bf16.mxu0 %v19375_v61  ;;  %v15154_v61 = vcombine.high %v71_v58, %v71_v58 }
 0x315   :  { %17670 = vmatpush3.bf16.msra.mxu1 %v19374_v60  ;;  %v15153_v60 = vcombine.low %v71_v58, %v71_v58 }
 0x316   :  { %17671 = vmatprep.subr.bf16.mxu1 %v19377_v63  ;;  %v19425_v63 = vld [vmem:[%s24523_s1 + $0x1a78] sm:$0xff]  }
 0x317   :  { %17650 = vmatpush3.bf16.msra.mxu0 %v19376_v62  ;;  %v19424_v62 = vld [vmem:[%s24523_s1 + $0x1980] sm:$0xff]  }
 0x318   :  { %17651 = vmatprep.subr.bf16.mxu0 %v19379_v1 }
 0x319   :  { %17672 = vmatpush3.bf16.msra.mxu1 %v19378_v0  ;;  %v72_v0 = vld [vmem:[%s24524_s0 + $0x198] sm:$0xff] }
 0x31a   :  { %17673 = vmatprep.subr.bf16.mxu1 %v19381_v3  ;;  %v15155_v3 = vcombine.low %v72_v0, %v72_v0 }
 0x31b   :  { %17652 = vmatpush3.bf16.msra.mxu0 %v19380_v2 }
 0x31c   :  { %17653 = vmatprep.subr.bf16.mxu0 %v19383_v5  ;;  %v19428_v5 = vld [vmem:[%s24523_s1 + $0x1a38] sm:$0xff]  }
 0x31d   :  { %17674 = vmatpush3.bf16.msra.mxu1 %v19382_v4  ;;  %v15156_v4 = vcombine.high %v72_v0, %v72_v0  ;;  %v19467_v0 = vld [vmem:[%s24523_s1 + $0x1b70] sm:$0xff]  }
 0x31e   :  { %17675 = vmatprep.subr.bf16.mxu1 %v19385_v7  ;;  %v19429_v7 = vld [vmem:[%s24523_s1 + $0x1af8] sm:$0xff]  }
 0x31f   :  { %17654 = vmatpush3.bf16.msra.mxu0 %v19384_v6 }
 0x320   :  { %17683 = vmatprep.subr.bf16.mxu0 %v19389_v13  ;;  %v19431_v13 = vld [vmem:[%s24523_s1 + $0x1a70] sm:$0xff]  }
 0x321   :  { %17676 = vmatpush3.bf16.msra.mxu1 %v19388_v12 }
 0x322   :  { %v17391_v9 = vpop.f32.mrf.mxu0  ;;  %13474 = vmatmul.mubr.bf16.vlgmr.msra.gmra.mxu0 %v15149_v10  ;;  %17705 = vmatprep.subr.bf16.mxu1 %v19393_v21  ;;  %v19435_v21 = vld [vmem:[%s24523_s1 + $0x1a68] sm:$0xff]  }
 0x323   :  { %17684 = vmatpush3.bf16.msra.mxu0 %v19392_v19  ;;  %13553 = vmatprep.mubr.bf16.mxu0 %v15154_v61  ;;  %v19466_v61 = vld [vmem:[%s24523_s1 + $0x1bb8] sm:$0xff]  }
 0x324   :  { %v17392_v15 = vpop.f32.mrf.mxu0  ;;  %v17413_v16 = vpop.f32.mrf.mxu1  ;;  %13514 = vmatmul.mubr.bf16.vlgmr.msra.gmra.mxu1 %v15151_v17  ;;  %17685 = vmatprep.subr.bf16.mxu0 %v19395_v27  ;;  %v19432_v17 = vld [vmem:[%s24523_s1 + $0x1a30] sm:$0xff]   ;;  %v19441_v27 = vld [vmem:[%s24523_s1 + $0x1ae0] sm:$0xff]  }
 0x325   :  { %v17393_v20 = vadd.f32 %v17392_v15, %v17391_v9  ;;  %17706 = vmatpush3.bf16.msra.mxu1 %v19394_v25  ;;  %13593 = vmatprep.mubr.bf16.mxu1 %v15156_v4  ;;  %v19439_v25 = vld [vmem:[%s24523_s1 + $0x1a60] sm:$0xff]   ;;  %v19469_v4 = vld [vmem:[%s24523_s1 + $0x1bf0] sm:$0xff]  }
 0x326   :  { %v17394_v22 = vpop.f32.mrf.mxu0  ;;  %v17414_v23 = vpop.f32.mrf.mxu1  ;;  %17707 = vmatprep.subr.bf16.mxu1 %v19397_v32  ;;  %v19446_v32 = vld [vmem:[%s24523_s1 + $0x1a98] sm:$0xff]  }
 0x327   :  { %v12996_v24 = vadd.f32 %v17393_v20, %v22573_v44  ;;  %v17415_v26 = vadd.f32 %v17414_v23, %v17413_v16  ;;  %17686 = vmatpush3.bf16.msra.mxu0 %v19396_v31  ;;  %v19408_v44 = vld [vmem:[%s24523_s1 + $0x1918] sm:$0xff]   ;;  %v19434_v20 = vld [vmem:[%s24523_s1 + $0x1ab0] sm:$0xff]   ;;  %v19436_v22 = vld [vmem:[%s24523_s1 + $0x1a28] sm:$0xff]  }
 0x328   :  { %v17395_v28 = vpop.f32.mrf.mxu0  ;;  %v17416_v29 = vpop.f32.mrf.mxu1  ;;  %17687 = vmatprep.subr.bf16.mxu0 %v19399_v35  ;;  %v19437_v23 = vld [vmem:[%s24523_s1 + $0x1ae8] sm:$0xff]   ;;  %v19445_v31 = vld [vmem:[%s24523_s1 + $0x1ad8] sm:$0xff]   ;;  %v19449_v35 = vld [vmem:[%s24523_s1 + $0x1ad0] sm:$0xff]  }
 0x329   :  { %v22678_v30 = vadd.f32 %v17415_v26, %v12996_v24  ;;  %17708 = vmatpush3.bf16.msra.mxu1 %v19398_v34  ;;  %v19438_v24 = vld [vmem:[%s24523_s1 + $0x1aa8] sm:$0xff]   ;;  %v19440_v26 = vld [vmem:[%s24523_s1 + $0x1a20] sm:$0xff]   ;;  %v19443_v29 = vld [vmem:[%s24523_s1 + $0x1a58] sm:$0xff]  }
 0x32a   :  { %v17417_v33 = vpop.f32.mrf.mxu1  ;;  %17709 = vmatprep.subr.bf16.mxu1 %v19401_v37  ;;  %v19442_v28 = vld [vmem:[%s24523_s1 + $0x1aa0] sm:$0xff]   ;;  %v19448_v34 = vld [vmem:[%s24523_s1 + $0x1a10] sm:$0xff]   ;;  %v19451_v37 = vld [vmem:[%s24523_s1 + $0x1a48] sm:$0xff]  }
 0x32b   :  { %17688 = vmatpush3.bf16.msra.mxu0 %v19400_v36  ;;  %v19447_v33 = vld [vmem:[%s24523_s1 + $0x1a50] sm:$0xff]  }
 0x32c   :  { %17689 = vmatprep.subr.bf16.mxu0 %v19403_v39  ;;  %v19450_v36 = vld [vmem:[%s24523_s1 + $0x1a90] sm:$0xff]   ;;  %v19453_v39 = vld [vmem:[%s24523_s1 + $0x1ac8] sm:$0xff]  }
 0x32d   :  { %17710 = vmatpush3.bf16.msra.mxu1 %v19402_v38  ;;  %v19452_v38 = vld [vmem:[%s24523_s1 + $0x1a08] sm:$0xff]  }
 0x32e   :  { %17711 = vmatprep.subr.bf16.mxu1 %v19405_v41  ;;  %v19455_v41 = vld [vmem:[%s24523_s1 + $0x1a40] sm:$0xff]  }
 0x32f   :  { %17690 = vmatpush3.bf16.msra.mxu0 %v19404_v40  ;;  %v19454_v40 = vld [vmem:[%s24523_s1 + $0x1a88] sm:$0xff]  }
 0x330   :  { %17691 = vmatprep.subr.bf16.mxu0 %v19407_v43  ;;  %v19457_v43 = vld [vmem:[%s24523_s1 + $0x1ac0] sm:$0xff]  }
 0x331   :  { %17712 = vmatpush3.bf16.msra.mxu1 %v19406_v42  ;;  %v19456_v42 = vld [vmem:[%s24523_s1 + $0x1a00] sm:$0xff]  }
 0x332   :  { %17713 = vmatprep.subr.bf16.mxu1 %v19409_v45 }
 0x333   :  { %17692 = vmatpush3.bf16.msra.mxu0 %v19408_v44  ;;  %v73_v44 = vld [vmem:[%s24524_s0 + $0x1a0] sm:$0xff] }
 0x334   :  { %17693 = vmatprep.subr.bf16.mxu0 %v19411_v47  ;;  %v15158_v47 = vcombine.high %v73_v44, %v73_v44 }
 0x335   :  { %17714 = vmatpush3.bf16.msra.mxu1 %v19410_v46  ;;  %v15157_v46 = vcombine.low %v73_v44, %v73_v44 }
 0x336   :  { %17715 = vmatprep.subr.bf16.mxu1 %v19413_v49  ;;  %v19461_v49 = vld [vmem:[%s24523_s1 + $0x1b78] sm:$0xff]  }
 0x337   :  { %17694 = vmatpush3.bf16.msra.mxu0 %v19412_v48  ;;  %v19460_v48 = vld [vmem:[%s24523_s1 + $0x1a80] sm:$0xff]  }
 0x338   :  { %17695 = vmatprep.subr.bf16.mxu0 %v19415_v51  ;;  %v74_v51 = vld [vmem:[%s24524_s0 + $0x1a8] sm:$0xff] }
 0x339   :  { %17716 = vmatpush3.bf16.msra.mxu1 %v19414_v50 }
 0x33a   :  { %17717 = vmatprep.subr.bf16.mxu1 %v19417_v53 }
 0x33b   :  { %17696 = vmatpush3.bf16.msra.mxu0 %v19416_v52 }
 0x33c   :  { %17697 = vmatprep.subr.bf16.mxu0 %v19419_v55  ;;  %v15160_v55 = vcombine.high %v74_v51, %v74_v51 }
 0x33d   :  { %17718 = vmatpush3.bf16.msra.mxu1 %v19418_v54  ;;  %v15159_v54 = vcombine.low %v74_v51, %v74_v51 }
 0x33e   :  { %17719 = vmatprep.subr.bf16.mxu1 %v19421_v57 }
 0x33f   :  { %17698 = vmatpush3.bf16.msra.mxu0 %v19420_v56  ;;  %v19464_v56 = vld [vmem:[%s24523_s1 + $0x1b38] sm:$0xff]  }
 0x340   :  { %17727 = vmatprep.subr.bf16.mxu0 %v19425_v63 }
 0x341   :  { %17720 = vmatpush3.bf16.msra.mxu1 %v19424_v62 }
 0x342   :  { %v17435_v59 = vpop.f32.mrf.mxu0  ;;  %13554 = vmatmul.mubr.bf16.vlgmr.msra.gmra.mxu0 %v15153_v60  ;;  %17749 = vmatprep.subr.bf16.mxu1 %v19429_v7  ;;  %v19471_v7 = vld [vmem:[%s24523_s1 + $0x1b68] sm:$0xff]  }
 0x343   :  { %17728 = vmatpush3.bf16.msra.mxu0 %v19428_v5  ;;  %13633 = vmatprep.mubr.bf16.mxu0 %v15158_v47  ;;  %v19502_v47 = vld [vmem:[%s24523_s1 + $0x1cb8] sm:$0xff]  }
 0x344   :  { %v17436_v1 = vpop.f32.mrf.mxu0  ;;  %v17457_v2 = vpop.f32.mrf.mxu1  ;;  %13594 = vmatmul.mubr.bf16.vlgmr.msra.gmra.mxu1 %v15155_v3  ;;  %17729 = vmatprep.subr.bf16.mxu0 %v19431_v13  ;;  %v19468_v3 = vld [vmem:[%s24523_s1 + $0x1b30] sm:$0xff]   ;;  %v19477_v13 = vld [vmem:[%s24523_s1 + $0x1be0] sm:$0xff]  }
 0x345   :  { %v17437_v6 = vadd.f32 %v17436_v1, %v17435_v59  ;;  %17750 = vmatpush3.bf16.msra.mxu1 %v19430_v11  ;;  %v19465_v59 = vld [vmem:[%s24523_s1 + $0x1bf8] sm:$0xff]   ;;  %13673 = vmatprep.mubr.bf16.mxu1 %v15160_v55  ;;  %v19475_v11 = vld [vmem:[%s24523_s1 + $0x1b60] sm:$0xff]  }
 0x346   :  { %v17438_v8 = vpop.f32.mrf.mxu0  ;;  %v17458_v9 = vpop.f32.mrf.mxu1  ;;  %17751 = vmatprep.subr.bf16.mxu1 %v19433_v18  ;;  %v19482_v18 = vld [vmem:[%s24523_s1 + $0x1b98] sm:$0xff]  }
 0x347   :  { %v13076_v10 = vadd.f32 %v17437_v6, %v22678_v30  ;;  %v17459_v12 = vadd.f32 %v17458_v9, %v17457_v2  ;;  %17730 = vmatpush3.bf16.msra.mxu0 %v19432_v17  ;;  %v19444_v30 = vld [vmem:[%s24523_s1 + $0x1a18] sm:$0xff]   ;;  %v19470_v6 = vld [vmem:[%s24523_s1 + $0x1bb0] sm:$0xff]   ;;  %v19472_v8 = vld [vmem:[%s24523_s1 + $0x1b28] sm:$0xff]  }
 0x348   :  { %v17439_v14 = vpop.f32.mrf.mxu0  ;;  %v17460_v15 = vpop.f32.mrf.mxu1  ;;  %17731 = vmatprep.subr.bf16.mxu0 %v19435_v21  ;;  %v19473_v9 = vld [vmem:[%s24523_s1 + $0x1be8] sm:$0xff]   ;;  %v19481_v17 = vld [vmem:[%s24523_s1 + $0x1bd8] sm:$0xff]   ;;  %v19485_v21 = vld [vmem:[%s24523_s1 + $0x1bd0] sm:$0xff]  }
 0x349   :  { %v22783_v16 = vadd.f32 %v17459_v12, %v13076_v10  ;;  %17752 = vmatpush3.bf16.msra.mxu1 %v19434_v20  ;;  %v19474_v10 = vld [vmem:[%s24523_s1 + $0x1ba8] sm:$0xff]   ;;  %v19476_v12 = vld [vmem:[%s24523_s1 + $0x1b20] sm:$0xff]   ;;  %v19479_v15 = vld [vmem:[%s24523_s1 + $0x1b58] sm:$0xff]  }
 0x34a   :  { %v17461_v19 = vpop.f32.mrf.mxu1  ;;  %17753 = vmatprep.subr.bf16.mxu1 %v19437_v23  ;;  %v19478_v14 = vld [vmem:[%s24523_s1 + $0x1ba0] sm:$0xff]   ;;  %v19484_v20 = vld [vmem:[%s24523_s1 + $0x1b10] sm:$0xff]   ;;  %v19487_v23 = vld [vmem:[%s24523_s1 + $0x1b48] sm:$0xff]  }
 0x34b   :  { %17732 = vmatpush3.bf16.msra.mxu0 %v19436_v22  ;;  %v19483_v19 = vld [vmem:[%s24523_s1 + $0x1b50] sm:$0xff]  }
 0x34c   :  { %17733 = vmatprep.subr.bf16.mxu0 %v19439_v25  ;;  %v19486_v22 = vld [vmem:[%s24523_s1 + $0x1b90] sm:$0xff]   ;;  %v19489_v25 = vld [vmem:[%s24523_s1 + $0x1bc8] sm:$0xff]  }
 0x34d   :  { %17754 = vmatpush3.bf16.msra.mxu1 %v19438_v24  ;;  %v19488_v24 = vld [vmem:[%s24523_s1 + $0x1b08] sm:$0xff]  }
 0x34e   :  { %17755 = vmatprep.subr.bf16.mxu1 %v19441_v27  ;;  %v19491_v27 = vld [vmem:[%s24523_s1 + $0x1b40] sm:$0xff]  }
 0x34f   :  { %17734 = vmatpush3.bf16.msra.mxu0 %v19440_v26  ;;  %v19490_v26 = vld [vmem:[%s24523_s1 + $0x1b88] sm:$0xff]  }
 0x350   :  { %17735 = vmatprep.subr.bf16.mxu0 %v19443_v29  ;;  %v19493_v29 = vld [vmem:[%s24523_s1 + $0x1bc0] sm:$0xff]  }
 0x351   :  { %17756 = vmatpush3.bf16.msra.mxu1 %v19442_v28  ;;  %v19492_v28 = vld [vmem:[%s24523_s1 + $0x1b00] sm:$0xff]  }
 0x352   :  { %17757 = vmatprep.subr.bf16.mxu1 %v19445_v31 }
 0x353   :  { %17736 = vmatpush3.bf16.msra.mxu0 %v19444_v30  ;;  %v75_v30 = vld [vmem:[%s24524_s0 + $0x1b0] sm:$0xff] }
 0x354   :  { %17737 = vmatprep.subr.bf16.mxu0 %v19447_v33  ;;  %v15162_v33 = vcombine.high %v75_v30, %v75_v30 }
 0x355   :  { %17758 = vmatpush3.bf16.msra.mxu1 %v19446_v32  ;;  %v15161_v32 = vcombine.low %v75_v30, %v75_v30 }
 0x356   :  { %17759 = vmatprep.subr.bf16.mxu1 %v19449_v35  ;;  %v19497_v35 = vld [vmem:[%s24523_s1 + $0x1c78] sm:$0xff]  }
 0x357   :  { %17738 = vmatpush3.bf16.msra.mxu0 %v19448_v34  ;;  %v19496_v34 = vld [vmem:[%s24523_s1 + $0x1b80] sm:$0xff]  }
 0x358   :  { %17739 = vmatprep.subr.bf16.mxu0 %v19451_v37 }
 0x359   :  { %17760 = vmatpush3.bf16.msra.mxu1 %v19450_v36  ;;  %v76_v36 = vld [vmem:[%s24524_s0 + $0x1b8] sm:$0xff] }
 0x35a   :  { %17761 = vmatprep.subr.bf16.mxu1 %v19453_v39  ;;  %v15163_v39 = vcombine.low %v76_v36, %v76_v36 }
 0x35b   :  { %17740 = vmatpush3.bf16.msra.mxu0 %v19452_v38 }
 0x35c   :  { %17741 = vmatprep.subr.bf16.mxu0 %v19455_v41  ;;  %v19500_v41 = vld [vmem:[%s24523_s1 + $0x1c38] sm:$0xff]  }
 0x35d   :  { %17762 = vmatpush3.bf16.msra.mxu1 %v19454_v40  ;;  %v15164_v40 = vcombine.high %v76_v36, %v76_v36 }
 0x35e   :  { %17763 = vmatprep.subr.bf16.mxu1 %v19457_v43  ;;  %v19501_v43 = vld [vmem:[%s24523_s1 + $0x1cf8] sm:$0xff]  }
 0x35f   :  { %17742 = vmatpush3.bf16.msra.mxu0 %v19456_v42 }
 0x360   :  { %17771 = vmatprep.subr.bf16.mxu0 %v19461_v49  ;;  %v19503_v49 = vld [vmem:[%s24523_s1 + $0x1c70] sm:$0xff]  }
 0x361   :  { %17764 = vmatpush3.bf16.msra.mxu1 %v19460_v48 }
 0x362   :  { %v17479_v45 = vpop.f32.mrf.mxu0  ;;  %13634 = vmatmul.mubr.bf16.vlgmr.msra.gmra.mxu0 %v15157_v46  ;;  %17793 = vmatprep.subr.bf16.mxu1 %v19465_v59  ;;  %v19509_v59 = vld [vmem:[%s24523_s1 + $0x1ce8] sm:$0xff]  }
 0x363   :  { %17772 = vmatpush3.bf16.msra.mxu0 %v19464_v56  ;;  %13713 = vmatprep.mubr.bf16.mxu0 %v15162_v33  ;;  %v19506_v56 = vld [vmem:[%s24523_s1 + $0x1cb0] sm:$0xff]   ;;  %v19538_v33 = vld [vmem:[%s24523_s1 + $0x1db8] sm:$0xff]  }
 0x364   :  { %v17480_v50 = vpop.f32.mrf.mxu0  ;;  %v17501_v53 = vpop.f32.mrf.mxu1  ;;  %13674 = vmatmul.mubr.bf16.vlgmr.msra.gmra.mxu1 %v15159_v54  ;;  %17773 = vmatprep.subr.bf16.mxu0 %v19467_v0  ;;  %v19505_v54 = vld [vmem:[%s24523_s1 + $0x1cf0] sm:$0xff]   ;;  %v19514_v0 = vld [vmem:[%s24523_s1 + $0x1ca0] sm:$0xff]  }
 0x365   :  { %v17481_v52 = vadd.f32 %v17480_v50, %v17479_v45  ;;  %17794 = vmatpush3.bf16.msra.mxu1 %v19466_v61  ;;  %13753 = vmatprep.mubr.bf16.mxu1 %v15164_v40  ;;  %v19511_v61 = vld [vmem:[%s24523_s1 + $0x1c60] sm:$0xff]   ;;  %v19541_v40 = vld [vmem:[%s24523_s1 + $0x1df0] sm:$0xff]  }
 0x366   :  { %v17482_v57 = vpop.f32.mrf.mxu0  ;;  %v17502_v60 = vpop.f32.mrf.mxu1  ;;  %17795 = vmatprep.subr.bf16.mxu1 %v19469_v4  ;;  %v19518_v4 = vld [vmem:[%s24523_s1 + $0x1c98] sm:$0xff]  }
 0x367   :  { %v13156_v58 = vadd.f32 %v17481_v52, %v22783_v16  ;;  %v17503_v62 = vadd.f32 %v17502_v60, %v17501_v53  ;;  %17774 = vmatpush3.bf16.msra.mxu0 %v19468_v3  ;;  %v19480_v16 = vld [vmem:[%s24523_s1 + $0x1b18] sm:$0xff]   ;;  %v19504_v53 = vld [vmem:[%s24523_s1 + $0x1c30] sm:$0xff]   ;;  %v19507_v57 = vld [vmem:[%s24523_s1 + $0x1c68] sm:$0xff]  }
 0x368   :  { %v17483_v63 = vpop.f32.mrf.mxu0  ;;  %v17504_v1 = vpop.f32.mrf.mxu1  ;;  %17775 = vmatprep.subr.bf16.mxu0 %v19471_v7  ;;  %v19510_v60 = vld [vmem:[%s24523_s1 + $0x1ca8] sm:$0xff]   ;;  %v19517_v3 = vld [vmem:[%s24523_s1 + $0x1cd8] sm:$0xff]   ;;  %v19521_v7 = vld [vmem:[%s24523_s1 + $0x1cd0] sm:$0xff]  }
 0x369   :  { %v22888_v2 = vadd.f32 %v17503_v62, %v13156_v58  ;;  %17796 = vmatpush3.bf16.msra.mxu1 %v19470_v6  ;;  %v19508_v58 = vld [vmem:[%s24523_s1 + $0x1c28] sm:$0xff]   ;;  %v19512_v62 = vld [vmem:[%s24523_s1 + $0x1c20] sm:$0xff]   ;;  %v19515_v1 = vld [vmem:[%s24523_s1 + $0x1c58] sm:$0xff]  }
 0x36a   :  { %v17505_v5 = vpop.f32.mrf.mxu1  ;;  %17797 = vmatprep.subr.bf16.mxu1 %v19473_v9  ;;  %v19513_v63 = vld [vmem:[%s24523_s1 + $0x1ce0] sm:$0xff]   ;;  %v19520_v6 = vld [vmem:[%s24523_s1 + $0x1c10] sm:$0xff]   ;;  %v19523_v9 = vld [vmem:[%s24523_s1 + $0x1c48] sm:$0xff]  }
 0x36b   :  { %17776 = vmatpush3.bf16.msra.mxu0 %v19472_v8  ;;  %v19519_v5 = vld [vmem:[%s24523_s1 + $0x1c50] sm:$0xff]  }
 0x36c   :  { %17777 = vmatprep.subr.bf16.mxu0 %v19475_v11  ;;  %v19522_v8 = vld [vmem:[%s24523_s1 + $0x1c90] sm:$0xff]   ;;  %v19525_v11 = vld [vmem:[%s24523_s1 + $0x1cc8] sm:$0xff]  }
 0x36d   :  { %17798 = vmatpush3.bf16.msra.mxu1 %v19474_v10  ;;  %v19524_v10 = vld [vmem:[%s24523_s1 + $0x1c08] sm:$0xff]  }
 0x36e   :  { %17799 = vmatprep.subr.bf16.mxu1 %v19477_v13  ;;  %v19527_v13 = vld [vmem:[%s24523_s1 + $0x1c40] sm:$0xff]  }
 0x36f   :  { %17778 = vmatpush3.bf16.msra.mxu0 %v19476_v12  ;;  %v19526_v12 = vld [vmem:[%s24523_s1 + $0x1c88] sm:$0xff]  }
 0x370   :  { %17779 = vmatprep.subr.bf16.mxu0 %v19479_v15  ;;  %v19529_v15 = vld [vmem:[%s24523_s1 + $0x1cc0] sm:$0xff]  }
 0x371   :  { %17800 = vmatpush3.bf16.msra.mxu1 %v19478_v14  ;;  %v19528_v14 = vld [vmem:[%s24523_s1 + $0x1c00] sm:$0xff]  }
 0x372   :  { %17801 = vmatprep.subr.bf16.mxu1 %v19481_v17 }
 0x373   :  { %17780 = vmatpush3.bf16.msra.mxu0 %v19480_v16  ;;  %v77_v16 = vld [vmem:[%s24524_s0 + $0x1c0] sm:$0xff] }
 0x374   :  { %17781 = vmatprep.subr.bf16.mxu0 %v19483_v19  ;;  %v15166_v19 = vcombine.high %v77_v16, %v77_v16 }
 0x375   :  { %17802 = vmatpush3.bf16.msra.mxu1 %v19482_v18  ;;  %v15165_v18 = vcombine.low %v77_v16, %v77_v16 }
 0x376   :  { %17803 = vmatprep.subr.bf16.mxu1 %v19485_v21  ;;  %v19533_v21 = vld [vmem:[%s24523_s1 + $0x1d78] sm:$0xff]  }
 0x377   :  { %17782 = vmatpush3.bf16.msra.mxu0 %v19484_v20  ;;  %v19532_v20 = vld [vmem:[%s24523_s1 + $0x1c80] sm:$0xff]  }
 0x378   :  { %17783 = vmatprep.subr.bf16.mxu0 %v19487_v23 }
 0x379   :  { %17804 = vmatpush3.bf16.msra.mxu1 %v19486_v22  ;;  %v78_v22 = vld [vmem:[%s24524_s0 + $0x1c8] sm:$0xff] }
 0x37a   :  { %17805 = vmatprep.subr.bf16.mxu1 %v19489_v25  ;;  %v15167_v25 = vcombine.low %v78_v22, %v78_v22 }
 0x37b   :  { %17784 = vmatpush3.bf16.msra.mxu0 %v19488_v24 }
 0x37c   :  { %17785 = vmatprep.subr.bf16.mxu0 %v19491_v27  ;;  %v19536_v27 = vld [vmem:[%s24523_s1 + $0x1d38] sm:$0xff]  }
 0x37d   :  { %17806 = vmatpush3.bf16.msra.mxu1 %v19490_v26  ;;  %v15168_v26 = vcombine.high %v78_v22, %v78_v22  ;;  %v19575_v22 = vld [vmem:[%s24523_s1 + $0x1e70] sm:$0xff]  }
 0x37e   :  { %17807 = vmatprep.subr.bf16.mxu1 %v19493_v29  ;;  %v19537_v29 = vld [vmem:[%s24523_s1 + $0x1df8] sm:$0xff]  }
 0x37f   :  { %17786 = vmatpush3.bf16.msra.mxu0 %v19492_v28 }
 0x380   :  { %17815 = vmatprep.subr.bf16.mxu0 %v19497_v35  ;;  %v19539_v35 = vld [vmem:[%s24523_s1 + $0x1d70] sm:$0xff]  }
 0x381   :  { %17808 = vmatpush3.bf16.msra.mxu1 %v19496_v34 }
 0x382   :  { %v17523_v31 = vpop.f32.mrf.mxu0  ;;  %13714 = vmatmul.mubr.bf16.vlgmr.msra.gmra.mxu0 %v15161_v32  ;;  %17837 = vmatprep.subr.bf16.mxu1 %v19501_v43  ;;  %v19543_v43 = vld [vmem:[%s24523_s1 + $0x1d68] sm:$0xff]  }
 0x383   :  { %17816 = vmatpush3.bf16.msra.mxu0 %v19500_v41  ;;  %13793 = vmatprep.mubr.bf16.mxu0 %v15166_v19  ;;  %v19574_v19 = vld [vmem:[%s24523_s1 + $0x1eb8] sm:$0xff]  }
 0x384   :  { %v17524_v37 = vpop.f32.mrf.mxu0  ;;  %v17545_v38 = vpop.f32.mrf.mxu1  ;;  %13754 = vmatmul.mubr.bf16.vlgmr.msra.gmra.mxu1 %v15163_v39  ;;  %17817 = vmatprep.subr.bf16.mxu0 %v19503_v49  ;;  %v19540_v39 = vld [vmem:[%s24523_s1 + $0x1d30] sm:$0xff]   ;;  %v19549_v49 = vld [vmem:[%s24523_s1 + $0x1de0] sm:$0xff]  }
 0x385   :  { %v17525_v42 = vadd.f32 %v17524_v37, %v17523_v31  ;;  %17838 = vmatpush3.bf16.msra.mxu1 %v19502_v47  ;;  %13833 = vmatprep.mubr.bf16.mxu1 %v15168_v26  ;;  %v19547_v47 = vld [vmem:[%s24523_s1 + $0x1d60] sm:$0xff]   ;;  %v19577_v26 = vld [vmem:[%s24523_s1 + $0x1ef0] sm:$0xff]  }
 0x386   :  { %v17526_v44 = vpop.f32.mrf.mxu0  ;;  %v17546_v45 = vpop.f32.mrf.mxu1  ;;  %17839 = vmatprep.subr.bf16.mxu1 %v19505_v54  ;;  %v19554_v54 = vld [vmem:[%s24523_s1 + $0x1d98] sm:$0xff]  }
 0x387   :  { %v13236_v46 = vadd.f32 %v17525_v42, %v22888_v2  ;;  %v17547_v48 = vadd.f32 %v17546_v45, %v17545_v38  ;;  %17818 = vmatpush3.bf16.msra.mxu0 %v19504_v53  ;;  %v19516_v2 = vld [vmem:[%s24523_s1 + $0x1c18] sm:$0xff]   ;;  %v19542_v42 = vld [vmem:[%s24523_s1 + $0x1db0] sm:$0xff]   ;;  %v19544_v44 = vld [vmem:[%s24523_s1 + $0x1d28] sm:$0xff]  }
 0x388   :  { %v17527_v50 = vpop.f32.mrf.mxu0  ;;  %v17548_v51 = vpop.f32.mrf.mxu1  ;;  %17819 = vmatprep.subr.bf16.mxu0 %v19507_v57  ;;  %v19545_v45 = vld [vmem:[%s24523_s1 + $0x1de8] sm:$0xff]   ;;  %v19553_v53 = vld [vmem:[%s24523_s1 + $0x1dd8] sm:$0xff]   ;;  %v19557_v57 = vld [vmem:[%s24523_s1 + $0x1dd0] sm:$0xff]  }
 0x389   :  { %v22993_v52 = vadd.f32 %v17547_v48, %v13236_v46  ;;  %17840 = vmatpush3.bf16.msra.mxu1 %v19506_v56  ;;  %v19546_v46 = vld [vmem:[%s24523_s1 + $0x1da8] sm:$0xff]   ;;  %v19548_v48 = vld [vmem:[%s24523_s1 + $0x1d20] sm:$0xff]   ;;  %v19551_v51 = vld [vmem:[%s24523_s1 + $0x1d58] sm:$0xff]  }
 0x38a   :  { %v17549_v55 = vpop.f32.mrf.mxu1  ;;  %17841 = vmatprep.subr.bf16.mxu1 %v19509_v59  ;;  %v19550_v50 = vld [vmem:[%s24523_s1 + $0x1da0] sm:$0xff]   ;;  %v19556_v56 = vld [vmem:[%s24523_s1 + $0x1d10] sm:$0xff]   ;;  %v19559_v59 = vld [vmem:[%s24523_s1 + $0x1d48] sm:$0xff]  }
 0x38b   :  { %17820 = vmatpush3.bf16.msra.mxu0 %v19508_v58  ;;  %v19555_v55 = vld [vmem:[%s24523_s1 + $0x1d50] sm:$0xff]  }
 0x38c   :  { %17821 = vmatprep.subr.bf16.mxu0 %v19511_v61  ;;  %v19558_v58 = vld [vmem:[%s24523_s1 + $0x1d90] sm:$0xff]   ;;  %v19561_v61 = vld [vmem:[%s24523_s1 + $0x1dc8] sm:$0xff]  }
 0x38d   :  { %17842 = vmatpush3.bf16.msra.mxu1 %v19510_v60  ;;  %v19560_v60 = vld [vmem:[%s24523_s1 + $0x1d08] sm:$0xff]  }
 0x38e   :  { %17843 = vmatprep.subr.bf16.mxu1 %v19513_v63  ;;  %v19563_v63 = vld [vmem:[%s24523_s1 + $0x1d40] sm:$0xff]  }
 0x38f   :  { %17822 = vmatpush3.bf16.msra.mxu0 %v19512_v62  ;;  %v19562_v62 = vld [vmem:[%s24523_s1 + $0x1d88] sm:$0xff]  }
 0x390   :  { %17823 = vmatprep.subr.bf16.mxu0 %v19515_v1  ;;  %v19565_v1 = vld [vmem:[%s24523_s1 + $0x1dc0] sm:$0xff]  }
 0x391   :  { %17844 = vmatpush3.bf16.msra.mxu1 %v19514_v0  ;;  %v19564_v0 = vld [vmem:[%s24523_s1 + $0x1d00] sm:$0xff]  }
 0x392   :  { %17845 = vmatprep.subr.bf16.mxu1 %v19517_v3 }
 0x393   :  { %17824 = vmatpush3.bf16.msra.mxu0 %v19516_v2  ;;  %v79_v2 = vld [vmem:[%s24524_s0 + $0x1d0] sm:$0xff] }
 0x394   :  { %17825 = vmatprep.subr.bf16.mxu0 %v19519_v5  ;;  %v15170_v5 = vcombine.high %v79_v2, %v79_v2 }
 0x395   :  { %17846 = vmatpush3.bf16.msra.mxu1 %v19518_v4  ;;  %v15169_v4 = vcombine.low %v79_v2, %v79_v2 }
 0x396   :  { %17847 = vmatprep.subr.bf16.mxu1 %v19521_v7  ;;  %v19569_v7 = vld [vmem:[%s24523_s1 + $0x1e78] sm:$0xff]  }
 0x397   :  { %17826 = vmatpush3.bf16.msra.mxu0 %v19520_v6  ;;  %v19568_v6 = vld [vmem:[%s24523_s1 + $0x1d80] sm:$0xff]  }
 0x398   :  { %17827 = vmatprep.subr.bf16.mxu0 %v19523_v9  ;;  %v80_v9 = vld [vmem:[%s24524_s0 + $0x1d8] sm:$0xff] }
 0x399   :  { %17848 = vmatpush3.bf16.msra.mxu1 %v19522_v8 }
 0x39a   :  { %17849 = vmatprep.subr.bf16.mxu1 %v19525_v11 }
 0x39b   :  { %17828 = vmatpush3.bf16.msra.mxu0 %v19524_v10 }
 0x39c   :  { %17829 = vmatprep.subr.bf16.mxu0 %v19527_v13  ;;  %v15172_v13 = vcombine.high %v80_v9, %v80_v9 }
 0x39d   :  { %17850 = vmatpush3.bf16.msra.mxu1 %v19526_v12  ;;  %v15171_v12 = vcombine.low %v80_v9, %v80_v9 }
 0x39e   :  { %17851 = vmatprep.subr.bf16.mxu1 %v19529_v15 }
 0x39f   :  { %17830 = vmatpush3.bf16.msra.mxu0 %v19528_v14  ;;  %v19572_v14 = vld [vmem:[%s24523_s1 + $0x1e38] sm:$0xff]  }
 0x3a0   :  { %17859 = vmatprep.subr.bf16.mxu0 %v19533_v21 }
 0x3a1   :  { %17852 = vmatpush3.bf16.msra.mxu1 %v19532_v20 }
 0x3a2   :  { %v17567_v17 = vpop.f32.mrf.mxu0  ;;  %13794 = vmatmul.mubr.bf16.vlgmr.msra.gmra.mxu0 %v15165_v18  ;;  %17881 = vmatprep.subr.bf16.mxu1 %v19537_v29  ;;  %v19579_v29 = vld [vmem:[%s24523_s1 + $0x1e68] sm:$0xff]  }
 0x3a3   :  { %17860 = vmatpush3.bf16.msra.mxu0 %v19536_v27  ;;  %13873 = vmatprep.mubr.bf16.mxu0 %v15170_v5  ;;  %v19610_v5 = vld [vmem:[%s24523_s1 + $0x1fb8] sm:$0xff]  }
 0x3a4   :  { %v17568_v23 = vpop.f32.mrf.mxu0  ;;  %v17589_v24 = vpop.f32.mrf.mxu1  ;;  %13834 = vmatmul.mubr.bf16.vlgmr.msra.gmra.mxu1 %v15167_v25  ;;  %17861 = vmatprep.subr.bf16.mxu0 %v19539_v35  ;;  %v19576_v25 = vld [vmem:[%s24523_s1 + $0x1e30] sm:$0xff]   ;;  %v19585_v35 = vld [vmem:[%s24523_s1 + $0x1ee0] sm:$0xff]  }
 0x3a5   :  { %v17569_v28 = vadd.f32 %v17568_v23, %v17567_v17  ;;  %17882 = vmatpush3.bf16.msra.mxu1 %v19538_v33  ;;  %v19573_v17 = vld [vmem:[%s24523_s1 + $0x1ef8] sm:$0xff]   ;;  %13913 = vmatprep.mubr.bf16.mxu1 %v15172_v13  ;;  %v19583_v33 = vld [vmem:[%s24523_s1 + $0x1e60] sm:$0xff]  }
 0x3a6   :  { %v17570_v30 = vpop.f32.mrf.mxu0  ;;  %v17590_v31 = vpop.f32.mrf.mxu1  ;;  %17883 = vmatprep.subr.bf16.mxu1 %v19541_v40  ;;  %v19590_v40 = vld [vmem:[%s24523_s1 + $0x1e98] sm:$0xff]  }
 0x3a7   :  { %v13316_v32 = vadd.f32 %v17569_v28, %v22993_v52  ;;  %v17591_v34 = vadd.f32 %v17590_v31, %v17589_v24  ;;  %17862 = vmatpush3.bf16.msra.mxu0 %v19540_v39  ;;  %v19552_v52 = vld [vmem:[%s24523_s1 + $0x1d18] sm:$0xff]   ;;  %v19578_v28 = vld [vmem:[%s24523_s1 + $0x1eb0] sm:$0xff]   ;;  %v19580_v30 = vld [vmem:[%s24523_s1 + $0x1e28] sm:$0xff]  }
 0x3a8   :  { %v17571_v36 = vpop.f32.mrf.mxu0  ;;  %v17592_v37 = vpop.f32.mrf.mxu1  ;;  %17863 = vmatprep.subr.bf16.mxu0 %v19543_v43  ;;  %v19581_v31 = vld [vmem:[%s24523_s1 + $0x1ee8] sm:$0xff]   ;;  %v19589_v39 = vld [vmem:[%s24523_s1 + $0x1ed8] sm:$0xff]   ;;  %v19593_v43 = vld [vmem:[%s24523_s1 + $0x1ed0] sm:$0xff]  }
 0x3a9   :  { %v23098_v38 = vadd.f32 %v17591_v34, %v13316_v32  ;;  %17884 = vmatpush3.bf16.msra.mxu1 %v19542_v42  ;;  %v19582_v32 = vld [vmem:[%s24523_s1 + $0x1ea8] sm:$0xff]   ;;  %v19584_v34 = vld [vmem:[%s24523_s1 + $0x1e20] sm:$0xff]   ;;  %v19587_v37 = vld [vmem:[%s24523_s1 + $0x1e58] sm:$0xff]  }
 0x3aa   :  { %v17593_v41 = vpop.f32.mrf.mxu1  ;;  %17885 = vmatprep.subr.bf16.mxu1 %v19545_v45  ;;  %v19586_v36 = vld [vmem:[%s24523_s1 + $0x1ea0] sm:$0xff]   ;;  %v19592_v42 = vld [vmem:[%s24523_s1 + $0x1e10] sm:$0xff]   ;;  %v19595_v45 = vld [vmem:[%s24523_s1 + $0x1e48] sm:$0xff]  }
 0x3ab   :  { %17864 = vmatpush3.bf16.msra.mxu0 %v19544_v44  ;;  %v19591_v41 = vld [vmem:[%s24523_s1 + $0x1e50] sm:$0xff]  }
 0x3ac   :  { %17865 = vmatprep.subr.bf16.mxu0 %v19547_v47  ;;  %v19594_v44 = vld [vmem:[%s24523_s1 + $0x1e90] sm:$0xff]   ;;  %v19597_v47 = vld [vmem:[%s24523_s1 + $0x1ec8] sm:$0xff]  }
 0x3ad   :  { %17886 = vmatpush3.bf16.msra.mxu1 %v19546_v46  ;;  %v19596_v46 = vld [vmem:[%s24523_s1 + $0x1e08] sm:$0xff]  }
 0x3ae   :  { %17887 = vmatprep.subr.bf16.mxu1 %v19549_v49  ;;  %v19599_v49 = vld [vmem:[%s24523_s1 + $0x1e40] sm:$0xff]  }
 0x3af   :  { %17866 = vmatpush3.bf16.msra.mxu0 %v19548_v48  ;;  %v19598_v48 = vld [vmem:[%s24523_s1 + $0x1e88] sm:$0xff]  }
 0x3b0   :  { %17867 = vmatprep.subr.bf16.mxu0 %v19551_v51  ;;  %v19601_v51 = vld [vmem:[%s24523_s1 + $0x1ec0] sm:$0xff]  }
 0x3b1   :  { %17888 = vmatpush3.bf16.msra.mxu1 %v19550_v50  ;;  %v19600_v50 = vld [vmem:[%s24523_s1 + $0x1e00] sm:$0xff]  }
 0x3b2   :  { %17889 = vmatprep.subr.bf16.mxu1 %v19553_v53 }
 0x3b3   :  { %17868 = vmatpush3.bf16.msra.mxu0 %v19552_v52  ;;  %v81_v52 = vld [vmem:[%s24524_s0 + $0x1e0] sm:$0xff] }
 0x3b4   :  { %17869 = vmatprep.subr.bf16.mxu0 %v19555_v55  ;;  %v15174_v55 = vcombine.high %v81_v52, %v81_v52 }
 0x3b5   :  { %17890 = vmatpush3.bf16.msra.mxu1 %v19554_v54  ;;  %v15173_v54 = vcombine.low %v81_v52, %v81_v52 }
 0x3b6   :  { %17891 = vmatprep.subr.bf16.mxu1 %v19557_v57  ;;  %v19605_v57 = vld [vmem:[%s24523_s1 + $0x1f78] sm:$0xff]  }
 0x3b7   :  { %17870 = vmatpush3.bf16.msra.mxu0 %v19556_v56  ;;  %v19604_v56 = vld [vmem:[%s24523_s1 + $0x1e80] sm:$0xff]  }
 0x3b8   :  { %17871 = vmatprep.subr.bf16.mxu0 %v19559_v59 }
 0x3b9   :  { %17892 = vmatpush3.bf16.msra.mxu1 %v19558_v58  ;;  %v82_v58 = vld [vmem:[%s24524_s0 + $0x1e8] sm:$0xff] }
 0x3ba   :  { %17893 = vmatprep.subr.bf16.mxu1 %v19561_v61  ;;  %v15175_v61 = vcombine.low %v82_v58, %v82_v58 }
 0x3bb   :  { %17872 = vmatpush3.bf16.msra.mxu0 %v19560_v60 }
 0x3bc   :  { %17873 = vmatprep.subr.bf16.mxu0 %v19563_v63  ;;  %v19608_v63 = vld [vmem:[%s24523_s1 + $0x1f38] sm:$0xff]  }
 0x3bd   :  { %17894 = vmatpush3.bf16.msra.mxu1 %v19562_v62  ;;  %v15176_v62 = vcombine.high %v82_v58, %v82_v58 }
 0x3be   :  { %17895 = vmatprep.subr.bf16.mxu1 %v19565_v1  ;;  %v19609_v1 = vld [vmem:[%s24523_s1 + $0x1ff8] sm:$0xff]  }
 0x3bf   :  { %17874 = vmatpush3.bf16.msra.mxu0 %v19564_v0 }
 0x3c0   :  { %17903 = vmatprep.subr.bf16.mxu0 %v19569_v7  ;;  %v19611_v7 = vld [vmem:[%s24523_s1 + $0x1f70] sm:$0xff]  }
 0x3c1   :  { %17896 = vmatpush3.bf16.msra.mxu1 %v19568_v6 }
 0x3c2   :  { %v17611_v3 = vpop.f32.mrf.mxu0  ;;  %13874 = vmatmul.mubr.bf16.vlgmr.msra.gmra.mxu0 %v15169_v4  ;;  %17925 = vmatprep.subr.bf16.mxu1 %v19573_v17  ;;  %v19617_v17 = vld [vmem:[%s24523_s1 + $0x1fe8] sm:$0xff]  }
 0x3c3   :  { %17904 = vmatpush3.bf16.msra.mxu0 %v19572_v14  ;;  %13953 = vmatprep.mubr.bf16.mxu0 %v15174_v55  ;;  %v19614_v14 = vld [vmem:[%s24523_s1 + $0x1fb0] sm:$0xff]   ;;  %v19646_v55 = vld [vmem:[%s24523_s1 + $0x20b8] sm:$0xff]  }
 0x3c4   :  { %v17612_v8 = vpop.f32.mrf.mxu0  ;;  %v17633_v11 = vpop.f32.mrf.mxu1  ;;  %13914 = vmatmul.mubr.bf16.vlgmr.msra.gmra.mxu1 %v15171_v12  ;;  %17905 = vmatprep.subr.bf16.mxu0 %v19575_v22  ;;  %v19613_v12 = vld [vmem:[%s24523_s1 + $0x1ff0] sm:$0xff]   ;;  %v19622_v22 = vld [vmem:[%s24523_s1 + $0x1fa0] sm:$0xff]  }
 0x3c5   :  { %v17613_v10 = vadd.f32 %v17612_v8, %v17611_v3  ;;  %17926 = vmatpush3.bf16.msra.mxu1 %v19574_v19  ;;  %13993 = vmatprep.mubr.bf16.mxu1 %v15176_v62  ;;  %v19619_v19 = vld [vmem:[%s24523_s1 + $0x1f60] sm:$0xff]   ;;  %v19649_v62 = vld [vmem:[%s24523_s1 + $0x20f0] sm:$0xff]  }
 0x3c6   :  { %v17614_v15 = vpop.f32.mrf.mxu0  ;;  %v17634_v18 = vpop.f32.mrf.mxu1  ;;  %17927 = vmatprep.subr.bf16.mxu1 %v19577_v26  ;;  %v19626_v26 = vld [vmem:[%s24523_s1 + $0x1f98] sm:$0xff]  }
 0x3c7   :  { %v13396_v16 = vadd.f32 %v17613_v10, %v23098_v38  ;;  %v17635_v20 = vadd.f32 %v17634_v18, %v17633_v11  ;;  %17906 = vmatpush3.bf16.msra.mxu0 %v19576_v25  ;;  %v19588_v38 = vld [vmem:[%s24523_s1 + $0x1e18] sm:$0xff]   ;;  %v19612_v11 = vld [vmem:[%s24523_s1 + $0x1f30] sm:$0xff]   ;;  %v19615_v15 = vld [vmem:[%s24523_s1 + $0x1f68] sm:$0xff]  }
 0x3c8   :  { %v17615_v21 = vpop.f32.mrf.mxu0  ;;  %v17636_v23 = vpop.f32.mrf.mxu1  ;;  %17907 = vmatprep.subr.bf16.mxu0 %v19579_v29  ;;  %v19618_v18 = vld [vmem:[%s24523_s1 + $0x1fa8] sm:$0xff]   ;;  %v19625_v25 = vld [vmem:[%s24523_s1 + $0x1fd8] sm:$0xff]   ;;  %v19629_v29 = vld [vmem:[%s24523_s1 + $0x1fd0] sm:$0xff]  }
 0x3c9   :  { %v23203_v24 = vadd.f32 %v17635_v20, %v13396_v16  ;;  %17928 = vmatpush3.bf16.msra.mxu1 %v19578_v28  ;;  %v19616_v16 = vld [vmem:[%s24523_s1 + $0x1f28] sm:$0xff]   ;;  %v19620_v20 = vld [vmem:[%s24523_s1 + $0x1f20] sm:$0xff]   ;;  %v19623_v23 = vld [vmem:[%s24523_s1 + $0x1f58] sm:$0xff]  }
 0x3ca   :  { %v17637_v27 = vpop.f32.mrf.mxu1  ;;  %17929 = vmatprep.subr.bf16.mxu1 %v19581_v31  ;;  %v19621_v21 = vld [vmem:[%s24523_s1 + $0x1fe0] sm:$0xff]   ;;  %v19628_v28 = vld [vmem:[%s24523_s1 + $0x1f10] sm:$0xff]   ;;  %v19631_v31 = vld [vmem:[%s24523_s1 + $0x1f48] sm:$0xff]  }
 0x3cb   :  { %17908 = vmatpush3.bf16.msra.mxu0 %v19580_v30  ;;  %v19627_v27 = vld [vmem:[%s24523_s1 + $0x1f50] sm:$0xff]  }
 0x3cc   :  { %17909 = vmatprep.subr.bf16.mxu0 %v19583_v33  ;;  %v19630_v30 = vld [vmem:[%s24523_s1 + $0x1f90] sm:$0xff]   ;;  %v19633_v33 = vld [vmem:[%s24523_s1 + $0x1fc8] sm:$0xff]  }
 0x3cd   :  { %17930 = vmatpush3.bf16.msra.mxu1 %v19582_v32  ;;  %v19632_v32 = vld [vmem:[%s24523_s1 + $0x1f08] sm:$0xff]  }
 0x3ce   :  { %17931 = vmatprep.subr.bf16.mxu1 %v19585_v35  ;;  %v19635_v35 = vld [vmem:[%s24523_s1 + $0x1f40] sm:$0xff]  }
 0x3cf   :  { %17910 = vmatpush3.bf16.msra.mxu0 %v19584_v34  ;;  %v19634_v34 = vld [vmem:[%s24523_s1 + $0x1f88] sm:$0xff]  }
 0x3d0   :  { %17911 = vmatprep.subr.bf16.mxu0 %v19587_v37  ;;  %v19637_v37 = vld [vmem:[%s24523_s1 + $0x1fc0] sm:$0xff]  }
 0x3d1   :  { %17932 = vmatpush3.bf16.msra.mxu1 %v19586_v36  ;;  %v19636_v36 = vld [vmem:[%s24523_s1 + $0x1f00] sm:$0xff]  }
 0x3d2   :  { %17933 = vmatprep.subr.bf16.mxu1 %v19589_v39 }
 0x3d3   :  { %17912 = vmatpush3.bf16.msra.mxu0 %v19588_v38  ;;  %v83_v38 = vld [vmem:[%s24524_s0 + $0x1f0] sm:$0xff] }
 0x3d4   :  { %17913 = vmatprep.subr.bf16.mxu0 %v19591_v41  ;;  %v15178_v41 = vcombine.high %v83_v38, %v83_v38 }
 0x3d5   :  { %17934 = vmatpush3.bf16.msra.mxu1 %v19590_v40  ;;  %v15177_v40 = vcombine.low %v83_v38, %v83_v38 }
 0x3d6   :  { %17935 = vmatprep.subr.bf16.mxu1 %v19593_v43  ;;  %v19641_v43 = vld [vmem:[%s24523_s1 + $0x2078] sm:$0xff]  }
 0x3d7   :  { %17914 = vmatpush3.bf16.msra.mxu0 %v19592_v42  ;;  %v19640_v42 = vld [vmem:[%s24523_s1 + $0x1f80] sm:$0xff]  }
 0x3d8   :  { %17915 = vmatprep.subr.bf16.mxu0 %v19595_v45 }
 0x3d9   :  { %17936 = vmatpush3.bf16.msra.mxu1 %v19594_v44  ;;  %v84_v44 = vld [vmem:[%s24524_s0 + $0x1f8] sm:$0xff] }
 0x3da   :  { %17937 = vmatprep.subr.bf16.mxu1 %v19597_v47  ;;  %v15179_v47 = vcombine.low %v84_v44, %v84_v44 }
 0x3db   :  { %17916 = vmatpush3.bf16.msra.mxu0 %v19596_v46 }
 0x3dc   :  { %17917 = vmatprep.subr.bf16.mxu0 %v19599_v49  ;;  %v19644_v49 = vld [vmem:[%s24523_s1 + $0x2038] sm:$0xff]  }
 0x3dd   :  { %17938 = vmatpush3.bf16.msra.mxu1 %v19598_v48  ;;  %v15180_v48 = vcombine.high %v84_v44, %v84_v44  ;;  %v19683_v44 = vld [vmem:[%s24523_s1 + $0x2170] sm:$0xff]  }
 0x3de   :  { %17939 = vmatprep.subr.bf16.mxu1 %v19601_v51  ;;  %v19645_v51 = vld [vmem:[%s24523_s1 + $0x20f8] sm:$0xff]  }
 0x3df   :  { %17918 = vmatpush3.bf16.msra.mxu0 %v19600_v50 }
 0x3e0   :  { %17947 = vmatprep.subr.bf16.mxu0 %v19605_v57  ;;  %v19647_v57 = vld [vmem:[%s24523_s1 + $0x2070] sm:$0xff]  }
 0x3e1   :  { %17940 = vmatpush3.bf16.msra.mxu1 %v19604_v56 }
 0x3e2   :  { %v17655_v53 = vpop.f32.mrf.mxu0  ;;  %13954 = vmatmul.mubr.bf16.vlgmr.msra.gmra.mxu0 %v15173_v54  ;;  %17969 = vmatprep.subr.bf16.mxu1 %v19609_v1  ;;  %v19651_v1 = vld [vmem:[%s24523_s1 + $0x2068] sm:$0xff]  }
 0x3e3   :  { %17948 = vmatpush3.bf16.msra.mxu0 %v19608_v63  ;;  %14033 = vmatprep.mubr.bf16.mxu0 %v15178_v41  ;;  %v19682_v41 = vld [vmem:[%s24523_s1 + $0x21b8] sm:$0xff]  }
 0x3e4   :  { %v17656_v59 = vpop.f32.mrf.mxu0  ;;  %v17677_v60 = vpop.f32.mrf.mxu1  ;;  %13994 = vmatmul.mubr.bf16.vlgmr.msra.gmra.mxu1 %v15175_v61  ;;  %17949 = vmatprep.subr.bf16.mxu0 %v19611_v7  ;;  %v19648_v61 = vld [vmem:[%s24523_s1 + $0x2030] sm:$0xff]   ;;  %v19657_v7 = vld [vmem:[%s24523_s1 + $0x20e0] sm:$0xff]  }
 0x3e5   :  { %v17657_v0 = vadd.f32 %v17656_v59, %v17655_v53  ;;  %17970 = vmatpush3.bf16.msra.mxu1 %v19610_v5  ;;  %14073 = vmatprep.mubr.bf16.mxu1 %v15180_v48  ;;  %v19655_v5 = vld [vmem:[%s24523_s1 + $0x2060] sm:$0xff]   ;;  %v19685_v48 = vld [vmem:[%s24523_s1 + $0x21f0] sm:$0xff]  }
 0x3e6   :  { %v17658_v2 = vpop.f32.mrf.mxu0  ;;  %v17678_v3 = vpop.f32.mrf.mxu1  ;;  %17971 = vmatprep.subr.bf16.mxu1 %v19613_v12  ;;  %v19662_v12 = vld [vmem:[%s24523_s1 + $0x2098] sm:$0xff]  }
 0x3e7   :  { %v13476_v4 = vadd.f32 %v17657_v0, %v23203_v24  ;;  %v17679_v6 = vadd.f32 %v17678_v3, %v17677_v60  ;;  %17950 = vmatpush3.bf16.msra.mxu0 %v19612_v11  ;;  %v19624_v24 = vld [vmem:[%s24523_s1 + $0x1f18] sm:$0xff]   ;;  %v19650_v0 = vld [vmem:[%s24523_s1 + $0x20b0] sm:$0xff]   ;;  %v19652_v2 = vld [vmem:[%s24523_s1 + $0x2028] sm:$0xff]  }
 0x3e8   :  { %v17659_v8 = vpop.f32.mrf.mxu0  ;;  %v17680_v9 = vpop.f32.mrf.mxu1  ;;  %17951 = vmatprep.subr.bf16.mxu0 %v19615_v15  ;;  %v19653_v3 = vld [vmem:[%s24523_s1 + $0x20e8] sm:$0xff]   ;;  %v19661_v11 = vld [vmem:[%s24523_s1 + $0x20d8] sm:$0xff]   ;;  %v19665_v15 = vld [vmem:[%s24523_s1 + $0x20d0] sm:$0xff]  }
 0x3e9   :  { %v23308_v10 = vadd.f32 %v17679_v6, %v13476_v4  ;;  %17972 = vmatpush3.bf16.msra.mxu1 %v19614_v14  ;;  %v19654_v4 = vld [vmem:[%s24523_s1 + $0x20a8] sm:$0xff]   ;;  %v19656_v6 = vld [vmem:[%s24523_s1 + $0x2020] sm:$0xff]   ;;  %v19659_v9 = vld [vmem:[%s24523_s1 + $0x2058] sm:$0xff]  }
 0x3ea   :  { %v17681_v13 = vpop.f32.mrf.mxu1  ;;  %17973 = vmatprep.subr.bf16.mxu1 %v19617_v17  ;;  %v19658_v8 = vld [vmem:[%s24523_s1 + $0x20a0] sm:$0xff]   ;;  %v19664_v14 = vld [vmem:[%s24523_s1 + $0x2010] sm:$0xff]   ;;  %v19667_v17 = vld [vmem:[%s24523_s1 + $0x2048] sm:$0xff]  }
 0x3eb   :  { %17952 = vmatpush3.bf16.msra.mxu0 %v19616_v16  ;;  %v19663_v13 = vld [vmem:[%s24523_s1 + $0x2050] sm:$0xff]  }
 0x3ec   :  { %17953 = vmatprep.subr.bf16.mxu0 %v19619_v19  ;;  %v19666_v16 = vld [vmem:[%s24523_s1 + $0x2090] sm:$0xff]   ;;  %v19669_v19 = vld [vmem:[%s24523_s1 + $0x20c8] sm:$0xff]  }
 0x3ed   :  { %17974 = vmatpush3.bf16.msra.mxu1 %v19618_v18  ;;  %v19668_v18 = vld [vmem:[%s24523_s1 + $0x2008] sm:$0xff]  }
 0x3ee   :  { %17975 = vmatprep.subr.bf16.mxu1 %v19621_v21  ;;  %v19671_v21 = vld [vmem:[%s24523_s1 + $0x2040] sm:$0xff]  }
 0x3ef   :  { %17954 = vmatpush3.bf16.msra.mxu0 %v19620_v20  ;;  %v19670_v20 = vld [vmem:[%s24523_s1 + $0x2088] sm:$0xff]  }
 0x3f0   :  { %17955 = vmatprep.subr.bf16.mxu0 %v19623_v23  ;;  %v19673_v23 = vld [vmem:[%s24523_s1 + $0x20c0] sm:$0xff]  }
 0x3f1   :  { %17976 = vmatpush3.bf16.msra.mxu1 %v19622_v22  ;;  %v19672_v22 = vld [vmem:[%s24523_s1 + $0x2000] sm:$0xff]  }
 0x3f2   :  { %17977 = vmatprep.subr.bf16.mxu1 %v19625_v25 }
 0x3f3   :  { %17956 = vmatpush3.bf16.msra.mxu0 %v19624_v24  ;;  %v85_v24 = vld [vmem:[%s24524_s0 + $0x200] sm:$0xff] }
 0x3f4   :  { %17957 = vmatprep.subr.bf16.mxu0 %v19627_v27  ;;  %v15182_v27 = vcombine.high %v85_v24, %v85_v24 }
 0x3f5   :  { %17978 = vmatpush3.bf16.msra.mxu1 %v19626_v26  ;;  %v15181_v26 = vcombine.low %v85_v24, %v85_v24 }
 0x3f6   :  { %17979 = vmatprep.subr.bf16.mxu1 %v19629_v29  ;;  %v19677_v29 = vld [vmem:[%s24523_s1 + $0x2178] sm:$0xff]  }
 0x3f7   :  { %17958 = vmatpush3.bf16.msra.mxu0 %v19628_v28  ;;  %v19676_v28 = vld [vmem:[%s24523_s1 + $0x2080] sm:$0xff]  }
 0x3f8   :  { %17959 = vmatprep.subr.bf16.mxu0 %v19631_v31  ;;  %v86_v31 = vld [vmem:[%s24524_s0 + $0x208] sm:$0xff] }
 0x3f9   :  { %17980 = vmatpush3.bf16.msra.mxu1 %v19630_v30 }
 0x3fa   :  { %17981 = vmatprep.subr.bf16.mxu1 %v19633_v33 }
 0x3fb   :  { %17960 = vmatpush3.bf16.msra.mxu0 %v19632_v32 }
 0x3fc   :  { %17961 = vmatprep.subr.bf16.mxu0 %v19635_v35  ;;  %v15184_v35 = vcombine.high %v86_v31, %v86_v31 }
 0x3fd   :  { %17982 = vmatpush3.bf16.msra.mxu1 %v19634_v34  ;;  %v15183_v34 = vcombine.low %v86_v31, %v86_v31 }
 0x3fe   :  { %17983 = vmatprep.subr.bf16.mxu1 %v19637_v37 }
 0x3ff   :  { %17962 = vmatpush3.bf16.msra.mxu0 %v19636_v36  ;;  %v19680_v36 = vld [vmem:[%s24523_s1 + $0x2138] sm:$0xff]  }
 0x400   :  { %17991 = vmatprep.subr.bf16.mxu0 %v19641_v43 }
 0x401   :  { %17984 = vmatpush3.bf16.msra.mxu1 %v19640_v42 }
 0x402   :  { %v17699_v39 = vpop.f32.mrf.mxu0  ;;  %14034 = vmatmul.mubr.bf16.vlgmr.msra.gmra.mxu0 %v15177_v40  ;;  %18013 = vmatprep.subr.bf16.mxu1 %v19645_v51  ;;  %v19687_v51 = vld [vmem:[%s24523_s1 + $0x2168] sm:$0xff]  }
 0x403   :  { %17992 = vmatpush3.bf16.msra.mxu0 %v19644_v49  ;;  %14113 = vmatprep.mubr.bf16.mxu0 %v15182_v27  ;;  %v19718_v27 = vld [vmem:[%s24523_s1 + $0x22b8] sm:$0xff]  }
 0x404   :  { %v17700_v45 = vpop.f32.mrf.mxu0  ;;  %v17721_v46 = vpop.f32.mrf.mxu1  ;;  %14074 = vmatmul.mubr.bf16.vlgmr.msra.gmra.mxu1 %v15179_v47  ;;  %17993 = vmatprep.subr.bf16.mxu0 %v19647_v57  ;;  %v19684_v47 = vld [vmem:[%s24523_s1 + $0x2130] sm:$0xff]   ;;  %v19693_v57 = vld [vmem:[%s24523_s1 + $0x21e0] sm:$0xff]  }
 0x405   :  { %v17701_v50 = vadd.f32 %v17700_v45, %v17699_v39  ;;  %18014 = vmatpush3.bf16.msra.mxu1 %v19646_v55  ;;  %v19681_v39 = vld [vmem:[%s24523_s1 + $0x21f8] sm:$0xff]   ;;  %14153 = vmatprep.mubr.bf16.mxu1 %v15184_v35  ;;  %v19691_v55 = vld [vmem:[%s24523_s1 + $0x2160] sm:$0xff]  }
 0x406   :  { %v17702_v52 = vpop.f32.mrf.mxu0  ;;  %v17722_v53 = vpop.f32.mrf.mxu1  ;;  %18015 = vmatprep.subr.bf16.mxu1 %v19649_v62  ;;  %v19698_v62 = vld [vmem:[%s24523_s1 + $0x2198] sm:$0xff]  }
 0x407   :  { %v13556_v54 = vadd.f32 %v17701_v50, %v23308_v10  ;;  %v17723_v56 = vadd.f32 %v17722_v53, %v17721_v46  ;;  %17994 = vmatpush3.bf16.msra.mxu0 %v19648_v61  ;;  %v19660_v10 = vld [vmem:[%s24523_s1 + $0x2018] sm:$0xff]   ;;  %v19686_v50 = vld [vmem:[%s24523_s1 + $0x21b0] sm:$0xff]   ;;  %v19688_v52 = vld [vmem:[%s24523_s1 + $0x2128] sm:$0xff]  }
 0x408   :  { %v17703_v58 = vpop.f32.mrf.mxu0  ;;  %v17724_v59 = vpop.f32.mrf.mxu1  ;;  %17995 = vmatprep.subr.bf16.mxu0 %v19651_v1  ;;  %v19689_v53 = vld [vmem:[%s24523_s1 + $0x21e8] sm:$0xff]   ;;  %v19697_v61 = vld [vmem:[%s24523_s1 + $0x21d8] sm:$0xff]   ;;  %v19701_v1 = vld [vmem:[%s24523_s1 + $0x21d0] sm:$0xff]  }
 0x409   :  { %v23413_v60 = vadd.f32 %v17723_v56, %v13556_v54  ;;  %18016 = vmatpush3.bf16.msra.mxu1 %v19650_v0  ;;  %v19690_v54 = vld [vmem:[%s24523_s1 + $0x21a8] sm:$0xff]   ;;  %v19692_v56 = vld [vmem:[%s24523_s1 + $0x2120] sm:$0xff]   ;;  %v19695_v59 = vld [vmem:[%s24523_s1 + $0x2158] sm:$0xff]  }
 0x40a   :  { %v17725_v63 = vpop.f32.mrf.mxu1  ;;  %18017 = vmatprep.subr.bf16.mxu1 %v19653_v3  ;;  %v19694_v58 = vld [vmem:[%s24523_s1 + $0x21a0] sm:$0xff]   ;;  %v19700_v0 = vld [vmem:[%s24523_s1 + $0x2110] sm:$0xff]   ;;  %v19703_v3 = vld [vmem:[%s24523_s1 + $0x2148] sm:$0xff]  }
 0x40b   :  { %17996 = vmatpush3.bf16.msra.mxu0 %v19652_v2  ;;  %v19699_v63 = vld [vmem:[%s24523_s1 + $0x2150] sm:$0xff]  }
 0x40c   :  { %17997 = vmatprep.subr.bf16.mxu0 %v19655_v5  ;;  %v19702_v2 = vld [vmem:[%s24523_s1 + $0x2190] sm:$0xff]   ;;  %v19705_v5 = vld [vmem:[%s24523_s1 + $0x21c8] sm:$0xff]  }
 0x40d   :  { %18018 = vmatpush3.bf16.msra.mxu1 %v19654_v4  ;;  %v19704_v4 = vld [vmem:[%s24523_s1 + $0x2108] sm:$0xff]  }
 0x40e   :  { %18019 = vmatprep.subr.bf16.mxu1 %v19657_v7  ;;  %v19707_v7 = vld [vmem:[%s24523_s1 + $0x2140] sm:$0xff]  }
 0x40f   :  { %17998 = vmatpush3.bf16.msra.mxu0 %v19656_v6  ;;  %v19706_v6 = vld [vmem:[%s24523_s1 + $0x2188] sm:$0xff]  }
 0x410   :  { %17999 = vmatprep.subr.bf16.mxu0 %v19659_v9  ;;  %v19709_v9 = vld [vmem:[%s24523_s1 + $0x21c0] sm:$0xff]  }
 0x411   :  { %18020 = vmatpush3.bf16.msra.mxu1 %v19658_v8  ;;  %v19708_v8 = vld [vmem:[%s24523_s1 + $0x2100] sm:$0xff]  }
 0x412   :  { %18021 = vmatprep.subr.bf16.mxu1 %v19661_v11 }
 0x413   :  { %18000 = vmatpush3.bf16.msra.mxu0 %v19660_v10  ;;  %v87_v10 = vld [vmem:[%s24524_s0 + $0x210] sm:$0xff] }
 0x414   :  { %18001 = vmatprep.subr.bf16.mxu0 %v19663_v13  ;;  %v15186_v13 = vcombine.high %v87_v10, %v87_v10 }
 0x415   :  { %18022 = vmatpush3.bf16.msra.mxu1 %v19662_v12  ;;  %v15185_v12 = vcombine.low %v87_v10, %v87_v10 }
 0x416   :  { %18023 = vmatprep.subr.bf16.mxu1 %v19665_v15  ;;  %v19713_v15 = vld [vmem:[%s24523_s1 + $0x2278] sm:$0xff]  }
 0x417   :  { %18002 = vmatpush3.bf16.msra.mxu0 %v19664_v14  ;;  %v19712_v14 = vld [vmem:[%s24523_s1 + $0x2180] sm:$0xff]  }
 0x418   :  { %18003 = vmatprep.subr.bf16.mxu0 %v19667_v17 }
 0x419   :  { %18024 = vmatpush3.bf16.msra.mxu1 %v19666_v16  ;;  %v88_v16 = vld [vmem:[%s24524_s0 + $0x218] sm:$0xff] }
 0x41a   :  { %18025 = vmatprep.subr.bf16.mxu1 %v19669_v19  ;;  %v15187_v19 = vcombine.low %v88_v16, %v88_v16 }
 0x41b   :  { %18004 = vmatpush3.bf16.msra.mxu0 %v19668_v18 }
 0x41c   :  { %18005 = vmatprep.subr.bf16.mxu0 %v19671_v21  ;;  %v19716_v21 = vld [vmem:[%s24523_s1 + $0x2238] sm:$0xff]  }
 0x41d   :  { %18026 = vmatpush3.bf16.msra.mxu1 %v19670_v20  ;;  %v15188_v20 = vcombine.high %v88_v16, %v88_v16 }
 0x41e   :  { %18027 = vmatprep.subr.bf16.mxu1 %v19673_v23  ;;  %v19717_v23 = vld [vmem:[%s24523_s1 + $0x22f8] sm:$0xff]  }
 0x41f   :  { %18006 = vmatpush3.bf16.msra.mxu0 %v19672_v22 }
 0x420   :  { %18035 = vmatprep.subr.bf16.mxu0 %v19677_v29  ;;  %v19719_v29 = vld [vmem:[%s24523_s1 + $0x2270] sm:$0xff]  }
 0x421   :  { %18028 = vmatpush3.bf16.msra.mxu1 %v19676_v28 }
 0x422   :  { %v17743_v25 = vpop.f32.mrf.mxu0  ;;  %14114 = vmatmul.mubr.bf16.vlgmr.msra.gmra.mxu0 %v15181_v26  ;;  %18057 = vmatprep.subr.bf16.mxu1 %v19681_v39  ;;  %v19725_v39 = vld [vmem:[%s24523_s1 + $0x22e8] sm:$0xff]  }
 0x423   :  { %18036 = vmatpush3.bf16.msra.mxu0 %v19680_v36  ;;  %14193 = vmatprep.mubr.bf16.mxu0 %v15186_v13  ;;  %v19722_v36 = vld [vmem:[%s24523_s1 + $0x22b0] sm:$0xff]   ;;  %v19754_v13 = vld [vmem:[%s24523_s1 + $0x23b8] sm:$0xff]  }
 0x424   :  { %v17744_v30 = vpop.f32.mrf.mxu0  ;;  %v17765_v33 = vpop.f32.mrf.mxu1  ;;  %14154 = vmatmul.mubr.bf16.vlgmr.msra.gmra.mxu1 %v15183_v34  ;;  %18037 = vmatprep.subr.bf16.mxu0 %v19683_v44  ;;  %v19721_v34 = vld [vmem:[%s24523_s1 + $0x22f0] sm:$0xff]   ;;  %v19730_v44 = vld [vmem:[%s24523_s1 + $0x22a0] sm:$0xff]  }
 0x425   :  { %v17745_v32 = vadd.f32 %v17744_v30, %v17743_v25  ;;  %18058 = vmatpush3.bf16.msra.mxu1 %v19682_v41  ;;  %14233 = vmatprep.mubr.bf16.mxu1 %v15188_v20  ;;  %v19727_v41 = vld [vmem:[%s24523_s1 + $0x2260] sm:$0xff]   ;;  %v19757_v20 = vld [vmem:[%s24523_s1 + $0x23f0] sm:$0xff]  }
 0x426   :  { %v17746_v37 = vpop.f32.mrf.mxu0  ;;  %v17766_v40 = vpop.f32.mrf.mxu1  ;;  %18059 = vmatprep.subr.bf16.mxu1 %v19685_v48  ;;  %v19734_v48 = vld [vmem:[%s24523_s1 + $0x2298] sm:$0xff]  }
 0x427   :  { %v13636_v38 = vadd.f32 %v17745_v32, %v23413_v60  ;;  %v17767_v42 = vadd.f32 %v17766_v40, %v17765_v33  ;;  %18038 = vmatpush3.bf16.msra.mxu0 %v19684_v47  ;;  %v19696_v60 = vld [vmem:[%s24523_s1 + $0x2118] sm:$0xff]   ;;  %v19720_v33 = vld [vmem:[%s24523_s1 + $0x2230] sm:$0xff]   ;;  %v19723_v37 = vld [vmem:[%s24523_s1 + $0x2268] sm:$0xff]  }
 0x428   :  { %v17747_v43 = vpop.f32.mrf.mxu0  ;;  %v17768_v45 = vpop.f32.mrf.mxu1  ;;  %18039 = vmatprep.subr.bf16.mxu0 %v19687_v51  ;;  %v19726_v40 = vld [vmem:[%s24523_s1 + $0x22a8] sm:$0xff]   ;;  %v19733_v47 = vld [vmem:[%s24523_s1 + $0x22d8] sm:$0xff]   ;;  %v19737_v51 = vld [vmem:[%s24523_s1 + $0x22d0] sm:$0xff]  }
 0x429   :  { %v23518_v46 = vadd.f32 %v17767_v42, %v13636_v38  ;;  %18060 = vmatpush3.bf16.msra.mxu1 %v19686_v50  ;;  %v19724_v38 = vld [vmem:[%s24523_s1 + $0x2228] sm:$0xff]   ;;  %v19728_v42 = vld [vmem:[%s24523_s1 + $0x2220] sm:$0xff]   ;;  %v19731_v45 = vld [vmem:[%s24523_s1 + $0x2258] sm:$0xff]  }
 0x42a   :  { %v17769_v49 = vpop.f32.mrf.mxu1  ;;  %18061 = vmatprep.subr.bf16.mxu1 %v19689_v53  ;;  %v19729_v43 = vld [vmem:[%s24523_s1 + $0x22e0] sm:$0xff]   ;;  %v19736_v50 = vld [vmem:[%s24523_s1 + $0x2210] sm:$0xff]   ;;  %v19739_v53 = vld [vmem:[%s24523_s1 + $0x2248] sm:$0xff]  }
 0x42b   :  { %18040 = vmatpush3.bf16.msra.mxu0 %v19688_v52  ;;  %v19735_v49 = vld [vmem:[%s24523_s1 + $0x2250] sm:$0xff]  }
 0x42c   :  { %18041 = vmatprep.subr.bf16.mxu0 %v19691_v55  ;;  %v19738_v52 = vld [vmem:[%s24523_s1 + $0x2290] sm:$0xff]   ;;  %v19741_v55 = vld [vmem:[%s24523_s1 + $0x22c8] sm:$0xff]  }
 0x42d   :  { %18062 = vmatpush3.bf16.msra.mxu1 %v19690_v54  ;;  %v19740_v54 = vld [vmem:[%s24523_s1 + $0x2208] sm:$0xff]  }
 0x42e   :  { %18063 = vmatprep.subr.bf16.mxu1 %v19693_v57  ;;  %v19743_v57 = vld [vmem:[%s24523_s1 + $0x2240] sm:$0xff]  }
 0x42f   :  { %18042 = vmatpush3.bf16.msra.mxu0 %v19692_v56  ;;  %v19742_v56 = vld [vmem:[%s24523_s1 + $0x2288] sm:$0xff]  }
 0x430   :  { %18043 = vmatprep.subr.bf16.mxu0 %v19695_v59  ;;  %v19745_v59 = vld [vmem:[%s24523_s1 + $0x22c0] sm:$0xff]  }
 0x431   :  { %18064 = vmatpush3.bf16.msra.mxu1 %v19694_v58  ;;  %v19744_v58 = vld [vmem:[%s24523_s1 + $0x2200] sm:$0xff]  }
 0x432   :  { %18065 = vmatprep.subr.bf16.mxu1 %v19697_v61 }
 0x433   :  { %18044 = vmatpush3.bf16.msra.mxu0 %v19696_v60  ;;  %v89_v60 = vld [vmem:[%s24524_s0 + $0x220] sm:$0xff] }
 0x434   :  { %18045 = vmatprep.subr.bf16.mxu0 %v19699_v63  ;;  %v15190_v63 = vcombine.high %v89_v60, %v89_v60 }
 0x435   :  { %18066 = vmatpush3.bf16.msra.mxu1 %v19698_v62  ;;  %v15189_v62 = vcombine.low %v89_v60, %v89_v60 }
 0x436   :  { %18067 = vmatprep.subr.bf16.mxu1 %v19701_v1  ;;  %v19749_v1 = vld [vmem:[%s24523_s1 + $0x2378] sm:$0xff]  }
 0x437   :  { %18046 = vmatpush3.bf16.msra.mxu0 %v19700_v0  ;;  %v19748_v0 = vld [vmem:[%s24523_s1 + $0x2280] sm:$0xff]  }
 0x438   :  { %18047 = vmatprep.subr.bf16.mxu0 %v19703_v3 }
 0x439   :  { %18068 = vmatpush3.bf16.msra.mxu1 %v19702_v2  ;;  %v90_v2 = vld [vmem:[%s24524_s0 + $0x228] sm:$0xff] }
 0x43a   :  { %18069 = vmatprep.subr.bf16.mxu1 %v19705_v5  ;;  %v15191_v5 = vcombine.low %v90_v2, %v90_v2 }
 0x43b   :  { %18048 = vmatpush3.bf16.msra.mxu0 %v19704_v4 }
 0x43c   :  { %18049 = vmatprep.subr.bf16.mxu0 %v19707_v7  ;;  %v19752_v7 = vld [vmem:[%s24523_s1 + $0x2338] sm:$0xff]  }
 0x43d   :  { %18070 = vmatpush3.bf16.msra.mxu1 %v19706_v6  ;;  %v15192_v6 = vcombine.high %v90_v2, %v90_v2  ;;  %v19791_v2 = vld [vmem:[%s24523_s1 + $0x2470] sm:$0xff]  }
 0x43e   :  { %18071 = vmatprep.subr.bf16.mxu1 %v19709_v9  ;;  %v19753_v9 = vld [vmem:[%s24523_s1 + $0x23f8] sm:$0xff]  }
 0x43f   :  { %18050 = vmatpush3.bf16.msra.mxu0 %v19708_v8 }
 0x440   :  { %18079 = vmatprep.subr.bf16.mxu0 %v19713_v15  ;;  %v19755_v15 = vld [vmem:[%s24523_s1 + $0x2370] sm:$0xff]  }
 0x441   :  { %18072 = vmatpush3.bf16.msra.mxu1 %v19712_v14 }
 0x442   :  { %v17787_v11 = vpop.f32.mrf.mxu0  ;;  %14194 = vmatmul.mubr.bf16.vlgmr.msra.gmra.mxu0 %v15185_v12  ;;  %18101 = vmatprep.subr.bf16.mxu1 %v19717_v23  ;;  %v19759_v23 = vld [vmem:[%s24523_s1 + $0x2368] sm:$0xff]  }
 0x443   :  { %18080 = vmatpush3.bf16.msra.mxu0 %v19716_v21  ;;  %14273 = vmatprep.mubr.bf16.mxu0 %v15190_v63  ;;  %v19790_v63 = vld [vmem:[%s24523_s1 + $0x24b8] sm:$0xff]  }
 0x444   :  { %v17788_v17 = vpop.f32.mrf.mxu0  ;;  %v17809_v18 = vpop.f32.mrf.mxu1  ;;  %14234 = vmatmul.mubr.bf16.vlgmr.msra.gmra.mxu1 %v15187_v19  ;;  %18081 = vmatprep.subr.bf16.mxu0 %v19719_v29  ;;  %v19756_v19 = vld [vmem:[%s24523_s1 + $0x2330] sm:$0xff]   ;;  %v19765_v29 = vld [vmem:[%s24523_s1 + $0x23e0] sm:$0xff]  }
 0x445   :  { %v17789_v22 = vadd.f32 %v17788_v17, %v17787_v11  ;;  %18102 = vmatpush3.bf16.msra.mxu1 %v19718_v27  ;;  %14313 = vmatprep.mubr.bf16.mxu1 %v15192_v6  ;;  %v19763_v27 = vld [vmem:[%s24523_s1 + $0x2360] sm:$0xff]   ;;  %v19793_v6 = vld [vmem:[%s24523_s1 + $0x24f0] sm:$0xff]  }
 0x446   :  { %v17790_v24 = vpop.f32.mrf.mxu0  ;;  %v17810_v25 = vpop.f32.mrf.mxu1  ;;  %18103 = vmatprep.subr.bf16.mxu1 %v19721_v34  ;;  %v19770_v34 = vld [vmem:[%s24523_s1 + $0x2398] sm:$0xff]  }
 0x447   :  { %v13716_v26 = vadd.f32 %v17789_v22, %v23518_v46  ;;  %v17811_v28 = vadd.f32 %v17810_v25, %v17809_v18  ;;  %18082 = vmatpush3.bf16.msra.mxu0 %v19720_v33  ;;  %v19732_v46 = vld [vmem:[%s24523_s1 + $0x2218] sm:$0xff]   ;;  %v19758_v22 = vld [vmem:[%s24523_s1 + $0x23b0] sm:$0xff]   ;;  %v19760_v24 = vld [vmem:[%s24523_s1 + $0x2328] sm:$0xff]  }
 0x448   :  { %v17791_v30 = vpop.f32.mrf.mxu0  ;;  %v17812_v31 = vpop.f32.mrf.mxu1  ;;  %18083 = vmatprep.subr.bf16.mxu0 %v19723_v37  ;;  %v19761_v25 = vld [vmem:[%s24523_s1 + $0x23e8] sm:$0xff]   ;;  %v19769_v33 = vld [vmem:[%s24523_s1 + $0x23d8] sm:$0xff]   ;;  %v19773_v37 = vld [vmem:[%s24523_s1 + $0x23d0] sm:$0xff]  }
 0x449   :  { %v23623_v32 = vadd.f32 %v17811_v28, %v13716_v26  ;;  %18104 = vmatpush3.bf16.msra.mxu1 %v19722_v36  ;;  %v19762_v26 = vld [vmem:[%s24523_s1 + $0x23a8] sm:$0xff]   ;;  %v19764_v28 = vld [vmem:[%s24523_s1 + $0x2320] sm:$0xff]   ;;  %v19767_v31 = vld [vmem:[%s24523_s1 + $0x2358] sm:$0xff]  }
 0x44a   :  { %v17813_v35 = vpop.f32.mrf.mxu1  ;;  %18105 = vmatprep.subr.bf16.mxu1 %v19725_v39  ;;  %v19766_v30 = vld [vmem:[%s24523_s1 + $0x23a0] sm:$0xff]   ;;  %v19772_v36 = vld [vmem:[%s24523_s1 + $0x2310] sm:$0xff]   ;;  %v19775_v39 = vld [vmem:[%s24523_s1 + $0x2348] sm:$0xff]  }
 0x44b   :  { %18084 = vmatpush3.bf16.msra.mxu0 %v19724_v38  ;;  %v19771_v35 = vld [vmem:[%s24523_s1 + $0x2350] sm:$0xff]  }
 0x44c   :  { %18085 = vmatprep.subr.bf16.mxu0 %v19727_v41  ;;  %v19774_v38 = vld [vmem:[%s24523_s1 + $0x2390] sm:$0xff]   ;;  %v19777_v41 = vld [vmem:[%s24523_s1 + $0x23c8] sm:$0xff]  }
 0x44d   :  { %18106 = vmatpush3.bf16.msra.mxu1 %v19726_v40  ;;  %v19776_v40 = vld [vmem:[%s24523_s1 + $0x2308] sm:$0xff]  }
 0x44e   :  { %18107 = vmatprep.subr.bf16.mxu1 %v19729_v43  ;;  %v19779_v43 = vld [vmem:[%s24523_s1 + $0x2340] sm:$0xff]  }
 0x44f   :  { %18086 = vmatpush3.bf16.msra.mxu0 %v19728_v42  ;;  %v19778_v42 = vld [vmem:[%s24523_s1 + $0x2388] sm:$0xff]  }
 0x450   :  { %18087 = vmatprep.subr.bf16.mxu0 %v19731_v45  ;;  %v19781_v45 = vld [vmem:[%s24523_s1 + $0x23c0] sm:$0xff]  }
 0x451   :  { %18108 = vmatpush3.bf16.msra.mxu1 %v19730_v44  ;;  %v19780_v44 = vld [vmem:[%s24523_s1 + $0x2300] sm:$0xff]  }
 0x452   :  { %18109 = vmatprep.subr.bf16.mxu1 %v19733_v47 }
 0x453   :  { %18088 = vmatpush3.bf16.msra.mxu0 %v19732_v46  ;;  %v91_v46 = vld [vmem:[%s24524_s0 + $0x230] sm:$0xff] }
 0x454   :  { %18089 = vmatprep.subr.bf16.mxu0 %v19735_v49  ;;  %v15194_v49 = vcombine.high %v91_v46, %v91_v46 }
 0x455   :  { %18110 = vmatpush3.bf16.msra.mxu1 %v19734_v48  ;;  %v15193_v48 = vcombine.low %v91_v46, %v91_v46 }
 0x456   :  { %18111 = vmatprep.subr.bf16.mxu1 %v19737_v51  ;;  %v19785_v51 = vld [vmem:[%s24523_s1 + $0x2478] sm:$0xff]  }
 0x457   :  { %18090 = vmatpush3.bf16.msra.mxu0 %v19736_v50  ;;  %v19784_v50 = vld [vmem:[%s24523_s1 + $0x2380] sm:$0xff]  }
 0x458   :  { %18091 = vmatprep.subr.bf16.mxu0 %v19739_v53  ;;  %v92_v53 = vld [vmem:[%s24524_s0 + $0x238] sm:$0xff] }
 0x459   :  { %18112 = vmatpush3.bf16.msra.mxu1 %v19738_v52 }
 0x45a   :  { %18113 = vmatprep.subr.bf16.mxu1 %v19741_v55 }
 0x45b   :  { %18092 = vmatpush3.bf16.msra.mxu0 %v19740_v54 }
 0x45c   :  { %18093 = vmatprep.subr.bf16.mxu0 %v19743_v57  ;;  %v15196_v57 = vcombine.high %v92_v53, %v92_v53 }
 0x45d   :  { %18114 = vmatpush3.bf16.msra.mxu1 %v19742_v56  ;;  %v15195_v56 = vcombine.low %v92_v53, %v92_v53 }
 0x45e   :  { %18115 = vmatprep.subr.bf16.mxu1 %v19745_v59 }
 0x45f   :  { %18094 = vmatpush3.bf16.msra.mxu0 %v19744_v58  ;;  %v19788_v58 = vld [vmem:[%s24523_s1 + $0x2438] sm:$0xff]  }
 0x460   :  { %18123 = vmatprep.subr.bf16.mxu0 %v19749_v1 }
 0x461   :  { %18116 = vmatpush3.bf16.msra.mxu1 %v19748_v0 }
 0x462   :  { %v17831_v61 = vpop.f32.mrf.mxu0  ;;  %14274 = vmatmul.mubr.bf16.vlgmr.msra.gmra.mxu0 %v15189_v62  ;;  %18145 = vmatprep.subr.bf16.mxu1 %v19753_v9  ;;  %v19795_v9 = vld [vmem:[%s24523_s1 + $0x2468] sm:$0xff]  }
 0x463   :  { %18124 = vmatpush3.bf16.msra.mxu0 %v19752_v7  ;;  %14353 = vmatprep.mubr.bf16.mxu0 %v15194_v49  ;;  %v19826_v49 = vld [vmem:[%s24523_s1 + $0x25b8] sm:$0xff]  }
 0x464   :  { %v17832_v3 = vpop.f32.mrf.mxu0  ;;  %v17853_v4 = vpop.f32.mrf.mxu1  ;;  %14314 = vmatmul.mubr.bf16.vlgmr.msra.gmra.mxu1 %v15191_v5  ;;  %18125 = vmatprep.subr.bf16.mxu0 %v19755_v15  ;;  %v19792_v5 = vld [vmem:[%s24523_s1 + $0x2430] sm:$0xff]   ;;  %v19801_v15 = vld [vmem:[%s24523_s1 + $0x24e0] sm:$0xff]  }
 0x465   :  { %v17833_v8 = vadd.f32 %v17832_v3, %v17831_v61  ;;  %18146 = vmatpush3.bf16.msra.mxu1 %v19754_v13  ;;  %v19789_v61 = vld [vmem:[%s24523_s1 + $0x24f8] sm:$0xff]   ;;  %14393 = vmatprep.mubr.bf16.mxu1 %v15196_v57  ;;  %v19799_v13 = vld [vmem:[%s24523_s1 + $0x2460] sm:$0xff]  }
 0x466   :  { %v17834_v10 = vpop.f32.mrf.mxu0  ;;  %v17854_v11 = vpop.f32.mrf.mxu1  ;;  %18147 = vmatprep.subr.bf16.mxu1 %v19757_v20  ;;  %v19806_v20 = vld [vmem:[%s24523_s1 + $0x2498] sm:$0xff]  }
 0x467   :  { %v13796_v12 = vadd.f32 %v17833_v8, %v23623_v32  ;;  %v17855_v14 = vadd.f32 %v17854_v11, %v17853_v4  ;;  %18126 = vmatpush3.bf16.msra.mxu0 %v19756_v19  ;;  %v19768_v32 = vld [vmem:[%s24523_s1 + $0x2318] sm:$0xff]   ;;  %v19794_v8 = vld [vmem:[%s24523_s1 + $0x24b0] sm:$0xff]   ;;  %v19796_v10 = vld [vmem:[%s24523_s1 + $0x2428] sm:$0xff]  }
 0x468   :  { %v17835_v16 = vpop.f32.mrf.mxu0  ;;  %v17856_v17 = vpop.f32.mrf.mxu1  ;;  %18127 = vmatprep.subr.bf16.mxu0 %v19759_v23  ;;  %v19797_v11 = vld [vmem:[%s24523_s1 + $0x24e8] sm:$0xff]   ;;  %v19805_v19 = vld [vmem:[%s24523_s1 + $0x24d8] sm:$0xff]   ;;  %v19809_v23 = vld [vmem:[%s24523_s1 + $0x24d0] sm:$0xff]  }
 0x469   :  { %v23728_v18 = vadd.f32 %v17855_v14, %v13796_v12  ;;  %18148 = vmatpush3.bf16.msra.mxu1 %v19758_v22  ;;  %v19798_v12 = vld [vmem:[%s24523_s1 + $0x24a8] sm:$0xff]   ;;  %v19800_v14 = vld [vmem:[%s24523_s1 + $0x2420] sm:$0xff]   ;;  %v19803_v17 = vld [vmem:[%s24523_s1 + $0x2458] sm:$0xff]  }
 0x46a   :  { %v17857_v21 = vpop.f32.mrf.mxu1  ;;  %18149 = vmatprep.subr.bf16.mxu1 %v19761_v25  ;;  %v19802_v16 = vld [vmem:[%s24523_s1 + $0x24a0] sm:$0xff]   ;;  %v19808_v22 = vld [vmem:[%s24523_s1 + $0x2410] sm:$0xff]   ;;  %v19811_v25 = vld [vmem:[%s24523_s1 + $0x2448] sm:$0xff]  }
 0x46b   :  { %18128 = vmatpush3.bf16.msra.mxu0 %v19760_v24  ;;  %v19807_v21 = vld [vmem:[%s24523_s1 + $0x2450] sm:$0xff]  }
 0x46c   :  { %18129 = vmatprep.subr.bf16.mxu0 %v19763_v27  ;;  %v19810_v24 = vld [vmem:[%s24523_s1 + $0x2490] sm:$0xff]   ;;  %v19813_v27 = vld [vmem:[%s24523_s1 + $0x24c8] sm:$0xff]  }
 0x46d   :  { %18150 = vmatpush3.bf16.msra.mxu1 %v19762_v26  ;;  %v19812_v26 = vld [vmem:[%s24523_s1 + $0x2408] sm:$0xff]  }
 0x46e   :  { %18151 = vmatprep.subr.bf16.mxu1 %v19765_v29  ;;  %v19815_v29 = vld [vmem:[%s24523_s1 + $0x2440] sm:$0xff]  }
 0x46f   :  { %18130 = vmatpush3.bf16.msra.mxu0 %v19764_v28  ;;  %v19814_v28 = vld [vmem:[%s24523_s1 + $0x2488] sm:$0xff]  }
 0x470   :  { %18131 = vmatprep.subr.bf16.mxu0 %v19767_v31  ;;  %v19817_v31 = vld [vmem:[%s24523_s1 + $0x24c0] sm:$0xff]  }
 0x471   :  { %18152 = vmatpush3.bf16.msra.mxu1 %v19766_v30  ;;  %v19816_v30 = vld [vmem:[%s24523_s1 + $0x2400] sm:$0xff]  }
 0x472   :  { %18153 = vmatprep.subr.bf16.mxu1 %v19769_v33 }
 0x473   :  { %18132 = vmatpush3.bf16.msra.mxu0 %v19768_v32  ;;  %v93_v32 = vld [vmem:[%s24524_s0 + $0x240] sm:$0xff] }
 0x474   :  { %18133 = vmatprep.subr.bf16.mxu0 %v19771_v35  ;;  %v15198_v35 = vcombine.high %v93_v32, %v93_v32 }
 0x475   :  { %18154 = vmatpush3.bf16.msra.mxu1 %v19770_v34  ;;  %v15197_v34 = vcombine.low %v93_v32, %v93_v32 }
 0x476   :  { %18155 = vmatprep.subr.bf16.mxu1 %v19773_v37  ;;  %v19821_v37 = vld [vmem:[%s24523_s1 + $0x2578] sm:$0xff]  }
 0x477   :  { %18134 = vmatpush3.bf16.msra.mxu0 %v19772_v36  ;;  %v19820_v36 = vld [vmem:[%s24523_s1 + $0x2480] sm:$0xff]  }
 0x478   :  { %18135 = vmatprep.subr.bf16.mxu0 %v19775_v39 }
 0x479   :  { %18156 = vmatpush3.bf16.msra.mxu1 %v19774_v38  ;;  %v94_v38 = vld [vmem:[%s24524_s0 + $0x248] sm:$0xff] }
 0x47a   :  { %18157 = vmatprep.subr.bf16.mxu1 %v19777_v41  ;;  %v15199_v41 = vcombine.low %v94_v38, %v94_v38 }
 0x47b   :  { %18136 = vmatpush3.bf16.msra.mxu0 %v19776_v40 }
 0x47c   :  { %18137 = vmatprep.subr.bf16.mxu0 %v19779_v43  ;;  %v19824_v43 = vld [vmem:[%s24523_s1 + $0x2538] sm:$0xff]  }
 0x47d   :  { %18158 = vmatpush3.bf16.msra.mxu1 %v19778_v42  ;;  %v15200_v42 = vcombine.high %v94_v38, %v94_v38 }
 0x47e   :  { %18159 = vmatprep.subr.bf16.mxu1 %v19781_v45  ;;  %v19825_v45 = vld [vmem:[%s24523_s1 + $0x25f8] sm:$0xff]  }
 0x47f   :  { %18138 = vmatpush3.bf16.msra.mxu0 %v19780_v44 }
 0x480   :  { %18167 = vmatprep.subr.bf16.mxu0 %v19785_v51  ;;  %v19827_v51 = vld [vmem:[%s24523_s1 + $0x2570] sm:$0xff]  }
 0x481   :  { %18160 = vmatpush3.bf16.msra.mxu1 %v19784_v50 }
 0x482   :  { %v17875_v47 = vpop.f32.mrf.mxu0  ;;  %14354 = vmatmul.mubr.bf16.vlgmr.msra.gmra.mxu0 %v15193_v48  ;;  %18189 = vmatprep.subr.bf16.mxu1 %v19789_v61  ;;  %v19833_v61 = vld [vmem:[%s24523_s1 + $0x25e8] sm:$0xff]  }
 0x483   :  { %18168 = vmatpush3.bf16.msra.mxu0 %v19788_v58  ;;  %14433 = vmatprep.mubr.bf16.mxu0 %v15198_v35  ;;  %v19830_v58 = vld [vmem:[%s24523_s1 + $0x25b0] sm:$0xff]   ;;  %v19862_v35 = vld [vmem:[%s24523_s1 + $0x26b8] sm:$0xff]  }
 0x484   :  { %v17876_v52 = vpop.f32.mrf.mxu0  ;;  %v17897_v55 = vpop.f32.mrf.mxu1  ;;  %14394 = vmatmul.mubr.bf16.vlgmr.msra.gmra.mxu1 %v15195_v56  ;;  %18169 = vmatprep.subr.bf16.mxu0 %v19791_v2  ;;  %v19829_v56 = vld [vmem:[%s24523_s1 + $0x25f0] sm:$0xff]   ;;  %v19838_v2 = vld [vmem:[%s24523_s1 + $0x25a0] sm:$0xff]  }
 0x485   :  { %v17877_v54 = vadd.f32 %v17876_v52, %v17875_v47  ;;  %18190 = vmatpush3.bf16.msra.mxu1 %v19790_v63  ;;  %14473 = vmatprep.mubr.bf16.mxu1 %v15200_v42  ;;  %v19835_v63 = vld [vmem:[%s24523_s1 + $0x2560] sm:$0xff]   ;;  %v19865_v42 = vld [vmem:[%s24523_s1 + $0x26f0] sm:$0xff]  }
 0x486   :  { %v17878_v59 = vpop.f32.mrf.mxu0  ;;  %v17898_v62 = vpop.f32.mrf.mxu1  ;;  %18191 = vmatprep.subr.bf16.mxu1 %v19793_v6  ;;  %v19842_v6 = vld [vmem:[%s24523_s1 + $0x2598] sm:$0xff]  }
 0x487   :  { %v13876_v60 = vadd.f32 %v17877_v54, %v23728_v18  ;;  %v17899_v0 = vadd.f32 %v17898_v62, %v17897_v55  ;;  %18170 = vmatpush3.bf16.msra.mxu0 %v19792_v5  ;;  %v19804_v18 = vld [vmem:[%s24523_s1 + $0x2418] sm:$0xff]   ;;  %v19828_v55 = vld [vmem:[%s24523_s1 + $0x2530] sm:$0xff]   ;;  %v19831_v59 = vld [vmem:[%s24523_s1 + $0x2568] sm:$0xff]  }
 0x488   :  { %v17879_v1 = vpop.f32.mrf.mxu0  ;;  %v17900_v3 = vpop.f32.mrf.mxu1  ;;  %18171 = vmatprep.subr.bf16.mxu0 %v19795_v9  ;;  %v19834_v62 = vld [vmem:[%s24523_s1 + $0x25a8] sm:$0xff]   ;;  %v19841_v5 = vld [vmem:[%s24523_s1 + $0x25d8] sm:$0xff]   ;;  %v19845_v9 = vld [vmem:[%s24523_s1 + $0x25d0] sm:$0xff]  }
 0x489   :  { %v23833_v4 = vadd.f32 %v17899_v0, %v13876_v60  ;;  %18192 = vmatpush3.bf16.msra.mxu1 %v19794_v8  ;;  %v19832_v60 = vld [vmem:[%s24523_s1 + $0x2528] sm:$0xff]   ;;  %v19836_v0 = vld [vmem:[%s24523_s1 + $0x2520] sm:$0xff]   ;;  %v19839_v3 = vld [vmem:[%s24523_s1 + $0x2558] sm:$0xff]  }
 0x48a   :  { %v17901_v7 = vpop.f32.mrf.mxu1  ;;  %18193 = vmatprep.subr.bf16.mxu1 %v19797_v11  ;;  %v19837_v1 = vld [vmem:[%s24523_s1 + $0x25e0] sm:$0xff]   ;;  %v19844_v8 = vld [vmem:[%s24523_s1 + $0x2510] sm:$0xff]   ;;  %v19847_v11 = vld [vmem:[%s24523_s1 + $0x2548] sm:$0xff]  }
 0x48b   :  { %18172 = vmatpush3.bf16.msra.mxu0 %v19796_v10  ;;  %v19843_v7 = vld [vmem:[%s24523_s1 + $0x2550] sm:$0xff]  }
 0x48c   :  { %18173 = vmatprep.subr.bf16.mxu0 %v19799_v13  ;;  %v19846_v10 = vld [vmem:[%s24523_s1 + $0x2590] sm:$0xff]   ;;  %v19849_v13 = vld [vmem:[%s24523_s1 + $0x25c8] sm:$0xff]  }
 0x48d   :  { %18194 = vmatpush3.bf16.msra.mxu1 %v19798_v12  ;;  %v19848_v12 = vld [vmem:[%s24523_s1 + $0x2508] sm:$0xff]  }
 0x48e   :  { %18195 = vmatprep.subr.bf16.mxu1 %v19801_v15  ;;  %v19851_v15 = vld [vmem:[%s24523_s1 + $0x2540] sm:$0xff]  }
 0x48f   :  { %18174 = vmatpush3.bf16.msra.mxu0 %v19800_v14  ;;  %v19850_v14 = vld [vmem:[%s24523_s1 + $0x2588] sm:$0xff]  }
 0x490   :  { %18175 = vmatprep.subr.bf16.mxu0 %v19803_v17  ;;  %v19853_v17 = vld [vmem:[%s24523_s1 + $0x25c0] sm:$0xff]  }
 0x491   :  { %18196 = vmatpush3.bf16.msra.mxu1 %v19802_v16  ;;  %v19852_v16 = vld [vmem:[%s24523_s1 + $0x2500] sm:$0xff]  }
 0x492   :  { %18197 = vmatprep.subr.bf16.mxu1 %v19805_v19 }
 0x493   :  { %18176 = vmatpush3.bf16.msra.mxu0 %v19804_v18  ;;  %v95_v18 = vld [vmem:[%s24524_s0 + $0x250] sm:$0xff] }
 0x494   :  { %18177 = vmatprep.subr.bf16.mxu0 %v19807_v21  ;;  %v15202_v21 = vcombine.high %v95_v18, %v95_v18 }
 0x495   :  { %18198 = vmatpush3.bf16.msra.mxu1 %v19806_v20  ;;  %v15201_v20 = vcombine.low %v95_v18, %v95_v18 }
 0x496   :  { %18199 = vmatprep.subr.bf16.mxu1 %v19809_v23  ;;  %v19857_v23 = vld [vmem:[%s24523_s1 + $0x2678] sm:$0xff]  }
 0x497   :  { %18178 = vmatpush3.bf16.msra.mxu0 %v19808_v22  ;;  %v19856_v22 = vld [vmem:[%s24523_s1 + $0x2580] sm:$0xff]  }
 0x498   :  { %18179 = vmatprep.subr.bf16.mxu0 %v19811_v25 }
 0x499   :  { %18200 = vmatpush3.bf16.msra.mxu1 %v19810_v24  ;;  %v96_v24 = vld [vmem:[%s24524_s0 + $0x258] sm:$0xff] }
 0x49a   :  { %18201 = vmatprep.subr.bf16.mxu1 %v19813_v27  ;;  %v15203_v27 = vcombine.low %v96_v24, %v96_v24 }
 0x49b   :  { %18180 = vmatpush3.bf16.msra.mxu0 %v19812_v26 }
 0x49c   :  { %18181 = vmatprep.subr.bf16.mxu0 %v19815_v29  ;;  %v19860_v29 = vld [vmem:[%s24523_s1 + $0x2638] sm:$0xff]  }
 0x49d   :  { %18202 = vmatpush3.bf16.msra.mxu1 %v19814_v28  ;;  %v15204_v28 = vcombine.high %v96_v24, %v96_v24  ;;  %v19899_v24 = vld [vmem:[%s24523_s1 + $0x2770] sm:$0xff]  }
 0x49e   :  { %18203 = vmatprep.subr.bf16.mxu1 %v19817_v31  ;;  %v19861_v31 = vld [vmem:[%s24523_s1 + $0x26f8] sm:$0xff]  }
 0x49f   :  { %18182 = vmatpush3.bf16.msra.mxu0 %v19816_v30 }
 0x4a0   :  { %18211 = vmatprep.subr.bf16.mxu0 %v19821_v37  ;;  %v19863_v37 = vld [vmem:[%s24523_s1 + $0x2670] sm:$0xff]  }
 0x4a1   :  { %18204 = vmatpush3.bf16.msra.mxu1 %v19820_v36 }
 0x4a2   :  { %v17919_v33 = vpop.f32.mrf.mxu0  ;;  %14434 = vmatmul.mubr.bf16.vlgmr.msra.gmra.mxu0 %v15197_v34  ;;  %18233 = vmatprep.subr.bf16.mxu1 %v19825_v45  ;;  %v19867_v45 = vld [vmem:[%s24523_s1 + $0x2668] sm:$0xff]  }
 0x4a3   :  { %18212 = vmatpush3.bf16.msra.mxu0 %v19824_v43  ;;  %14513 = vmatprep.mubr.bf16.mxu0 %v15202_v21  ;;  %v19898_v21 = vld [vmem:[%s24523_s1 + $0x27b8] sm:$0xff]  }
 0x4a4   :  { %v17920_v39 = vpop.f32.mrf.mxu0  ;;  %v17941_v40 = vpop.f32.mrf.mxu1  ;;  %14474 = vmatmul.mubr.bf16.vlgmr.msra.gmra.mxu1 %v15199_v41  ;;  %18213 = vmatprep.subr.bf16.mxu0 %v19827_v51  ;;  %v19864_v41 = vld [vmem:[%s24523_s1 + $0x2630] sm:$0xff]   ;;  %v19873_v51 = vld [vmem:[%s24523_s1 + $0x26e0] sm:$0xff]  }
 0x4a5   :  { %v17921_v44 = vadd.f32 %v17920_v39, %v17919_v33  ;;  %18234 = vmatpush3.bf16.msra.mxu1 %v19826_v49  ;;  %14553 = vmatprep.mubr.bf16.mxu1 %v15204_v28  ;;  %v19871_v49 = vld [vmem:[%s24523_s1 + $0x2660] sm:$0xff]   ;;  %v19901_v28 = vld [vmem:[%s24523_s1 + $0x27f0] sm:$0xff]  }
 0x4a6   :  { %v17922_v46 = vpop.f32.mrf.mxu0  ;;  %v17942_v47 = vpop.f32.mrf.mxu1  ;;  %18235 = vmatprep.subr.bf16.mxu1 %v19829_v56  ;;  %v19878_v56 = vld [vmem:[%s24523_s1 + $0x2698] sm:$0xff]  }
 0x4a7   :  { %v13956_v48 = vadd.f32 %v17921_v44, %v23833_v4  ;;  %v17943_v50 = vadd.f32 %v17942_v47, %v17941_v40  ;;  %18214 = vmatpush3.bf16.msra.mxu0 %v19828_v55  ;;  %v19840_v4 = vld [vmem:[%s24523_s1 + $0x2518] sm:$0xff]   ;;  %v19866_v44 = vld [vmem:[%s24523_s1 + $0x26b0] sm:$0xff]   ;;  %v19868_v46 = vld [vmem:[%s24523_s1 + $0x2628] sm:$0xff]  }
 0x4a8   :  { %v17923_v52 = vpop.f32.mrf.mxu0  ;;  %v17944_v53 = vpop.f32.mrf.mxu1  ;;  %18215 = vmatprep.subr.bf16.mxu0 %v19831_v59  ;;  %v19869_v47 = vld [vmem:[%s24523_s1 + $0x26e8] sm:$0xff]   ;;  %v19877_v55 = vld [vmem:[%s24523_s1 + $0x26d8] sm:$0xff]   ;;  %v19881_v59 = vld [vmem:[%s24523_s1 + $0x26d0] sm:$0xff]  }
 0x4a9   :  { %v23938_v54 = vadd.f32 %v17943_v50, %v13956_v48  ;;  %18236 = vmatpush3.bf16.msra.mxu1 %v19830_v58  ;;  %v19870_v48 = vld [vmem:[%s24523_s1 + $0x26a8] sm:$0xff]   ;;  %v19872_v50 = vld [vmem:[%s24523_s1 + $0x2620] sm:$0xff]   ;;  %v19875_v53 = vld [vmem:[%s24523_s1 + $0x2658] sm:$0xff]  }
 0x4aa   :  { %v17945_v57 = vpop.f32.mrf.mxu1  ;;  %18237 = vmatprep.subr.bf16.mxu1 %v19833_v61  ;;  %v19874_v52 = vld [vmem:[%s24523_s1 + $0x26a0] sm:$0xff]   ;;  %v19880_v58 = vld [vmem:[%s24523_s1 + $0x2610] sm:$0xff]   ;;  %v19883_v61 = vld [vmem:[%s24523_s1 + $0x2648] sm:$0xff]  }
 0x4ab   :  { %18216 = vmatpush3.bf16.msra.mxu0 %v19832_v60  ;;  %v19879_v57 = vld [vmem:[%s24523_s1 + $0x2650] sm:$0xff]  }
 0x4ac   :  { %18217 = vmatprep.subr.bf16.mxu0 %v19835_v63  ;;  %v19882_v60 = vld [vmem:[%s24523_s1 + $0x2690] sm:$0xff]   ;;  %v19885_v63 = vld [vmem:[%s24523_s1 + $0x26c8] sm:$0xff]  }
 0x4ad   :  { %18238 = vmatpush3.bf16.msra.mxu1 %v19834_v62  ;;  %v19884_v62 = vld [vmem:[%s24523_s1 + $0x2608] sm:$0xff]  }
 0x4ae   :  { %18239 = vmatprep.subr.bf16.mxu1 %v19837_v1  ;;  %v19887_v1 = vld [vmem:[%s24523_s1 + $0x2640] sm:$0xff]  }
 0x4af   :  { %18218 = vmatpush3.bf16.msra.mxu0 %v19836_v0  ;;  %v19886_v0 = vld [vmem:[%s24523_s1 + $0x2688] sm:$0xff]  }
 0x4b0   :  { %18219 = vmatprep.subr.bf16.mxu0 %v19839_v3  ;;  %v19889_v3 = vld [vmem:[%s24523_s1 + $0x26c0] sm:$0xff]  }
 0x4b1   :  { %18240 = vmatpush3.bf16.msra.mxu1 %v19838_v2  ;;  %v19888_v2 = vld [vmem:[%s24523_s1 + $0x2600] sm:$0xff]  }
 0x4b2   :  { %18241 = vmatprep.subr.bf16.mxu1 %v19841_v5 }
 0x4b3   :  { %18220 = vmatpush3.bf16.msra.mxu0 %v19840_v4  ;;  %v97_v4 = vld [vmem:[%s24524_s0 + $0x260] sm:$0xff] }
 0x4b4   :  { %18221 = vmatprep.subr.bf16.mxu0 %v19843_v7  ;;  %v15206_v7 = vcombine.high %v97_v4, %v97_v4 }
 0x4b5   :  { %18242 = vmatpush3.bf16.msra.mxu1 %v19842_v6  ;;  %v15205_v6 = vcombine.low %v97_v4, %v97_v4 }
 0x4b6   :  { %18243 = vmatprep.subr.bf16.mxu1 %v19845_v9  ;;  %v19893_v9 = vld [vmem:[%s24523_s1 + $0x2778] sm:$0xff]  }
 0x4b7   :  { %18222 = vmatpush3.bf16.msra.mxu0 %v19844_v8  ;;  %v19892_v8 = vld [vmem:[%s24523_s1 + $0x2680] sm:$0xff]  }
 0x4b8   :  { %18223 = vmatprep.subr.bf16.mxu0 %v19847_v11  ;;  %v98_v11 = vld [vmem:[%s24524_s0 + $0x268] sm:$0xff] }
 0x4b9   :  { %18244 = vmatpush3.bf16.msra.mxu1 %v19846_v10 }
 0x4ba   :  { %18245 = vmatprep.subr.bf16.mxu1 %v19849_v13 }
 0x4bb   :  { %18224 = vmatpush3.bf16.msra.mxu0 %v19848_v12 }
 0x4bc   :  { %18225 = vmatprep.subr.bf16.mxu0 %v19851_v15  ;;  %v15208_v15 = vcombine.high %v98_v11, %v98_v11 }
 0x4bd   :  { %18246 = vmatpush3.bf16.msra.mxu1 %v19850_v14  ;;  %v15207_v14 = vcombine.low %v98_v11, %v98_v11 }
 0x4be   :  { %18247 = vmatprep.subr.bf16.mxu1 %v19853_v17 }
 0x4bf   :  { %18226 = vmatpush3.bf16.msra.mxu0 %v19852_v16  ;;  %v19896_v16 = vld [vmem:[%s24523_s1 + $0x2738] sm:$0xff]  }
 0x4c0   :  { %18255 = vmatprep.subr.bf16.mxu0 %v19857_v23 }
 0x4c1   :  { %18248 = vmatpush3.bf16.msra.mxu1 %v19856_v22 }
 0x4c2   :  { %v17963_v19 = vpop.f32.mrf.mxu0  ;;  %14514 = vmatmul.mubr.bf16.vlgmr.msra.gmra.mxu0 %v15201_v20  ;;  %18277 = vmatprep.subr.bf16.mxu1 %v19861_v31  ;;  %v19903_v31 = vld [vmem:[%s24523_s1 + $0x2768] sm:$0xff]  }
 0x4c3   :  { %18256 = vmatpush3.bf16.msra.mxu0 %v19860_v29  ;;  %14593 = vmatprep.mubr.bf16.mxu0 %v15206_v7  ;;  %v19934_v7 = vld [vmem:[%s24523_s1 + $0x28b8] sm:$0xff]  }
 0x4c4   :  { %v17964_v25 = vpop.f32.mrf.mxu0  ;;  %v17985_v26 = vpop.f32.mrf.mxu1  ;;  %14554 = vmatmul.mubr.bf16.vlgmr.msra.gmra.mxu1 %v15203_v27  ;;  %18257 = vmatprep.subr.bf16.mxu0 %v19863_v37  ;;  %v19900_v27 = vld [vmem:[%s24523_s1 + $0x2730] sm:$0xff]   ;;  %v19909_v37 = vld [vmem:[%s24523_s1 + $0x27e0] sm:$0xff]  }
 0x4c5   :  { %v17965_v30 = vadd.f32 %v17964_v25, %v17963_v19  ;;  %18278 = vmatpush3.bf16.msra.mxu1 %v19862_v35  ;;  %v19897_v19 = vld [vmem:[%s24523_s1 + $0x27f8] sm:$0xff]   ;;  %14633 = vmatprep.mubr.bf16.mxu1 %v15208_v15  ;;  %v19907_v35 = vld [vmem:[%s24523_s1 + $0x2760] sm:$0xff]  }
 0x4c6   :  { %v17966_v32 = vpop.f32.mrf.mxu0  ;;  %v17986_v33 = vpop.f32.mrf.mxu1  ;;  %18279 = vmatprep.subr.bf16.mxu1 %v19865_v42  ;;  %v19914_v42 = vld [vmem:[%s24523_s1 + $0x2798] sm:$0xff]  }
 0x4c7   :  { %v14036_v34 = vadd.f32 %v17965_v30, %v23938_v54  ;;  %v17987_v36 = vadd.f32 %v17986_v33, %v17985_v26  ;;  %18258 = vmatpush3.bf16.msra.mxu0 %v19864_v41  ;;  %v19876_v54 = vld [vmem:[%s24523_s1 + $0x2618] sm:$0xff]   ;;  %v19902_v30 = vld [vmem:[%s24523_s1 + $0x27b0] sm:$0xff]   ;;  %v19904_v32 = vld [vmem:[%s24523_s1 + $0x2728] sm:$0xff]  }
 0x4c8   :  { %v17967_v38 = vpop.f32.mrf.mxu0  ;;  %v17988_v39 = vpop.f32.mrf.mxu1  ;;  %18259 = vmatprep.subr.bf16.mxu0 %v19867_v45  ;;  %v19905_v33 = vld [vmem:[%s24523_s1 + $0x27e8] sm:$0xff]   ;;  %v19913_v41 = vld [vmem:[%s24523_s1 + $0x27d8] sm:$0xff]   ;;  %v19917_v45 = vld [vmem:[%s24523_s1 + $0x27d0] sm:$0xff]  }
 0x4c9   :  { %v24043_v40 = vadd.f32 %v17987_v36, %v14036_v34  ;;  %18280 = vmatpush3.bf16.msra.mxu1 %v19866_v44  ;;  %v19906_v34 = vld [vmem:[%s24523_s1 + $0x27a8] sm:$0xff]   ;;  %v19908_v36 = vld [vmem:[%s24523_s1 + $0x2720] sm:$0xff]   ;;  %v19911_v39 = vld [vmem:[%s24523_s1 + $0x2758] sm:$0xff]  }
 0x4ca   :  { %v17989_v43 = vpop.f32.mrf.mxu1  ;;  %18281 = vmatprep.subr.bf16.mxu1 %v19869_v47  ;;  %v19910_v38 = vld [vmem:[%s24523_s1 + $0x27a0] sm:$0xff]   ;;  %v19916_v44 = vld [vmem:[%s24523_s1 + $0x2710] sm:$0xff]   ;;  %v19919_v47 = vld [vmem:[%s24523_s1 + $0x2748] sm:$0xff]  }
 0x4cb   :  { %18260 = vmatpush3.bf16.msra.mxu0 %v19868_v46  ;;  %v19915_v43 = vld [vmem:[%s24523_s1 + $0x2750] sm:$0xff]  }
 0x4cc   :  { %18261 = vmatprep.subr.bf16.mxu0 %v19871_v49  ;;  %v19918_v46 = vld [vmem:[%s24523_s1 + $0x2790] sm:$0xff]   ;;  %v19921_v49 = vld [vmem:[%s24523_s1 + $0x27c8] sm:$0xff]  }
 0x4cd   :  { %18282 = vmatpush3.bf16.msra.mxu1 %v19870_v48  ;;  %v19920_v48 = vld [vmem:[%s24523_s1 + $0x2708] sm:$0xff]  }
 0x4ce   :  { %18283 = vmatprep.subr.bf16.mxu1 %v19873_v51  ;;  %v19923_v51 = vld [vmem:[%s24523_s1 + $0x2740] sm:$0xff]  }
 0x4cf   :  { %18262 = vmatpush3.bf16.msra.mxu0 %v19872_v50  ;;  %v19922_v50 = vld [vmem:[%s24523_s1 + $0x2788] sm:$0xff]  }
 0x4d0   :  { %18263 = vmatprep.subr.bf16.mxu0 %v19875_v53  ;;  %v19925_v53 = vld [vmem:[%s24523_s1 + $0x27c0] sm:$0xff]  }
 0x4d1   :  { %18284 = vmatpush3.bf16.msra.mxu1 %v19874_v52  ;;  %v19924_v52 = vld [vmem:[%s24523_s1 + $0x2700] sm:$0xff]  }
 0x4d2   :  { %18285 = vmatprep.subr.bf16.mxu1 %v19877_v55 }
 0x4d3   :  { %18264 = vmatpush3.bf16.msra.mxu0 %v19876_v54  ;;  %v99_v54 = vld [vmem:[%s24524_s0 + $0x270] sm:$0xff] }
 0x4d4   :  { %18265 = vmatprep.subr.bf16.mxu0 %v19879_v57  ;;  %v15210_v57 = vcombine.high %v99_v54, %v99_v54 }
 0x4d5   :  { %18286 = vmatpush3.bf16.msra.mxu1 %v19878_v56  ;;  %v15209_v56 = vcombine.low %v99_v54, %v99_v54 }
 0x4d6   :  { %18287 = vmatprep.subr.bf16.mxu1 %v19881_v59  ;;  %v19929_v59 = vld [vmem:[%s24523_s1 + $0x2878] sm:$0xff]  }
 0x4d7   :  { %18266 = vmatpush3.bf16.msra.mxu0 %v19880_v58  ;;  %v19928_v58 = vld [vmem:[%s24523_s1 + $0x2780] sm:$0xff]  }
 0x4d8   :  { %18267 = vmatprep.subr.bf16.mxu0 %v19883_v61 }
 0x4d9   :  { %18288 = vmatpush3.bf16.msra.mxu1 %v19882_v60  ;;  %v100_v60 = vld [vmem:[%s24524_s0 + $0x278] sm:$0xff] }
 0x4da   :  { %18289 = vmatprep.subr.bf16.mxu1 %v19885_v63  ;;  %v15211_v63 = vcombine.low %v100_v60, %v100_v60 }
 0x4db   :  { %18268 = vmatpush3.bf16.msra.mxu0 %v19884_v62 }
 0x4dc   :  { %18269 = vmatprep.subr.bf16.mxu0 %v19887_v1  ;;  %v19932_v1 = vld [vmem:[%s24523_s1 + $0x2838] sm:$0xff]  }
 0x4dd   :  { %18290 = vmatpush3.bf16.msra.mxu1 %v19886_v0  ;;  %v15212_v0 = vcombine.high %v100_v60, %v100_v60 }
 0x4de   :  { %18291 = vmatprep.subr.bf16.mxu1 %v19889_v3  ;;  %v19933_v3 = vld [vmem:[%s24523_s1 + $0x28f8] sm:$0xff]  }
 0x4df   :  { %18270 = vmatpush3.bf16.msra.mxu0 %v19888_v2 }
 0x4e0   :  { %18299 = vmatprep.subr.bf16.mxu0 %v19893_v9  ;;  %v19935_v9 = vld [vmem:[%s24523_s1 + $0x2870] sm:$0xff]  }
 0x4e1   :  { %18292 = vmatpush3.bf16.msra.mxu1 %v19892_v8 }
 0x4e2   :  { %v18007_v5 = vpop.f32.mrf.mxu0  ;;  %14594 = vmatmul.mubr.bf16.vlgmr.msra.gmra.mxu0 %v15205_v6  ;;  %18321 = vmatprep.subr.bf16.mxu1 %v19897_v19  ;;  %v19941_v19 = vld [vmem:[%s24523_s1 + $0x28e8] sm:$0xff]  }
 0x4e3   :  { %18300 = vmatpush3.bf16.msra.mxu0 %v19896_v16  ;;  %14673 = vmatprep.mubr.bf16.mxu0 %v15210_v57  ;;  %v19938_v16 = vld [vmem:[%s24523_s1 + $0x28b0] sm:$0xff]   ;;  %v19970_v57 = vld [vmem:[%s24523_s1 + $0x29b8] sm:$0xff]  }
 0x4e4   :  { %v18008_v10 = vpop.f32.mrf.mxu0  ;;  %v18029_v13 = vpop.f32.mrf.mxu1  ;;  %14634 = vmatmul.mubr.bf16.vlgmr.msra.gmra.mxu1 %v15207_v14  ;;  %18301 = vmatprep.subr.bf16.mxu0 %v19899_v24  ;;  %v19937_v14 = vld [vmem:[%s24523_s1 + $0x28f0] sm:$0xff]   ;;  %v19946_v24 = vld [vmem:[%s24523_s1 + $0x28a0] sm:$0xff]  }
 0x4e5   :  { %v18009_v12 = vadd.f32 %v18008_v10, %v18007_v5  ;;  %18322 = vmatpush3.bf16.msra.mxu1 %v19898_v21  ;;  %14713 = vmatprep.mubr.bf16.mxu1 %v15212_v0  ;;  %v19943_v21 = vld [vmem:[%s24523_s1 + $0x2860] sm:$0xff]   ;;  %v19973_v0 = vld [vmem:[%s24523_s1 + $0x29f0] sm:$0xff]  }
 0x4e6   :  { %v18010_v17 = vpop.f32.mrf.mxu0  ;;  %v18030_v20 = vpop.f32.mrf.mxu1  ;;  %18323 = vmatprep.subr.bf16.mxu1 %v19901_v28  ;;  %v19950_v28 = vld [vmem:[%s24523_s1 + $0x2898] sm:$0xff]  }
 0x4e7   :  { %v14116_v18 = vadd.f32 %v18009_v12, %v24043_v40  ;;  %v18031_v22 = vadd.f32 %v18030_v20, %v18029_v13  ;;  %18302 = vmatpush3.bf16.msra.mxu0 %v19900_v27  ;;  %v19912_v40 = vld [vmem:[%s24523_s1 + $0x2718] sm:$0xff]   ;;  %v19936_v13 = vld [vmem:[%s24523_s1 + $0x2830] sm:$0xff]   ;;  %v19939_v17 = vld [vmem:[%s24523_s1 + $0x2868] sm:$0xff]  }
 0x4e8   :  { %v18011_v23 = vpop.f32.mrf.mxu0  ;;  %v18032_v25 = vpop.f32.mrf.mxu1  ;;  %18303 = vmatprep.subr.bf16.mxu0 %v19903_v31  ;;  %v19942_v20 = vld [vmem:[%s24523_s1 + $0x28a8] sm:$0xff]   ;;  %v19949_v27 = vld [vmem:[%s24523_s1 + $0x28d8] sm:$0xff]   ;;  %v19953_v31 = vld [vmem:[%s24523_s1 + $0x28d0] sm:$0xff]  }
 0x4e9   :  { %v24148_v26 = vadd.f32 %v18031_v22, %v14116_v18  ;;  %18324 = vmatpush3.bf16.msra.mxu1 %v19902_v30  ;;  %v19940_v18 = vld [vmem:[%s24523_s1 + $0x2828] sm:$0xff]   ;;  %v19944_v22 = vld [vmem:[%s24523_s1 + $0x2820] sm:$0xff]   ;;  %v19947_v25 = vld [vmem:[%s24523_s1 + $0x2858] sm:$0xff]  }
 0x4ea   :  { %v18033_v29 = vpop.f32.mrf.mxu1  ;;  %18325 = vmatprep.subr.bf16.mxu1 %v19905_v33  ;;  %v19945_v23 = vld [vmem:[%s24523_s1 + $0x28e0] sm:$0xff]   ;;  %v19952_v30 = vld [vmem:[%s24523_s1 + $0x2810] sm:$0xff]   ;;  %v19955_v33 = vld [vmem:[%s24523_s1 + $0x2848] sm:$0xff]  }
 0x4eb   :  { %18304 = vmatpush3.bf16.msra.mxu0 %v19904_v32  ;;  %v19951_v29 = vld [vmem:[%s24523_s1 + $0x2850] sm:$0xff]  }
 0x4ec   :  { %18305 = vmatprep.subr.bf16.mxu0 %v19907_v35  ;;  %v19954_v32 = vld [vmem:[%s24523_s1 + $0x2890] sm:$0xff]   ;;  %v19957_v35 = vld [vmem:[%s24523_s1 + $0x28c8] sm:$0xff]  }
 0x4ed   :  { %18326 = vmatpush3.bf16.msra.mxu1 %v19906_v34  ;;  %v19956_v34 = vld [vmem:[%s24523_s1 + $0x2808] sm:$0xff]  }
 0x4ee   :  { %18327 = vmatprep.subr.bf16.mxu1 %v19909_v37  ;;  %v19959_v37 = vld [vmem:[%s24523_s1 + $0x2840] sm:$0xff]  }
 0x4ef   :  { %18306 = vmatpush3.bf16.msra.mxu0 %v19908_v36  ;;  %v19958_v36 = vld [vmem:[%s24523_s1 + $0x2888] sm:$0xff]  }
 0x4f0   :  { %18307 = vmatprep.subr.bf16.mxu0 %v19911_v39  ;;  %v19961_v39 = vld [vmem:[%s24523_s1 + $0x28c0] sm:$0xff]  }
 0x4f1   :  { %18328 = vmatpush3.bf16.msra.mxu1 %v19910_v38  ;;  %v19960_v38 = vld [vmem:[%s24523_s1 + $0x2800] sm:$0xff]  }
 0x4f2   :  { %18329 = vmatprep.subr.bf16.mxu1 %v19913_v41 }
 0x4f3   :  { %18308 = vmatpush3.bf16.msra.mxu0 %v19912_v40  ;;  %v101_v40 = vld [vmem:[%s24524_s0 + $0x280] sm:$0xff] }
 0x4f4   :  { %18309 = vmatprep.subr.bf16.mxu0 %v19915_v43  ;;  %v15214_v43 = vcombine.high %v101_v40, %v101_v40 }
 0x4f5   :  { %18330 = vmatpush3.bf16.msra.mxu1 %v19914_v42  ;;  %v15213_v42 = vcombine.low %v101_v40, %v101_v40 }
 0x4f6   :  { %18331 = vmatprep.subr.bf16.mxu1 %v19917_v45  ;;  %v19965_v45 = vld [vmem:[%s24523_s1 + $0x2978] sm:$0xff]  }
 0x4f7   :  { %18310 = vmatpush3.bf16.msra.mxu0 %v19916_v44  ;;  %v19964_v44 = vld [vmem:[%s24523_s1 + $0x2880] sm:$0xff]  }
 0x4f8   :  { %18311 = vmatprep.subr.bf16.mxu0 %v19919_v47 }
 0x4f9   :  { %18332 = vmatpush3.bf16.msra.mxu1 %v19918_v46  ;;  %v102_v46 = vld [vmem:[%s24524_s0 + $0x288] sm:$0xff] }
 0x4fa   :  { %18333 = vmatprep.subr.bf16.mxu1 %v19921_v49  ;;  %v15215_v49 = vcombine.low %v102_v46, %v102_v46 }
 0x4fb   :  { %18312 = vmatpush3.bf16.msra.mxu0 %v19920_v48 }
 0x4fc   :  { %18313 = vmatprep.subr.bf16.mxu0 %v19923_v51  ;;  %v19968_v51 = vld [vmem:[%s24523_s1 + $0x2938] sm:$0xff]  }
 0x4fd   :  { %18334 = vmatpush3.bf16.msra.mxu1 %v19922_v50  ;;  %v15216_v50 = vcombine.high %v102_v46, %v102_v46 }
 0x4fe   :  { %18335 = vmatprep.subr.bf16.mxu1 %v19925_v53  ;;  %v19969_v53 = vld [vmem:[%s24523_s1 + $0x29f8] sm:$0xff]  }
 0x4ff   :  { %18314 = vmatpush3.bf16.msra.mxu0 %v19924_v52 }
 0x500   :  { %18343 = vmatprep.subr.bf16.mxu0 %v19929_v59  ;;  %v19971_v59 = vld [vmem:[%s24523_s1 + $0x2970] sm:$0xff]  }
 0x501   :  { %18336 = vmatpush3.bf16.msra.mxu1 %v19928_v58 }
 0x502   :  { %v18051_v55 = vpop.f32.mrf.mxu0  ;;  %14674 = vmatmul.mubr.bf16.vlgmr.msra.gmra.mxu0 %v15209_v56  ;;  %18365 = vmatprep.subr.bf16.mxu1 %v19933_v3  ;;  %v19975_v3 = vld [vmem:[%s24523_s1 + $0x2968] sm:$0xff]  }
 0x503   :  { %18344 = vmatpush3.bf16.msra.mxu0 %v19932_v1  ;;  %14753 = vmatprep.mubr.bf16.mxu0 %v15214_v43 }
 0x504   :  { %v18052_v61 = vpop.f32.mrf.mxu0  ;;  %v18073_v62 = vpop.f32.mrf.mxu1  ;;  %14714 = vmatmul.mubr.bf16.vlgmr.msra.gmra.mxu1 %v15211_v63  ;;  %18345 = vmatprep.subr.bf16.mxu0 %v19935_v9  ;;  %v19972_v63 = vld [vmem:[%s24523_s1 + $0x2930] sm:$0xff]   ;;  %v19981_v9 = vld [vmem:[%s24523_s1 + $0x29e0] sm:$0xff]  }
 0x505   :  { %v18053_v2 = vadd.f32 %v18052_v61, %v18051_v55  ;;  %18366 = vmatpush3.bf16.msra.mxu1 %v19934_v7  ;;  %14793 = vmatprep.mubr.bf16.mxu1 %v15216_v50  ;;  %v19979_v7 = vld [vmem:[%s24523_s1 + $0x2960] sm:$0xff]   ;;  %v20007_v50 = vld [vmem:[%s24523_s1 + $0x2a18] sm:$0xff]  }
 0x506   :  { %v18054_v4 = vpop.f32.mrf.mxu0  ;;  %v18074_v5 = vpop.f32.mrf.mxu1  ;;  %18367 = vmatprep.subr.bf16.mxu1 %v19937_v14  ;;  %v19986_v14 = vld [vmem:[%s24523_s1 + $0x2998] sm:$0xff]  }
 0x507   :  { %v14196_v6 = vadd.f32 %v18053_v2, %v24148_v26  ;;  %v18075_v8 = vadd.f32 %v18074_v5, %v18073_v62  ;;  %18346 = vmatpush3.bf16.msra.mxu0 %v19936_v13  ;;  %v19948_v26 = vld [vmem:[%s24523_s1 + $0x2818] sm:$0xff]   ;;  %v19974_v2 = vld [vmem:[%s24523_s1 + $0x29b0] sm:$0xff]   ;;  %v19976_v4 = vld [vmem:[%s24523_s1 + $0x2928] sm:$0xff]  }
 0x508   :  { %v18055_v10 = vpop.f32.mrf.mxu0  ;;  %v18076_v11 = vpop.f32.mrf.mxu1  ;;  %18347 = vmatprep.subr.bf16.mxu0 %v19939_v17  ;;  %v19977_v5 = vld [vmem:[%s24523_s1 + $0x29e8] sm:$0xff]   ;;  %v19985_v13 = vld [vmem:[%s24523_s1 + $0x29d8] sm:$0xff]   ;;  %v19989_v17 = vld [vmem:[%s24523_s1 + $0x29d0] sm:$0xff]  }
 0x509   :  { %v24253_v12 = vadd.f32 %v18075_v8, %v14196_v6  ;;  %18368 = vmatpush3.bf16.msra.mxu1 %v19938_v16  ;;  %v19978_v6 = vld [vmem:[%s24523_s1 + $0x29a8] sm:$0xff]   ;;  %v19980_v8 = vld [vmem:[%s24523_s1 + $0x2920] sm:$0xff]   ;;  %v19983_v11 = vld [vmem:[%s24523_s1 + $0x2958] sm:$0xff]  }
 0x50a   :  { %v18077_v15 = vpop.f32.mrf.mxu1  ;;  %18369 = vmatprep.subr.bf16.mxu1 %v19941_v19  ;;  %v19982_v10 = vld [vmem:[%s24523_s1 + $0x29a0] sm:$0xff]   ;;  %v19988_v16 = vld [vmem:[%s24523_s1 + $0x2910] sm:$0xff]   ;;  %v19991_v19 = vld [vmem:[%s24523_s1 + $0x2948] sm:$0xff]  }
 0x50b   :  { %18348 = vmatpush3.bf16.msra.mxu0 %v19940_v18  ;;  %v19987_v15 = vld [vmem:[%s24523_s1 + $0x2950] sm:$0xff]  }
 0x50c   :  { %18349 = vmatprep.subr.bf16.mxu0 %v19943_v21  ;;  %v19990_v18 = vld [vmem:[%s24523_s1 + $0x2990] sm:$0xff]   ;;  %v19993_v21 = vld [vmem:[%s24523_s1 + $0x29c8] sm:$0xff]  }
 0x50d   :  { %18370 = vmatpush3.bf16.msra.mxu1 %v19942_v20  ;;  %v19992_v20 = vld [vmem:[%s24523_s1 + $0x2908] sm:$0xff]  }
 0x50e   :  { %18371 = vmatprep.subr.bf16.mxu1 %v19945_v23  ;;  %v19995_v23 = vld [vmem:[%s24523_s1 + $0x2940] sm:$0xff]  }
 0x50f   :  { %18350 = vmatpush3.bf16.msra.mxu0 %v19944_v22  ;;  %v19994_v22 = vld [vmem:[%s24523_s1 + $0x2988] sm:$0xff]  }
 0x510   :  { %18351 = vmatprep.subr.bf16.mxu0 %v19947_v25  ;;  %v19997_v25 = vld [vmem:[%s24523_s1 + $0x29c0] sm:$0xff]  }
 0x511   :  { %18372 = vmatpush3.bf16.msra.mxu1 %v19946_v24  ;;  %v19996_v24 = vld [vmem:[%s24523_s1 + $0x2900] sm:$0xff]  }
 0x512   :  { %18373 = vmatprep.subr.bf16.mxu1 %v19949_v27 }
 0x513   :  { %18352 = vmatpush3.bf16.msra.mxu0 %v19948_v26  ;;  %v103_v26 = vld [vmem:[%s24524_s0 + $0x290] sm:$0xff] }
 0x514   :  { %18353 = vmatprep.subr.bf16.mxu0 %v19951_v29  ;;  %v15218_v29 = vcombine.high %v103_v26, %v103_v26 }
 0x515   :  { %18374 = vmatpush3.bf16.msra.mxu1 %v19950_v28  ;;  %v15217_v28 = vcombine.low %v103_v26, %v103_v26 }
 0x516   :  { %18375 = vmatprep.subr.bf16.mxu1 %v19953_v31  ;;  %v20024_v31 = vmov 0.0  }
 0x517   :  { %18354 = vmatpush3.bf16.msra.mxu0 %v19952_v30  ;;  %v20000_v30 = vld [vmem:[%s24523_s1 + $0x2980] sm:$0xff]  }
 0x518   :  { %18355 = vmatprep.subr.bf16.mxu0 %v19955_v33 }
 0x519   :  { %18376 = vmatpush3.bf16.msra.mxu1 %v19954_v32  ;;  %v104_v32 = vld [vmem:[%s24524_s0 + $0x298] sm:$0xff] }
 0x51a   :  { %18377 = vmatprep.subr.bf16.mxu1 %v19957_v35  ;;  %v15220_v35 = vcombine.high %v104_v32, %v104_v32 }
 0x51b   :  { %18356 = vmatpush3.bf16.msra.mxu0 %v19956_v34  ;;  %v15219_v34 = vcombine.low %v104_v32, %v104_v32 }
 0x51c   :  { %18357 = vmatprep.subr.bf16.mxu0 %v19959_v37 }
 0x51d   :  { %18378 = vmatpush3.bf16.msra.mxu1 %v19958_v36  ;;  %v20003_v36 = vld [vmem:[%s24523_s1 + $0x2a38] sm:$0xff]  }
 0x51e   :  { %18379 = vmatprep.subr.bf16.mxu1 %v19961_v39 }
 0x51f   :  { %18358 = vmatpush3.bf16.msra.mxu0 %v19960_v38 }
 0x520   :  { %18387 = vmatprep.subr.bf16.mxu0 %v19965_v45 }
 0x521   :  { %18380 = vmatpush3.bf16.msra.mxu1 %v19964_v44 }
 0x522   :  { %v18095_v41 = vpop.f32.mrf.mxu0  ;;  %14754 = vmatmul.mubr.bf16.vlgmr.msra.gmra.mxu0 %v15213_v42  ;;  %18409 = vmatprep.subr.bf16.mxu1 %v19969_v53  ;;  %v20004_v42 = vld [vmem:[%s24523_s1 + $0x2a30] sm:$0xff]   ;;  %v20010_v53 = vld [vmem:[%s24523_s1 + $0x2a00] sm:$0xff]  }
 0x523   :  { %18388 = vmatpush3.bf16.msra.mxu0 %v19968_v51  ;;  %14833 = vmatprep.mubr.bf16.mxu0 %v15218_v29  ;;  %v20008_v51 = vld [vmem:[%s24523_s1 + $0x2a10] sm:$0xff]  }
 0x524   :  { %v18096_v47 = vpop.f32.mrf.mxu0  ;;  %v18117_v48 = vpop.f32.mrf.mxu1  ;;  %14794 = vmatmul.mubr.bf16.vlgmr.msra.gmra.mxu1 %v15215_v49  ;;  %18389 = vmatprep.subr.bf16.mxu0 %v19971_v59  ;;  %v20006_v49 = vld [vmem:[%s24523_s1 + $0x2a20] sm:$0xff]  }
 0x525   :  { %v18097_v52 = vadd.f32 %v18096_v47, %v18095_v41  ;;  %18410 = vmatpush3.bf16.msra.mxu1 %v19970_v57  ;;  %14873 = vmatprep.mubr.bf16.mxu1 %v15220_v35  ;;  %v20005_v47 = vld [vmem:[%s24523_s1 + $0x2a28] sm:$0xff]  }
 0x526   :  { %v18098_v54 = vpop.f32.mrf.mxu0  ;;  %v18118_v55 = vpop.f32.mrf.mxu1  ;;  %18411 = vmatprep.subr.bf16.mxu1 %v19973_v0 }
 0x527   :  { %v14276_v56 = vadd.f32 %v18097_v52, %v24253_v12  ;;  %v18119_v58 = vadd.f32 %v18118_v55, %v18117_v48  ;;  %18390 = vmatpush3.bf16.msra.mxu0 %v19972_v63  ;;  %v19984_v12 = vld [vmem:[%s24523_s1 + $0x2918] sm:$0xff]   ;;  %v20009_v52 = vld [vmem:[%s24523_s1 + $0x2a08] sm:$0xff]   ;;  %v20011_v54 = vld [vmem:[%s24524_s0 + $0x2a0] ss:$0 sps:$4 sm:$0xff]  }
 0x528   :  { %v18099_v60 = vpop.f32.mrf.mxu0  ;;  %v18120_v61 = vpop.f32.mrf.mxu1  ;;  %18391 = vmatprep.subr.bf16.mxu0 %v19975_v3 }
 0x529   :  { %v24358_v62 = vadd.f32 %v18119_v58, %v14276_v56  ;;  %18412 = vmatpush3.bf16.msra.mxu1 %v19974_v2 }
 0x52a   :  { %v18121_v1 = vpop.f32.mrf.mxu1  ;;  %18413 = vmatprep.subr.bf16.mxu1 %v19977_v5 }
 0x52b   :  { %18392 = vmatpush3.bf16.msra.mxu0 %v19976_v4 }
 0x52c   :  { %18393 = vmatprep.subr.bf16.mxu0 %v19979_v7 }
 0x52d   :  { %18414 = vmatpush3.bf16.msra.mxu1 %v19978_v6 }
 0x52e   :  { %18415 = vmatprep.subr.bf16.mxu1 %v19981_v9 }
 0x52f   :  { %18394 = vmatpush3.bf16.msra.mxu0 %v19980_v8 }
 0x530   :  { %18395 = vmatprep.subr.bf16.mxu0 %v19983_v11 }
 0x531   :  { %18416 = vmatpush3.bf16.msra.mxu1 %v19982_v10 }
 0x532   :  { %18417 = vmatprep.subr.bf16.mxu1 %v19985_v13 }
 0x533   :  { %18396 = vmatpush3.bf16.msra.mxu0 %v19984_v12 }
 0x534   :  { %18397 = vmatprep.subr.bf16.mxu0 %v19987_v15  ;;  %v20012_v15 = vld [vmem:[%s24526_s3 + $0x38] sm:$0xff]  }
 0x535   :  { %18418 = vmatpush3.bf16.msra.mxu1 %v19986_v14 }
 0x536   :  { %18419 = vmatprep.subr.bf16.mxu1 %v19989_v17  ;;  %v20014_v17 = vld [vmem:[%s24526_s3 + $0x28] sm:$0xff]  }
 0x537   :  { %18398 = vmatpush3.bf16.msra.mxu0 %v19988_v16  ;;  %v20013_v16 = vld [vmem:[%s24526_s3 + $0x30] sm:$0xff]  }
 0x538   :  { %18399 = vmatprep.subr.bf16.mxu0 %v19991_v19  ;;  %v20016_v19 = vld [vmem:[%s24526_s3 + $0x18] sm:$0xff]  }
 0x539   :  { %18420 = vmatpush3.bf16.msra.mxu1 %v19990_v18  ;;  %v20015_v18 = vld [vmem:[%s24526_s3 + $0x20] sm:$0xff]  }
 0x53a   :  { %18421 = vmatprep.subr.bf16.mxu1 %v19993_v21 }
 0x53b   :  { %18400 = vmatpush3.bf16.msra.mxu0 %v19992_v20  ;;  %v20017_v20 = vld [vmem:[%s24526_s3 + $0x10] sm:$0xff]  }
 0x53c   :  { %18401 = vmatprep.subr.bf16.mxu0 %v19995_v23 }
 0x53d   :  { %18422 = vmatpush3.bf16.msra.mxu1 %v19994_v22  ;;  %v20018_v22 = vld [vmem:[%s24526_s3 + $0x8] sm:$0xff]  }
 0x53e   :  { %18423 = vmatprep.subr.bf16.mxu1 %v19997_v25 }
 0x53f   :  { %18402 = vmatpush3.bf16.msra.mxu0 %v19996_v24 }
 0x540   :  { %18449 = vmatprep.subr.bf16.mxu0 %v20024_v31 }
 0x541   :  { %18424 = vmatpush3.bf16.msra.mxu1 %v20000_v30 }
 0x542   :  { %v18139_v27 = vpop.f32.mrf.mxu0  ;;  %14834 = vmatmul.mubr.bf16.vlgmr.msra.gmra.mxu0 %v15217_v28  ;;  %18469 = vmatprep.subr.bf16.mxu1 %v20024_v31 }
 0x543   :  { %18450 = vmatpush3.bf16.msra.mxu0 %v20003_v36  ;;  %18465 = vmatprep.mubr.msk.bf16.mxu0 %vm20025_vm0, %v20024_v31 }
 0x544   :  { %v18140_v33 = vpop.f32.mrf.mxu0  ;;  %v18161_v38 = vpop.f32.mrf.mxu1  ;;  %14874 = vmatmul.mubr.bf16.vlgmr.msra.gmra.mxu1 %v15219_v34  ;;  %18451 = vmatprep.subr.bf16.mxu0 %v20024_v31 }
 0x545   :  { %v18141_v37 = vadd.f32 %v18140_v33, %v18139_v27  ;;  %18485 = vmatprep.mubr.msk.bf16.mxu1 %vm20025_vm0, %v20024_v31  ;;  %18470 = vmatpush3.bf16.msra.mxu1 %v20012_v15  ;;  %v20019_v27 = vld [vmem:[%s24526_s3] sm:$0xff]  }
 0x546   :  { %v18142_v39 = vpop.f32.mrf.mxu0  ;;  %v18162_v41 = vpop.f32.mrf.mxu1  ;;  %18471 = vmatprep.subr.bf16.mxu1 %v20024_v31 }
 0x547   :  { %v14356_v40 = vadd.f32 %v18141_v37, %v24358_v62  ;;  %v18163_v43 = vadd.f32 %v18162_v41, %v18161_v38  ;;  %18452 = vmatpush3.bf16.msra.mxu0 %v20004_v42 }
 0x548   :  { %v18143_v44 = vpop.f32.mrf.mxu0  ;;  %v18164_v45 = vpop.f32.mrf.mxu1  ;;  %18453 = vmatprep.subr.bf16.mxu0 %v20024_v31 }
 0x549   :  { %v14396_v46 = vadd.f32 %v18163_v43, %v14356_v40  ;;  %18472 = vmatpush3.bf16.msra.mxu1 %v20013_v16  ;;  %v16574_v16 = vld [vmem:[%s24527_s4] ss:$0 sm:$0xff] }
 0x54a   :  { %v18165_v48 = vpop.f32.mrf.mxu1  ;;  %18473 = vmatprep.subr.bf16.mxu1 %v20024_v31 }
 0x54b   :  { %18454 = vmatpush3.bf16.msra.mxu0 %v20005_v47 }
 0x54c   :  { %18455 = vmatprep.subr.bf16.mxu0 %v20024_v31 }
 0x54d   :  { %18474 = vmatpush3.bf16.msra.mxu1 %v20014_v17 }
 0x54e   :  { %18475 = vmatprep.subr.bf16.mxu1 %v20024_v31 }
 0x54f   :  { %18456 = vmatpush3.bf16.msra.mxu0 %v20006_v49 }
 0x550   :  { %18457 = vmatprep.subr.bf16.mxu0 %v20024_v31 }
 0x551   :  { %18476 = vmatpush3.bf16.msra.mxu1 %v20015_v18 }
 0x552   :  { %18477 = vmatprep.subr.bf16.mxu1 %v20024_v31 }
 0x553   :  { %18458 = vmatpush3.bf16.msra.mxu0 %v20007_v50 }
 0x554   :  { %18459 = vmatprep.subr.bf16.mxu0 %v20024_v31 }
 0x555   :  { %18478 = vmatpush3.bf16.msra.mxu1 %v20016_v19 }
 0x556   :  { %18479 = vmatprep.subr.bf16.mxu1 %v20024_v31 }
 0x557   :  { %18460 = vmatpush3.bf16.msra.mxu0 %v20008_v51 }
 0x558   :  { %18461 = vmatprep.subr.bf16.mxu0 %v20024_v31 }
 0x559   :  { %18480 = vmatpush3.bf16.msra.mxu1 %v20017_v20 }
 0x55a   :  { %18481 = vmatprep.subr.bf16.mxu1 %v20024_v31 }
 0x55b   :  { %18462 = vmatpush3.bf16.msra.mxu0 %v20009_v52 }
 0x55c   :  { %18463 = vmatprep.subr.bf16.mxu0 %v20024_v31 }
 0x55d   :  { %18482 = vmatpush3.bf16.msra.mxu1 %v20018_v22 }
 0x55e   :  { %18483 = vmatprep.subr.bf16.mxu1 %v20024_v31 }
 0x55f   :  { %18464 = vmatpush3.bf16.msra.mxu0 %v20010_v53 }
 0x561   :  { %18484 = vmatpush3.bf16.msra.mxu1 %v20019_v27 }
 0x562   :  { %v18183_v55 = vpop.f32.mrf.mxu0  ;;  %18466 = vmatmul.mubr.bf16.vlgmr.msra.gmra.mxu0 %v20011_v54 }
 0x564   :  { %v18184_v56 = vpop.f32.mrf.mxu0  ;;  %v18205_v57 = vpop.f32.mrf.mxu1 }
 0x565   :  { %v18185_v58 = vadd.f32 %v18184_v56, %v18183_v55 }
 0x566   :  { %v18186_v59 = vpop.f32.mrf.mxu0  ;;  %v18206_v60 = vpop.f32.mrf.mxu1 }
 0x567   :  { %v14436_v61 = vadd.f32 %v18185_v58, %v14396_v46  ;;  %v18207_v62 = vadd.f32 %v18206_v60, %v18205_v57 }
 0x568   :  { %v18187_v63 = vpop.f32.mrf.mxu0  ;;  %v18208_v0 = vpop.f32.mrf.mxu1 }
 0x569   :  { %v14476_v1 = vadd.f32 %v18207_v62, %v14436_v61 }
 0x56a   :  { %v18209_v2 = vpop.f32.mrf.mxu1 }
 0x582   :  { %v18227_v3 = vpop.f32.mrf.mxu0 }
 0x584   :  { %v18228_v4 = vpop.f32.mrf.mxu0  ;;  %v18249_v5 = vpop.f32.mrf.mxu1 }
 0x585   :  { %v18229_v6 = vadd.f32 %v18228_v4, %v18227_v3 }
 0x586   :  { %v18230_v7 = vpop.f32.mrf.mxu0  ;;  %v18250_v8 = vpop.f32.mrf.mxu1 }
 0x587   :  { %v14516_v9 = vadd.f32 %v18229_v6, %v14476_v1  ;;  %v18251_v10 = vadd.f32 %v18250_v8, %v18249_v5 }
 0x588   :  { %v18231_v11 = vpop.f32.mrf.mxu0  ;;  %v18252_v12 = vpop.f32.mrf.mxu1 }
 0x589   :  { %v14556_v13 = vadd.f32 %v18251_v10, %v14516_v9 }
 0x58a   :  { %v18253_v14 = vpop.f32.mrf.mxu1 }
 0x58b   :  { %v15034_v14 = vlaneseq }
 0x58d   :  { %v15035_v15 = vand.u32 127, %v15034_v14 }
 0x58f   :  { %vm15036_vm1 = vcmp.lt.s32.totalorder %v15035_v15, 10 }
 0x5a2   :  { %v18271_v21 = vpop.f32.mrf.mxu0 }
 0x5a4   :  { %v18272_v23 = vpop.f32.mrf.mxu0  ;;  %v18293_v25 = vpop.f32.mrf.mxu1 }
 0x5a5   :  { %v18273_v24 = vadd.f32 %v18272_v23, %v18271_v21 }
 0x5a6   :  { %v18274_v26 = vpop.f32.mrf.mxu0  ;;  %v18294_v29 = vpop.f32.mrf.mxu1 }
 0x5a7   :  { %v14596_v28 = vadd.f32 %v18273_v24, %v14556_v13  ;;  %v18295_v30 = vadd.f32 %v18294_v29, %v18293_v25 }
 0x5a8   :  { %v18275_v32 = vpop.f32.mrf.mxu0  ;;  %v18296_v33 = vpop.f32.mrf.mxu1 }
 0x5a9   :  { %v14636_v34 = vadd.f32 %v18295_v30, %v14596_v28 }
 0x5aa   :  { %v18297_v35 = vpop.f32.mrf.mxu1 }
 0x5c2   :  { %v18315_v36 = vpop.f32.mrf.mxu0 }
 0x5c4   :  { %v18316_v37 = vpop.f32.mrf.mxu0  ;;  %v18337_v38 = vpop.f32.mrf.mxu1 }
 0x5c5   :  { %v18317_v39 = vadd.f32 %v18316_v37, %v18315_v36 }
 0x5c6   :  { %v18318_v40 = vpop.f32.mrf.mxu0  ;;  %v18338_v41 = vpop.f32.mrf.mxu1 }
 0x5c7   :  { %v14676_v31 = vadd.f32 %v18317_v39, %v14636_v34  ;;  %v18339_v42 = vadd.f32 %v18338_v41, %v18337_v38 }
 0x5c8   :  { %v18319_v43 = vpop.f32.mrf.mxu0  ;;  %v18340_v44 = vpop.f32.mrf.mxu1 }
 0x5c9   :  { %v14716_v45 = vadd.f32 %v18339_v42, %v14676_v31 }
 0x5ca   :  { %v18341_v46 = vpop.f32.mrf.mxu1 }
 0x5e2   :  { %v18359_v47 = vpop.f32.mrf.mxu0 }
 0x5e4   :  { %v18360_v48 = vpop.f32.mrf.mxu0  ;;  %v18381_v49 = vpop.f32.mrf.mxu1 }
 0x5e5   :  { %v18361_v63 = vadd.f32 %v18360_v48, %v18359_v47 }
 0x5e6   :  { %v18362_v50 = vpop.f32.mrf.mxu0  ;;  %v18382_v51 = vpop.f32.mrf.mxu1 }
 0x5e7   :  { %v14756_v0 = vadd.f32 %v18361_v63, %v14716_v45  ;;  %v18383_v1 = vadd.f32 %v18382_v51, %v18381_v49 }
 0x5e8   :  { %v18363_v52 = vpop.f32.mrf.mxu0  ;;  %v18384_v53 = vpop.f32.mrf.mxu1 }
 0x5e9   :  { %v14796_v3 = vadd.f32 %v18383_v1, %v14756_v0 }
 0x5ea   :  { %v18385_v54 = vpop.f32.mrf.mxu1 }
 0x602   :  { %v18403_v55 = vpop.f32.mrf.mxu0 }
 0x604   :  { %v18404_v56 = vpop.f32.mrf.mxu0  ;;  %v18425_v57 = vpop.f32.mrf.mxu1 }
 0x605   :  { %v18405_v2 = vadd.f32 %v18404_v56, %v18403_v55 }
 0x606   :  { %v18406_v58 = vpop.f32.mrf.mxu0  ;;  %v18426_v59 = vpop.f32.mrf.mxu1 }
 0x607   :  { %v14836_v4 = vadd.f32 %v18405_v2, %v14796_v3  ;;  %v18427_v5 = vadd.f32 %v18426_v59, %v18425_v57 }
 0x608   :  { %v18407_v60 = vpop.f32.mrf.mxu0  ;;  %v18428_v61 = vpop.f32.mrf.mxu1 }
 0x609   :  { %v14876_v6 = vadd.f32 %v18427_v5, %v14836_v4 }
 0x60a   :  { %v18429_v62 = vpop.f32.mrf.mxu1 }
 0x622   :  { %v14915_v7 = vpop.f32.mrf.mxu0 }
 0x623   :  { %v14916_v8 = vadd.f32 %v14915_v7, %v14876_v6 }
 0x624   :  { %v18467_v9 = vpop.f32.mrf.mxu0 }
 0x625   :  { %v14921_v10 = vmax.f32 %v14916_v8, 0.0 }
 0x626   :  { %v14918_v11 = vpop.f32.mrf.mxu0 }
 0x627   :  { %v14922_v12 = vpack.c.bf16 %v14921_v10, %v14921_v10 }
 0x628   :  { %v18468_v13 = vpop.f32.mrf.mxu0 }
 0x629   :  { %18486 = vmatmul.mubr.bf16.vlgmr.msra.gmra.mxu1 %v14922_v12 }
 0x6e9   :  { %v15028_v17 = vpop.f32.mrf.mxu1 }
 0x6ea   :  { %v15029_v18 = vadd.f32 %v16574_v16, %v15028_v17 }
 0x6eb   :  { %v18487_v19 = vpop.f32.mrf.mxu1 }
 0x6ec   :  { %v15037_v20 = vsel %vm15036_vm1, %v15029_v18, -1e+30 }
 0x6ed   :  { %15038 = vmax.xlane.f32.xlu0 %v15037_v20  ;;  %v15031_v21 = vpop.f32.mrf.mxu1 }
 0x6ef   :  { %v18488_v22 = vpop.f32.mrf.mxu1 }
 0x776   :  { %v15039_v23 = vpop.xlane.xlu0 %15038 }
 0x777   :  { %v15040_v24 = vsub.f32 %v15037_v20, %v15039_v23 }
 0x779   :  { %v15041_v25 = vmul.f32 1.442695, %v15040_v24 }
 0x77b   :  { %20020 = vpow2.f32 %v15041_v25 }
 0x788   :  { %v20021_v26 = vpop.eup %20020 }
 0x789   :  { %15043 = vadd.xlane.f32.xlu0 %v20021_v26 }
 0x812   :  { %v15044_v27 = vpop.xlane.xlu0 %15043 }
 0x813   :  { %20022 = vrcp.f32 %v15044_v27 }
 0x820   :  { %v20023_v28 = vpop.eup %20022 }
 0x821   :  { %v15046_v29 = vmul.f32 %v20023_v28, %v20021_v26 }
 0x823   :  { %15047 = vst [vmem:[%s24528_s5] sm:$0xff] %v15046_v29 }

</bundles_post_ra>
